<compile_context>
chip_gen: v5e
topology: v5e:2x2
jax: 0.10.0
libtpu: 0.0.40
codegen_flags: <defaults>
</compile_context>

<pallas_src>
import functools

import jax
import jax.numpy as jnp
from jax.experimental import pallas as pl
from jax.experimental.pallas import tpu as pltpu


# ----------------------------------------------------------------------------
# Small helpers
# ----------------------------------------------------------------------------
def _round_up(x, m):
    return ((x + m - 1) // m) * m


def _vmem_spec():
    return pl.BlockSpec(memory_space=pltpu.MemorySpace.VMEM)


# ----------------------------------------------------------------------------
# Pallas kernels
# ----------------------------------------------------------------------------
def _bilstm_recurrence(x_ref, wih_ref, whh_f_ref, whh_b_ref, b_ref,
                       gproj_ref, y_ref, T, Bp, Hp):
    """Shared body: fused forward+backward LSTM over the whole sequence.

    x_ref    : (T*Bp, I)    time-major input slab (f32)
    wih_ref  : (I, 8*Hp)    [W_ih_fwd | W_ih_bwd] (bf16)
    whh_*_ref: (Hp, 4*Hp)   recurrent weights per direction (bf16)
    b_ref    : (1, 8*Hp)    b_ih + b_hh for both directions (f32)
    gproj_ref: (T*Bp, 8*Hp) f32 scratch for hoisted input projection
    y_ref    : (T*Bp, 2*Hp) f32 output [h_fwd | h_bwd] per timestep, or None
    Gate order along each 4*Hp block is PyTorch's: [i, f, g, o].
    Returns (h_fwd_final, h_bwd_final), each (Bp, Hp) f32.
    """
    # (1) Hoisted input projection for BOTH directions as one MXU matmul.
    x_bf = x_ref[...].astype(jnp.bfloat16)
    gproj_ref[...] = (
        jnp.dot(x_bf, wih_ref[...], preferred_element_type=jnp.float32)
        + b_ref[...]
    )

    whh_f = whh_f_ref[...]
    whh_b = whh_b_ref[...]

    def cell(gates, c):
        i_g = jax.nn.sigmoid(gates[:, 0 * Hp:1 * Hp])
        f_g = jax.nn.sigmoid(gates[:, 1 * Hp:2 * Hp])
        g_g = jnp.tanh(gates[:, 2 * Hp:3 * Hp])
        o_g = jax.nn.sigmoid(gates[:, 3 * Hp:4 * Hp])
        c_new = f_g * c + i_g * g_g
        return o_g * jnp.tanh(c_new), c_new

    h_f = jnp.zeros((Bp, Hp), jnp.float32)
    c_f = jnp.zeros((Bp, Hp), jnp.float32)
    h_b = jnp.zeros((Bp, Hp), jnp.float32)
    c_b = jnp.zeros((Bp, Hp), jnp.float32)

    # (2) Recurrent part: only the tiny (Bp,Hp)@(Hp,4Hp) matmuls stay in the
    #     loop.  Fully unrolled (static T) -> static aligned slices + full
    #     cross-timestep scheduling visibility.  Backward direction walks the
    #     same scratch in reverse (in-kernel time reversal).
    for t in range(T):
        tb = T - 1 - t
        g_f = gproj_ref[t * Bp:(t + 1) * Bp, 0:4 * Hp] + jnp.dot(
            h_f.astype(jnp.bfloat16), whh_f, preferred_element_type=jnp.float32)
        g_b = gproj_ref[tb * Bp:(tb + 1) * Bp, 4 * Hp:8 * Hp] + jnp.dot(
            h_b.astype(jnp.bfloat16), whh_b, preferred_element_type=jnp.float32)
        h_f, c_f = cell(g_f, c_f)
        h_b, c_b = cell(g_b, c_b)
        if y_ref is not None:
            y_ref[t * Bp:(t + 1) * Bp, 0:Hp] = h_f
            y_ref[tb * Bp:(tb + 1) * Bp, Hp:2 * Hp] = h_b
    return h_f, h_b


def bilstm_layer_kernel(x_ref, wih_ref, whh_f_ref, whh_b_ref, b_ref,
                        y_ref, gproj_ref, *, T, Bp, Hp):
    """Intermediate bidirectional LSTM layer: emits per-timestep outputs only."""
    _bilstm_recurrence(x_ref, wih_ref, whh_f_ref, whh_b_ref, b_ref,
                       gproj_ref, y_ref, T, Bp, Hp)


def bilstm_last_fc_kernel(x_ref, wih_ref, whh_f_ref, whh_b_ref, b_ref,
                          fcw_ref, fcb_ref, out_ref, gproj_ref, *, T, Bp, Hp):
    """Last bidirectional LSTM layer fused with the final Linear layer.

    Only the final hidden states are needed (torch: cat(hidden[-2], hidden[-1]))
    so no per-timestep y is stored; the FC runs in the kernel epilogue.
    """
    h_f, h_b = _bilstm_recurrence(x_ref, wih_ref, whh_f_ref, whh_b_ref, b_ref,
                                  gproj_ref, None, T, Bp, Hp)
    h_cat = jnp.concatenate([h_f, h_b], axis=1).astype(jnp.bfloat16)  # (Bp, 2Hp)
    out_ref[...] = (
        jnp.dot(h_cat, fcw_ref[...], preferred_element_type=jnp.float32)
        + fcb_ref[...]
    )


# ----------------------------------------------------------------------------
# Wrappers around pallas_call
# ----------------------------------------------------------------------------
_COMPILER_PARAMS = pltpu.CompilerParams(vmem_limit_bytes=32 * 1024 * 1024)


def run_bilstm_layer(x2d, wih, whh_f, whh_b, b, *, T, Bp, Hp):
    kernel = functools.partial(bilstm_layer_kernel, T=T, Bp=Bp, Hp=Hp)
    return pl.pallas_call(
        kernel,
        out_shape=jax.ShapeDtypeStruct((T * Bp, 2 * Hp), jnp.float32),
        in_specs=[_vmem_spec()] * 5,
        out_specs=_vmem_spec(),
        scratch_shapes=[pltpu.VMEM((T * Bp, 8 * Hp), jnp.float32)],
        compiler_params=_COMPILER_PARAMS,
    )(x2d, wih, whh_f, whh_b, b)


def run_bilstm_last_fc(x2d, wih, whh_f, whh_b, b, fc_w, fc_b, *, T, Bp, Hp):
    Op = fc_w.shape[1]
    kernel = functools.partial(bilstm_last_fc_kernel, T=T, Bp=Bp, Hp=Hp)
    return pl.pallas_call(
        kernel,
        out_shape=jax.ShapeDtypeStruct((Bp, Op), jnp.float32),
        in_specs=[_vmem_spec()] * 7,
        out_specs=_vmem_spec(),
        scratch_shapes=[pltpu.VMEM((T * Bp, 8 * Hp), jnp.float32)],
        compiler_params=_COMPILER_PARAMS,
    )(x2d, wih, whh_f, whh_b, b, fc_w, fc_b)


# ----------------------------------------------------------------------------
# Parameter construction (PyTorch-style init, then zero-padded to the
# lane/sublane-aligned kernel layout; padding preserves exact math).
# ----------------------------------------------------------------------------
def _pad_gate_cols(w, H, Hp):
    """(in, 4H) -> (in, 4Hp): gate k's real columns live at [k*Hp, k*Hp+H)."""
    out = jnp.zeros((w.shape[0], 4 * Hp), w.dtype)
    for k in range(4):
        out = out.at[:, k * Hp:k * Hp + H].set(w[:, k * H:(k + 1) * H])
    return out


def _pad_dir_rows(w, H, Hp):
    """(2H, N) -> (2Hp, N): fwd rows at [0,H), bwd rows at [Hp, Hp+H)."""
    out = jnp.zeros((2 * Hp, w.shape[1]), w.dtype)
    out = out.at[0:H, :].set(w[0:H, :])
    out = out.at[Hp:Hp + H, :].set(w[H:2 * H, :])
    return out


def _pad_hh(w, H, Hp):
    """(H, 4H) -> (Hp, 4Hp)."""
    out = jnp.zeros((Hp, w.shape[1]), w.dtype).at[:H, :].set(w)
    return _pad_gate_cols(out, H, Hp)


def make_params(key, vocab_size, embedding_dim, hidden_dim, output_dim, n_layers):
    H = hidden_dim
    Hp = _round_up(H, 128)            # lane-pad hidden -> every gate is vreg aligned
    Op = _round_up(output_dim, 128)   # lane-dense FC output
    bound = 1.0 / (H ** 0.5)

    k_emb, key = jax.random.split(key)
    params = {
        "embedding": jax.random.normal(
            k_emb, (vocab_size, embedding_dim), jnp.float32),
    }

    lstm = []
    for layer in range(n_layers):
        in_dim = embedding_dim if layer == 0 else 2 * H
        wihs, whhs, biases = [], [], []
        for _d in range(2):  # forward, backward
            key, k1, k2, k3, k4 = jax.random.split(key, 5)
            w_ih = jax.random.uniform(k1, (in_dim, 4 * H), jnp.float32, -bound, bound)
            w_hh = jax.random.uniform(k2, (H, 4 * H), jnp.float32, -bound, bound)
            b_ih = jax.random.uniform(k3, (1, 4 * H), jnp.float32, -bound, bound)
            b_hh = jax.random.uniform(k4, (1, 4 * H), jnp.float32, -bound, bound)
            if layer == 0:
                w_ih_p = _pad_gate_cols(w_ih, H, Hp)                         # (E, 4Hp)
            else:
                w_ih_p = _pad_gate_cols(_pad_dir_rows(w_ih, H, Hp), H, Hp)   # (2Hp, 4Hp)
            wihs.append(w_ih_p)
            whhs.append(_pad_hh(w_hh, H, Hp))
            biases.append(_pad_gate_cols(b_ih + b_hh, H, Hp))
        lstm.append({
            "wih": jnp.concatenate(wihs, axis=1).astype(jnp.bfloat16),   # (I, 8Hp)
            "whh_f": whhs[0].astype(jnp.bfloat16),                       # (Hp, 4Hp)
            "whh_b": whhs[1].astype(jnp.bfloat16),
            "b": jnp.concatenate(biases, axis=1),                        # (1, 8Hp) f32
        })
    params["lstm"] = lstm

    bound_fc = 1.0 / ((2 * H) ** 0.5)
    key, k1, k2 = jax.random.split(key, 3)
    fc_w = jax.random.uniform(k1, (2 * H, output_dim), jnp.float32, -bound_fc, bound_fc)
    fc_b = jax.random.uniform(k2, (1, output_dim), jnp.float32, -bound_fc, bound_fc)
    fc_w_p = jnp.zeros((2 * Hp, Op), jnp.float32).at[:, :output_dim].set(
        _pad_dir_rows(fc_w, H, Hp))
    fc_b_p = jnp.zeros((1, Op), jnp.float32).at[:, :output_dim].set(fc_b)
    params["fc_w"] = fc_w_p.astype(jnp.bfloat16)
    params["fc_b"] = fc_b_p
    return params


# ----------------------------------------------------------------------------
# BIRNN forward
# ----------------------------------------------------------------------------
@functools.partial(jax.jit, static_argnums=(2,))
def birnn_forward(x_tokens, params, output_dim):
    T, B = x_tokens.shape
    Hp = params["lstm"][0]["whh_f"].shape[0]
    Bp = max(_round_up(B, 8), 8)     # sublane-pad batch

    # Embedding lookup (plain JAX gather); dropout = identity at inference.
    # TODO(synk): training-mode dropout
    emb = jnp.take(params["embedding"], x_tokens, axis=0)        # (T, B, E)
    E = emb.shape[-1]
    x = jnp.zeros((T, Bp, E), jnp.float32).at[:, :B, :].set(emb)
    x = x.reshape(T * Bp, E)                                     # time-major 2D slab

    layers = params["lstm"]
    for p in layers[:-1]:
        x = run_bilstm_layer(x, p["wih"], p["whh_f"], p["whh_b"], p["b"],
                             T=T, Bp=Bp, Hp=Hp)                  # (T*Bp, 2Hp)

    p = layers[-1]
    out = run_bilstm_last_fc(x, p["wih"], p["whh_f"], p["whh_b"], p["b"],
                             params["fc_w"], params["fc_b"],
                             T=T, Bp=Bp, Hp=Hp)                  # (Bp, Op)
    return out[:B, :output_dim]


# ----------------------------------------------------------------------------
if __name__ == "__main__":
    VOCAB_SIZE = 50
    EMBEDDING_DIM = 32
    HIDDEN_DIM = 32
    OUTPUT_DIM = 2
    N_LAYERS = 2
    SEQ_LEN = 8
    BATCH = 2

    key = jax.random.PRNGKey(0)
    k_tok, k_par = jax.random.split(key)

    x_tokens = jax.random.randint(k_tok, (SEQ_LEN, BATCH), 0, VOCAB_SIZE, jnp.int32)
    params = make_params(
        k_par, VOCAB_SIZE, EMBEDDING_DIM, HIDDEN_DIM, OUTPUT_DIM, N_LAYERS
    )

    out = birnn_forward(x_tokens, params, OUTPUT_DIM)
    out = jax.block_until_ready(out)

    assert out.shape == (BATCH, OUTPUT_DIM), out.shape
    assert bool(jnp.all(jnp.isfinite(out)))
    print("KERNEL_OK")
</pallas_src>

<mosaic_0001>
module attributes {stable_mosaic.version = 11 : i64} {
  func.func @bilstm_last_fc_kernel(%arg0: memref<64x256xf32, #tpu.memory_space<vmem>>, %arg1: memref<256x1024xbf16, #tpu.memory_space<vmem>>, %arg2: memref<128x512xbf16, #tpu.memory_space<vmem>>, %arg3: memref<128x512xbf16, #tpu.memory_space<vmem>>, %arg4: memref<1x1024xf32, #tpu.memory_space<vmem>>, %arg5: memref<256x128xbf16, #tpu.memory_space<vmem>>, %arg6: memref<1x128xf32, #tpu.memory_space<vmem>>, %arg7: memref<8x128xf32, #tpu.memory_space<vmem>>, %arg8: memref<64x1024xf32, #tpu.memory_space<vmem>>) attributes {dimension_semantics = [], scalar_prefetch = 0 : i64, scratch_operands = 1 : i64, tpu.core_type = #tpu.core_type<tc>} {
    %c0 = arith.constant 0 : index
    %c0_0 = arith.constant 0 : index
    %0 = vector.load %arg0[%c0, %c0_0] : memref<64x256xf32, #tpu.memory_space<vmem>>, vector<64x256xf32>
    %1 = arith.truncf %0 : vector<64x256xf32> to vector<64x256xbf16>
    %c0_1 = arith.constant 0 : index
    %c0_2 = arith.constant 0 : index
    %2 = vector.load %arg1[%c0_1, %c0_2] : memref<256x1024xbf16, #tpu.memory_space<vmem>>, vector<256x1024xbf16>
    %cst = arith.constant dense<0.000000e+00> : vector<64x1024xf32>
    %3 = tpu.matmul %1, %2, %cst {dimension_numbers = #tpu.dot_dimension_numbers<[1], [0], [0], [1], [0, 0, 1, 1], [], []>} : vector<64x256xbf16>, vector<256x1024xbf16>, vector<64x1024xf32> -> vector<64x1024xf32>
    %c0_3 = arith.constant 0 : index
    %c0_4 = arith.constant 0 : index
    %4 = vector.load %arg4[%c0_3, %c0_4] : memref<1x1024xf32, #tpu.memory_space<vmem>>, vector<1x1024xf32>
    %5 = vector.broadcast %4 : vector<1x1024xf32> to vector<64x1024xf32>
    %6 = arith.addf %3, %5 : vector<64x1024xf32>
    %c0_5 = arith.constant 0 : index
    %c0_6 = arith.constant 0 : index
    %7 = vector.load %arg8[%c0_5, %c0_6] : memref<64x1024xf32, #tpu.memory_space<vmem>>, vector<64x1024xf32>
    tpu.vector_store %arg8[%c0_5, %c0_6], %6 {strides = array<i32>} : memref<64x1024xf32, #tpu.memory_space<vmem>>, vector<64x1024xf32>,
    %c0_7 = arith.constant 0 : index
    %c0_8 = arith.constant 0 : index
    %8 = vector.load %arg2[%c0_7, %c0_8] : memref<128x512xbf16, #tpu.memory_space<vmem>>, vector<128x512xbf16>
    %c0_9 = arith.constant 0 : index
    %c0_10 = arith.constant 0 : index
    %9 = vector.load %arg3[%c0_9, %c0_10] : memref<128x512xbf16, #tpu.memory_space<vmem>>, vector<128x512xbf16>
    %cst_11 = arith.constant 0.000000e+00 : f32
    %10 = vector.broadcast %cst_11 : f32 to vector<8x128xf32>
    %cst_12 = arith.constant 0.000000e+00 : f32
    %11 = vector.broadcast %cst_12 : f32 to vector<8x128xf32>
    %cst_13 = arith.constant 0.000000e+00 : f32
    %12 = vector.broadcast %cst_13 : f32 to vector<8x128xf32>
    %cst_14 = arith.constant 0.000000e+00 : f32
    %13 = vector.broadcast %cst_14 : f32 to vector<8x128xf32>
    %c0_15 = arith.constant 0 : index
    %c0_16 = arith.constant 0 : index
    %14 = vector.load %arg8[%c0_15, %c0_16] : memref<64x1024xf32, #tpu.memory_space<vmem>>, vector<8x512xf32>
    %15 = arith.truncf %10 : vector<8x128xf32> to vector<8x128xbf16>
    %cst_17 = arith.constant dense<0.000000e+00> : vector<8x512xf32>
    %16 = tpu.matmul %15, %8, %cst_17 {dimension_numbers = #tpu.dot_dimension_numbers<[1], [0], [0], [1], [0, 0, 1, 1], [], []>} : vector<8x128xbf16>, vector<128x512xbf16>, vector<8x512xf32> -> vector<8x512xf32>
    %17 = arith.addf %14, %16 : vector<8x512xf32>
    %c56 = arith.constant 56 : index
    %c512 = arith.constant 512 : index
    %18 = vector.load %arg8[%c56, %c512] : memref<64x1024xf32, #tpu.memory_space<vmem>>, vector<8x512xf32>
    %19 = arith.truncf %12 : vector<8x128xf32> to vector<8x128xbf16>
    %cst_18 = arith.constant dense<0.000000e+00> : vector<8x512xf32>
    %20 = tpu.matmul %19, %9, %cst_18 {dimension_numbers = #tpu.dot_dimension_numbers<[1], [0], [0], [1], [0, 0, 1, 1], [], []>} : vector<8x128xbf16>, vector<128x512xbf16>, vector<8x512xf32> -> vector<8x512xf32>
    %21 = arith.addf %18, %20 : vector<8x512xf32>
    %22 = vector.extract_strided_slice %17 {offsets = [0, 0], sizes = [8, 128], strides = [1, 1]} : vector<8x512xf32> to vector<8x128xf32>
    %23 = arith.negf %22 : vector<8x128xf32>
    %24 = math.exp %23 : vector<8x128xf32>
    %cst_19 = arith.constant 1.000000e+00 : f32
    %25 = vector.broadcast %cst_19 : f32 to vector<8x128xf32>
    %26 = arith.addf %25, %24 : vector<8x128xf32>
    %27 = arith.divf %25, %26 : vector<8x128xf32>
    %28 = vector.extract_strided_slice %17 {offsets = [0, 128], sizes = [8, 128], strides = [1, 1]} : vector<8x512xf32> to vector<8x128xf32>
    %29 = arith.negf %28 : vector<8x128xf32>
    %30 = math.exp %29 : vector<8x128xf32>
    %cst_20 = arith.constant 1.000000e+00 : f32
    %31 = vector.broadcast %cst_20 : f32 to vector<8x128xf32>
    %32 = arith.addf %31, %30 : vector<8x128xf32>
    %33 = arith.divf %31, %32 : vector<8x128xf32>
    %34 = vector.extract_strided_slice %17 {offsets = [0, 256], sizes = [8, 128], strides = [1, 1]} : vector<8x512xf32> to vector<8x128xf32>
    %35 = math.tanh %34 : vector<8x128xf32>
    %36 = vector.extract_strided_slice %17 {offsets = [0, 384], sizes = [8, 128], strides = [1, 1]} : vector<8x512xf32> to vector<8x128xf32>
    %37 = arith.negf %36 : vector<8x128xf32>
    %38 = math.exp %37 : vector<8x128xf32>
    %cst_21 = arith.constant 1.000000e+00 : f32
    %39 = vector.broadcast %cst_21 : f32 to vector<8x128xf32>
    %40 = arith.addf %39, %38 : vector<8x128xf32>
    %41 = arith.divf %39, %40 : vector<8x128xf32>
    %42 = arith.mulf %33, %11 : vector<8x128xf32>
    %43 = arith.mulf %27, %35 : vector<8x128xf32>
    %44 = arith.addf %42, %43 : vector<8x128xf32>
    %45 = math.tanh %44 : vector<8x128xf32>
    %46 = arith.mulf %41, %45 : vector<8x128xf32>
    %47 = vector.extract_strided_slice %21 {offsets = [0, 0], sizes = [8, 128], strides = [1, 1]} : vector<8x512xf32> to vector<8x128xf32>
    %48 = arith.negf %47 : vector<8x128xf32>
    %49 = math.exp %48 : vector<8x128xf32>
    %cst_22 = arith.constant 1.000000e+00 : f32
    %50 = vector.broadcast %cst_22 : f32 to vector<8x128xf32>
    %51 = arith.addf %50, %49 : vector<8x128xf32>
    %52 = arith.divf %50, %51 : vector<8x128xf32>
    %53 = vector.extract_strided_slice %21 {offsets = [0, 128], sizes = [8, 128], strides = [1, 1]} : vector<8x512xf32> to vector<8x128xf32>
    %54 = arith.negf %53 : vector<8x128xf32>
    %55 = math.exp %54 : vector<8x128xf32>
    %cst_23 = arith.constant 1.000000e+00 : f32
    %56 = vector.broadcast %cst_23 : f32 to vector<8x128xf32>
    %57 = arith.addf %56, %55 : vector<8x128xf32>
    %58 = arith.divf %56, %57 : vector<8x128xf32>
    %59 = vector.extract_strided_slice %21 {offsets = [0, 256], sizes = [8, 128], strides = [1, 1]} : vector<8x512xf32> to vector<8x128xf32>
    %60 = math.tanh %59 : vector<8x128xf32>
    %61 = vector.extract_strided_slice %21 {offsets = [0, 384], sizes = [8, 128], strides = [1, 1]} : vector<8x512xf32> to vector<8x128xf32>
    %62 = arith.negf %61 : vector<8x128xf32>
    %63 = math.exp %62 : vector<8x128xf32>
    %cst_24 = arith.constant 1.000000e+00 : f32
    %64 = vector.broadcast %cst_24 : f32 to vector<8x128xf32>
    %65 = arith.addf %64, %63 : vector<8x128xf32>
    %66 = arith.divf %64, %65 : vector<8x128xf32>
    %67 = arith.mulf %58, %13 : vector<8x128xf32>
    %68 = arith.mulf %52, %60 : vector<8x128xf32>
    %69 = arith.addf %67, %68 : vector<8x128xf32>
    %70 = math.tanh %69 : vector<8x128xf32>
    %71 = arith.mulf %66, %70 : vector<8x128xf32>
    %c8 = arith.constant 8 : index
    %c0_25 = arith.constant 0 : index
    %72 = vector.load %arg8[%c8, %c0_25] : memref<64x1024xf32, #tpu.memory_space<vmem>>, vector<8x512xf32>
    %73 = arith.truncf %46 : vector<8x128xf32> to vector<8x128xbf16>
    %cst_26 = arith.constant dense<0.000000e+00> : vector<8x512xf32>
    %74 = tpu.matmul %73, %8, %cst_26 {dimension_numbers = #tpu.dot_dimension_numbers<[1], [0], [0], [1], [0, 0, 1, 1], [], []>} : vector<8x128xbf16>, vector<128x512xbf16>, vector<8x512xf32> -> vector<8x512xf32>
    %75 = arith.addf %72, %74 : vector<8x512xf32>
    %c48 = arith.constant 48 : index
    %c512_27 = arith.constant 512 : index
    %76 = vector.load %arg8[%c48, %c512_27] : memref<64x1024xf32, #tpu.memory_space<vmem>>, vector<8x512xf32>
    %77 = arith.truncf %71 : vector<8x128xf32> to vector<8x128xbf16>
    %cst_28 = arith.constant dense<0.000000e+00> : vector<8x512xf32>
    %78 = tpu.matmul %77, %9, %cst_28 {dimension_numbers = #tpu.dot_dimension_numbers<[1], [0], [0], [1], [0, 0, 1, 1], [], []>} : vector<8x128xbf16>, vector<128x512xbf16>, vector<8x512xf32> -> vector<8x512xf32>
    %79 = arith.addf %76, %78 : vector<8x512xf32>
    %80 = vector.extract_strided_slice %75 {offsets = [0, 0], sizes = [8, 128], strides = [1, 1]} : vector<8x512xf32> to vector<8x128xf32>
    %81 = arith.negf %80 : vector<8x128xf32>
    %82 = math.exp %81 : vector<8x128xf32>
    %cst_29 = arith.constant 1.000000e+00 : f32
    %83 = vector.broadcast %cst_29 : f32 to vector<8x128xf32>
    %84 = arith.addf %83, %82 : vector<8x128xf32>
    %85 = arith.divf %83, %84 : vector<8x128xf32>
    %86 = vector.extract_strided_slice %75 {offsets = [0, 128], sizes = [8, 128], strides = [1, 1]} : vector<8x512xf32> to vector<8x128xf32>
    %87 = arith.negf %86 : vector<8x128xf32>
    %88 = math.exp %87 : vector<8x128xf32>
    %cst_30 = arith.constant 1.000000e+00 : f32
    %89 = vector.broadcast %cst_30 : f32 to vector<8x128xf32>
    %90 = arith.addf %89, %88 : vector<8x128xf32>
    %91 = arith.divf %89, %90 : vector<8x128xf32>
    %92 = vector.extract_strided_slice %75 {offsets = [0, 256], sizes = [8, 128], strides = [1, 1]} : vector<8x512xf32> to vector<8x128xf32>
    %93 = math.tanh %92 : vector<8x128xf32>
    %94 = vector.extract_strided_slice %75 {offsets = [0, 384], sizes = [8, 128], strides = [1, 1]} : vector<8x512xf32> to vector<8x128xf32>
    %95 = arith.negf %94 : vector<8x128xf32>
    %96 = math.exp %95 : vector<8x128xf32>
    %cst_31 = arith.constant 1.000000e+00 : f32
    %97 = vector.broadcast %cst_31 : f32 to vector<8x128xf32>
    %98 = arith.addf %97, %96 : vector<8x128xf32>
    %99 = arith.divf %97, %98 : vector<8x128xf32>
    %100 = arith.mulf %91, %44 : vector<8x128xf32>
    %101 = arith.mulf %85, %93 : vector<8x128xf32>
    %102 = arith.addf %100, %101 : vector<8x128xf32>
    %103 = math.tanh %102 : vector<8x128xf32>
    %104 = arith.mulf %99, %103 : vector<8x128xf32>
    %105 = vector.extract_strided_slice %79 {offsets = [0, 0], sizes = [8, 128], strides = [1, 1]} : vector<8x512xf32> to vector<8x128xf32>
    %106 = arith.negf %105 : vector<8x128xf32>
    %107 = math.exp %106 : vector<8x128xf32>
    %cst_32 = arith.constant 1.000000e+00 : f32
    %108 = vector.broadcast %cst_32 : f32 to vector<8x128xf32>
    %109 = arith.addf %108, %107 : vector<8x128xf32>
    %110 = arith.divf %108, %109 : vector<8x128xf32>
    %111 = vector.extract_strided_slice %79 {offsets = [0, 128], sizes = [8, 128], strides = [1, 1]} : vector<8x512xf32> to vector<8x128xf32>
    %112 = arith.negf %111 : vector<8x128xf32>
    %113 = math.exp %112 : vector<8x128xf32>
    %cst_33 = arith.constant 1.000000e+00 : f32
    %114 = vector.broadcast %cst_33 : f32 to vector<8x128xf32>
    %115 = arith.addf %114, %113 : vector<8x128xf32>
    %116 = arith.divf %114, %115 : vector<8x128xf32>
    %117 = vector.extract_strided_slice %79 {offsets = [0, 256], sizes = [8, 128], strides = [1, 1]} : vector<8x512xf32> to vector<8x128xf32>
    %118 = math.tanh %117 : vector<8x128xf32>
    %119 = vector.extract_strided_slice %79 {offsets = [0, 384], sizes = [8, 128], strides = [1, 1]} : vector<8x512xf32> to vector<8x128xf32>
    %120 = arith.negf %119 : vector<8x128xf32>
    %121 = math.exp %120 : vector<8x128xf32>
    %cst_34 = arith.constant 1.000000e+00 : f32
    %122 = vector.broadcast %cst_34 : f32 to vector<8x128xf32>
    %123 = arith.addf %122, %121 : vector<8x128xf32>
    %124 = arith.divf %122, %123 : vector<8x128xf32>
    %125 = arith.mulf %116, %69 : vector<8x128xf32>
    %126 = arith.mulf %110, %118 : vector<8x128xf32>
    %127 = arith.addf %125, %126 : vector<8x128xf32>
    %128 = math.tanh %127 : vector<8x128xf32>
    %129 = arith.mulf %124, %128 : vector<8x128xf32>
    %c16 = arith.constant 16 : index
    %c0_35 = arith.constant 0 : index
    %130 = vector.load %arg8[%c16, %c0_35] : memref<64x1024xf32, #tpu.memory_space<vmem>>, vector<8x512xf32>
    %131 = arith.truncf %104 : vector<8x128xf32> to vector<8x128xbf16>
    %cst_36 = arith.constant dense<0.000000e+00> : vector<8x512xf32>
    %132 = tpu.matmul %131, %8, %cst_36 {dimension_numbers = #tpu.dot_dimension_numbers<[1], [0], [0], [1], [0, 0, 1, 1], [], []>} : vector<8x128xbf16>, vector<128x512xbf16>, vector<8x512xf32> -> vector<8x512xf32>
    %133 = arith.addf %130, %132 : vector<8x512xf32>
    %c40 = arith.constant 40 : index
    %c512_37 = arith.constant 512 : index
    %134 = vector.load %arg8[%c40, %c512_37] : memref<64x1024xf32, #tpu.memory_space<vmem>>, vector<8x512xf32>
    %135 = arith.truncf %129 : vector<8x128xf32> to vector<8x128xbf16>
    %cst_38 = arith.constant dense<0.000000e+00> : vector<8x512xf32>
    %136 = tpu.matmul %135, %9, %cst_38 {dimension_numbers = #tpu.dot_dimension_numbers<[1], [0], [0], [1], [0, 0, 1, 1], [], []>} : vector<8x128xbf16>, vector<128x512xbf16>, vector<8x512xf32> -> vector<8x512xf32>
    %137 = arith.addf %134, %136 : vector<8x512xf32>
    %138 = vector.extract_strided_slice %133 {offsets = [0, 0], sizes = [8, 128], strides = [1, 1]} : vector<8x512xf32> to vector<8x128xf32>
    %139 = arith.negf %138 : vector<8x128xf32>
    %140 = math.exp %139 : vector<8x128xf32>
    %cst_39 = arith.constant 1.000000e+00 : f32
    %141 = vector.broadcast %cst_39 : f32 to vector<8x128xf32>
    %142 = arith.addf %141, %140 : vector<8x128xf32>
    %143 = arith.divf %141, %142 : vector<8x128xf32>
    %144 = vector.extract_strided_slice %133 {offsets = [0, 128], sizes = [8, 128], strides = [1, 1]} : vector<8x512xf32> to vector<8x128xf32>
    %145 = arith.negf %144 : vector<8x128xf32>
    %146 = math.exp %145 : vector<8x128xf32>
    %cst_40 = arith.constant 1.000000e+00 : f32
    %147 = vector.broadcast %cst_40 : f32 to vector<8x128xf32>
    %148 = arith.addf %147, %146 : vector<8x128xf32>
    %149 = arith.divf %147, %148 : vector<8x128xf32>
    %150 = vector.extract_strided_slice %133 {offsets = [0, 256], sizes = [8, 128], strides = [1, 1]} : vector<8x512xf32> to vector<8x128xf32>
    %151 = math.tanh %150 : vector<8x128xf32>
    %152 = vector.extract_strided_slice %133 {offsets = [0, 384], sizes = [8, 128], strides = [1, 1]} : vector<8x512xf32> to vector<8x128xf32>
    %153 = arith.negf %152 : vector<8x128xf32>
    %154 = math.exp %153 : vector<8x128xf32>
    %cst_41 = arith.constant 1.000000e+00 : f32
    %155 = vector.broadcast %cst_41 : f32 to vector<8x128xf32>
    %156 = arith.addf %155, %154 : vector<8x128xf32>
    %157 = arith.divf %155, %156 : vector<8x128xf32>
    %158 = arith.mulf %149, %102 : vector<8x128xf32>
    %159 = arith.mulf %143, %151 : vector<8x128xf32>
    %160 = arith.addf %158, %159 : vector<8x128xf32>
    %161 = math.tanh %160 : vector<8x128xf32>
    %162 = arith.mulf %157, %161 : vector<8x128xf32>
    %163 = vector.extract_strided_slice %137 {offsets = [0, 0], sizes = [8, 128], strides = [1, 1]} : vector<8x512xf32> to vector<8x128xf32>
    %164 = arith.negf %163 : vector<8x128xf32>
    %165 = math.exp %164 : vector<8x128xf32>
    %cst_42 = arith.constant 1.000000e+00 : f32
    %166 = vector.broadcast %cst_42 : f32 to vector<8x128xf32>
    %167 = arith.addf %166, %165 : vector<8x128xf32>
    %168 = arith.divf %166, %167 : vector<8x128xf32>
    %169 = vector.extract_strided_slice %137 {offsets = [0, 128], sizes = [8, 128], strides = [1, 1]} : vector<8x512xf32> to vector<8x128xf32>
    %170 = arith.negf %169 : vector<8x128xf32>
    %171 = math.exp %170 : vector<8x128xf32>
    %cst_43 = arith.constant 1.000000e+00 : f32
    %172 = vector.broadcast %cst_43 : f32 to vector<8x128xf32>
    %173 = arith.addf %172, %171 : vector<8x128xf32>
    %174 = arith.divf %172, %173 : vector<8x128xf32>
    %175 = vector.extract_strided_slice %137 {offsets = [0, 256], sizes = [8, 128], strides = [1, 1]} : vector<8x512xf32> to vector<8x128xf32>
    %176 = math.tanh %175 : vector<8x128xf32>
    %177 = vector.extract_strided_slice %137 {offsets = [0, 384], sizes = [8, 128], strides = [1, 1]} : vector<8x512xf32> to vector<8x128xf32>
    %178 = arith.negf %177 : vector<8x128xf32>
    %179 = math.exp %178 : vector<8x128xf32>
    %cst_44 = arith.constant 1.000000e+00 : f32
    %180 = vector.broadcast %cst_44 : f32 to vector<8x128xf32>
    %181 = arith.addf %180, %179 : vector<8x128xf32>
    %182 = arith.divf %180, %181 : vector<8x128xf32>
    %183 = arith.mulf %174, %127 : vector<8x128xf32>
    %184 = arith.mulf %168, %176 : vector<8x128xf32>
    %185 = arith.addf %183, %184 : vector<8x128xf32>
    %186 = math.tanh %185 : vector<8x128xf32>
    %187 = arith.mulf %182, %186 : vector<8x128xf32>
    %c24 = arith.constant 24 : index
    %c0_45 = arith.constant 0 : index
    %188 = vector.load %arg8[%c24, %c0_45] : memref<64x1024xf32, #tpu.memory_space<vmem>>, vector<8x512xf32>
    %189 = arith.truncf %162 : vector<8x128xf32> to vector<8x128xbf16>
    %cst_46 = arith.constant dense<0.000000e+00> : vector<8x512xf32>
    %190 = tpu.matmul %189, %8, %cst_46 {dimension_numbers = #tpu.dot_dimension_numbers<[1], [0], [0], [1], [0, 0, 1, 1], [], []>} : vector<8x128xbf16>, vector<128x512xbf16>, vector<8x512xf32> -> vector<8x512xf32>
    %191 = arith.addf %188, %190 : vector<8x512xf32>
    %c32 = arith.constant 32 : index
    %c512_47 = arith.constant 512 : index
    %192 = vector.load %arg8[%c32, %c512_47] : memref<64x1024xf32, #tpu.memory_space<vmem>>, vector<8x512xf32>
    %193 = arith.truncf %187 : vector<8x128xf32> to vector<8x128xbf16>
    %cst_48 = arith.constant dense<0.000000e+00> : vector<8x512xf32>
    %194 = tpu.matmul %193, %9, %cst_48 {dimension_numbers = #tpu.dot_dimension_numbers<[1], [0], [0], [1], [0, 0, 1, 1], [], []>} : vector<8x128xbf16>, vector<128x512xbf16>, vector<8x512xf32> -> vector<8x512xf32>
    %195 = arith.addf %192, %194 : vector<8x512xf32>
    %196 = vector.extract_strided_slice %191 {offsets = [0, 0], sizes = [8, 128], strides = [1, 1]} : vector<8x512xf32> to vector<8x128xf32>
    %197 = arith.negf %196 : vector<8x128xf32>
    %198 = math.exp %197 : vector<8x128xf32>
    %cst_49 = arith.constant 1.000000e+00 : f32
    %199 = vector.broadcast %cst_49 : f32 to vector<8x128xf32>
    %200 = arith.addf %199, %198 : vector<8x128xf32>
    %201 = arith.divf %199, %200 : vector<8x128xf32>
    %202 = vector.extract_strided_slice %191 {offsets = [0, 128], sizes = [8, 128], strides = [1, 1]} : vector<8x512xf32> to vector<8x128xf32>
    %203 = arith.negf %202 : vector<8x128xf32>
    %204 = math.exp %203 : vector<8x128xf32>
    %cst_50 = arith.constant 1.000000e+00 : f32
    %205 = vector.broadcast %cst_50 : f32 to vector<8x128xf32>
    %206 = arith.addf %205, %204 : vector<8x128xf32>
    %207 = arith.divf %205, %206 : vector<8x128xf32>
    %208 = vector.extract_strided_slice %191 {offsets = [0, 256], sizes = [8, 128], strides = [1, 1]} : vector<8x512xf32> to vector<8x128xf32>
    %209 = math.tanh %208 : vector<8x128xf32>
    %210 = vector.extract_strided_slice %191 {offsets = [0, 384], sizes = [8, 128], strides = [1, 1]} : vector<8x512xf32> to vector<8x128xf32>
    %211 = arith.negf %210 : vector<8x128xf32>
    %212 = math.exp %211 : vector<8x128xf32>
    %cst_51 = arith.constant 1.000000e+00 : f32
    %213 = vector.broadcast %cst_51 : f32 to vector<8x128xf32>
    %214 = arith.addf %213, %212 : vector<8x128xf32>
    %215 = arith.divf %213, %214 : vector<8x128xf32>
    %216 = arith.mulf %207, %160 : vector<8x128xf32>
    %217 = arith.mulf %201, %209 : vector<8x128xf32>
    %218 = arith.addf %216, %217 : vector<8x128xf32>
    %219 = math.tanh %218 : vector<8x128xf32>
    %220 = arith.mulf %215, %219 : vector<8x128xf32>
    %221 = vector.extract_strided_slice %195 {offsets = [0, 0], sizes = [8, 128], strides = [1, 1]} : vector<8x512xf32> to vector<8x128xf32>
    %222 = arith.negf %221 : vector<8x128xf32>
    %223 = math.exp %222 : vector<8x128xf32>
    %cst_52 = arith.constant 1.000000e+00 : f32
    %224 = vector.broadcast %cst_52 : f32 to vector<8x128xf32>
    %225 = arith.addf %224, %223 : vector<8x128xf32>
    %226 = arith.divf %224, %225 : vector<8x128xf32>
    %227 = vector.extract_strided_slice %195 {offsets = [0, 128], sizes = [8, 128], strides = [1, 1]} : vector<8x512xf32> to vector<8x128xf32>
    %228 = arith.negf %227 : vector<8x128xf32>
    %229 = math.exp %228 : vector<8x128xf32>
    %cst_53 = arith.constant 1.000000e+00 : f32
    %230 = vector.broadcast %cst_53 : f32 to vector<8x128xf32>
    %231 = arith.addf %230, %229 : vector<8x128xf32>
    %232 = arith.divf %230, %231 : vector<8x128xf32>
    %233 = vector.extract_strided_slice %195 {offsets = [0, 256], sizes = [8, 128], strides = [1, 1]} : vector<8x512xf32> to vector<8x128xf32>
    %234 = math.tanh %233 : vector<8x128xf32>
    %235 = vector.extract_strided_slice %195 {offsets = [0, 384], sizes = [8, 128], strides = [1, 1]} : vector<8x512xf32> to vector<8x128xf32>
    %236 = arith.negf %235 : vector<8x128xf32>
    %237 = math.exp %236 : vector<8x128xf32>
    %cst_54 = arith.constant 1.000000e+00 : f32
    %238 = vector.broadcast %cst_54 : f32 to vector<8x128xf32>
    %239 = arith.addf %238, %237 : vector<8x128xf32>
    %240 = arith.divf %238, %239 : vector<8x128xf32>
    %241 = arith.mulf %232, %185 : vector<8x128xf32>
    %242 = arith.mulf %226, %234 : vector<8x128xf32>
    %243 = arith.addf %241, %242 : vector<8x128xf32>
    %244 = math.tanh %243 : vector<8x128xf32>
    %245 = arith.mulf %240, %244 : vector<8x128xf32>
    %c32_55 = arith.constant 32 : index
    %c0_56 = arith.constant 0 : index
    %246 = vector.load %arg8[%c32_55, %c0_56] : memref<64x1024xf32, #tpu.memory_space<vmem>>, vector<8x512xf32>
    %247 = arith.truncf %220 : vector<8x128xf32> to vector<8x128xbf16>
    %cst_57 = arith.constant dense<0.000000e+00> : vector<8x512xf32>
    %248 = tpu.matmul %247, %8, %cst_57 {dimension_numbers = #tpu.dot_dimension_numbers<[1], [0], [0], [1], [0, 0, 1, 1], [], []>} : vector<8x128xbf16>, vector<128x512xbf16>, vector<8x512xf32> -> vector<8x512xf32>
    %249 = arith.addf %246, %248 : vector<8x512xf32>
    %c24_58 = arith.constant 24 : index
    %c512_59 = arith.constant 512 : index
    %250 = vector.load %arg8[%c24_58, %c512_59] : memref<64x1024xf32, #tpu.memory_space<vmem>>, vector<8x512xf32>
    %251 = arith.truncf %245 : vector<8x128xf32> to vector<8x128xbf16>
    %cst_60 = arith.constant dense<0.000000e+00> : vector<8x512xf32>
    %252 = tpu.matmul %251, %9, %cst_60 {dimension_numbers = #tpu.dot_dimension_numbers<[1], [0], [0], [1], [0, 0, 1, 1], [], []>} : vector<8x128xbf16>, vector<128x512xbf16>, vector<8x512xf32> -> vector<8x512xf32>
    %253 = arith.addf %250, %252 : vector<8x512xf32>
    %254 = vector.extract_strided_slice %249 {offsets = [0, 0], sizes = [8, 128], strides = [1, 1]} : vector<8x512xf32> to vector<8x128xf32>
    %255 = arith.negf %254 : vector<8x128xf32>
    %256 = math.exp %255 : vector<8x128xf32>
    %cst_61 = arith.constant 1.000000e+00 : f32
    %257 = vector.broadcast %cst_61 : f32 to vector<8x128xf32>
    %258 = arith.addf %257, %256 : vector<8x128xf32>
    %259 = arith.divf %257, %258 : vector<8x128xf32>
    %260 = vector.extract_strided_slice %249 {offsets = [0, 128], sizes = [8, 128], strides = [1, 1]} : vector<8x512xf32> to vector<8x128xf32>
    %261 = arith.negf %260 : vector<8x128xf32>
    %262 = math.exp %261 : vector<8x128xf32>
    %cst_62 = arith.constant 1.000000e+00 : f32
    %263 = vector.broadcast %cst_62 : f32 to vector<8x128xf32>
    %264 = arith.addf %263, %262 : vector<8x128xf32>
    %265 = arith.divf %263, %264 : vector<8x128xf32>
    %266 = vector.extract_strided_slice %249 {offsets = [0, 256], sizes = [8, 128], strides = [1, 1]} : vector<8x512xf32> to vector<8x128xf32>
    %267 = math.tanh %266 : vector<8x128xf32>
    %268 = vector.extract_strided_slice %249 {offsets = [0, 384], sizes = [8, 128], strides = [1, 1]} : vector<8x512xf32> to vector<8x128xf32>
    %269 = arith.negf %268 : vector<8x128xf32>
    %270 = math.exp %269 : vector<8x128xf32>
    %cst_63 = arith.constant 1.000000e+00 : f32
    %271 = vector.broadcast %cst_63 : f32 to vector<8x128xf32>
    %272 = arith.addf %271, %270 : vector<8x128xf32>
    %273 = arith.divf %271, %272 : vector<8x128xf32>
    %274 = arith.mulf %265, %218 : vector<8x128xf32>
    %275 = arith.mulf %259, %267 : vector<8x128xf32>
    %276 = arith.addf %274, %275 : vector<8x128xf32>
    %277 = math.tanh %276 : vector<8x128xf32>
    %278 = arith.mulf %273, %277 : vector<8x128xf32>
    %279 = vector.extract_strided_slice %253 {offsets = [0, 0], sizes = [8, 128], strides = [1, 1]} : vector<8x512xf32> to vector<8x128xf32>
    %280 = arith.negf %279 : vector<8x128xf32>
    %281 = math.exp %280 : vector<8x128xf32>
    %cst_64 = arith.constant 1.000000e+00 : f32
    %282 = vector.broadcast %cst_64 : f32 to vector<8x128xf32>
    %283 = arith.addf %282, %281 : vector<8x128xf32>
    %284 = arith.divf %282, %283 : vector<8x128xf32>
    %285 = vector.extract_strided_slice %253 {offsets = [0, 128], sizes = [8, 128], strides = [1, 1]} : vector<8x512xf32> to vector<8x128xf32>
    %286 = arith.negf %285 : vector<8x128xf32>
    %287 = math.exp %286 : vector<8x128xf32>
    %cst_65 = arith.constant 1.000000e+00 : f32
    %288 = vector.broadcast %cst_65 : f32 to vector<8x128xf32>
    %289 = arith.addf %288, %287 : vector<8x128xf32>
    %290 = arith.divf %288, %289 : vector<8x128xf32>
    %291 = vector.extract_strided_slice %253 {offsets = [0, 256], sizes = [8, 128], strides = [1, 1]} : vector<8x512xf32> to vector<8x128xf32>
    %292 = math.tanh %291 : vector<8x128xf32>
    %293 = vector.extract_strided_slice %253 {offsets = [0, 384], sizes = [8, 128], strides = [1, 1]} : vector<8x512xf32> to vector<8x128xf32>
    %294 = arith.negf %293 : vector<8x128xf32>
    %295 = math.exp %294 : vector<8x128xf32>
    %cst_66 = arith.constant 1.000000e+00 : f32
    %296 = vector.broadcast %cst_66 : f32 to vector<8x128xf32>
    %297 = arith.addf %296, %295 : vector<8x128xf32>
    %298 = arith.divf %296, %297 : vector<8x128xf32>
    %299 = arith.mulf %290, %243 : vector<8x128xf32>
    %300 = arith.mulf %284, %292 : vector<8x128xf32>
    %301 = arith.addf %299, %300 : vector<8x128xf32>
    %302 = math.tanh %301 : vector<8x128xf32>
    %303 = arith.mulf %298, %302 : vector<8x128xf32>
    %c40_67 = arith.constant 40 : index
    %c0_68 = arith.constant 0 : index
    %304 = vector.load %arg8[%c40_67, %c0_68] : memref<64x1024xf32, #tpu.memory_space<vmem>>, vector<8x512xf32>
    %305 = arith.truncf %278 : vector<8x128xf32> to vector<8x128xbf16>
    %cst_69 = arith.constant dense<0.000000e+00> : vector<8x512xf32>
    %306 = tpu.matmul %305, %8, %cst_69 {dimension_numbers = #tpu.dot_dimension_numbers<[1], [0], [0], [1], [0, 0, 1, 1], [], []>} : vector<8x128xbf16>, vector<128x512xbf16>, vector<8x512xf32> -> vector<8x512xf32>
    %307 = arith.addf %304, %306 : vector<8x512xf32>
    %c16_70 = arith.constant 16 : index
    %c512_71 = arith.constant 512 : index
    %308 = vector.load %arg8[%c16_70, %c512_71] : memref<64x1024xf32, #tpu.memory_space<vmem>>, vector<8x512xf32>
    %309 = arith.truncf %303 : vector<8x128xf32> to vector<8x128xbf16>
    %cst_72 = arith.constant dense<0.000000e+00> : vector<8x512xf32>
    %310 = tpu.matmul %309, %9, %cst_72 {dimension_numbers = #tpu.dot_dimension_numbers<[1], [0], [0], [1], [0, 0, 1, 1], [], []>} : vector<8x128xbf16>, vector<128x512xbf16>, vector<8x512xf32> -> vector<8x512xf32>
    %311 = arith.addf %308, %310 : vector<8x512xf32>
    %312 = vector.extract_strided_slice %307 {offsets = [0, 0], sizes = [8, 128], strides = [1, 1]} : vector<8x512xf32> to vector<8x128xf32>
    %313 = arith.negf %312 : vector<8x128xf32>
    %314 = math.exp %313 : vector<8x128xf32>
    %cst_73 = arith.constant 1.000000e+00 : f32
    %315 = vector.broadcast %cst_73 : f32 to vector<8x128xf32>
    %316 = arith.addf %315, %314 : vector<8x128xf32>
    %317 = arith.divf %315, %316 : vector<8x128xf32>
    %318 = vector.extract_strided_slice %307 {offsets = [0, 128], sizes = [8, 128], strides = [1, 1]} : vector<8x512xf32> to vector<8x128xf32>
    %319 = arith.negf %318 : vector<8x128xf32>
    %320 = math.exp %319 : vector<8x128xf32>
    %cst_74 = arith.constant 1.000000e+00 : f32
    %321 = vector.broadcast %cst_74 : f32 to vector<8x128xf32>
    %322 = arith.addf %321, %320 : vector<8x128xf32>
    %323 = arith.divf %321, %322 : vector<8x128xf32>
    %324 = vector.extract_strided_slice %307 {offsets = [0, 256], sizes = [8, 128], strides = [1, 1]} : vector<8x512xf32> to vector<8x128xf32>
    %325 = math.tanh %324 : vector<8x128xf32>
    %326 = vector.extract_strided_slice %307 {offsets = [0, 384], sizes = [8, 128], strides = [1, 1]} : vector<8x512xf32> to vector<8x128xf32>
    %327 = arith.negf %326 : vector<8x128xf32>
    %328 = math.exp %327 : vector<8x128xf32>
    %cst_75 = arith.constant 1.000000e+00 : f32
    %329 = vector.broadcast %cst_75 : f32 to vector<8x128xf32>
    %330 = arith.addf %329, %328 : vector<8x128xf32>
    %331 = arith.divf %329, %330 : vector<8x128xf32>
    %332 = arith.mulf %323, %276 : vector<8x128xf32>
    %333 = arith.mulf %317, %325 : vector<8x128xf32>
    %334 = arith.addf %332, %333 : vector<8x128xf32>
    %335 = math.tanh %334 : vector<8x128xf32>
    %336 = arith.mulf %331, %335 : vector<8x128xf32>
    %337 = vector.extract_strided_slice %311 {offsets = [0, 0], sizes = [8, 128], strides = [1, 1]} : vector<8x512xf32> to vector<8x128xf32>
    %338 = arith.negf %337 : vector<8x128xf32>
    %339 = math.exp %338 : vector<8x128xf32>
    %cst_76 = arith.constant 1.000000e+00 : f32
    %340 = vector.broadcast %cst_76 : f32 to vector<8x128xf32>
    %341 = arith.addf %340, %339 : vector<8x128xf32>
    %342 = arith.divf %340, %341 : vector<8x128xf32>
    %343 = vector.extract_strided_slice %311 {offsets = [0, 128], sizes = [8, 128], strides = [1, 1]} : vector<8x512xf32> to vector<8x128xf32>
    %344 = arith.negf %343 : vector<8x128xf32>
    %345 = math.exp %344 : vector<8x128xf32>
    %cst_77 = arith.constant 1.000000e+00 : f32
    %346 = vector.broadcast %cst_77 : f32 to vector<8x128xf32>
    %347 = arith.addf %346, %345 : vector<8x128xf32>
    %348 = arith.divf %346, %347 : vector<8x128xf32>
    %349 = vector.extract_strided_slice %311 {offsets = [0, 256], sizes = [8, 128], strides = [1, 1]} : vector<8x512xf32> to vector<8x128xf32>
    %350 = math.tanh %349 : vector<8x128xf32>
    %351 = vector.extract_strided_slice %311 {offsets = [0, 384], sizes = [8, 128], strides = [1, 1]} : vector<8x512xf32> to vector<8x128xf32>
    %352 = arith.negf %351 : vector<8x128xf32>
    %353 = math.exp %352 : vector<8x128xf32>
    %cst_78 = arith.constant 1.000000e+00 : f32
    %354 = vector.broadcast %cst_78 : f32 to vector<8x128xf32>
    %355 = arith.addf %354, %353 : vector<8x128xf32>
    %356 = arith.divf %354, %355 : vector<8x128xf32>
    %357 = arith.mulf %348, %301 : vector<8x128xf32>
    %358 = arith.mulf %342, %350 : vector<8x128xf32>
    %359 = arith.addf %357, %358 : vector<8x128xf32>
    %360 = math.tanh %359 : vector<8x128xf32>
    %361 = arith.mulf %356, %360 : vector<8x128xf32>
    %c48_79 = arith.constant 48 : index
    %c0_80 = arith.constant 0 : index
    %362 = vector.load %arg8[%c48_79, %c0_80] : memref<64x1024xf32, #tpu.memory_space<vmem>>, vector<8x512xf32>
    %363 = arith.truncf %336 : vector<8x128xf32> to vector<8x128xbf16>
    %cst_81 = arith.constant dense<0.000000e+00> : vector<8x512xf32>
    %364 = tpu.matmul %363, %8, %cst_81 {dimension_numbers = #tpu.dot_dimension_numbers<[1], [0], [0], [1], [0, 0, 1, 1], [], []>} : vector<8x128xbf16>, vector<128x512xbf16>, vector<8x512xf32> -> vector<8x512xf32>
    %365 = arith.addf %362, %364 : vector<8x512xf32>
    %c8_82 = arith.constant 8 : index
    %c512_83 = arith.constant 512 : index
    %366 = vector.load %arg8[%c8_82, %c512_83] : memref<64x1024xf32, #tpu.memory_space<vmem>>, vector<8x512xf32>
    %367 = arith.truncf %361 : vector<8x128xf32> to vector<8x128xbf16>
    %cst_84 = arith.constant dense<0.000000e+00> : vector<8x512xf32>
    %368 = tpu.matmul %367, %9, %cst_84 {dimension_numbers = #tpu.dot_dimension_numbers<[1], [0], [0], [1], [0, 0, 1, 1], [], []>} : vector<8x128xbf16>, vector<128x512xbf16>, vector<8x512xf32> -> vector<8x512xf32>
    %369 = arith.addf %366, %368 : vector<8x512xf32>
    %370 = vector.extract_strided_slice %365 {offsets = [0, 0], sizes = [8, 128], strides = [1, 1]} : vector<8x512xf32> to vector<8x128xf32>
    %371 = arith.negf %370 : vector<8x128xf32>
    %372 = math.exp %371 : vector<8x128xf32>
    %cst_85 = arith.constant 1.000000e+00 : f32
    %373 = vector.broadcast %cst_85 : f32 to vector<8x128xf32>
    %374 = arith.addf %373, %372 : vector<8x128xf32>
    %375 = arith.divf %373, %374 : vector<8x128xf32>
    %376 = vector.extract_strided_slice %365 {offsets = [0, 128], sizes = [8, 128], strides = [1, 1]} : vector<8x512xf32> to vector<8x128xf32>
    %377 = arith.negf %376 : vector<8x128xf32>
    %378 = math.exp %377 : vector<8x128xf32>
    %cst_86 = arith.constant 1.000000e+00 : f32
    %379 = vector.broadcast %cst_86 : f32 to vector<8x128xf32>
    %380 = arith.addf %379, %378 : vector<8x128xf32>
    %381 = arith.divf %379, %380 : vector<8x128xf32>
    %382 = vector.extract_strided_slice %365 {offsets = [0, 256], sizes = [8, 128], strides = [1, 1]} : vector<8x512xf32> to vector<8x128xf32>
    %383 = math.tanh %382 : vector<8x128xf32>
    %384 = vector.extract_strided_slice %365 {offsets = [0, 384], sizes = [8, 128], strides = [1, 1]} : vector<8x512xf32> to vector<8x128xf32>
    %385 = arith.negf %384 : vector<8x128xf32>
    %386 = math.exp %385 : vector<8x128xf32>
    %cst_87 = arith.constant 1.000000e+00 : f32
    %387 = vector.broadcast %cst_87 : f32 to vector<8x128xf32>
    %388 = arith.addf %387, %386 : vector<8x128xf32>
    %389 = arith.divf %387, %388 : vector<8x128xf32>
    %390 = arith.mulf %381, %334 : vector<8x128xf32>
    %391 = arith.mulf %375, %383 : vector<8x128xf32>
    %392 = arith.addf %390, %391 : vector<8x128xf32>
    %393 = math.tanh %392 : vector<8x128xf32>
    %394 = arith.mulf %389, %393 : vector<8x128xf32>
    %395 = vector.extract_strided_slice %369 {offsets = [0, 0], sizes = [8, 128], strides = [1, 1]} : vector<8x512xf32> to vector<8x128xf32>
    %396 = arith.negf %395 : vector<8x128xf32>
    %397 = math.exp %396 : vector<8x128xf32>
    %cst_88 = arith.constant 1.000000e+00 : f32
    %398 = vector.broadcast %cst_88 : f32 to vector<8x128xf32>
    %399 = arith.addf %398, %397 : vector<8x128xf32>
    %400 = arith.divf %398, %399 : vector<8x128xf32>
    %401 = vector.extract_strided_slice %369 {offsets = [0, 128], sizes = [8, 128], strides = [1, 1]} : vector<8x512xf32> to vector<8x128xf32>
    %402 = arith.negf %401 : vector<8x128xf32>
    %403 = math.exp %402 : vector<8x128xf32>
    %cst_89 = arith.constant 1.000000e+00 : f32
    %404 = vector.broadcast %cst_89 : f32 to vector<8x128xf32>
    %405 = arith.addf %404, %403 : vector<8x128xf32>
    %406 = arith.divf %404, %405 : vector<8x128xf32>
    %407 = vector.extract_strided_slice %369 {offsets = [0, 256], sizes = [8, 128], strides = [1, 1]} : vector<8x512xf32> to vector<8x128xf32>
    %408 = math.tanh %407 : vector<8x128xf32>
    %409 = vector.extract_strided_slice %369 {offsets = [0, 384], sizes = [8, 128], strides = [1, 1]} : vector<8x512xf32> to vector<8x128xf32>
    %410 = arith.negf %409 : vector<8x128xf32>
    %411 = math.exp %410 : vector<8x128xf32>
    %cst_90 = arith.constant 1.000000e+00 : f32
    %412 = vector.broadcast %cst_90 : f32 to vector<8x128xf32>
    %413 = arith.addf %412, %411 : vector<8x128xf32>
    %414 = arith.divf %412, %413 : vector<8x128xf32>
    %415 = arith.mulf %406, %359 : vector<8x128xf32>
    %416 = arith.mulf %400, %408 : vector<8x128xf32>
    %417 = arith.addf %415, %416 : vector<8x128xf32>
    %418 = math.tanh %417 : vector<8x128xf32>
    %419 = arith.mulf %414, %418 : vector<8x128xf32>
    %c56_91 = arith.constant 56 : index
    %c0_92 = arith.constant 0 : index
    %420 = vector.load %arg8[%c56_91, %c0_92] : memref<64x1024xf32, #tpu.memory_space<vmem>>, vector<8x512xf32>
    %421 = arith.truncf %394 : vector<8x128xf32> to vector<8x128xbf16>
    %cst_93 = arith.constant dense<0.000000e+00> : vector<8x512xf32>
    %422 = tpu.matmul %421, %8, %cst_93 {dimension_numbers = #tpu.dot_dimension_numbers<[1], [0], [0], [1], [0, 0, 1, 1], [], []>} : vector<8x128xbf16>, vector<128x512xbf16>, vector<8x512xf32> -> vector<8x512xf32>
    %423 = arith.addf %420, %422 : vector<8x512xf32>
    %c0_94 = arith.constant 0 : index
    %c512_95 = arith.constant 512 : index
    %424 = vector.load %arg8[%c0_94, %c512_95] : memref<64x1024xf32, #tpu.memory_space<vmem>>, vector<8x512xf32>
    %425 = arith.truncf %419 : vector<8x128xf32> to vector<8x128xbf16>
    %cst_96 = arith.constant dense<0.000000e+00> : vector<8x512xf32>
    %426 = tpu.matmul %425, %9, %cst_96 {dimension_numbers = #tpu.dot_dimension_numbers<[1], [0], [0], [1], [0, 0, 1, 1], [], []>} : vector<8x128xbf16>, vector<128x512xbf16>, vector<8x512xf32> -> vector<8x512xf32>
    %427 = arith.addf %424, %426 : vector<8x512xf32>
    %428 = vector.extract_strided_slice %423 {offsets = [0, 0], sizes = [8, 128], strides = [1, 1]} : vector<8x512xf32> to vector<8x128xf32>
    %429 = arith.negf %428 : vector<8x128xf32>
    %430 = math.exp %429 : vector<8x128xf32>
    %cst_97 = arith.constant 1.000000e+00 : f32
    %431 = vector.broadcast %cst_97 : f32 to vector<8x128xf32>
    %432 = arith.addf %431, %430 : vector<8x128xf32>
    %433 = arith.divf %431, %432 : vector<8x128xf32>
    %434 = vector.extract_strided_slice %423 {offsets = [0, 128], sizes = [8, 128], strides = [1, 1]} : vector<8x512xf32> to vector<8x128xf32>
    %435 = arith.negf %434 : vector<8x128xf32>
    %436 = math.exp %435 : vector<8x128xf32>
    %cst_98 = arith.constant 1.000000e+00 : f32
    %437 = vector.broadcast %cst_98 : f32 to vector<8x128xf32>
    %438 = arith.addf %437, %436 : vector<8x128xf32>
    %439 = arith.divf %437, %438 : vector<8x128xf32>
    %440 = vector.extract_strided_slice %423 {offsets = [0, 256], sizes = [8, 128], strides = [1, 1]} : vector<8x512xf32> to vector<8x128xf32>
    %441 = math.tanh %440 : vector<8x128xf32>
    %442 = vector.extract_strided_slice %423 {offsets = [0, 384], sizes = [8, 128], strides = [1, 1]} : vector<8x512xf32> to vector<8x128xf32>
    %443 = arith.negf %442 : vector<8x128xf32>
    %444 = math.exp %443 : vector<8x128xf32>
    %cst_99 = arith.constant 1.000000e+00 : f32
    %445 = vector.broadcast %cst_99 : f32 to vector<8x128xf32>
    %446 = arith.addf %445, %444 : vector<8x128xf32>
    %447 = arith.divf %445, %446 : vector<8x128xf32>
    %448 = arith.mulf %439, %392 : vector<8x128xf32>
    %449 = arith.mulf %433, %441 : vector<8x128xf32>
    %450 = arith.addf %448, %449 : vector<8x128xf32>
    %451 = math.tanh %450 : vector<8x128xf32>
    %452 = arith.mulf %447, %451 : vector<8x128xf32>
    %453 = vector.extract_strided_slice %427 {offsets = [0, 0], sizes = [8, 128], strides = [1, 1]} : vector<8x512xf32> to vector<8x128xf32>
    %454 = arith.negf %453 : vector<8x128xf32>
    %455 = math.exp %454 : vector<8x128xf32>
    %cst_100 = arith.constant 1.000000e+00 : f32
    %456 = vector.broadcast %cst_100 : f32 to vector<8x128xf32>
    %457 = arith.addf %456, %455 : vector<8x128xf32>
    %458 = arith.divf %456, %457 : vector<8x128xf32>
    %459 = vector.extract_strided_slice %427 {offsets = [0, 128], sizes = [8, 128], strides = [1, 1]} : vector<8x512xf32> to vector<8x128xf32>
    %460 = arith.negf %459 : vector<8x128xf32>
    %461 = math.exp %460 : vector<8x128xf32>
    %cst_101 = arith.constant 1.000000e+00 : f32
    %462 = vector.broadcast %cst_101 : f32 to vector<8x128xf32>
    %463 = arith.addf %462, %461 : vector<8x128xf32>
    %464 = arith.divf %462, %463 : vector<8x128xf32>
    %465 = vector.extract_strided_slice %427 {offsets = [0, 256], sizes = [8, 128], strides = [1, 1]} : vector<8x512xf32> to vector<8x128xf32>
    %466 = math.tanh %465 : vector<8x128xf32>
    %467 = vector.extract_strided_slice %427 {offsets = [0, 384], sizes = [8, 128], strides = [1, 1]} : vector<8x512xf32> to vector<8x128xf32>
    %468 = arith.negf %467 : vector<8x128xf32>
    %469 = math.exp %468 : vector<8x128xf32>
    %cst_102 = arith.constant 1.000000e+00 : f32
    %470 = vector.broadcast %cst_102 : f32 to vector<8x128xf32>
    %471 = arith.addf %470, %469 : vector<8x128xf32>
    %472 = arith.divf %470, %471 : vector<8x128xf32>
    %473 = arith.mulf %464, %417 : vector<8x128xf32>
    %474 = arith.mulf %458, %466 : vector<8x128xf32>
    %475 = arith.addf %473, %474 : vector<8x128xf32>
    %476 = math.tanh %475 : vector<8x128xf32>
    %477 = arith.mulf %472, %476 : vector<8x128xf32>
    %478 = tpu.concatenate %452, %477 in 1 : vector<8x128xf32>, vector<8x128xf32> -> vector<8x256xf32>
    %479 = arith.truncf %478 : vector<8x256xf32> to vector<8x256xbf16>
    %c0_103 = arith.constant 0 : index
    %c0_104 = arith.constant 0 : index
    %480 = vector.load %arg5[%c0_103, %c0_104] : memref<256x128xbf16, #tpu.memory_space<vmem>>, vector<256x128xbf16>
    %cst_105 = arith.constant dense<0.000000e+00> : vector<8x128xf32>
    %481 = tpu.matmul %479, %480, %cst_105 {dimension_numbers = #tpu.dot_dimension_numbers<[1], [0], [0], [1], [0, 0, 1, 1], [], []>} : vector<8x256xbf16>, vector<256x128xbf16>, vector<8x128xf32> -> vector<8x128xf32>
    %c0_106 = arith.constant 0 : index
    %c0_107 = arith.constant 0 : index
    %482 = vector.load %arg6[%c0_106, %c0_107] : memref<1x128xf32, #tpu.memory_space<vmem>>, vector<1x128xf32>
    %483 = vector.broadcast %482 : vector<1x128xf32> to vector<8x128xf32>
    %484 = arith.addf %481, %483 : vector<8x128xf32>
    %c0_108 = arith.constant 0 : index
    %c0_109 = arith.constant 0 : index
    %485 = vector.load %arg7[%c0_108, %c0_109] : memref<8x128xf32, #tpu.memory_space<vmem>>, vector<8x128xf32>
    tpu.vector_store %arg7[%c0_108, %c0_109], %484 {strides = array<i32>} : memref<8x128xf32, #tpu.memory_space<vmem>>, vector<8x128xf32>,
    return
  }
}

module attributes {stable_mosaic.version = 11 : i64} {
  func.func @bilstm_layer_kernel(%arg0: memref<64x32xf32, #tpu.memory_space<vmem>>, %arg1: memref<32x1024xbf16, #tpu.memory_space<vmem>>, %arg2: memref<128x512xbf16, #tpu.memory_space<vmem>>, %arg3: memref<128x512xbf16, #tpu.memory_space<vmem>>, %arg4: memref<1x1024xf32, #tpu.memory_space<vmem>>, %arg5: memref<64x256xf32, #tpu.memory_space<vmem>>, %arg6: memref<64x1024xf32, #tpu.memory_space<vmem>>) attributes {dimension_semantics = [], scalar_prefetch = 0 : i64, scratch_operands = 1 : i64, tpu.core_type = #tpu.core_type<tc>} {
    %c0 = arith.constant 0 : index
    %c0_0 = arith.constant 0 : index
    %0 = vector.load %arg0[%c0, %c0_0] : memref<64x32xf32, #tpu.memory_space<vmem>>, vector<64x32xf32>
    %1 = arith.truncf %0 : vector<64x32xf32> to vector<64x32xbf16>
    %c0_1 = arith.constant 0 : index
    %c0_2 = arith.constant 0 : index
    %2 = vector.load %arg1[%c0_1, %c0_2] : memref<32x1024xbf16, #tpu.memory_space<vmem>>, vector<32x1024xbf16>
    %cst = arith.constant dense<0.000000e+00> : vector<64x1024xf32>
    %3 = tpu.matmul %1, %2, %cst {dimension_numbers = #tpu.dot_dimension_numbers<[1], [0], [0], [1], [0, 0, 1, 1], [], []>} : vector<64x32xbf16>, vector<32x1024xbf16>, vector<64x1024xf32> -> vector<64x1024xf32>
    %c0_3 = arith.constant 0 : index
    %c0_4 = arith.constant 0 : index
    %4 = vector.load %arg4[%c0_3, %c0_4] : memref<1x1024xf32, #tpu.memory_space<vmem>>, vector<1x1024xf32>
    %5 = vector.broadcast %4 : vector<1x1024xf32> to vector<64x1024xf32>
    %6 = arith.addf %3, %5 : vector<64x1024xf32>
    %c0_5 = arith.constant 0 : index
    %c0_6 = arith.constant 0 : index
    %7 = vector.load %arg6[%c0_5, %c0_6] : memref<64x1024xf32, #tpu.memory_space<vmem>>, vector<64x1024xf32>
    tpu.vector_store %arg6[%c0_5, %c0_6], %6 {strides = array<i32>} : memref<64x1024xf32, #tpu.memory_space<vmem>>, vector<64x1024xf32>,
    %c0_7 = arith.constant 0 : index
    %c0_8 = arith.constant 0 : index
    %8 = vector.load %arg2[%c0_7, %c0_8] : memref<128x512xbf16, #tpu.memory_space<vmem>>, vector<128x512xbf16>
    %c0_9 = arith.constant 0 : index
    %c0_10 = arith.constant 0 : index
    %9 = vector.load %arg3[%c0_9, %c0_10] : memref<128x512xbf16, #tpu.memory_space<vmem>>, vector<128x512xbf16>
    %cst_11 = arith.constant 0.000000e+00 : f32
    %10 = vector.broadcast %cst_11 : f32 to vector<8x128xf32>
    %cst_12 = arith.constant 0.000000e+00 : f32
    %11 = vector.broadcast %cst_12 : f32 to vector<8x128xf32>
    %cst_13 = arith.constant 0.000000e+00 : f32
    %12 = vector.broadcast %cst_13 : f32 to vector<8x128xf32>
    %cst_14 = arith.constant 0.000000e+00 : f32
    %13 = vector.broadcast %cst_14 : f32 to vector<8x128xf32>
    %c0_15 = arith.constant 0 : index
    %c0_16 = arith.constant 0 : index
    %14 = vector.load %arg6[%c0_15, %c0_16] : memref<64x1024xf32, #tpu.memory_space<vmem>>, vector<8x512xf32>
    %15 = arith.truncf %10 : vector<8x128xf32> to vector<8x128xbf16>
    %cst_17 = arith.constant dense<0.000000e+00> : vector<8x512xf32>
    %16 = tpu.matmul %15, %8, %cst_17 {dimension_numbers = #tpu.dot_dimension_numbers<[1], [0], [0], [1], [0, 0, 1, 1], [], []>} : vector<8x128xbf16>, vector<128x512xbf16>, vector<8x512xf32> -> vector<8x512xf32>
    %17 = arith.addf %14, %16 : vector<8x512xf32>
    %c56 = arith.constant 56 : index
    %c512 = arith.constant 512 : index
    %18 = vector.load %arg6[%c56, %c512] : memref<64x1024xf32, #tpu.memory_space<vmem>>, vector<8x512xf32>
    %19 = arith.truncf %12 : vector<8x128xf32> to vector<8x128xbf16>
    %cst_18 = arith.constant dense<0.000000e+00> : vector<8x512xf32>
    %20 = tpu.matmul %19, %9, %cst_18 {dimension_numbers = #tpu.dot_dimension_numbers<[1], [0], [0], [1], [0, 0, 1, 1], [], []>} : vector<8x128xbf16>, vector<128x512xbf16>, vector<8x512xf32> -> vector<8x512xf32>
    %21 = arith.addf %18, %20 : vector<8x512xf32>
    %22 = vector.extract_strided_slice %17 {offsets = [0, 0], sizes = [8, 128], strides = [1, 1]} : vector<8x512xf32> to vector<8x128xf32>
    %23 = arith.negf %22 : vector<8x128xf32>
    %24 = math.exp %23 : vector<8x128xf32>
    %cst_19 = arith.constant 1.000000e+00 : f32
    %25 = vector.broadcast %cst_19 : f32 to vector<8x128xf32>
    %26 = arith.addf %25, %24 : vector<8x128xf32>
    %27 = arith.divf %25, %26 : vector<8x128xf32>
    %28 = vector.extract_strided_slice %17 {offsets = [0, 128], sizes = [8, 128], strides = [1, 1]} : vector<8x512xf32> to vector<8x128xf32>
    %29 = arith.negf %28 : vector<8x128xf32>
    %30 = math.exp %29 : vector<8x128xf32>
    %cst_20 = arith.constant 1.000000e+00 : f32
    %31 = vector.broadcast %cst_20 : f32 to vector<8x128xf32>
    %32 = arith.addf %31, %30 : vector<8x128xf32>
    %33 = arith.divf %31, %32 : vector<8x128xf32>
    %34 = vector.extract_strided_slice %17 {offsets = [0, 256], sizes = [8, 128], strides = [1, 1]} : vector<8x512xf32> to vector<8x128xf32>
    %35 = math.tanh %34 : vector<8x128xf32>
    %36 = vector.extract_strided_slice %17 {offsets = [0, 384], sizes = [8, 128], strides = [1, 1]} : vector<8x512xf32> to vector<8x128xf32>
    %37 = arith.negf %36 : vector<8x128xf32>
    %38 = math.exp %37 : vector<8x128xf32>
    %cst_21 = arith.constant 1.000000e+00 : f32
    %39 = vector.broadcast %cst_21 : f32 to vector<8x128xf32>
    %40 = arith.addf %39, %38 : vector<8x128xf32>
    %41 = arith.divf %39, %40 : vector<8x128xf32>
    %42 = arith.mulf %33, %11 : vector<8x128xf32>
    %43 = arith.mulf %27, %35 : vector<8x128xf32>
    %44 = arith.addf %42, %43 : vector<8x128xf32>
    %45 = math.tanh %44 : vector<8x128xf32>
    %46 = arith.mulf %41, %45 : vector<8x128xf32>
    %47 = vector.extract_strided_slice %21 {offsets = [0, 0], sizes = [8, 128], strides = [1, 1]} : vector<8x512xf32> to vector<8x128xf32>
    %48 = arith.negf %47 : vector<8x128xf32>
    %49 = math.exp %48 : vector<8x128xf32>
    %cst_22 = arith.constant 1.000000e+00 : f32
    %50 = vector.broadcast %cst_22 : f32 to vector<8x128xf32>
    %51 = arith.addf %50, %49 : vector<8x128xf32>
    %52 = arith.divf %50, %51 : vector<8x128xf32>
    %53 = vector.extract_strided_slice %21 {offsets = [0, 128], sizes = [8, 128], strides = [1, 1]} : vector<8x512xf32> to vector<8x128xf32>
    %54 = arith.negf %53 : vector<8x128xf32>
    %55 = math.exp %54 : vector<8x128xf32>
    %cst_23 = arith.constant 1.000000e+00 : f32
    %56 = vector.broadcast %cst_23 : f32 to vector<8x128xf32>
    %57 = arith.addf %56, %55 : vector<8x128xf32>
    %58 = arith.divf %56, %57 : vector<8x128xf32>
    %59 = vector.extract_strided_slice %21 {offsets = [0, 256], sizes = [8, 128], strides = [1, 1]} : vector<8x512xf32> to vector<8x128xf32>
    %60 = math.tanh %59 : vector<8x128xf32>
    %61 = vector.extract_strided_slice %21 {offsets = [0, 384], sizes = [8, 128], strides = [1, 1]} : vector<8x512xf32> to vector<8x128xf32>
    %62 = arith.negf %61 : vector<8x128xf32>
    %63 = math.exp %62 : vector<8x128xf32>
    %cst_24 = arith.constant 1.000000e+00 : f32
    %64 = vector.broadcast %cst_24 : f32 to vector<8x128xf32>
    %65 = arith.addf %64, %63 : vector<8x128xf32>
    %66 = arith.divf %64, %65 : vector<8x128xf32>
    %67 = arith.mulf %58, %13 : vector<8x128xf32>
    %68 = arith.mulf %52, %60 : vector<8x128xf32>
    %69 = arith.addf %67, %68 : vector<8x128xf32>
    %70 = math.tanh %69 : vector<8x128xf32>
    %71 = arith.mulf %66, %70 : vector<8x128xf32>
    %c0_25 = arith.constant 0 : index
    %c0_26 = arith.constant 0 : index
    %72 = vector.load %arg5[%c0_25, %c0_26] : memref<64x256xf32, #tpu.memory_space<vmem>>, vector<8x128xf32>
    tpu.vector_store %arg5[%c0_25, %c0_26], %46 {strides = array<i32>} : memref<64x256xf32, #tpu.memory_space<vmem>>, vector<8x128xf32>,
    %c56_27 = arith.constant 56 : index
    %c128 = arith.constant 128 : index
    %73 = vector.load %arg5[%c56_27, %c128] : memref<64x256xf32, #tpu.memory_space<vmem>>, vector<8x128xf32>
    tpu.vector_store %arg5[%c56_27, %c128], %71 {strides = array<i32>} : memref<64x256xf32, #tpu.memory_space<vmem>>, vector<8x128xf32>,
    %c8 = arith.constant 8 : index
    %c0_28 = arith.constant 0 : index
    %74 = vector.load %arg6[%c8, %c0_28] : memref<64x1024xf32, #tpu.memory_space<vmem>>, vector<8x512xf32>
    %75 = arith.truncf %46 : vector<8x128xf32> to vector<8x128xbf16>
    %cst_29 = arith.constant dense<0.000000e+00> : vector<8x512xf32>
    %76 = tpu.matmul %75, %8, %cst_29 {dimension_numbers = #tpu.dot_dimension_numbers<[1], [0], [0], [1], [0, 0, 1, 1], [], []>} : vector<8x128xbf16>, vector<128x512xbf16>, vector<8x512xf32> -> vector<8x512xf32>
    %77 = arith.addf %74, %76 : vector<8x512xf32>
    %c48 = arith.constant 48 : index
    %c512_30 = arith.constant 512 : index
    %78 = vector.load %arg6[%c48, %c512_30] : memref<64x1024xf32, #tpu.memory_space<vmem>>, vector<8x512xf32>
    %79 = arith.truncf %71 : vector<8x128xf32> to vector<8x128xbf16>
    %cst_31 = arith.constant dense<0.000000e+00> : vector<8x512xf32>
    %80 = tpu.matmul %79, %9, %cst_31 {dimension_numbers = #tpu.dot_dimension_numbers<[1], [0], [0], [1], [0, 0, 1, 1], [], []>} : vector<8x128xbf16>, vector<128x512xbf16>, vector<8x512xf32> -> vector<8x512xf32>
    %81 = arith.addf %78, %80 : vector<8x512xf32>
    %82 = vector.extract_strided_slice %77 {offsets = [0, 0], sizes = [8, 128], strides = [1, 1]} : vector<8x512xf32> to vector<8x128xf32>
    %83 = arith.negf %82 : vector<8x128xf32>
    %84 = math.exp %83 : vector<8x128xf32>
    %cst_32 = arith.constant 1.000000e+00 : f32
    %85 = vector.broadcast %cst_32 : f32 to vector<8x128xf32>
    %86 = arith.addf %85, %84 : vector<8x128xf32>
    %87 = arith.divf %85, %86 : vector<8x128xf32>
    %88 = vector.extract_strided_slice %77 {offsets = [0, 128], sizes = [8, 128], strides = [1, 1]} : vector<8x512xf32> to vector<8x128xf32>
    %89 = arith.negf %88 : vector<8x128xf32>
    %90 = math.exp %89 : vector<8x128xf32>
    %cst_33 = arith.constant 1.000000e+00 : f32
    %91 = vector.broadcast %cst_33 : f32 to vector<8x128xf32>
    %92 = arith.addf %91, %90 : vector<8x128xf32>
    %93 = arith.divf %91, %92 : vector<8x128xf32>
    %94 = vector.extract_strided_slice %77 {offsets = [0, 256], sizes = [8, 128], strides = [1, 1]} : vector<8x512xf32> to vector<8x128xf32>
    %95 = math.tanh %94 : vector<8x128xf32>
    %96 = vector.extract_strided_slice %77 {offsets = [0, 384], sizes = [8, 128], strides = [1, 1]} : vector<8x512xf32> to vector<8x128xf32>
    %97 = arith.negf %96 : vector<8x128xf32>
    %98 = math.exp %97 : vector<8x128xf32>
    %cst_34 = arith.constant 1.000000e+00 : f32
    %99 = vector.broadcast %cst_34 : f32 to vector<8x128xf32>
    %100 = arith.addf %99, %98 : vector<8x128xf32>
    %101 = arith.divf %99, %100 : vector<8x128xf32>
    %102 = arith.mulf %93, %44 : vector<8x128xf32>
    %103 = arith.mulf %87, %95 : vector<8x128xf32>
    %104 = arith.addf %102, %103 : vector<8x128xf32>
    %105 = math.tanh %104 : vector<8x128xf32>
    %106 = arith.mulf %101, %105 : vector<8x128xf32>
    %107 = vector.extract_strided_slice %81 {offsets = [0, 0], sizes = [8, 128], strides = [1, 1]} : vector<8x512xf32> to vector<8x128xf32>
    %108 = arith.negf %107 : vector<8x128xf32>
    %109 = math.exp %108 : vector<8x128xf32>
    %cst_35 = arith.constant 1.000000e+00 : f32
    %110 = vector.broadcast %cst_35 : f32 to vector<8x128xf32>
    %111 = arith.addf %110, %109 : vector<8x128xf32>
    %112 = arith.divf %110, %111 : vector<8x128xf32>
    %113 = vector.extract_strided_slice %81 {offsets = [0, 128], sizes = [8, 128], strides = [1, 1]} : vector<8x512xf32> to vector<8x128xf32>
    %114 = arith.negf %113 : vector<8x128xf32>
    %115 = math.exp %114 : vector<8x128xf32>
    %cst_36 = arith.constant 1.000000e+00 : f32
    %116 = vector.broadcast %cst_36 : f32 to vector<8x128xf32>
    %117 = arith.addf %116, %115 : vector<8x128xf32>
    %118 = arith.divf %116, %117 : vector<8x128xf32>
    %119 = vector.extract_strided_slice %81 {offsets = [0, 256], sizes = [8, 128], strides = [1, 1]} : vector<8x512xf32> to vector<8x128xf32>
    %120 = math.tanh %119 : vector<8x128xf32>
    %121 = vector.extract_strided_slice %81 {offsets = [0, 384], sizes = [8, 128], strides = [1, 1]} : vector<8x512xf32> to vector<8x128xf32>
    %122 = arith.negf %121 : vector<8x128xf32>
    %123 = math.exp %122 : vector<8x128xf32>
    %cst_37 = arith.constant 1.000000e+00 : f32
    %124 = vector.broadcast %cst_37 : f32 to vector<8x128xf32>
    %125 = arith.addf %124, %123 : vector<8x128xf32>
    %126 = arith.divf %124, %125 : vector<8x128xf32>
    %127 = arith.mulf %118, %69 : vector<8x128xf32>
    %128 = arith.mulf %112, %120 : vector<8x128xf32>
    %129 = arith.addf %127, %128 : vector<8x128xf32>
    %130 = math.tanh %129 : vector<8x128xf32>
    %131 = arith.mulf %126, %130 : vector<8x128xf32>
    %c8_38 = arith.constant 8 : index
    %c0_39 = arith.constant 0 : index
    %132 = vector.load %arg5[%c8_38, %c0_39] : memref<64x256xf32, #tpu.memory_space<vmem>>, vector<8x128xf32>
    tpu.vector_store %arg5[%c8_38, %c0_39], %106 {strides = array<i32>} : memref<64x256xf32, #tpu.memory_space<vmem>>, vector<8x128xf32>,
    %c48_40 = arith.constant 48 : index
    %c128_41 = arith.constant 128 : index
    %133 = vector.load %arg5[%c48_40, %c128_41] : memref<64x256xf32, #tpu.memory_space<vmem>>, vector<8x128xf32>
    tpu.vector_store %arg5[%c48_40, %c128_41], %131 {strides = array<i32>} : memref<64x256xf32, #tpu.memory_space<vmem>>, vector<8x128xf32>,
    %c16 = arith.constant 16 : index
    %c0_42 = arith.constant 0 : index
    %134 = vector.load %arg6[%c16, %c0_42] : memref<64x1024xf32, #tpu.memory_space<vmem>>, vector<8x512xf32>
    %135 = arith.truncf %106 : vector<8x128xf32> to vector<8x128xbf16>
    %cst_43 = arith.constant dense<0.000000e+00> : vector<8x512xf32>
    %136 = tpu.matmul %135, %8, %cst_43 {dimension_numbers = #tpu.dot_dimension_numbers<[1], [0], [0], [1], [0, 0, 1, 1], [], []>} : vector<8x128xbf16>, vector<128x512xbf16>, vector<8x512xf32> -> vector<8x512xf32>
    %137 = arith.addf %134, %136 : vector<8x512xf32>
    %c40 = arith.constant 40 : index
    %c512_44 = arith.constant 512 : index
    %138 = vector.load %arg6[%c40, %c512_44] : memref<64x1024xf32, #tpu.memory_space<vmem>>, vector<8x512xf32>
    %139 = arith.truncf %131 : vector<8x128xf32> to vector<8x128xbf16>
    %cst_45 = arith.constant dense<0.000000e+00> : vector<8x512xf32>
    %140 = tpu.matmul %139, %9, %cst_45 {dimension_numbers = #tpu.dot_dimension_numbers<[1], [0], [0], [1], [0, 0, 1, 1], [], []>} : vector<8x128xbf16>, vector<128x512xbf16>, vector<8x512xf32> -> vector<8x512xf32>
    %141 = arith.addf %138, %140 : vector<8x512xf32>
    %142 = vector.extract_strided_slice %137 {offsets = [0, 0], sizes = [8, 128], strides = [1, 1]} : vector<8x512xf32> to vector<8x128xf32>
    %143 = arith.negf %142 : vector<8x128xf32>
    %144 = math.exp %143 : vector<8x128xf32>
    %cst_46 = arith.constant 1.000000e+00 : f32
    %145 = vector.broadcast %cst_46 : f32 to vector<8x128xf32>
    %146 = arith.addf %145, %144 : vector<8x128xf32>
    %147 = arith.divf %145, %146 : vector<8x128xf32>
    %148 = vector.extract_strided_slice %137 {offsets = [0, 128], sizes = [8, 128], strides = [1, 1]} : vector<8x512xf32> to vector<8x128xf32>
    %149 = arith.negf %148 : vector<8x128xf32>
    %150 = math.exp %149 : vector<8x128xf32>
    %cst_47 = arith.constant 1.000000e+00 : f32
    %151 = vector.broadcast %cst_47 : f32 to vector<8x128xf32>
    %152 = arith.addf %151, %150 : vector<8x128xf32>
    %153 = arith.divf %151, %152 : vector<8x128xf32>
    %154 = vector.extract_strided_slice %137 {offsets = [0, 256], sizes = [8, 128], strides = [1, 1]} : vector<8x512xf32> to vector<8x128xf32>
    %155 = math.tanh %154 : vector<8x128xf32>
    %156 = vector.extract_strided_slice %137 {offsets = [0, 384], sizes = [8, 128], strides = [1, 1]} : vector<8x512xf32> to vector<8x128xf32>
    %157 = arith.negf %156 : vector<8x128xf32>
    %158 = math.exp %157 : vector<8x128xf32>
    %cst_48 = arith.constant 1.000000e+00 : f32
    %159 = vector.broadcast %cst_48 : f32 to vector<8x128xf32>
    %160 = arith.addf %159, %158 : vector<8x128xf32>
    %161 = arith.divf %159, %160 : vector<8x128xf32>
    %162 = arith.mulf %153, %104 : vector<8x128xf32>
    %163 = arith.mulf %147, %155 : vector<8x128xf32>
    %164 = arith.addf %162, %163 : vector<8x128xf32>
    %165 = math.tanh %164 : vector<8x128xf32>
    %166 = arith.mulf %161, %165 : vector<8x128xf32>
    %167 = vector.extract_strided_slice %141 {offsets = [0, 0], sizes = [8, 128], strides = [1, 1]} : vector<8x512xf32> to vector<8x128xf32>
    %168 = arith.negf %167 : vector<8x128xf32>
    %169 = math.exp %168 : vector<8x128xf32>
    %cst_49 = arith.constant 1.000000e+00 : f32
    %170 = vector.broadcast %cst_49 : f32 to vector<8x128xf32>
    %171 = arith.addf %170, %169 : vector<8x128xf32>
    %172 = arith.divf %170, %171 : vector<8x128xf32>
    %173 = vector.extract_strided_slice %141 {offsets = [0, 128], sizes = [8, 128], strides = [1, 1]} : vector<8x512xf32> to vector<8x128xf32>
    %174 = arith.negf %173 : vector<8x128xf32>
    %175 = math.exp %174 : vector<8x128xf32>
    %cst_50 = arith.constant 1.000000e+00 : f32
    %176 = vector.broadcast %cst_50 : f32 to vector<8x128xf32>
    %177 = arith.addf %176, %175 : vector<8x128xf32>
    %178 = arith.divf %176, %177 : vector<8x128xf32>
    %179 = vector.extract_strided_slice %141 {offsets = [0, 256], sizes = [8, 128], strides = [1, 1]} : vector<8x512xf32> to vector<8x128xf32>
    %180 = math.tanh %179 : vector<8x128xf32>
    %181 = vector.extract_strided_slice %141 {offsets = [0, 384], sizes = [8, 128], strides = [1, 1]} : vector<8x512xf32> to vector<8x128xf32>
    %182 = arith.negf %181 : vector<8x128xf32>
    %183 = math.exp %182 : vector<8x128xf32>
    %cst_51 = arith.constant 1.000000e+00 : f32
    %184 = vector.broadcast %cst_51 : f32 to vector<8x128xf32>
    %185 = arith.addf %184, %183 : vector<8x128xf32>
    %186 = arith.divf %184, %185 : vector<8x128xf32>
    %187 = arith.mulf %178, %129 : vector<8x128xf32>
    %188 = arith.mulf %172, %180 : vector<8x128xf32>
    %189 = arith.addf %187, %188 : vector<8x128xf32>
    %190 = math.tanh %189 : vector<8x128xf32>
    %191 = arith.mulf %186, %190 : vector<8x128xf32>
    %c16_52 = arith.constant 16 : index
    %c0_53 = arith.constant 0 : index
    %192 = vector.load %arg5[%c16_52, %c0_53] : memref<64x256xf32, #tpu.memory_space<vmem>>, vector<8x128xf32>
    tpu.vector_store %arg5[%c16_52, %c0_53], %166 {strides = array<i32>} : memref<64x256xf32, #tpu.memory_space<vmem>>, vector<8x128xf32>,
    %c40_54 = arith.constant 40 : index
    %c128_55 = arith.constant 128 : index
    %193 = vector.load %arg5[%c40_54, %c128_55] : memref<64x256xf32, #tpu.memory_space<vmem>>, vector<8x128xf32>
    tpu.vector_store %arg5[%c40_54, %c128_55], %191 {strides = array<i32>} : memref<64x256xf32, #tpu.memory_space<vmem>>, vector<8x128xf32>,
    %c24 = arith.constant 24 : index
    %c0_56 = arith.constant 0 : index
    %194 = vector.load %arg6[%c24, %c0_56] : memref<64x1024xf32, #tpu.memory_space<vmem>>, vector<8x512xf32>
    %195 = arith.truncf %166 : vector<8x128xf32> to vector<8x128xbf16>
    %cst_57 = arith.constant dense<0.000000e+00> : vector<8x512xf32>
    %196 = tpu.matmul %195, %8, %cst_57 {dimension_numbers = #tpu.dot_dimension_numbers<[1], [0], [0], [1], [0, 0, 1, 1], [], []>} : vector<8x128xbf16>, vector<128x512xbf16>, vector<8x512xf32> -> vector<8x512xf32>
    %197 = arith.addf %194, %196 : vector<8x512xf32>
    %c32 = arith.constant 32 : index
    %c512_58 = arith.constant 512 : index
    %198 = vector.load %arg6[%c32, %c512_58] : memref<64x1024xf32, #tpu.memory_space<vmem>>, vector<8x512xf32>
    %199 = arith.truncf %191 : vector<8x128xf32> to vector<8x128xbf16>
    %cst_59 = arith.constant dense<0.000000e+00> : vector<8x512xf32>
    %200 = tpu.matmul %199, %9, %cst_59 {dimension_numbers = #tpu.dot_dimension_numbers<[1], [0], [0], [1], [0, 0, 1, 1], [], []>} : vector<8x128xbf16>, vector<128x512xbf16>, vector<8x512xf32> -> vector<8x512xf32>
    %201 = arith.addf %198, %200 : vector<8x512xf32>
    %202 = vector.extract_strided_slice %197 {offsets = [0, 0], sizes = [8, 128], strides = [1, 1]} : vector<8x512xf32> to vector<8x128xf32>
    %203 = arith.negf %202 : vector<8x128xf32>
    %204 = math.exp %203 : vector<8x128xf32>
    %cst_60 = arith.constant 1.000000e+00 : f32
    %205 = vector.broadcast %cst_60 : f32 to vector<8x128xf32>
    %206 = arith.addf %205, %204 : vector<8x128xf32>
    %207 = arith.divf %205, %206 : vector<8x128xf32>
    %208 = vector.extract_strided_slice %197 {offsets = [0, 128], sizes = [8, 128], strides = [1, 1]} : vector<8x512xf32> to vector<8x128xf32>
    %209 = arith.negf %208 : vector<8x128xf32>
    %210 = math.exp %209 : vector<8x128xf32>
    %cst_61 = arith.constant 1.000000e+00 : f32
    %211 = vector.broadcast %cst_61 : f32 to vector<8x128xf32>
    %212 = arith.addf %211, %210 : vector<8x128xf32>
    %213 = arith.divf %211, %212 : vector<8x128xf32>
    %214 = vector.extract_strided_slice %197 {offsets = [0, 256], sizes = [8, 128], strides = [1, 1]} : vector<8x512xf32> to vector<8x128xf32>
    %215 = math.tanh %214 : vector<8x128xf32>
    %216 = vector.extract_strided_slice %197 {offsets = [0, 384], sizes = [8, 128], strides = [1, 1]} : vector<8x512xf32> to vector<8x128xf32>
    %217 = arith.negf %216 : vector<8x128xf32>
    %218 = math.exp %217 : vector<8x128xf32>
    %cst_62 = arith.constant 1.000000e+00 : f32
    %219 = vector.broadcast %cst_62 : f32 to vector<8x128xf32>
    %220 = arith.addf %219, %218 : vector<8x128xf32>
    %221 = arith.divf %219, %220 : vector<8x128xf32>
    %222 = arith.mulf %213, %164 : vector<8x128xf32>
    %223 = arith.mulf %207, %215 : vector<8x128xf32>
    %224 = arith.addf %222, %223 : vector<8x128xf32>
    %225 = math.tanh %224 : vector<8x128xf32>
    %226 = arith.mulf %221, %225 : vector<8x128xf32>
    %227 = vector.extract_strided_slice %201 {offsets = [0, 0], sizes = [8, 128], strides = [1, 1]} : vector<8x512xf32> to vector<8x128xf32>
    %228 = arith.negf %227 : vector<8x128xf32>
    %229 = math.exp %228 : vector<8x128xf32>
    %cst_63 = arith.constant 1.000000e+00 : f32
    %230 = vector.broadcast %cst_63 : f32 to vector<8x128xf32>
    %231 = arith.addf %230, %229 : vector<8x128xf32>
    %232 = arith.divf %230, %231 : vector<8x128xf32>
    %233 = vector.extract_strided_slice %201 {offsets = [0, 128], sizes = [8, 128], strides = [1, 1]} : vector<8x512xf32> to vector<8x128xf32>
    %234 = arith.negf %233 : vector<8x128xf32>
    %235 = math.exp %234 : vector<8x128xf32>
    %cst_64 = arith.constant 1.000000e+00 : f32
    %236 = vector.broadcast %cst_64 : f32 to vector<8x128xf32>
    %237 = arith.addf %236, %235 : vector<8x128xf32>
    %238 = arith.divf %236, %237 : vector<8x128xf32>
    %239 = vector.extract_strided_slice %201 {offsets = [0, 256], sizes = [8, 128], strides = [1, 1]} : vector<8x512xf32> to vector<8x128xf32>
    %240 = math.tanh %239 : vector<8x128xf32>
    %241 = vector.extract_strided_slice %201 {offsets = [0, 384], sizes = [8, 128], strides = [1, 1]} : vector<8x512xf32> to vector<8x128xf32>
    %242 = arith.negf %241 : vector<8x128xf32>
    %243 = math.exp %242 : vector<8x128xf32>
    %cst_65 = arith.constant 1.000000e+00 : f32
    %244 = vector.broadcast %cst_65 : f32 to vector<8x128xf32>
    %245 = arith.addf %244, %243 : vector<8x128xf32>
    %246 = arith.divf %244, %245 : vector<8x128xf32>
    %247 = arith.mulf %238, %189 : vector<8x128xf32>
    %248 = arith.mulf %232, %240 : vector<8x128xf32>
    %249 = arith.addf %247, %248 : vector<8x128xf32>
    %250 = math.tanh %249 : vector<8x128xf32>
    %251 = arith.mulf %246, %250 : vector<8x128xf32>
    %c24_66 = arith.constant 24 : index
    %c0_67 = arith.constant 0 : index
    %252 = vector.load %arg5[%c24_66, %c0_67] : memref<64x256xf32, #tpu.memory_space<vmem>>, vector<8x128xf32>
    tpu.vector_store %arg5[%c24_66, %c0_67], %226 {strides = array<i32>} : memref<64x256xf32, #tpu.memory_space<vmem>>, vector<8x128xf32>,
    %c32_68 = arith.constant 32 : index
    %c128_69 = arith.constant 128 : index
    %253 = vector.load %arg5[%c32_68, %c128_69] : memref<64x256xf32, #tpu.memory_space<vmem>>, vector<8x128xf32>
    tpu.vector_store %arg5[%c32_68, %c128_69], %251 {strides = array<i32>} : memref<64x256xf32, #tpu.memory_space<vmem>>, vector<8x128xf32>,
    %c32_70 = arith.constant 32 : index
    %c0_71 = arith.constant 0 : index
    %254 = vector.load %arg6[%c32_70, %c0_71] : memref<64x1024xf32, #tpu.memory_space<vmem>>, vector<8x512xf32>
    %255 = arith.truncf %226 : vector<8x128xf32> to vector<8x128xbf16>
    %cst_72 = arith.constant dense<0.000000e+00> : vector<8x512xf32>
    %256 = tpu.matmul %255, %8, %cst_72 {dimension_numbers = #tpu.dot_dimension_numbers<[1], [0], [0], [1], [0, 0, 1, 1], [], []>} : vector<8x128xbf16>, vector<128x512xbf16>, vector<8x512xf32> -> vector<8x512xf32>
    %257 = arith.addf %254, %256 : vector<8x512xf32>
    %c24_73 = arith.constant 24 : index
    %c512_74 = arith.constant 512 : index
    %258 = vector.load %arg6[%c24_73, %c512_74] : memref<64x1024xf32, #tpu.memory_space<vmem>>, vector<8x512xf32>
    %259 = arith.truncf %251 : vector<8x128xf32> to vector<8x128xbf16>
    %cst_75 = arith.constant dense<0.000000e+00> : vector<8x512xf32>
    %260 = tpu.matmul %259, %9, %cst_75 {dimension_numbers = #tpu.dot_dimension_numbers<[1], [0], [0], [1], [0, 0, 1, 1], [], []>} : vector<8x128xbf16>, vector<128x512xbf16>, vector<8x512xf32> -> vector<8x512xf32>
    %261 = arith.addf %258, %260 : vector<8x512xf32>
    %262 = vector.extract_strided_slice %257 {offsets = [0, 0], sizes = [8, 128], strides = [1, 1]} : vector<8x512xf32> to vector<8x128xf32>
    %263 = arith.negf %262 : vector<8x128xf32>
    %264 = math.exp %263 : vector<8x128xf32>
    %cst_76 = arith.constant 1.000000e+00 : f32
    %265 = vector.broadcast %cst_76 : f32 to vector<8x128xf32>
    %266 = arith.addf %265, %264 : vector<8x128xf32>
    %267 = arith.divf %265, %266 : vector<8x128xf32>
    %268 = vector.extract_strided_slice %257 {offsets = [0, 128], sizes = [8, 128], strides = [1, 1]} : vector<8x512xf32> to vector<8x128xf32>
    %269 = arith.negf %268 : vector<8x128xf32>
    %270 = math.exp %269 : vector<8x128xf32>
    %cst_77 = arith.constant 1.000000e+00 : f32
    %271 = vector.broadcast %cst_77 : f32 to vector<8x128xf32>
    %272 = arith.addf %271, %270 : vector<8x128xf32>
    %273 = arith.divf %271, %272 : vector<8x128xf32>
    %274 = vector.extract_strided_slice %257 {offsets = [0, 256], sizes = [8, 128], strides = [1, 1]} : vector<8x512xf32> to vector<8x128xf32>
    %275 = math.tanh %274 : vector<8x128xf32>
    %276 = vector.extract_strided_slice %257 {offsets = [0, 384], sizes = [8, 128], strides = [1, 1]} : vector<8x512xf32> to vector<8x128xf32>
    %277 = arith.negf %276 : vector<8x128xf32>
    %278 = math.exp %277 : vector<8x128xf32>
    %cst_78 = arith.constant 1.000000e+00 : f32
    %279 = vector.broadcast %cst_78 : f32 to vector<8x128xf32>
    %280 = arith.addf %279, %278 : vector<8x128xf32>
    %281 = arith.divf %279, %280 : vector<8x128xf32>
    %282 = arith.mulf %273, %224 : vector<8x128xf32>
    %283 = arith.mulf %267, %275 : vector<8x128xf32>
    %284 = arith.addf %282, %283 : vector<8x128xf32>
    %285 = math.tanh %284 : vector<8x128xf32>
    %286 = arith.mulf %281, %285 : vector<8x128xf32>
    %287 = vector.extract_strided_slice %261 {offsets = [0, 0], sizes = [8, 128], strides = [1, 1]} : vector<8x512xf32> to vector<8x128xf32>
    %288 = arith.negf %287 : vector<8x128xf32>
    %289 = math.exp %288 : vector<8x128xf32>
    %cst_79 = arith.constant 1.000000e+00 : f32
    %290 = vector.broadcast %cst_79 : f32 to vector<8x128xf32>
    %291 = arith.addf %290, %289 : vector<8x128xf32>
    %292 = arith.divf %290, %291 : vector<8x128xf32>
    %293 = vector.extract_strided_slice %261 {offsets = [0, 128], sizes = [8, 128], strides = [1, 1]} : vector<8x512xf32> to vector<8x128xf32>
    %294 = arith.negf %293 : vector<8x128xf32>
    %295 = math.exp %294 : vector<8x128xf32>
    %cst_80 = arith.constant 1.000000e+00 : f32
    %296 = vector.broadcast %cst_80 : f32 to vector<8x128xf32>
    %297 = arith.addf %296, %295 : vector<8x128xf32>
    %298 = arith.divf %296, %297 : vector<8x128xf32>
    %299 = vector.extract_strided_slice %261 {offsets = [0, 256], sizes = [8, 128], strides = [1, 1]} : vector<8x512xf32> to vector<8x128xf32>
    %300 = math.tanh %299 : vector<8x128xf32>
    %301 = vector.extract_strided_slice %261 {offsets = [0, 384], sizes = [8, 128], strides = [1, 1]} : vector<8x512xf32> to vector<8x128xf32>
    %302 = arith.negf %301 : vector<8x128xf32>
    %303 = math.exp %302 : vector<8x128xf32>
    %cst_81 = arith.constant 1.000000e+00 : f32
    %304 = vector.broadcast %cst_81 : f32 to vector<8x128xf32>
    %305 = arith.addf %304, %303 : vector<8x128xf32>
    %306 = arith.divf %304, %305 : vector<8x128xf32>
    %307 = arith.mulf %298, %249 : vector<8x128xf32>
    %308 = arith.mulf %292, %300 : vector<8x128xf32>
    %309 = arith.addf %307, %308 : vector<8x128xf32>
    %310 = math.tanh %309 : vector<8x128xf32>
    %311 = arith.mulf %306, %310 : vector<8x128xf32>
    %c32_82 = arith.constant 32 : index
    %c0_83 = arith.constant 0 : index
    %312 = vector.load %arg5[%c32_82, %c0_83] : memref<64x256xf32, #tpu.memory_space<vmem>>, vector<8x128xf32>
    tpu.vector_store %arg5[%c32_82, %c0_83], %286 {strides = array<i32>} : memref<64x256xf32, #tpu.memory_space<vmem>>, vector<8x128xf32>,
    %c24_84 = arith.constant 24 : index
    %c128_85 = arith.constant 128 : index
    %313 = vector.load %arg5[%c24_84, %c128_85] : memref<64x256xf32, #tpu.memory_space<vmem>>, vector<8x128xf32>
    tpu.vector_store %arg5[%c24_84, %c128_85], %311 {strides = array<i32>} : memref<64x256xf32, #tpu.memory_space<vmem>>, vector<8x128xf32>,
    %c40_86 = arith.constant 40 : index
    %c0_87 = arith.constant 0 : index
    %314 = vector.load %arg6[%c40_86, %c0_87] : memref<64x1024xf32, #tpu.memory_space<vmem>>, vector<8x512xf32>
    %315 = arith.truncf %286 : vector<8x128xf32> to vector<8x128xbf16>
    %cst_88 = arith.constant dense<0.000000e+00> : vector<8x512xf32>
    %316 = tpu.matmul %315, %8, %cst_88 {dimension_numbers = #tpu.dot_dimension_numbers<[1], [0], [0], [1], [0, 0, 1, 1], [], []>} : vector<8x128xbf16>, vector<128x512xbf16>, vector<8x512xf32> -> vector<8x512xf32>
    %317 = arith.addf %314, %316 : vector<8x512xf32>
    %c16_89 = arith.constant 16 : index
    %c512_90 = arith.constant 512 : index
    %318 = vector.load %arg6[%c16_89, %c512_90] : memref<64x1024xf32, #tpu.memory_space<vmem>>, vector<8x512xf32>
    %319 = arith.truncf %311 : vector<8x128xf32> to vector<8x128xbf16>
    %cst_91 = arith.constant dense<0.000000e+00> : vector<8x512xf32>
    %320 = tpu.matmul %319, %9, %cst_91 {dimension_numbers = #tpu.dot_dimension_numbers<[1], [0], [0], [1], [0, 0, 1, 1], [], []>} : vector<8x128xbf16>, vector<128x512xbf16>, vector<8x512xf32> -> vector<8x512xf32>
    %321 = arith.addf %318, %320 : vector<8x512xf32>
    %322 = vector.extract_strided_slice %317 {offsets = [0, 0], sizes = [8, 128], strides = [1, 1]} : vector<8x512xf32> to vector<8x128xf32>
    %323 = arith.negf %322 : vector<8x128xf32>
    %324 = math.exp %323 : vector<8x128xf32>
    %cst_92 = arith.constant 1.000000e+00 : f32
    %325 = vector.broadcast %cst_92 : f32 to vector<8x128xf32>
    %326 = arith.addf %325, %324 : vector<8x128xf32>
    %327 = arith.divf %325, %326 : vector<8x128xf32>
    %328 = vector.extract_strided_slice %317 {offsets = [0, 128], sizes = [8, 128], strides = [1, 1]} : vector<8x512xf32> to vector<8x128xf32>
    %329 = arith.negf %328 : vector<8x128xf32>
    %330 = math.exp %329 : vector<8x128xf32>
    %cst_93 = arith.constant 1.000000e+00 : f32
    %331 = vector.broadcast %cst_93 : f32 to vector<8x128xf32>
    %332 = arith.addf %331, %330 : vector<8x128xf32>
    %333 = arith.divf %331, %332 : vector<8x128xf32>
    %334 = vector.extract_strided_slice %317 {offsets = [0, 256], sizes = [8, 128], strides = [1, 1]} : vector<8x512xf32> to vector<8x128xf32>
    %335 = math.tanh %334 : vector<8x128xf32>
    %336 = vector.extract_strided_slice %317 {offsets = [0, 384], sizes = [8, 128], strides = [1, 1]} : vector<8x512xf32> to vector<8x128xf32>
    %337 = arith.negf %336 : vector<8x128xf32>
    %338 = math.exp %337 : vector<8x128xf32>
    %cst_94 = arith.constant 1.000000e+00 : f32
    %339 = vector.broadcast %cst_94 : f32 to vector<8x128xf32>
    %340 = arith.addf %339, %338 : vector<8x128xf32>
    %341 = arith.divf %339, %340 : vector<8x128xf32>
    %342 = arith.mulf %333, %284 : vector<8x128xf32>
    %343 = arith.mulf %327, %335 : vector<8x128xf32>
    %344 = arith.addf %342, %343 : vector<8x128xf32>
    %345 = math.tanh %344 : vector<8x128xf32>
    %346 = arith.mulf %341, %345 : vector<8x128xf32>
    %347 = vector.extract_strided_slice %321 {offsets = [0, 0], sizes = [8, 128], strides = [1, 1]} : vector<8x512xf32> to vector<8x128xf32>
    %348 = arith.negf %347 : vector<8x128xf32>
    %349 = math.exp %348 : vector<8x128xf32>
    %cst_95 = arith.constant 1.000000e+00 : f32
    %350 = vector.broadcast %cst_95 : f32 to vector<8x128xf32>
    %351 = arith.addf %350, %349 : vector<8x128xf32>
    %352 = arith.divf %350, %351 : vector<8x128xf32>
    %353 = vector.extract_strided_slice %321 {offsets = [0, 128], sizes = [8, 128], strides = [1, 1]} : vector<8x512xf32> to vector<8x128xf32>
    %354 = arith.negf %353 : vector<8x128xf32>
    %355 = math.exp %354 : vector<8x128xf32>
    %cst_96 = arith.constant 1.000000e+00 : f32
    %356 = vector.broadcast %cst_96 : f32 to vector<8x128xf32>
    %357 = arith.addf %356, %355 : vector<8x128xf32>
    %358 = arith.divf %356, %357 : vector<8x128xf32>
    %359 = vector.extract_strided_slice %321 {offsets = [0, 256], sizes = [8, 128], strides = [1, 1]} : vector<8x512xf32> to vector<8x128xf32>
    %360 = math.tanh %359 : vector<8x128xf32>
    %361 = vector.extract_strided_slice %321 {offsets = [0, 384], sizes = [8, 128], strides = [1, 1]} : vector<8x512xf32> to vector<8x128xf32>
    %362 = arith.negf %361 : vector<8x128xf32>
    %363 = math.exp %362 : vector<8x128xf32>
    %cst_97 = arith.constant 1.000000e+00 : f32
    %364 = vector.broadcast %cst_97 : f32 to vector<8x128xf32>
    %365 = arith.addf %364, %363 : vector<8x128xf32>
    %366 = arith.divf %364, %365 : vector<8x128xf32>
    %367 = arith.mulf %358, %309 : vector<8x128xf32>
    %368 = arith.mulf %352, %360 : vector<8x128xf32>
    %369 = arith.addf %367, %368 : vector<8x128xf32>
    %370 = math.tanh %369 : vector<8x128xf32>
    %371 = arith.mulf %366, %370 : vector<8x128xf32>
    %c40_98 = arith.constant 40 : index
    %c0_99 = arith.constant 0 : index
    %372 = vector.load %arg5[%c40_98, %c0_99] : memref<64x256xf32, #tpu.memory_space<vmem>>, vector<8x128xf32>
    tpu.vector_store %arg5[%c40_98, %c0_99], %346 {strides = array<i32>} : memref<64x256xf32, #tpu.memory_space<vmem>>, vector<8x128xf32>,
    %c16_100 = arith.constant 16 : index
    %c128_101 = arith.constant 128 : index
    %373 = vector.load %arg5[%c16_100, %c128_101] : memref<64x256xf32, #tpu.memory_space<vmem>>, vector<8x128xf32>
    tpu.vector_store %arg5[%c16_100, %c128_101], %371 {strides = array<i32>} : memref<64x256xf32, #tpu.memory_space<vmem>>, vector<8x128xf32>,
    %c48_102 = arith.constant 48 : index
    %c0_103 = arith.constant 0 : index
    %374 = vector.load %arg6[%c48_102, %c0_103] : memref<64x1024xf32, #tpu.memory_space<vmem>>, vector<8x512xf32>
    %375 = arith.truncf %346 : vector<8x128xf32> to vector<8x128xbf16>
    %cst_104 = arith.constant dense<0.000000e+00> : vector<8x512xf32>
    %376 = tpu.matmul %375, %8, %cst_104 {dimension_numbers = #tpu.dot_dimension_numbers<[1], [0], [0], [1], [0, 0, 1, 1], [], []>} : vector<8x128xbf16>, vector<128x512xbf16>, vector<8x512xf32> -> vector<8x512xf32>
    %377 = arith.addf %374, %376 : vector<8x512xf32>
    %c8_105 = arith.constant 8 : index
    %c512_106 = arith.constant 512 : index
    %378 = vector.load %arg6[%c8_105, %c512_106] : memref<64x1024xf32, #tpu.memory_space<vmem>>, vector<8x512xf32>
    %379 = arith.truncf %371 : vector<8x128xf32> to vector<8x128xbf16>
    %cst_107 = arith.constant dense<0.000000e+00> : vector<8x512xf32>
    %380 = tpu.matmul %379, %9, %cst_107 {dimension_numbers = #tpu.dot_dimension_numbers<[1], [0], [0], [1], [0, 0, 1, 1], [], []>} : vector<8x128xbf16>, vector<128x512xbf16>, vector<8x512xf32> -> vector<8x512xf32>
    %381 = arith.addf %378, %380 : vector<8x512xf32>
    %382 = vector.extract_strided_slice %377 {offsets = [0, 0], sizes = [8, 128], strides = [1, 1]} : vector<8x512xf32> to vector<8x128xf32>
    %383 = arith.negf %382 : vector<8x128xf32>
    %384 = math.exp %383 : vector<8x128xf32>
    %cst_108 = arith.constant 1.000000e+00 : f32
    %385 = vector.broadcast %cst_108 : f32 to vector<8x128xf32>
    %386 = arith.addf %385, %384 : vector<8x128xf32>
    %387 = arith.divf %385, %386 : vector<8x128xf32>
    %388 = vector.extract_strided_slice %377 {offsets = [0, 128], sizes = [8, 128], strides = [1, 1]} : vector<8x512xf32> to vector<8x128xf32>
    %389 = arith.negf %388 : vector<8x128xf32>
    %390 = math.exp %389 : vector<8x128xf32>
    %cst_109 = arith.constant 1.000000e+00 : f32
    %391 = vector.broadcast %cst_109 : f32 to vector<8x128xf32>
    %392 = arith.addf %391, %390 : vector<8x128xf32>
    %393 = arith.divf %391, %392 : vector<8x128xf32>
    %394 = vector.extract_strided_slice %377 {offsets = [0, 256], sizes = [8, 128], strides = [1, 1]} : vector<8x512xf32> to vector<8x128xf32>
    %395 = math.tanh %394 : vector<8x128xf32>
    %396 = vector.extract_strided_slice %377 {offsets = [0, 384], sizes = [8, 128], strides = [1, 1]} : vector<8x512xf32> to vector<8x128xf32>
    %397 = arith.negf %396 : vector<8x128xf32>
    %398 = math.exp %397 : vector<8x128xf32>
    %cst_110 = arith.constant 1.000000e+00 : f32
    %399 = vector.broadcast %cst_110 : f32 to vector<8x128xf32>
    %400 = arith.addf %399, %398 : vector<8x128xf32>
    %401 = arith.divf %399, %400 : vector<8x128xf32>
    %402 = arith.mulf %393, %344 : vector<8x128xf32>
    %403 = arith.mulf %387, %395 : vector<8x128xf32>
    %404 = arith.addf %402, %403 : vector<8x128xf32>
    %405 = math.tanh %404 : vector<8x128xf32>
    %406 = arith.mulf %401, %405 : vector<8x128xf32>
    %407 = vector.extract_strided_slice %381 {offsets = [0, 0], sizes = [8, 128], strides = [1, 1]} : vector<8x512xf32> to vector<8x128xf32>
    %408 = arith.negf %407 : vector<8x128xf32>
    %409 = math.exp %408 : vector<8x128xf32>
    %cst_111 = arith.constant 1.000000e+00 : f32
    %410 = vector.broadcast %cst_111 : f32 to vector<8x128xf32>
    %411 = arith.addf %410, %409 : vector<8x128xf32>
    %412 = arith.divf %410, %411 : vector<8x128xf32>
    %413 = vector.extract_strided_slice %381 {offsets = [0, 128], sizes = [8, 128], strides = [1, 1]} : vector<8x512xf32> to vector<8x128xf32>
    %414 = arith.negf %413 : vector<8x128xf32>
    %415 = math.exp %414 : vector<8x128xf32>
    %cst_112 = arith.constant 1.000000e+00 : f32
    %416 = vector.broadcast %cst_112 : f32 to vector<8x128xf32>
    %417 = arith.addf %416, %415 : vector<8x128xf32>
    %418 = arith.divf %416, %417 : vector<8x128xf32>
    %419 = vector.extract_strided_slice %381 {offsets = [0, 256], sizes = [8, 128], strides = [1, 1]} : vector<8x512xf32> to vector<8x128xf32>
    %420 = math.tanh %419 : vector<8x128xf32>
    %421 = vector.extract_strided_slice %381 {offsets = [0, 384], sizes = [8, 128], strides = [1, 1]} : vector<8x512xf32> to vector<8x128xf32>
    %422 = arith.negf %421 : vector<8x128xf32>
    %423 = math.exp %422 : vector<8x128xf32>
    %cst_113 = arith.constant 1.000000e+00 : f32
    %424 = vector.broadcast %cst_113 : f32 to vector<8x128xf32>
    %425 = arith.addf %424, %423 : vector<8x128xf32>
    %426 = arith.divf %424, %425 : vector<8x128xf32>
    %427 = arith.mulf %418, %369 : vector<8x128xf32>
    %428 = arith.mulf %412, %420 : vector<8x128xf32>
    %429 = arith.addf %427, %428 : vector<8x128xf32>
    %430 = math.tanh %429 : vector<8x128xf32>
    %431 = arith.mulf %426, %430 : vector<8x128xf32>
    %c48_114 = arith.constant 48 : index
    %c0_115 = arith.constant 0 : index
    %432 = vector.load %arg5[%c48_114, %c0_115] : memref<64x256xf32, #tpu.memory_space<vmem>>, vector<8x128xf32>
    tpu.vector_store %arg5[%c48_114, %c0_115], %406 {strides = array<i32>} : memref<64x256xf32, #tpu.memory_space<vmem>>, vector<8x128xf32>,
    %c8_116 = arith.constant 8 : index
    %c128_117 = arith.constant 128 : index
    %433 = vector.load %arg5[%c8_116, %c128_117] : memref<64x256xf32, #tpu.memory_space<vmem>>, vector<8x128xf32>
    tpu.vector_store %arg5[%c8_116, %c128_117], %431 {strides = array<i32>} : memref<64x256xf32, #tpu.memory_space<vmem>>, vector<8x128xf32>,
    %c56_118 = arith.constant 56 : index
    %c0_119 = arith.constant 0 : index
    %434 = vector.load %arg6[%c56_118, %c0_119] : memref<64x1024xf32, #tpu.memory_space<vmem>>, vector<8x512xf32>
    %435 = arith.truncf %406 : vector<8x128xf32> to vector<8x128xbf16>
    %cst_120 = arith.constant dense<0.000000e+00> : vector<8x512xf32>
    %436 = tpu.matmul %435, %8, %cst_120 {dimension_numbers = #tpu.dot_dimension_numbers<[1], [0], [0], [1], [0, 0, 1, 1], [], []>} : vector<8x128xbf16>, vector<128x512xbf16>, vector<8x512xf32> -> vector<8x512xf32>
    %437 = arith.addf %434, %436 : vector<8x512xf32>
    %c0_121 = arith.constant 0 : index
    %c512_122 = arith.constant 512 : index
    %438 = vector.load %arg6[%c0_121, %c512_122] : memref<64x1024xf32, #tpu.memory_space<vmem>>, vector<8x512xf32>
    %439 = arith.truncf %431 : vector<8x128xf32> to vector<8x128xbf16>
    %cst_123 = arith.constant dense<0.000000e+00> : vector<8x512xf32>
    %440 = tpu.matmul %439, %9, %cst_123 {dimension_numbers = #tpu.dot_dimension_numbers<[1], [0], [0], [1], [0, 0, 1, 1], [], []>} : vector<8x128xbf16>, vector<128x512xbf16>, vector<8x512xf32> -> vector<8x512xf32>
    %441 = arith.addf %438, %440 : vector<8x512xf32>
    %442 = vector.extract_strided_slice %437 {offsets = [0, 0], sizes = [8, 128], strides = [1, 1]} : vector<8x512xf32> to vector<8x128xf32>
    %443 = arith.negf %442 : vector<8x128xf32>
    %444 = math.exp %443 : vector<8x128xf32>
    %cst_124 = arith.constant 1.000000e+00 : f32
    %445 = vector.broadcast %cst_124 : f32 to vector<8x128xf32>
    %446 = arith.addf %445, %444 : vector<8x128xf32>
    %447 = arith.divf %445, %446 : vector<8x128xf32>
    %448 = vector.extract_strided_slice %437 {offsets = [0, 128], sizes = [8, 128], strides = [1, 1]} : vector<8x512xf32> to vector<8x128xf32>
    %449 = arith.negf %448 : vector<8x128xf32>
    %450 = math.exp %449 : vector<8x128xf32>
    %cst_125 = arith.constant 1.000000e+00 : f32
    %451 = vector.broadcast %cst_125 : f32 to vector<8x128xf32>
    %452 = arith.addf %451, %450 : vector<8x128xf32>
    %453 = arith.divf %451, %452 : vector<8x128xf32>
    %454 = vector.extract_strided_slice %437 {offsets = [0, 256], sizes = [8, 128], strides = [1, 1]} : vector<8x512xf32> to vector<8x128xf32>
    %455 = math.tanh %454 : vector<8x128xf32>
    %456 = vector.extract_strided_slice %437 {offsets = [0, 384], sizes = [8, 128], strides = [1, 1]} : vector<8x512xf32> to vector<8x128xf32>
    %457 = arith.negf %456 : vector<8x128xf32>
    %458 = math.exp %457 : vector<8x128xf32>
    %cst_126 = arith.constant 1.000000e+00 : f32
    %459 = vector.broadcast %cst_126 : f32 to vector<8x128xf32>
    %460 = arith.addf %459, %458 : vector<8x128xf32>
    %461 = arith.divf %459, %460 : vector<8x128xf32>
    %462 = arith.mulf %453, %404 : vector<8x128xf32>
    %463 = arith.mulf %447, %455 : vector<8x128xf32>
    %464 = arith.addf %462, %463 : vector<8x128xf32>
    %465 = math.tanh %464 : vector<8x128xf32>
    %466 = arith.mulf %461, %465 : vector<8x128xf32>
    %467 = vector.extract_strided_slice %441 {offsets = [0, 0], sizes = [8, 128], strides = [1, 1]} : vector<8x512xf32> to vector<8x128xf32>
    %468 = arith.negf %467 : vector<8x128xf32>
    %469 = math.exp %468 : vector<8x128xf32>
    %cst_127 = arith.constant 1.000000e+00 : f32
    %470 = vector.broadcast %cst_127 : f32 to vector<8x128xf32>
    %471 = arith.addf %470, %469 : vector<8x128xf32>
    %472 = arith.divf %470, %471 : vector<8x128xf32>
    %473 = vector.extract_strided_slice %441 {offsets = [0, 128], sizes = [8, 128], strides = [1, 1]} : vector<8x512xf32> to vector<8x128xf32>
    %474 = arith.negf %473 : vector<8x128xf32>
    %475 = math.exp %474 : vector<8x128xf32>
    %cst_128 = arith.constant 1.000000e+00 : f32
    %476 = vector.broadcast %cst_128 : f32 to vector<8x128xf32>
    %477 = arith.addf %476, %475 : vector<8x128xf32>
    %478 = arith.divf %476, %477 : vector<8x128xf32>
    %479 = vector.extract_strided_slice %441 {offsets = [0, 256], sizes = [8, 128], strides = [1, 1]} : vector<8x512xf32> to vector<8x128xf32>
    %480 = math.tanh %479 : vector<8x128xf32>
    %481 = vector.extract_strided_slice %441 {offsets = [0, 384], sizes = [8, 128], strides = [1, 1]} : vector<8x512xf32> to vector<8x128xf32>
    %482 = arith.negf %481 : vector<8x128xf32>
    %483 = math.exp %482 : vector<8x128xf32>
    %cst_129 = arith.constant 1.000000e+00 : f32
    %484 = vector.broadcast %cst_129 : f32 to vector<8x128xf32>
    %485 = arith.addf %484, %483 : vector<8x128xf32>
    %486 = arith.divf %484, %485 : vector<8x128xf32>
    %487 = arith.mulf %478, %429 : vector<8x128xf32>
    %488 = arith.mulf %472, %480 : vector<8x128xf32>
    %489 = arith.addf %487, %488 : vector<8x128xf32>
    %490 = math.tanh %489 : vector<8x128xf32>
    %491 = arith.mulf %486, %490 : vector<8x128xf32>
    %c56_130 = arith.constant 56 : index
    %c0_131 = arith.constant 0 : index
    %492 = vector.load %arg5[%c56_130, %c0_131] : memref<64x256xf32, #tpu.memory_space<vmem>>, vector<8x128xf32>
    tpu.vector_store %arg5[%c56_130, %c0_131], %466 {strides = array<i32>} : memref<64x256xf32, #tpu.memory_space<vmem>>, vector<8x128xf32>,
    %c0_132 = arith.constant 0 : index
    %c128_133 = arith.constant 128 : index
    %493 = vector.load %arg5[%c0_132, %c128_133] : memref<64x256xf32, #tpu.memory_space<vmem>>, vector<8x128xf32>
    tpu.vector_store %arg5[%c0_132, %c128_133], %491 {strides = array<i32>} : memref<64x256xf32, #tpu.memory_space<vmem>>, vector<8x128xf32>,
    return
  }
}

</mosaic_0001>

<bundles_post_ra>
// kernel: birnn_forward.2
= control target key start
LH: loop header
LB: loop body
LE: loop exit
PB: predicated region body
PF: predicated region fallthrough
CT: control target
= control target key end

     0   :  { %10 = vsyncpa [#allocation4], 0  ;;  %s5141_s0 = inlined_call_operand.vmem [shape: f32[64,32], index: 0, kind: input, shape index: {}]   ;;  %s5142_s1 = inlined_call_operand.hbm [shape: bf16[32,1024], index: 1, kind: input, shape index: {}]   ;;  %s5143_s2 = inlined_call_operand.vmem [shape: bf16[128,512], index: 2, kind: input, shape index: {}]   ;;  %s5144_s3 = inlined_call_operand.hbm [shape: bf16[128,512], index: 3, kind: input, shape index: {}]   ;;  %s5145_s4 = inlined_call_operand.vmem [shape: f32[1,1024], index: 4, kind: input, shape index: {}]   ;;  %s5146_s5 = inlined_call_operand.vmem [shape: f32[64,256], index: 5, kind: output, shape index: {}]  }
   0x1   :  { %s18_s20 = sshll.u32 %s5142_s1, 4  ;;  %s19_s20 = int_to_ptr.hbm [resolvable:$true] %s18_s20 }
   0x2   :  { %11 = vsyncpa [#allocation6], 0  ;;  %s3671_s21 = smov [#allocation3]   ;;  %s33_s25 = sshll.u32 %s5144_s3, 4  ;;  %s34_s25 = int_to_ptr.hbm [resolvable:$true] %s33_s25 }
   0x3   :  { %s20_s22 = sshll.u32 %s3671_s21, 4  ;;  %s3672_s26 = smov 512   ;;  %s21_s22 = int_to_ptr.vmem [resolvable:$true] %s20_s22 }
   0x4   :  { %s3673_s27 = smov 32   ;;  %s3674_s28 = smov [#allocation5]  }
   0x5   :  { %26 = dma.hbm_to_vmem [thread:$0]  %s19_s20, 2048, %s21_s22, [#allocation4], %s3672_s26, %s3672_s26, %s3673_s27  }
   0x6   :  { %s35_s29 = sshll.u32 %s3674_s28, 4  ;;  %s3675_s30 = smov 256   ;;  %s36_s29 = int_to_ptr.vmem [resolvable:$true] %s35_s29 }
   0x7   :  { %s3676_s6 = smov 16  }
   0x8   :  { %41 = dma.hbm_to_vmem [thread:$0]  %s34_s25, 4096, %s36_s29, [#allocation6], %s3675_s30, %s3675_s30, %s3676_s6  }
   0x9   :  { %3667 = dma.done.wait [#allocation4], 2048  }
   0xa   :  { %3668 = vsyncadd [#allocation4], 4294965248 }
   0xb   :  { %3669 = dma.done.wait [#allocation6], 4096  }
   0xc   :  { %3670 = vsyncadd [#allocation6], 4294963200  ;;  %v2910_v0 = vld [vmem:[#allocation3 + $0x40] sm:$0xf]  ;;  %v3284_v2 = vld [vmem:[#allocation3 + $0x44] sm:$0xf] }
   0xd   :  { %v3288_v1 = vld [vmem:[#allocation3 + $0x5c] sm:$0xf0]  ;;  %v2912_v4 = vld [vmem:[#allocation3 + $0x60] sm:$0xf0]  ;;  %v2918_v5 = vld [vmem:[#allocation3 + $0x48] sm:$0xf] }
   0xe   :  { %v2911_v3 = vor.u32 %v3288_v1, %v2910_v0  ;;  %v3289_v6 = vld [vmem:[#allocation3 + $0x64] sm:$0xf0]  ;;  %v2915_v7 = vor.u32 %v3284_v2, %v2912_v4  ;;  %v3285_v9 = vld [vmem:[#allocation3 + $0x4c] sm:$0xf]  ;;  %v2878_v11 = vld [vmem:[#allocation3] sm:$0xf] }
   0xf   :  { %v2919_v8 = vor.u32 %v3289_v6, %v2918_v5  ;;  %v2920_v10 = vld [vmem:[#allocation3 + $0x68] sm:$0xf0]  ;;  %v3280_v13 = vld [vmem:[#allocation3 + $0x1c] sm:$0xf0]  ;;  %v3276_v14 = vld [vmem:[#allocation3 + $0x4] sm:$0xf] }
  0x10   :  { %198 = vmatpush.bf16.msra.mxu0 %v2911_v3  ;;  %v2923_v12 = vor.u32 %v3285_v9, %v2920_v10  ;;  %v2880_v15 = vld [vmem:[#allocation3 + $0x20] sm:$0xf0]  ;;  %227 = vmatpush.bf16.msra.mxu1 %v2915_v7  ;;  %v2879_v16 = vor.u32 %v3280_v13, %v2878_v11  ;;  %v2886_v18 = vld [vmem:[#allocation3 + $0x8] sm:$0xf]  ;;  %v3277_v20 = vld [vmem:[#allocation3 + $0xc] sm:$0xf] }
  0x11   :  { %256 = vmatpush.bf16.msra.mxu2 %v2919_v8  ;;  %v2883_v17 = vor.u32 %v3276_v14, %v2880_v15  ;;  %v3281_v19 = vld [vmem:[#allocation3 + $0x24] sm:$0xf0]  ;;  %v2888_v22 = vld [vmem:[#allocation3 + $0x28] sm:$0xf0]  ;;  %v53_v23 = vld [vmem:[%s5141_s0] sm:$0xff]  ;;  %vm179_vm0 = vcmask 261120  }
  0x12   :  { %285 = vmatpush.bf16.msra.mxu3 %v2923_v12  ;;  %v2887_v21 = vor.u32 %v3281_v19, %v2886_v18  ;;  %v54_v24 = vld [vmem:[%s5141_s0 + $0x8] sm:$0xff]  ;;  %v2891_v25 = vor.u32 %v3277_v20, %v2888_v22  ;;  %v2926_v27 = vld [vmem:[#allocation3 + $0x50] sm:$0xf]  ;;  %v3286_v29 = vld [vmem:[#allocation3 + $0x54] sm:$0xf] }
  0x13   :  { %v3720_v26 = vpack.c.bf16 %v54_v24, %v53_v23  ;;  %v3290_v28 = vld [vmem:[#allocation3 + $0x6c] sm:$0xf0]  ;;  %v2928_v31 = vld [vmem:[#allocation3 + $0x70] sm:$0xf0]  ;;  %v3287_v32 = vld [vmem:[#allocation3 + $0x5c] sm:$0xf] }
  0x14   :  { %199 = vmatpush.bf16.msra.mxu0 %v2879_v16  ;;  %v2927_v30 = vor.u32 %v3290_v28, %v2926_v27  ;;  %v2936_v33 = vld [vmem:[#allocation3 + $0x78] sm:$0xf0]  ;;  %228 = vmatpush.bf16.msra.mxu1 %v2883_v17  ;;  %v2931_v34 = vor.u32 %v3286_v29, %v2928_v31  ;;  %v2934_v35 = vld [vmem:[#allocation3 + $0x58] sm:$0xf]  ;;  %v2894_v39 = vld [vmem:[#allocation3 + $0x10] sm:$0xf] }
  0x15   :  { %257 = vmatpush.bf16.msra.mxu2 %v2887_v21  ;;  %v3291_v36 = vld [vmem:[#allocation3 + $0x74] sm:$0xf0]  ;;  %v2939_v37 = vor.u32 %v3287_v32, %v2936_v33  ;;  %v3282_v40 = vld [vmem:[#allocation3 + $0x2c] sm:$0xf0]  ;;  %v3278_v41 = vld [vmem:[#allocation3 + $0x14] sm:$0xf] }
  0x16   :  { %286 = vmatpush.bf16.msra.mxu3 %v2891_v25  ;;  %v2935_v38 = vor.u32 %v3291_v36, %v2934_v35  ;;  %v2895_v42 = vor.u32 %v3282_v40, %v2894_v39  ;;  %v2896_v43 = vld [vmem:[#allocation3 + $0x30] sm:$0xf0]  ;;  %v3279_v44 = vld [vmem:[#allocation3 + $0x1c] sm:$0xf]  ;;  %v2902_v48 = vld [vmem:[#allocation3 + $0x18] sm:$0xf] }
  0x17   :  { %2940 = vmatmul.msk.bf16.vlgmr.msra.gmra.mxu0 %vm179_vm0, %v3720_v26  ;;  %2944 = vmatmul.msk.bf16.vlgmr.msra.gmra.mxu1 %vm179_vm0, %v3720_v26  ;;  %v2904_v45 = vld [vmem:[#allocation3 + $0x38] sm:$0xf0]  ;;  %v2899_v46 = vor.u32 %v3278_v41, %v2896_v43  ;;  %v3283_v49 = vld [vmem:[#allocation3 + $0x34] sm:$0xf0]  ;;  %v55_v51 = vld [vmem:[%s5141_s0 + $0x10] sm:$0xff] }
  0x18   :  { %314 = vmatpush.bf16.msrb.mxu0 %v2927_v30  ;;  %343 = vmatpush.bf16.msrb.mxu1 %v2931_v34  ;;  %v2907_v47 = vor.u32 %v3279_v44, %v2904_v45  ;;  %v2903_v50 = vor.u32 %v3283_v49, %v2902_v48  ;;  %v56_v52 = vld [vmem:[%s5141_s0 + $0x18] sm:$0xff]  ;;  %v57_v54 = vld [vmem:[%s5141_s0 + $0x20] sm:$0xff]  ;;  %v58_v55 = vld [vmem:[%s5141_s0 + $0x28] sm:$0xff] }
  0x19   :  { %2948 = vmatmul.msk.bf16.vlgmr.msra.gmra.mxu2 %vm179_vm0, %v3720_v26  ;;  %2952 = vmatmul.msk.bf16.vlgmr.msra.gmra.mxu3 %vm179_vm0, %v3720_v26  ;;  %v3736_v53 = vpack.c.bf16 %v56_v52, %v55_v51  ;;  %v3752_v56 = vpack.c.bf16 %v58_v55, %v57_v54  ;;  %v3086_v57 = vld [vmem:[%s5143_s2 + $0xe0] sm:$0xf]  ;;  %v3322_v58 = vld [vmem:[%s5143_s2 + $0xec] sm:$0xf0]  ;;  %v3320_v59 = vld [vmem:[%s5143_s2 + $0xe4] sm:$0xf] }
  0x1a   :  { %372 = vmatpush.bf16.msrb.mxu2 %v2935_v38  ;;  %401 = vmatpush.bf16.msrb.mxu3 %v2939_v37  ;;  %v3771_v60 = vor.u32 %v3322_v58, %v3086_v57  ;;  %v3088_v61 = vld [vmem:[%s5143_s2 + $0xf0] sm:$0xf0]  ;;  %v3321_v62 = vld [vmem:[%s5143_s2 + $0xec] sm:$0xf]  ;;  %v3096_v63 = vld [vmem:[%s5143_s2 + $0xf8] sm:$0xf0] }
  0x1b   :  { %v3782_v0 = vor.u32 %v3320_v59, %v3088_v61  ;;  %v3784_v1 = vor.u32 %v3321_v62, %v3096_v63  ;;  %v3070_v2 = vld [vmem:[%s5143_s2 + $0xc0] sm:$0xf]  ;;  %v3318_v3 = vld [vmem:[%s5143_s2 + $0xcc] sm:$0xf0]  ;;  %v3316_v4 = vld [vmem:[%s5143_s2 + $0xc4] sm:$0xf] }
  0x1c   :  { %315 = vmatpush.bf16.msrb.mxu0 %v2895_v42  ;;  %344 = vmatpush.bf16.msrb.mxu1 %v2899_v46  ;;  %v3796_v5 = vor.u32 %v3318_v3, %v3070_v2  ;;  %v3072_v6 = vld [vmem:[%s5143_s2 + $0xd0] sm:$0xf0]  ;;  %v3317_v7 = vld [vmem:[%s5143_s2 + $0xcc] sm:$0xf]  ;;  %v3080_v8 = vld [vmem:[%s5143_s2 + $0xd8] sm:$0xf0] }
  0x1d   :  { %v3809_v9 = vor.u32 %v3316_v4, %v3072_v6  ;;  %v3811_v10 = vor.u32 %v3317_v7, %v3080_v8  ;;  %v3094_v11 = vld [vmem:[%s5143_s2 + $0xe8] sm:$0xf]  ;;  %v3323_v12 = vld [vmem:[%s5143_s2 + $0xf4] sm:$0xf0]  ;;  %v59_v14 = vld [vmem:[%s5141_s0 + $0x30] sm:$0xff] }
  0x1e   :  { %402 = vmatpush.bf16.msrb.mxu3 %v2907_v47  ;;  %373 = vmatpush.bf16.msrb.mxu2 %v2903_v50  ;;  %v3819_v13 = vor.u32 %v3323_v12, %v3094_v11  ;;  %v60_v15 = vld [vmem:[%s5141_s0 + $0x38] sm:$0xff]  ;;  %v3054_v17 = vld [vmem:[%s5143_s2 + $0xa0] sm:$0xf]  ;;  %v3314_v18 = vld [vmem:[%s5143_s2 + $0xac] sm:$0xf0] }
  0x1f   :  { %v3831_v16 = vpack.c.bf16 %v60_v15, %v59_v14  ;;  %v3312_v19 = vld [vmem:[%s5143_s2 + $0xa4] sm:$0xf]  ;;  %v3850_v20 = vor.u32 %v3314_v18, %v3054_v17  ;;  %v3056_v21 = vld [vmem:[%s5143_s2 + $0xb0] sm:$0xf0]  ;;  %v3313_v22 = vld [vmem:[%s5143_s2 + $0xac] sm:$0xf] }
  0x20   :  { %716 = vmatpush.bf16.msra.mxu0 %v3771_v60  ;;  %729 = vmatpush.bf16.msra.mxu1 %v3782_v0  ;;  %v3064_v23 = vld [vmem:[%s5143_s2 + $0xb8] sm:$0xf0]  ;;  %v3861_v24 = vor.u32 %v3312_v19, %v3056_v21  ;;  %v3078_v27 = vld [vmem:[%s5143_s2 + $0xc8] sm:$0xf]  ;;  %v3319_v28 = vld [vmem:[%s5143_s2 + $0xd4] sm:$0xf0] }
  0x21   :  { %5236 = vst [vmem:[#allocation9_spill] sm:$0xff] %v3850_v20  ;;  %v3863_v25 = vor.u32 %v3313_v22, %v3064_v23  ;;  %v3038_v29 = vld [vmem:[%s5143_s2 + $0x80] sm:$0xf]  ;;  %v3875_v30 = vor.u32 %v3319_v28, %v3078_v27  ;;  %v3310_v31 = vld [vmem:[%s5143_s2 + $0x8c] sm:$0xf0] }
  0x22   :  { %755 = vmatpush.bf16.msra.mxu3 %v3784_v1  ;;  %742 = vmatpush.bf16.msra.mxu2 %v3819_v13  ;;  %v3308_v32 = vld [vmem:[%s5143_s2 + $0x84] sm:$0xf]  ;;  %v3040_v33 = vld [vmem:[%s5143_s2 + $0x90] sm:$0xf0]  ;;  %v3888_v34 = vor.u32 %v3310_v31, %v3038_v29  ;;  %v3062_v36 = vld [vmem:[%s5143_s2 + $0xa8] sm:$0xf] }
  0x23   :  { %v3890_v35 = vor.u32 %v3308_v32, %v3040_v33  ;;  %v3315_v37 = vld [vmem:[%s5143_s2 + $0xb4] sm:$0xf0]  ;;  %v3309_v38 = vld [vmem:[%s5143_s2 + $0x8c] sm:$0xf]  ;;  %v3048_v40 = vld [vmem:[%s5143_s2 + $0x98] sm:$0xf0] }
  0x24   :  { %717 = vmatpush.bf16.msra.mxu0 %v3796_v5  ;;  %730 = vmatpush.bf16.msra.mxu1 %v3809_v9  ;;  %v3902_v39 = vor.u32 %v3315_v37, %v3062_v36  ;;  %v3907_v41 = vor.u32 %v3309_v38, %v3048_v40  ;;  %v3046_v42 = vld [vmem:[%s5143_s2 + $0x88] sm:$0xf]  ;;  %v3311_v43 = vld [vmem:[%s5143_s2 + $0x94] sm:$0xf0]  ;;  %v3022_v45 = vld [vmem:[%s5143_s2 + $0x60] sm:$0xf] }
  0x25   :  { %v3921_v44 = vor.u32 %v3311_v43, %v3046_v42  ;;  %v3306_v46 = vld [vmem:[%s5143_s2 + $0x6c] sm:$0xf0]  ;;  %v3304_v47 = vld [vmem:[%s5143_s2 + $0x64] sm:$0xf]  ;;  %v3030_v49 = vld [vmem:[%s5143_s2 + $0x68] sm:$0xf] }
  0x26   :  { %756 = vmatpush.bf16.msra.mxu3 %v3811_v10  ;;  %743 = vmatpush.bf16.msra.mxu2 %v3875_v30  ;;  %5237 = vst [vmem:[#allocation10_spill] sm:$0xff] %v3902_v39  ;;  %v3939_v48 = vor.u32 %v3306_v46, %v3022_v45  ;;  %v3307_v50 = vld [vmem:[%s5143_s2 + $0x74] sm:$0xf0]  ;;  %v3305_v54 = vld [vmem:[%s5143_s2 + $0x6c] sm:$0xf] }
  0x27   :  { %2941 = vmatmul.msk.bf16.gmra.mxu0 %vm179_vm0, %v3736_v53  ;;  %2945 = vmatmul.msk.bf16.gmra.mxu1 %vm179_vm0, %v3736_v53  ;;  %v3952_v52 = vor.u32 %v3307_v50, %v3030_v49  ;;  %v3032_v55 = vld [vmem:[%s5143_s2 + $0x78] sm:$0xf0]  ;;  %v3006_v57 = vld [vmem:[%s5143_s2 + $0x40] sm:$0xf]  ;;  %v3302_v59 = vld [vmem:[%s5143_s2 + $0x4c] sm:$0xf0] }
  0x28   :  { %718 = vmatpush.bf16.msra.mxu0 %v3850_v20  ;;  %731 = vmatpush.bf16.msra.mxu1 %v3861_v24  ;;  %5238 = vst [vmem:[#allocation11_spill] sm:$0xff] %v3939_v48  ;;  %v3964_v58 = vor.u32 %v3305_v54, %v3032_v55  ;;  %v3300_v61 = vld [vmem:[%s5143_s2 + $0x44] sm:$0xf]  ;;  %v3008_v62 = vld [vmem:[%s5143_s2 + $0x50] sm:$0xf0]  ;;  %v3977_v63 = vor.u32 %v3302_v59, %v3006_v57 }
  0x29   :  { %2949 = vmatmul.msk.bf16.gmra.mxu2 %vm179_vm0, %v3736_v53  ;;  %2953 = vmatmul.msk.bf16.gmra.mxu3 %vm179_vm0, %v3736_v53  ;;  %v3979_v2 = vor.u32 %v3300_v61, %v3008_v62  ;;  %v3014_v3 = vld [vmem:[%s5143_s2 + $0x48] sm:$0xf]  ;;  %v3303_v4 = vld [vmem:[%s5143_s2 + $0x54] sm:$0xf0]  ;;  %v3301_v6 = vld [vmem:[%s5143_s2 + $0x4c] sm:$0xf] }
  0x2a   :  { %757 = vmatpush.bf16.msra.mxu3 %v3863_v25  ;;  %744 = vmatpush.bf16.msra.mxu2 %v3902_v39  ;;  %v3991_v7 = vor.u32 %v3303_v4, %v3014_v3  ;;  %v3016_v8 = vld [vmem:[%s5143_s2 + $0x58] sm:$0xf0]  ;;  %v2990_v11 = vld [vmem:[%s5143_s2 + $0x20] sm:$0xf]  ;;  %v3298_v12 = vld [vmem:[%s5143_s2 + $0x2c] sm:$0xf0] }
  0x2b   :  { %v4002_v14 = vor.u32 %v3301_v6, %v3016_v8  ;;  %v3296_v15 = vld [vmem:[%s5143_s2 + $0x24] sm:$0xf]  ;;  %v2992_v17 = vld [vmem:[%s5143_s2 + $0x30] sm:$0xf0]  ;;  %v2998_v18 = vld [vmem:[%s5143_s2 + $0x28] sm:$0xf]  ;;  %v4014_v19 = vor.u32 %v3298_v12, %v2990_v11 }
  0x2c   :  { %719 = vmatpush.bf16.msra.mxu0 %v3888_v34  ;;  %732 = vmatpush.bf16.msra.mxu1 %v3890_v35  ;;  %v3299_v21 = vld [vmem:[%s5143_s2 + $0x34] sm:$0xf0]  ;;  %v3297_v22 = vld [vmem:[%s5143_s2 + $0x2c] sm:$0xf]  ;;  %v3000_v23 = vld [vmem:[%s5143_s2 + $0x38] sm:$0xf0]  ;;  %v4027_v27 = vor.u32 %v3296_v15, %v2992_v17 }
  0x2d   :  { %v4029_v28 = vor.u32 %v3299_v21, %v2998_v18  ;;  %v4032_v29 = vor.u32 %v3297_v22, %v3000_v23  ;;  %v2974_v31 = vld [vmem:[%s5143_s2] sm:$0xf]  ;;  %v3294_v32 = vld [vmem:[%s5143_s2 + $0xc] sm:$0xf0]  ;;  %v3292_v33 = vld [vmem:[%s5143_s2 + $0x4] sm:$0xf] }
  0x2e   :  { %758 = vmatpush.bf16.msra.mxu3 %v3907_v41  ;;  %745 = vmatpush.bf16.msra.mxu2 %v3921_v44  ;;  %v4049_v36 = vor.u32 %v3294_v32, %v2974_v31  ;;  %v2976_v37 = vld [vmem:[%s5143_s2 + $0x10] sm:$0xf0]  ;;  %v2982_v38 = vld [vmem:[%s5143_s2 + $0x8] sm:$0xf]  ;;  %v3295_v40 = vld [vmem:[%s5143_s2 + $0x14] sm:$0xf0] }
  0x2f   :  { %v4064_v42 = vor.u32 %v3292_v33, %v2976_v37  ;;  %v4066_v43 = vor.u32 %v3295_v40, %v2982_v38  ;;  %v3293_v45 = vld [vmem:[%s5143_s2 + $0xc] sm:$0xf]  ;;  %v2984_v46 = vld [vmem:[%s5143_s2 + $0x18] sm:$0xf0]  ;;  %v3354_v49 = vld [vmem:[#allocation5 + $0xec] sm:$0xf0] }
  0x30   :  { %720 = vmatpush.bf16.msra.mxu0 %v3939_v48  ;;  %v3352_v50 = vld [vmem:[#allocation5 + $0xe4] sm:$0xf]  ;;  %v3216_v54 = vld [vmem:[#allocation5 + $0xf0] sm:$0xf0]  ;;  %v3222_v59 = vld [vmem:[#allocation5 + $0xe8] sm:$0xf] }
  0x31   :  { %v4083_v57 = vor.u32 %v3352_v50, %v3216_v54  ;;  %v3355_v61 = vld [vmem:[#allocation5 + $0xf4] sm:$0xf0]  ;;  %v3353_v62 = vld [vmem:[#allocation5 + $0xec] sm:$0xf]  ;;  %v3224_v3 = vld [vmem:[#allocation5 + $0xf8] sm:$0xf0] }
  0x32   :  { %746 = vmatpush.bf16.msra.mxu2 %v3952_v52  ;;  %759 = vmatpush.bf16.msra.mxu3 %v3964_v58  ;;  %v3198_v4 = vld [vmem:[#allocation5 + $0xc0] sm:$0xf]  ;;  %v3350_v6 = vld [vmem:[#allocation5 + $0xcc] sm:$0xf0]  ;;  %v4090_v8 = vor.u32 %v3353_v62, %v3224_v3  ;;  %v3348_v12 = vld [vmem:[#allocation5 + $0xc4] sm:$0xf] }
  0x33   :  { %5241 = vst [vmem:[#allocation14_spill] sm:$0xff] %v4083_v57  ;;  %v4092_v11 = vor.u32 %v3350_v6, %v3198_v4  ;;  %v3200_v15 = vld [vmem:[#allocation5 + $0xd0] sm:$0xf0]  ;;  %v3206_v17 = vld [vmem:[#allocation5 + $0xc8] sm:$0xf] }
  0x34   :  { %721 = vmatpush.bf16.msra.mxu0 %v3977_v63  ;;  %5243 = vst [vmem:[#allocation16_spill] sm:$0xff] %v4090_v8  ;;  %v4095_v18 = vor.u32 %v3348_v12, %v3200_v15  ;;  %v3351_v21 = vld [vmem:[#allocation5 + $0xd4] sm:$0xf0]  ;;  %v3349_v22 = vld [vmem:[#allocation5 + $0xcc] sm:$0xf] }
  0x35   :  { %5244 = vst [vmem:[#allocation17_spill] sm:$0xff] %v4092_v11  ;;  %v3208_v23 = vld [vmem:[#allocation5 + $0xd8] sm:$0xf0]  ;;  %v4098_v31 = vor.u32 %v3351_v21, %v3206_v17  ;;  %v3182_v33 = vld [vmem:[#allocation5 + $0xa0] sm:$0xf] }
  0x36   :  { %747 = vmatpush.bf16.msra.mxu2 %v3991_v7  ;;  %760 = vmatpush.bf16.msra.mxu3 %v4002_v14  ;;  %5245 = vst [vmem:[#allocation18_spill] sm:$0xff] %v4095_v18  ;;  %v4100_v32 = vor.u32 %v3349_v22, %v3208_v23  ;;  %v3346_v37 = vld [vmem:[#allocation5 + $0xac] sm:$0xf0]  ;;  %v3344_v38 = vld [vmem:[#allocation5 + $0xa4] sm:$0xf] }
  0x37   :  { %2942 = vmatmul.msk.bf16.gmra.mxu0 %vm179_vm0, %v3752_v56  ;;  %2946 = vmatmul.msk.bf16.gmra.mxu1 %vm179_vm0, %v3752_v56  ;;  %5246 = vst [vmem:[#allocation19_spill] sm:$0xff] %v4098_v31  ;;  %v3184_v40 = vld [vmem:[#allocation5 + $0xb0] sm:$0xf0]  ;;  %v3345_v50 = vld [vmem:[#allocation5 + $0xac] sm:$0xf] }
  0x38   :  { %722 = vmatpush.bf16.msra.mxu0 %v4014_v19  ;;  %5247 = vst [vmem:[#allocation20_spill] sm:$0xff] %v4100_v32  ;;  %v3192_v54 = vld [vmem:[#allocation5 + $0xb8] sm:$0xf0]  ;;  %v3166_v62 = vld [vmem:[#allocation5 + $0x80] sm:$0xf] }
  0x39   :  { %2950 = vmatmul.msk.bf16.gmra.mxu2 %vm179_vm0, %v3752_v56  ;;  %2954 = vmatmul.msk.bf16.gmra.mxu3 %vm179_vm0, %v3752_v56  ;;  %v3342_v3 = vld [vmem:[#allocation5 + $0x8c] sm:$0xf0]  ;;  %v3340_v4 = vld [vmem:[#allocation5 + $0x84] sm:$0xf]  ;;  %v3168_v6 = vld [vmem:[#allocation5 + $0x90] sm:$0xf0] }
  0x3a   :  { %748 = vmatpush.bf16.msra.mxu2 %v4029_v28  ;;  %761 = vmatpush.bf16.msra.mxu3 %v4032_v29  ;;  %v3174_v12 = vld [vmem:[#allocation5 + $0x88] sm:$0xf]  ;;  %v3343_v15 = vld [vmem:[#allocation5 + $0x94] sm:$0xf0]  ;;  %v4117_v17 = vor.u32 %v3342_v3, %v3166_v62  ;;  %v3341_v21 = vld [vmem:[#allocation5 + $0x8c] sm:$0xf]  ;;  %v4120_v23 = vor.u32 %v3340_v4, %v3168_v6 }
  0x3b   :  { %v3176_v22 = vld [vmem:[#allocation5 + $0x98] sm:$0xf0]  ;;  %v3337_v3 = vld [vmem:[#allocation5 + $0x6c] sm:$0xf] }
  0x3c   :  { %723 = vmatpush.bf16.msra.mxu0 %v4049_v36  ;;  %5252 = vst [vmem:[#allocation25_spill] sm:$0xff] %v4117_v17  ;;  %v3160_v4 = vld [vmem:[#allocation5 + $0x78] sm:$0xf0] }
  0x3d   :  { %5253 = vst [vmem:[#allocation26_spill] sm:$0xff] %v4120_v23 }
  0x3e   :  { %749 = vmatpush.bf16.msra.mxu2 %v4066_v43 }
  0x47   :  { %2943 = vmatmul.msk.bf16.gmra.mxu0 %vm179_vm0, %v3831_v16  ;;  %2947 = vmatmul.msk.bf16.gmra.mxu1 %vm179_vm0, %v3831_v16 }
  0x49   :  { %2951 = vmatmul.msk.bf16.gmra.mxu2 %vm179_vm0, %v3831_v16  ;;  %2955 = vmatmul.msk.bf16.gmra.mxu3 %vm179_vm0, %v3831_v16 }
  0x57   :  { %2956 = vmatmul.msk.bf16.vlgmr.msrb.gmra.mxu0 %vm179_vm0, %v3720_v26  ;;  %2960 = vmatmul.msk.bf16.vlgmr.msrb.gmra.mxu1 %vm179_vm0, %v3720_v26 }
  0x59   :  { %2964 = vmatmul.msk.bf16.vlgmr.msrb.gmra.mxu2 %vm179_vm0, %v3720_v26  ;;  %2968 = vmatmul.msk.bf16.vlgmr.msrb.gmra.mxu3 %vm179_vm0, %v3720_v26  ;;  %v3024_v26 = vld [vmem:[%s5143_s2 + $0x70] sm:$0xf0] }
  0x5a   :  { %v3950_v51 = vor.u32 %v3304_v47, %v3024_v26  ;;  %v3214_v47 = vld [vmem:[#allocation5 + $0xe0] sm:$0xf]  ;;  %v4077_v26 = vor.u32 %v3293_v45, %v2984_v46  ;;  %v3190_v45 = vld [vmem:[#allocation5 + $0xa8] sm:$0xf]  ;;  %v3347_v46 = vld [vmem:[#allocation5 + $0xb4] sm:$0xf0] }
  0x5b   :  { %v4081_v55 = vor.u32 %v3354_v49, %v3214_v47  ;;  %v4104_v47 = vor.u32 %v3346_v37, %v3182_v33  ;;  %v4106_v49 = vor.u32 %v3344_v38, %v3184_v40  ;;  %v4122_v33 = vor.u32 %v3343_v15, %v3174_v12  ;;  %v3150_v38 = vld [vmem:[#allocation5 + $0x60] sm:$0xf]  ;;  %v3338_v40 = vld [vmem:[#allocation5 + $0x6c] sm:$0xf0] }
  0x5c   :  { %733 = vmatpush.bf16.msra.mxu1 %v3950_v51  ;;  %5239 = vst [vmem:[#allocation12_spill] sm:$0xff] %v4077_v26  ;;  %762 = vmatpush.bf16.msra.mxu3 %v4077_v26  ;;  %v4126_v37 = vor.u32 %v3341_v21, %v3176_v22  ;;  %v4135_v62 = vor.u32 %v3338_v40, %v3150_v38  ;;  %v3134_v21 = vld [vmem:[#allocation5 + $0x40] sm:$0xf]  ;;  %v3332_v22 = vld [vmem:[#allocation5 + $0x44] sm:$0xf] }
  0x5d   :  { %5240 = vst [vmem:[#allocation13_spill] sm:$0xff] %v4081_v55  ;;  %936 = vmatpush.bf16.msrb.mxu0 %v4081_v55  ;;  %v4144_v15 = vor.u32 %v3337_v3, %v3160_v4  ;;  %v3142_v38 = vld [vmem:[#allocation5 + $0x48] sm:$0xf]  ;;  %v3328_v3 = vld [vmem:[#allocation5 + $0x24] sm:$0xf] }
  0x5e   :  { %5248 = vst [vmem:[#allocation21_spill] sm:$0xff] %v4104_v47 }
  0x5f   :  { %5249 = vst [vmem:[#allocation22_spill] sm:$0xff] %v4106_v49 }
  0x60   :  { %734 = vmatpush.bf16.msra.mxu1 %v3979_v2  ;;  %975 = vmatpush.bf16.msrb.mxu3 %v4090_v8  ;;  %5254 = vst [vmem:[#allocation27_spill] sm:$0xff] %v4122_v33 }
  0x61   :  { %937 = vmatpush.bf16.msrb.mxu0 %v4092_v11  ;;  %5255 = vst [vmem:[#allocation28_spill] sm:$0xff] %v4126_v37 }
  0x62   :  { %5256 = vst [vmem:[#allocation29_spill] sm:$0xff] %v4135_v62 }
  0x63   :  { %5259 = vst [vmem:[#allocation32_spill] sm:$0xff] %v4144_v15 }
  0x64   :  { %735 = vmatpush.bf16.msra.mxu1 %v4027_v27  ;;  %976 = vmatpush.bf16.msrb.mxu3 %v4100_v32 }
  0x65   :  { %938 = vmatpush.bf16.msrb.mxu0 %v4104_v47 }
  0x67   :  { %2957 = vmatmul.msk.bf16.gmra.mxu0 %vm179_vm0, %v3736_v53  ;;  %2961 = vmatmul.msk.bf16.gmra.mxu1 %vm179_vm0, %v3736_v53 }
  0x68   :  { %736 = vmatpush.bf16.msra.mxu1 %v4064_v42 }
  0x69   :  { %2965 = vmatmul.msk.bf16.gmra.mxu2 %vm179_vm0, %v3736_v53  ;;  %2969 = vmatmul.msk.bf16.gmra.mxu3 %vm179_vm0, %v3736_v53  ;;  %v4086_v53 = vor.u32 %v3355_v61, %v3222_v59  ;;  %v4109_v59 = vor.u32 %v3347_v46, %v3190_v45  ;;  %v4112_v61 = vor.u32 %v3345_v50, %v3192_v54  ;;  %v3336_v45 = vld [vmem:[#allocation5 + $0x64] sm:$0xf]  ;;  %v3152_v46 = vld [vmem:[#allocation5 + $0x70] sm:$0xf0]  ;;  %v3158_v50 = vld [vmem:[#allocation5 + $0x68] sm:$0xf] }
  0x6a   :  { %v3339_v54 = vld [vmem:[#allocation5 + $0x74] sm:$0xf0]  ;;  %939 = vmatpush.bf16.msrb.mxu0 %v4117_v17  ;;  %v4139_v6 = vor.u32 %v3336_v45, %v3152_v46  ;;  %v3136_v17 = vld [vmem:[#allocation5 + $0x50] sm:$0xf0] }
  0x6b   :  { %5242 = vst [vmem:[#allocation15_spill] sm:$0xff] %v4086_v53  ;;  %962 = vmatpush.bf16.msrb.mxu2 %v4086_v53  ;;  %977 = vmatpush.bf16.msrb.mxu3 %v4112_v61  ;;  %v4141_v12 = vor.u32 %v3339_v54, %v3158_v50  ;;  %v4151_v45 = vor.u32 %v3332_v22, %v3136_v17  ;;  %v3118_v50 = vld [vmem:[#allocation5 + $0x20] sm:$0xf]  ;;  %v3330_v54 = vld [vmem:[#allocation5 + $0x2c] sm:$0xf0] }
  0x6c   :  { %949 = vmatpush.bf16.msrb.mxu1 %v4083_v57  ;;  %5250 = vst [vmem:[#allocation23_spill] sm:$0xff] %v4109_v59  ;;  %v3326_v22 = vld [vmem:[#allocation5 + $0xc] sm:$0xf0] }
  0x6d   :  { %5251 = vst [vmem:[#allocation24_spill] sm:$0xff] %v4112_v61  ;;  %v3333_v61 = vld [vmem:[#allocation5 + $0x4c] sm:$0xf] }
  0x6e   :  { %5257 = vst [vmem:[#allocation30_spill] sm:$0xff] %v4139_v6  ;;  %940 = vmatpush.bf16.msrb.mxu0 %v4135_v62  ;;  %v3331_v62 = vld [vmem:[#allocation5 + $0x34] sm:$0xf0] }
  0x6f   :  { %963 = vmatpush.bf16.msrb.mxu2 %v4098_v31  ;;  %5258 = vst [vmem:[#allocation31_spill] sm:$0xff] %v4141_v12  ;;  %978 = vmatpush.bf16.msrb.mxu3 %v4126_v37  ;;  %v3329_v37 = vld [vmem:[#allocation5 + $0x2c] sm:$0xf] }
  0x70   :  { %950 = vmatpush.bf16.msrb.mxu1 %v4095_v18  ;;  %5261 = vst [vmem:[#allocation34_spill] sm:$0xff] %v4151_v45 }
  0x73   :  { %964 = vmatpush.bf16.msrb.mxu2 %v4109_v59  ;;  %979 = vmatpush.bf16.msrb.mxu3 %v4144_v15  ;;  %v3128_v59 = vld [vmem:[#allocation5 + $0x38] sm:$0xf0]  ;;  %v3104_v15 = vld [vmem:[#allocation5 + $0x10] sm:$0xf0] }
  0x74   :  { %951 = vmatpush.bf16.msrb.mxu1 %v4106_v49 }
  0x77   :  { %2958 = vmatmul.msk.bf16.gmra.mxu0 %vm179_vm0, %v3752_v56  ;;  %2962 = vmatmul.msk.bf16.gmra.mxu1 %vm179_vm0, %v3752_v56 }
  0x78   :  { %952 = vmatpush.bf16.msrb.mxu1 %v4120_v23  ;;  %965 = vmatpush.bf16.msrb.mxu2 %v4122_v33  ;;  %v3335_v23 = vld [vmem:[#allocation5 + $0x54] sm:$0xf0]  ;;  %v3144_v33 = vld [vmem:[#allocation5 + $0x58] sm:$0xf0] }
  0x79   :  { %2966 = vmatmul.msk.bf16.gmra.mxu2 %vm179_vm0, %v3752_v56  ;;  %2970 = vmatmul.msk.bf16.gmra.mxu3 %vm179_vm0, %v3752_v56  ;;  %v3334_v56 = vld [vmem:[#allocation5 + $0x4c] sm:$0xf0]  ;;  %v4153_v46 = vor.u32 %v3335_v23, %v3142_v38  ;;  %v4156_v4 = vor.u32 %v3333_v61, %v3144_v33  ;;  %v4168_v61 = vor.u32 %v3329_v37, %v3128_v59  ;;  %v3102_v33 = vld [vmem:[#allocation5] sm:$0xf]  ;;  %v3324_v38 = vld [vmem:[#allocation5 + $0x4] sm:$0xf] }
  0x7a   :  { %v4147_v40 = vor.u32 %v3334_v56, %v3134_v21  ;;  %v3120_v21 = vld [vmem:[#allocation5 + $0x30] sm:$0xf0]  ;;  %v3126_v56 = vld [vmem:[#allocation5 + $0x28] sm:$0xf] }
  0x7b   :  { %5262 = vst [vmem:[#allocation35_spill] sm:$0xff] %v4153_v46  ;;  %v4163_v17 = vor.u32 %v3328_v3, %v3120_v21  ;;  %v4165_v23 = vor.u32 %v3331_v62, %v3126_v56  ;;  %980 = vmatpush.bf16.msrb.mxu3 %v4156_v4  ;;  %v4175_v62 = vor.u32 %v3324_v38, %v3104_v15  ;;  %v4217_v56 = vld [vmem:[%s5145_s4] sm:$0xff] }
  0x7c   :  { %5260 = vst [vmem:[#allocation33_spill] sm:$0xff] %v4147_v40  ;;  %953 = vmatpush.bf16.msrb.mxu1 %v4139_v6  ;;  %966 = vmatpush.bf16.msrb.mxu2 %v4141_v12  ;;  %v4159_v6 = vor.u32 %v3330_v54, %v3118_v50  ;;  %v3110_v12 = vld [vmem:[#allocation5 + $0x8] sm:$0xf]  ;;  %v4171_v50 = vor.u32 %v3326_v22, %v3102_v33  ;;  %v3325_v54 = vld [vmem:[#allocation5 + $0xc] sm:$0xf]  ;;  %v4223_v33 = vperm.slane %v4217_v56, 0 }
  0x7d   :  { %5263 = vst [vmem:[#allocation36_spill] sm:$0xff] %v4156_v4  ;;  %941 = vmatpush.bf16.msrb.mxu0 %v4147_v40  ;;  %v3327_v40 = vld [vmem:[#allocation5 + $0x14] sm:$0xf0]  ;;  %v4229_v38 = vperm.slane %v4217_v56, 1 }
  0x7e   :  { %5264 = vst [vmem:[#allocation37_spill] sm:$0xff] %v4159_v6  ;;  %v4177_v59 = vor.u32 %v3327_v40, %v3110_v12  ;;  %v3677_v40 = vmov 0  }
  0x7f   :  { %5265 = vst [vmem:[#allocation38_spill] sm:$0xff] %v4163_v17  ;;  %981 = vmatpush.bf16.msrb.mxu3 %v4168_v61 }
  0x80   :  { %954 = vmatpush.bf16.msrb.mxu1 %v4151_v45  ;;  %967 = vmatpush.bf16.msrb.mxu2 %v4153_v46  ;;  %5266 = vst [vmem:[#allocation39_spill] sm:$0xff] %v4165_v23  ;;  %v3112_v46 = vld [vmem:[#allocation5 + $0x18] sm:$0xf0] }
  0x81   :  { %5267 = vst [vmem:[#allocation40_spill] sm:$0xff] %v4168_v61  ;;  %942 = vmatpush.bf16.msrb.mxu0 %v4159_v6  ;;  %v4182_v37 = vor.u32 %v3325_v54, %v3112_v46 }
  0x82   :  { %5268 = vst [vmem:[#allocation41_spill] sm:$0xff] %v4171_v50 }
  0x83   :  { %5269 = vst [vmem:[#allocation42_spill] sm:$0xff] %v4175_v62  ;;  %982 = vmatpush.bf16.msrb.mxu3 %v4182_v37 }
  0x84   :  { %955 = vmatpush.bf16.msrb.mxu1 %v4163_v17  ;;  %968 = vmatpush.bf16.msrb.mxu2 %v4165_v23  ;;  %5270 = vst [vmem:[#allocation43_spill] sm:$0xff] %v4177_v59 }
  0x85   :  { %5271 = vst [vmem:[#allocation44_spill] sm:$0xff] %v4182_v37  ;;  %943 = vmatpush.bf16.msrb.mxu0 %v4171_v50 }
  0x86   :  { %5274 = vst [vmem:[#allocation47_spill] sm:$0xff] %v4223_v33 }
  0x87   :  { %2959 = vmatmul.msk.bf16.gmra.mxu0 %vm179_vm0, %v3831_v16  ;;  %2963 = vmatmul.msk.bf16.gmra.mxu1 %vm179_vm0, %v3831_v16  ;;  %5276 = vst [vmem:[#allocation49_spill] sm:$0xff] %v4229_v38 }
  0x88   :  { %956 = vmatpush.bf16.msrb.mxu1 %v4175_v62  ;;  %969 = vmatpush.bf16.msrb.mxu2 %v4177_v59 }
  0x89   :  { %2967 = vmatmul.msk.bf16.gmra.mxu2 %vm179_vm0, %v3831_v16  ;;  %2971 = vmatmul.msk.bf16.gmra.mxu3 %vm179_vm0, %v3831_v16 }
  0x94   :  { %v4194_v12 = vpop.f32.mrf.mxu0  ;;  %v4196_v15 = vpop.f32.mrf.mxu1 }
  0x97   :  { %724 = vmatmul.bf16.vlgmr.msra.gmra.mxu0 %v3677_v40  ;;  %737 = vmatmul.bf16.vlgmr.msra.gmra.mxu1 %v3677_v40 }
  0x98   :  { %1125 = vmatpush.bf16.msra.mxu0 %v3771_v60  ;;  %1138 = vmatpush.bf16.msra.mxu1 %v3782_v0 }
  0x99   :  { %750 = vmatmul.bf16.vlgmr.msra.gmra.mxu2 %v3677_v40  ;;  %763 = vmatmul.bf16.vlgmr.msra.gmra.mxu3 %v3677_v40 }
  0x9a   :  { %1151 = vmatpush.bf16.msra.mxu2 %v3819_v13  ;;  %1164 = vmatpush.bf16.msra.mxu3 %v3784_v1 }
  0x9c   :  { %v4201_v16 = vpop.f32.mrf.mxu2  ;;  %v4204_v46 = vpop.f32.mrf.mxu3  ;;  %1126 = vmatpush.bf16.msra.mxu0 %v3796_v5  ;;  %1139 = vmatpush.bf16.msra.mxu1 %v3809_v9 }
  0x9d   :  { %v4206_v3 = vpop.f32.mrf.mxu0  ;;  %v4208_v21 = vpop.f32.mrf.mxu1 }
  0x9e   :  { %5272 = vst [vmem:[#allocation45_spill] sm:$0xff] %v4206_v3  ;;  %1152 = vmatpush.bf16.msra.mxu2 %v3875_v30  ;;  %1165 = vmatpush.bf16.msra.mxu3 %v3811_v10 }
  0x9f   :  { %5273 = vst [vmem:[#allocation46_spill] sm:$0xff] %v4208_v21 }
  0xa0   :  { %1127 = vmatpush.bf16.msra.mxu0 %v3850_v20  ;;  %1140 = vmatpush.bf16.msra.mxu1 %v3861_v24 }
  0xa2   :  { %1153 = vmatpush.bf16.msra.mxu2 %v3902_v39  ;;  %1166 = vmatpush.bf16.msra.mxu3 %v3863_v25 }
  0xa4   :  { %v4225_v22 = vpop.f32.mrf.mxu2  ;;  %v4231_v54 = vpop.f32.mrf.mxu3  ;;  %1128 = vmatpush.bf16.msra.mxu0 %v3888_v34  ;;  %1141 = vmatpush.bf16.msra.mxu1 %v3890_v35 }
  0xa5   :  { %5275 = vst [vmem:[#allocation48_spill] sm:$0xff] %v4225_v22  ;;  %v206_v21 = vpop.f32.mrf.mxu0  ;;  %v235_v20 = vpop.f32.mrf.mxu1 }
  0xa6   :  { %5277 = vst [vmem:[#allocation50_spill] sm:$0xff] %v4231_v54  ;;  %v4234_v3 = vadd.f32 %v206_v21, %v4223_v33  ;;  %v4238_v39 = vadd.f32 %v235_v20, %v4229_v38  ;;  %1154 = vmatpush.bf16.msra.mxu2 %v3921_v44  ;;  %1167 = vmatpush.bf16.msra.mxu3 %v3907_v41  ;;  %v4245_v21 = vperm.slane %v4217_v56, 2  ;;  %v4250_v20 = vperm.slane %v4217_v56, 3 }
  0xa7   :  { %944 = vmatmul.bf16.vlgmr.msrb.gmra.mxu0 %v3677_v40  ;;  %957 = vmatmul.bf16.vlgmr.msrb.gmra.mxu1 %v3677_v40 }
  0xa8   :  { %5278 = vst [vmem:[#allocation51_spill] sm:$0xff] %v4234_v3  ;;  %1129 = vmatpush.bf16.msra.mxu0 %v3939_v48  ;;  %1142 = vmatpush.bf16.msra.mxu1 %v3950_v51 }
  0xa9   :  { %5279 = vst [vmem:[#allocation52_spill] sm:$0xff] %v4238_v39  ;;  %970 = vmatmul.bf16.vlgmr.msrb.gmra.mxu2 %v3677_v40  ;;  %983 = vmatmul.bf16.vlgmr.msrb.gmra.mxu3 %v3677_v40 }
  0xaa   :  { %5280 = vst [vmem:[#allocation53_spill] sm:$0xff] %v4245_v21  ;;  %1155 = vmatpush.bf16.msra.mxu2 %v3952_v52  ;;  %1168 = vmatpush.bf16.msra.mxu3 %v3964_v58 }
  0xab   :  { %5281 = vst [vmem:[#allocation54_spill] sm:$0xff] %v4250_v20 }
  0xac   :  { %v264_v39 = vpop.f32.mrf.mxu2  ;;  %v293_v22 = vpop.f32.mrf.mxu3  ;;  %1130 = vmatpush.bf16.msra.mxu0 %v3977_v63  ;;  %1143 = vmatpush.bf16.msra.mxu1 %v3979_v2 }
  0xad   :  { %v4254_v3 = vadd.f32 %v264_v39, %v4245_v21  ;;  %v4256_v40 = vpop.f32.mrf.mxu0  ;;  %v4259_v54 = vadd.f32 %v293_v22, %v4250_v20  ;;  %v4261_v48 = vpop.f32.mrf.mxu1 }
  0xae   :  { %5283 = vst [vmem:[#allocation56_spill] sm:$0xff] %v4256_v40  ;;  %1156 = vmatpush.bf16.msra.mxu2 %v3991_v7  ;;  %1169 = vmatpush.bf16.msra.mxu3 %v4002_v14 }
  0xaf   :  { %5282 = vst [vmem:[#allocation55_spill] sm:$0xff] %v4254_v3 }
  0xb0   :  { %5284 = vst [vmem:[#allocation57_spill] sm:$0xff] %v4259_v54  ;;  %1131 = vmatpush.bf16.msra.mxu0 %v4014_v19  ;;  %1144 = vmatpush.bf16.msra.mxu1 %v4027_v27 }
  0xb1   :  { %5285 = vst [vmem:[#allocation58_spill] sm:$0xff] %v4261_v48 }
  0xb2   :  { %1157 = vmatpush.bf16.msra.mxu2 %v4029_v28  ;;  %1170 = vmatpush.bf16.msra.mxu3 %v4032_v29 }
  0xb4   :  { %v4270_v39 = vpop.f32.mrf.mxu2  ;;  %v4273_v22 = vpop.f32.mrf.mxu3  ;;  %1132 = vmatpush.bf16.msra.mxu0 %v4049_v36  ;;  %1145 = vmatpush.bf16.msra.mxu1 %v4064_v42 }
  0xb5   :  { %5286 = vst [vmem:[#allocation59_spill] sm:$0xff] %v4270_v39  ;;  %v211_v48 = vpop.f32.mrf.mxu0  ;;  %v240_v3 = vpop.f32.mrf.mxu1 }
  0xb6   :  { %5287 = vst [vmem:[#allocation60_spill] sm:$0xff] %v4273_v22  ;;  %v4276_v40 = vadd.f32 %v211_v48, %v4223_v33  ;;  %v4280_v54 = vadd.f32 %v240_v3, %v4229_v38  ;;  %1158 = vmatpush.bf16.msra.mxu2 %v4066_v43  ;;  %1171 = vmatpush.bf16.msra.mxu3 %v4077_v26 }
  0xb8   :  { %5288 = vst [vmem:[#allocation61_spill] sm:$0xff] %v4276_v40  ;;  %1186 = vmatpush.bf16.msrb.mxu0 %v4081_v55  ;;  %1199 = vmatpush.bf16.msrb.mxu1 %v4083_v57 }
  0xb9   :  { %5289 = vst [vmem:[#allocation62_spill] sm:$0xff] %v4280_v54 }
  0xba   :  { %1212 = vmatpush.bf16.msrb.mxu2 %v4086_v53  ;;  %1225 = vmatpush.bf16.msrb.mxu3 %v4090_v8 }
  0xbc   :  { %v269_v48 = vpop.f32.mrf.mxu2  ;;  %1187 = vmatpush.bf16.msrb.mxu0 %v4092_v11  ;;  %v298_v54 = vpop.f32.mrf.mxu3  ;;  %1200 = vmatpush.bf16.msrb.mxu1 %v4095_v18  ;;  %v5297_v18 = vld [vmem:[#allocation25_spill] sm:$0xff] }
  0xbd   :  { %v4291_v3 = vadd.f32 %v269_v48, %v4245_v21  ;;  %v4293_v40 = vpop.f32.mrf.mxu0  ;;  %v4298_v39 = vadd.f32 %v298_v54, %v4250_v20  ;;  %v4300_v22 = vpop.f32.mrf.mxu1  ;;  %v5294_v48 = vld [vmem:[#allocation23_spill] sm:$0xff]  ;;  %v5308_v11 = vld [vmem:[#allocation33_spill] sm:$0xff] }
  0xbe   :  { %5291 = vst [vmem:[#allocation64_spill] sm:$0xff] %v4293_v40  ;;  %1213 = vmatpush.bf16.msrb.mxu2 %v4098_v31  ;;  %1226 = vmatpush.bf16.msrb.mxu3 %v4100_v32 }
  0xbf   :  { %5290 = vst [vmem:[#allocation63_spill] sm:$0xff] %v4291_v3  ;;  %v5295_v3 = vld [vmem:[#allocation24_spill] sm:$0xff] }
  0xc0   :  { %5292 = vst [vmem:[#allocation65_spill] sm:$0xff] %v4298_v39  ;;  %1188 = vmatpush.bf16.msrb.mxu0 %v4104_v47  ;;  %1201 = vmatpush.bf16.msrb.mxu1 %v4106_v49  ;;  %v5299_v39 = vld [vmem:[#allocation26_spill] sm:$0xff]  ;;  %v5302_v49 = vld [vmem:[#allocation28_spill] sm:$0xff] }
  0xc1   :  { %5293 = vst [vmem:[#allocation66_spill] sm:$0xff] %v4300_v22  ;;  %v5300_v22 = vld [vmem:[#allocation27_spill] sm:$0xff] }
  0xc2   :  { %1214 = vmatpush.bf16.msrb.mxu2 %v5294_v48  ;;  %1227 = vmatpush.bf16.msrb.mxu3 %v5295_v3  ;;  %v5304_v3 = vld [vmem:[#allocation29_spill] sm:$0xff] }
  0xc4   :  { %v4307_v40 = vpop.f32.mrf.mxu2  ;;  %1189 = vmatpush.bf16.msrb.mxu0 %v5297_v18  ;;  %v4310_v31 = vpop.f32.mrf.mxu3  ;;  %1202 = vmatpush.bf16.msrb.mxu1 %v5299_v39  ;;  %v5306_v18 = vld [vmem:[#allocation31_spill] sm:$0xff] }
  0xc5   :  { %5296 = vst [vmem:[#allocation67_spill] sm:$0xff] %v4307_v40  ;;  %v216_v54 = vpop.f32.mrf.mxu0  ;;  %v245_v47 = vpop.f32.mrf.mxu1  ;;  %v5305_v40 = vld [vmem:[#allocation30_spill] sm:$0xff] }
  0xc6   :  { %5298 = vst [vmem:[#allocation68_spill] sm:$0xff] %v4310_v31  ;;  %1215 = vmatpush.bf16.msrb.mxu2 %v5300_v22  ;;  %v4315_v32 = vadd.f32 %v216_v54, %v4223_v33  ;;  %1228 = vmatpush.bf16.msrb.mxu3 %v5302_v49  ;;  %v4319_v48 = vadd.f32 %v245_v47, %v4229_v38  ;;  %v5307_v31 = vld [vmem:[#allocation32_spill] sm:$0xff]  ;;  %v5311_v47 = vld [vmem:[#allocation35_spill] sm:$0xff] }
  0xc8   :  { %5301 = vst [vmem:[#allocation69_spill] sm:$0xff] %v4315_v32  ;;  %1190 = vmatpush.bf16.msrb.mxu0 %v5304_v3  ;;  %1203 = vmatpush.bf16.msrb.mxu1 %v5305_v40 }
  0xc9   :  { %5303 = vst [vmem:[#allocation70_spill] sm:$0xff] %v4319_v48 }
  0xca   :  { %1216 = vmatpush.bf16.msrb.mxu2 %v5306_v18  ;;  %1229 = vmatpush.bf16.msrb.mxu3 %v5307_v31 }
  0xcc   :  { %v274_v39 = vpop.f32.mrf.mxu2  ;;  %1191 = vmatpush.bf16.msrb.mxu0 %v5308_v11  ;;  %v303_v32 = vpop.f32.mrf.mxu3  ;;  %1204 = vmatpush.bf16.msrb.mxu1 %v4151_v45 }
  0xcd   :  { %v4327_v54 = vadd.f32 %v274_v39, %v4245_v21  ;;  %v4329_v22 = vpop.f32.mrf.mxu0  ;;  %v4334_v48 = vadd.f32 %v303_v32, %v4250_v20  ;;  %v4336_v40 = vpop.f32.mrf.mxu1  ;;  %v4343_v39 = vperm.slane %v4217_v56, 4 }
  0xce   :  { %5310 = vst [vmem:[#allocation72_spill] sm:$0xff] %v4329_v22  ;;  %1217 = vmatpush.bf16.msrb.mxu2 %v5311_v47  ;;  %1230 = vmatpush.bf16.msrb.mxu3 %v4156_v4  ;;  %v4347_v22 = vperm.slane %v4217_v56, 5 }
  0xcf   :  { %5309 = vst [vmem:[#allocation71_spill] sm:$0xff] %v4327_v54 }
  0xd0   :  { %5312 = vst [vmem:[#allocation73_spill] sm:$0xff] %v4334_v48  ;;  %1192 = vmatpush.bf16.msrb.mxu0 %v4159_v6  ;;  %1205 = vmatpush.bf16.msrb.mxu1 %v4163_v17 }
  0xd1   :  { %5313 = vst [vmem:[#allocation74_spill] sm:$0xff] %v4336_v40 }
  0xd2   :  { %1218 = vmatpush.bf16.msrb.mxu2 %v4165_v23  ;;  %5314 = vst [vmem:[#allocation75_spill] sm:$0xff] %v4343_v39  ;;  %1231 = vmatpush.bf16.msrb.mxu3 %v4168_v61 }
  0xd3   :  { %5315 = vst [vmem:[#allocation76_spill] sm:$0xff] %v4347_v22 }
  0xd4   :  { %v4349_v32 = vpop.f32.mrf.mxu2  ;;  %1193 = vmatpush.bf16.msrb.mxu0 %v4171_v50  ;;  %v4352_v40 = vpop.f32.mrf.mxu3  ;;  %1206 = vmatpush.bf16.msrb.mxu1 %v4175_v62  ;;  %v4367_v50 = vperm.slane %v4217_v56, 7 }
  0xd5   :  { %5316 = vst [vmem:[#allocation77_spill] sm:$0xff] %v4349_v32  ;;  %v317_v54 = vpop.f32.mrf.mxu0  ;;  %v346_v23 = vpop.f32.mrf.mxu1  ;;  %v4364_v32 = vperm.slane %v4217_v56, 6 }
  0xd6   :  { %5317 = vst [vmem:[#allocation78_spill] sm:$0xff] %v4352_v40  ;;  %1219 = vmatpush.bf16.msrb.mxu2 %v4177_v59  ;;  %v4357_v48 = vadd.f32 %v317_v54, %v4343_v39  ;;  %1232 = vmatpush.bf16.msrb.mxu3 %v4182_v37  ;;  %v4361_v61 = vadd.f32 %v346_v23, %v4347_v22 }
  0xd7   :  { %5320 = vst [vmem:[#allocation81_spill] sm:$0xff] %v4364_v32 }
  0xd8   :  { %5318 = vst [vmem:[#allocation79_spill] sm:$0xff] %v4357_v48 }
  0xd9   :  { %5319 = vst [vmem:[#allocation80_spill] sm:$0xff] %v4361_v61 }
  0xda   :  { %5321 = vst [vmem:[#allocation82_spill] sm:$0xff] %v4367_v50 }
  0xdc   :  { %v375_v40 = vpop.f32.mrf.mxu2  ;;  %v404_v59 = vpop.f32.mrf.mxu3 }
  0xdd   :  { %v4370_v62 = vadd.f32 %v375_v40, %v4364_v32  ;;  %v4372_v17 = vpop.f32.mrf.mxu0  ;;  %v4375_v54 = vadd.f32 %v404_v59, %v4367_v50  ;;  %v4377_v48 = vpop.f32.mrf.mxu1 }
  0xde   :  { %5323 = vst [vmem:[#allocation84_spill] sm:$0xff] %v4372_v17 }
  0xdf   :  { %5322 = vst [vmem:[#allocation83_spill] sm:$0xff] %v4370_v62 }
  0xe0   :  { %5324 = vst [vmem:[#allocation85_spill] sm:$0xff] %v4375_v54 }
  0xe1   :  { %5325 = vst [vmem:[#allocation86_spill] sm:$0xff] %v4377_v48 }
  0xe4   :  { %v4379_v23 = vpop.f32.mrf.mxu2  ;;  %v4381_v61 = vpop.f32.mrf.mxu3 }
  0xe5   :  { %5326 = vst [vmem:[#allocation87_spill] sm:$0xff] %v4379_v23  ;;  %v322_v37 = vpop.f32.mrf.mxu0  ;;  %v351_v6 = vpop.f32.mrf.mxu1 }
  0xe6   :  { %5327 = vst [vmem:[#allocation88_spill] sm:$0xff] %v4381_v61  ;;  %v4384_v56 = vadd.f32 %v322_v37, %v4343_v39  ;;  %v4387_v40 = vadd.f32 %v351_v6, %v4347_v22 }
  0xe8   :  { %5328 = vst [vmem:[#allocation89_spill] sm:$0xff] %v4384_v56 }
  0xe9   :  { %5329 = vst [vmem:[#allocation90_spill] sm:$0xff] %v4387_v40 }
  0xec   :  { %v380_v62 = vpop.f32.mrf.mxu2  ;;  %v409_v59 = vpop.f32.mrf.mxu3 }
  0xed   :  { %v4390_v17 = vadd.f32 %v380_v62, %v4364_v32  ;;  %v4392_v54 = vpop.f32.mrf.mxu0  ;;  %v4395_v48 = vadd.f32 %v409_v59, %v4367_v50  ;;  %v4397_v23 = vpop.f32.mrf.mxu1 }
  0xee   :  { %5331 = vst [vmem:[#allocation92_spill] sm:$0xff] %v4392_v54 }
  0xef   :  { %5330 = vst [vmem:[#allocation91_spill] sm:$0xff] %v4390_v17 }
  0xf0   :  { %5332 = vst [vmem:[#allocation93_spill] sm:$0xff] %v4395_v48 }
  0xf1   :  { %5333 = vst [vmem:[#allocation94_spill] sm:$0xff] %v4397_v23 }
  0xf4   :  { %v4399_v61 = vpop.f32.mrf.mxu2  ;;  %v4401_v37 = vpop.f32.mrf.mxu3 }
  0xf5   :  { %5334 = vst [vmem:[#allocation95_spill] sm:$0xff] %v4399_v61  ;;  %v327_v56 = vpop.f32.mrf.mxu0  ;;  %v356_v40 = vpop.f32.mrf.mxu1 }
  0xf6   :  { %5335 = vst [vmem:[#allocation96_spill] sm:$0xff] %v4401_v37  ;;  %v4404_v6 = vadd.f32 %v327_v56, %v4343_v39  ;;  %v4407_v62 = vadd.f32 %v356_v40, %v4347_v22 }
  0xf8   :  { %5336 = vst [vmem:[#allocation97_spill] sm:$0xff] %v4404_v6 }
  0xf9   :  { %5337 = vst [vmem:[#allocation98_spill] sm:$0xff] %v4407_v62 }
  0xfc   :  { %v385_v17 = vpop.f32.mrf.mxu2  ;;  %v414_v59 = vpop.f32.mrf.mxu3 }
  0xfd   :  { %v4410_v54 = vadd.f32 %v385_v17, %v4364_v32  ;;  %v4412_v48 = vpop.f32.mrf.mxu0  ;;  %v4415_v23 = vadd.f32 %v414_v59, %v4367_v50  ;;  %v4417_v61 = vpop.f32.mrf.mxu1 }
  0xfe   :  { %5339 = vst [vmem:[#allocation100_spill] sm:$0xff] %v4412_v48 }
  0xff   :  { %5338 = vst [vmem:[#allocation99_spill] sm:$0xff] %v4410_v54 }
 0x100   :  { %5340 = vst [vmem:[#allocation101_spill] sm:$0xff] %v4415_v23 }
 0x101   :  { %5341 = vst [vmem:[#allocation102_spill] sm:$0xff] %v4417_v61 }
 0x104   :  { %v4419_v37 = vpop.f32.mrf.mxu2  ;;  %v4421_v56 = vpop.f32.mrf.mxu3 }
 0x105   :  { %5342 = vst [vmem:[#allocation103_spill] sm:$0xff] %v4419_v37  ;;  %v332_v6 = vpop.f32.mrf.mxu0  ;;  %v361_v62 = vpop.f32.mrf.mxu1 }
 0x106   :  { %5343 = vst [vmem:[#allocation104_spill] sm:$0xff] %v4421_v56  ;;  %v4424_v40 = vadd.f32 %v332_v6, %v4343_v39  ;;  %v4427_v17 = vadd.f32 %v361_v62, %v4347_v22  ;;  %v202_v56 = vadd.f32 %v4194_v12, %v4223_v33  ;;  %v231_v6 = vadd.f32 %v4196_v15, %v4229_v38 }
 0x108   :  { %5344 = vst [vmem:[#allocation105_spill] sm:$0xff] %v4424_v40 }
 0x109   :  { %5345 = vst [vmem:[#allocation106_spill] sm:$0xff] %v4427_v17 }
 0x10c   :  { %v390_v54 = vpop.f32.mrf.mxu2  ;;  %v419_v59 = vpop.f32.mrf.mxu3 }
 0x10d   :  { %v4430_v48 = vadd.f32 %v390_v54, %v4364_v32  ;;  %v334_v23 = vpop.f32.mrf.mxu0  ;;  %v4433_v61 = vadd.f32 %v419_v59, %v4367_v50  ;;  %v363_v37 = vpop.f32.mrf.mxu1  ;;  %v289_v59 = vadd.f32 %v4204_v46, %v4250_v20 }
 0x10f   :  { %5346 = vst [vmem:[#allocation107_spill] sm:$0xff] %v4430_v48 }
 0x110   :  { %5347 = vst [vmem:[#allocation108_spill] sm:$0xff] %v4433_v61 }
 0x114   :  { %v4437_v4 = vpop.f32.mrf.mxu2  ;;  %v421_v62 = vpop.f32.mrf.mxu3 }
 0x115   :  { %v725_v17 = vpop.f32.mrf.mxu0  ;;  %v738_v47 = vpop.f32.mrf.mxu1 }
 0x116   :  { %v768_v40 = vadd.f32 %v725_v17, %v202_v56  ;;  %v769_v54 = vadd.f32 %v738_v47, %v231_v6  ;;  %v335_v47 = vadd.f32 %v334_v23, %v4343_v39 }
 0x118   :  { %v3228_v48 = vmul.f32 -1.442695, %v768_v40  ;;  %v3229_v45 = vmul.f32 -1.442695, %v769_v54 }
 0x11a   :  { %3363 = vpow2.f32 %v3228_v48 }
 0x11b   :  { %3365 = vpow2.f32 %v3229_v45  ;;  %v364_v45 = vadd.f32 %v363_v37, %v4347_v22  ;;  %v422_v37 = vadd.f32 %v421_v62, %v4367_v50 }
 0x11c   :  { %v751_v61 = vpop.f32.mrf.mxu2  ;;  %v764_v11 = vpop.f32.mrf.mxu3 }
 0x11d   :  { %v727_v12 = vpop.f32.mrf.mxu0  ;;  %v771_v33 = vadd.f32 %v764_v11, %v289_v59  ;;  %v740_v31 = vpop.f32.mrf.mxu1  ;;  %v260_v11 = vadd.f32 %v4201_v16, %v4245_v21 }
 0x11f   :  { %v3230_v3 = vmul.f32 -1.442695, %v771_v33  ;;  %v770_v54 = vadd.f32 %v751_v61, %v260_v11 }
 0x120   :  { %v3364_v18 = vpop.eup %3363 }
 0x121   :  { %v3366_v15 = vpop.eup %3365  ;;  %v995_v38 = vadd.f32 1.0, %v3364_v18  ;;  %3367 = vpow2.f32 %v3230_v3 }
 0x122   :  { %v1014_v49 = vadd.f32 1.0, %v3366_v15 }
 0x123   :  { %3369 = vrcp.f32 %v995_v38  ;;  %vm1001_vm2 = vweird.f32 %v995_v38 }
 0x124   :  { %3371 = vrcp.f32 %v1014_v49  ;;  %v753_v48 = vpop.f32.mrf.mxu2  ;;  %v766_v56 = vpop.f32.mrf.mxu3  ;;  %v1024_v11 = vand.u32 2147483647, %v1014_v49  ;;  %vm1020_vm4 = vweird.f32 %v1014_v49 }
 0x125   :  { %v945_v46 = vpop.f32.mrf.mxu0  ;;  %v958_v17 = vpop.f32.mrf.mxu1  ;;  %v1005_v48 = vand.u32 2147483647, %v995_v38  ;;  %v1026_v56 = vand.u32 2147483648, %v1014_v49 }
 0x126   :  { %v988_v40 = vadd.f32 %v945_v46, %v335_v47  ;;  %v989_v31 = vadd.f32 %v958_v17, %v364_v45  ;;  %v1007_v46 = vand.u32 2147483648, %v995_v38  ;;  %vm1025_vm8 = vcmp.eq.f32.partialorder %v1024_v11, 8.507059e+37 }
 0x127   :  { %v3368_v33 = vpop.eup %3367  ;;  %vm1006_vm5 = vcmp.eq.f32.partialorder %v1005_v48, 8.507059e+37 }
 0x128   :  { %v3231_v6 = vmul.f32 -1.442695, %v988_v40  ;;  %v4447_v3 = vadd.f32 1.0, %v3368_v33  ;;  %v3232_v59 = vmul.f32 -1.442695, %v989_v31  ;;  %v1008_v50 = vor.u32 1.1754944e-38, %v1007_v46 }
 0x129   :  { %v3370_v18 = vpop.eup %3369 }
 0x12a   :  { %v3372_v23 = vpop.eup %3371  ;;  %v997_v12 = vmul.f32 %v3370_v18, %v995_v38  ;;  %3373 = vpow2.f32 %v3231_v6  ;;  %vm1002_vm1 = vweird.f32 %v3370_v18  ;;  %vm1040_vm10 = vweird.f32 %v4447_v3 }
 0x12b   :  { %v1016_v15 = vmul.f32 %v3372_v23, %v1014_v49  ;;  %3375 = vrcp.f32 %v4447_v3  ;;  %vm1021_vm3 = vweird.f32 %v3372_v23  ;;  %vm1003_vm6 = vmor %vm1001_vm2, %vm1002_vm1 }
 0x12c   :  { %v998_v47 = vsub.f32 1.0, %v997_v12  ;;  %3377 = vpow2.f32 %v3232_v59  ;;  %v971_v16 = vpop.f32.mrf.mxu2  ;;  %v984_v61 = vpop.f32.mrf.mxu3  ;;  %vm1022_vm7 = vmor %vm1020_vm4, %vm1021_vm3 }
 0x12d   :  { %v1017_v45 = vsub.f32 1.0, %v1016_v15  ;;  %3379 = vtanh.f32 %v770_v54  ;;  %v947_v40 = vpop.f32.mrf.mxu0  ;;  %v991_v31 = vadd.f32 %v984_v61, %v422_v37  ;;  %v960_v33 = vpop.f32.mrf.mxu1  ;;  %v1027_v15 = vor.u32 1.1754944e-38, %v1026_v56 }
 0x12e   :  { %v999_v17 = vmul.f32 %v3370_v18, %v998_v47 }
 0x12f   :  { %v1018_v6 = vmul.f32 %v3372_v23, %v1017_v45  ;;  %v3233_v59 = vmul.f32 -1.442695, %v991_v31 }
 0x130   :  { %v3374_v22 = vpop.eup %3373  ;;  %v1000_v62 = vadd.f32 %v3370_v18, %v999_v17 }
 0x131   :  { %v3376_v12 = vpop.eup %3375  ;;  %v1019_v54 = vadd.f32 %v3372_v23, %v1018_v6  ;;  %v1058_v39 = vadd.f32 1.0, %v3374_v22  ;;  %3381 = vpow2.f32 %v3233_v59 }
 0x132   :  { %v3378_v40 = vpop.eup %3377  ;;  %v1004_v47 = vsel %vm1003_vm6, %v3370_v18, %v1000_v62  ;;  %v1036_v37 = vmul.f32 %v3376_v12, %v4447_v3  ;;  %v393_v18 = vadd.f32 %v4437_v4, %v4364_v32  ;;  %vm1041_vm9 = vweird.f32 %v3376_v12  ;;  %v5376_v32 = vld [vmem:[#allocation40_spill] sm:$0xff] }
 0x133   :  { %v3380_v38 = vpop.eup %3379  ;;  %v1009_v45 = vsel %vm1006_vm5, %v1008_v50, %v1004_v47  ;;  %v1023_v61 = vsel %vm1022_vm7, %v3372_v23, %v1019_v54  ;;  %3383 = vrcp.f32 %v1058_v39  ;;  %v1077_v49 = vadd.f32 1.0, %v3378_v40  ;;  %vm4463_vm11 = vmor %vm1040_vm10, %vm1041_vm9 }
 0x134   :  { %v1028_v48 = vsel %vm1025_vm8, %v1027_v15, %v1023_v61  ;;  %v1051_v17 = vmul.f32 %v3380_v38, %v1009_v45  ;;  %v1037_v31 = vsub.f32 1.0, %v1036_v37  ;;  %v973_v56 = vpop.f32.mrf.mxu2  ;;  %v986_v46 = vpop.f32.mrf.mxu3  ;;  %v990_v23 = vadd.f32 %v971_v16, %v393_v18 }
 0x135   :  { %v1050_v33 = vmul.f32 0.0, %v1028_v48  ;;  %3385 = vrcp.f32 %v1077_v49  ;;  %v1046_v15 = vand.u32 2147483648, %v4447_v3  ;;  %v1044_v40 = vand.u32 2147483647, %v4447_v3 }
 0x136   :  { %v1038_v22 = vmul.f32 %v3376_v12, %v1037_v31  ;;  %v1068_v45 = vand.u32 2147483647, %v1058_v39  ;;  %v1070_v61 = vand.u32 2147483648, %v1058_v39  ;;  %v1089_v56 = vand.u32 2147483648, %v1077_v49 }
 0x137   :  { %v4454_v11 = vadd.f32 %v1051_v17, %v1050_v33  ;;  %v3382_v6 = vpop.eup %3381  ;;  %v1047_v48 = vor.u32 1.1754944e-38, %v1046_v15  ;;  %vm1045_vm13 = vcmp.eq.f32.partialorder %v1044_v40, 8.507059e+37  ;;  %vm1064_vm14 = vweird.f32 %v1058_v39 }
 0x138   :  { %v1039_v62 = vadd.f32 %v3376_v12, %v1038_v22  ;;  %v4457_v59 = vadd.f32 1.0, %v3382_v6  ;;  %v1087_v33 = vand.u32 2147483647, %v1077_v49  ;;  %vm1083_vm0 = vweird.f32 %v1077_v49 }
 0x139   :  { %v3384_v50 = vpop.eup %3383  ;;  %3387 = vtanh.f32 %v4454_v11  ;;  %vm1069_vm2 = vcmp.eq.f32.partialorder %v1068_v45, 8.507059e+37  ;;  %v1090_v4 = vor.u32 1.1754944e-38, %v1089_v56 }
 0x13a   :  { %v1060_v54 = vmul.f32 %v3384_v50, %v1058_v39  ;;  %3389 = vrcp.f32 %v4457_v59  ;;  %v1043_v16 = vsel %vm4463_vm11, %v3376_v12, %v1039_v62  ;;  %vm1065_vm12 = vweird.f32 %v3384_v50 }
 0x13b   :  { %v3386_v47 = vpop.eup %3385  ;;  %3391 = vtanh.f32 %v990_v23  ;;  %v1048_v46 = vsel %vm1045_vm13, %v1047_v48, %v1043_v16  ;;  %vm1066_vm1 = vmor %vm1064_vm14, %vm1065_vm12  ;;  %v1071_v12 = vor.u32 1.1754944e-38, %v1070_v61  ;;  %vm1088_vm4 = vcmp.eq.f32.partialorder %v1087_v33, 8.507059e+37  ;;  %v5350_v33 = vld [vmem:[#allocation9_spill] sm:$0xff] }
 0x13c   :  { %v1061_v37 = vsub.f32 1.0, %v1060_v54  ;;  %v1079_v38 = vmul.f32 %v3386_v47, %v1077_v49  ;;  %vm1084_vm15 = vweird.f32 %v3386_v47  ;;  %vm1103_vm6 = vweird.f32 %v4457_v59 }
 0x13d   :  { %vm1085_vm3 = vmor %vm1083_vm0, %vm1084_vm15 }
 0x13e   :  { %v1080_v17 = vsub.f32 1.0, %v1079_v38  ;;  %v1062_v31 = vmul.f32 %v3384_v50, %v1061_v37 }
 0x13f   :  { %v3388_v3 = vpop.eup %3387 }
 0x140   :  { %v1081_v22 = vmul.f32 %v3386_v47, %v1080_v17  ;;  %v1063_v18 = vadd.f32 %v3384_v50, %v1062_v31  ;;  %v1054_v6 = vmul.f32 %v3388_v3, %v1048_v46  ;;  %v3390_v54 = vpop.eup %3389  ;;  %v1109_v17 = vand.u32 2147483648, %v4457_v59  ;;  %v5351_v46 = vld [vmem:[#allocation10_spill] sm:$0xff] }
 0x141   :  { %v1099_v15 = vmul.f32 %v3390_v54, %v4457_v59  ;;  %v3392_v40 = vpop.eup %3391  ;;  %vm1104_vm5 = vweird.f32 %v3390_v54  ;;  %v1107_v31 = vand.u32 2147483647, %v4457_v59 }
 0x142   :  { %v1067_v62 = vsel %vm1066_vm1, %v3384_v50, %v1063_v18  ;;  %v1082_v23 = vadd.f32 %v3386_v47, %v1081_v22  ;;  %1118 = vst [vmem:[%s5146_s5] sm:$0xff] %v1054_v6  ;;  %v1124_v39 = vpack.c.bf16 %v1054_v6, %v1054_v6  ;;  %vm1105_vm7 = vmor %vm1103_vm6, %vm1104_vm5  ;;  %v1110_v56 = vor.u32 1.1754944e-38, %v1109_v17  ;;  %v5368_v17 = vld [vmem:[#allocation32_spill] sm:$0xff] }
 0x143   :  { %v1072_v37 = vsel %vm1069_vm2, %v1071_v12, %v1067_v62  ;;  %v1100_v16 = vsub.f32 1.0, %v1099_v15  ;;  %vm1108_vm8 = vcmp.eq.f32.partialorder %v1107_v31, 8.507059e+37  ;;  %v5353_v12 = vld [vmem:[#allocation17_spill] sm:$0xff]  ;;  %v5354_v62 = vld [vmem:[#allocation18_spill] sm:$0xff]  ;;  %v5356_v15 = vld [vmem:[#allocation20_spill] sm:$0xff] }
 0x144   :  { %v1086_v38 = vsel %vm1085_vm3, %v3386_v47, %v1082_v23  ;;  %v1114_v49 = vmul.f32 %v3392_v40, %v1072_v37  ;;  %1133 = vmatmul.bf16.vlgmr.msra.gmra.mxu0 %v1124_v39  ;;  %1146 = vmatmul.bf16.vlgmr.msra.gmra.mxu1 %v1124_v39  ;;  %v5355_v23 = vld [vmem:[#allocation19_spill] sm:$0xff]  ;;  %v5358_v40 = vld [vmem:[#allocation22_spill] sm:$0xff]  ;;  %v5360_v37 = vld [vmem:[#allocation24_spill] sm:$0xff] }
 0x145   :  { %v1091_v50 = vsel %vm1088_vm4, %v1090_v4, %v1086_v38  ;;  %1159 = vmatmul.bf16.vlgmr.msra.gmra.mxu2 %v1124_v39  ;;  %1172 = vmatmul.bf16.vlgmr.msra.gmra.mxu3 %v1124_v39  ;;  %v1101_v61 = vmul.f32 %v3390_v54, %v1100_v16  ;;  %v5357_v39 = vld [vmem:[#allocation21_spill] sm:$0xff]  ;;  %v5359_v4 = vld [vmem:[#allocation23_spill] sm:$0xff] }
 0x146   :  { %v1113_v45 = vmul.f32 0.0, %v1091_v50  ;;  %1375 = vmatpush.bf16.msra.mxu0 %v3771_v60  ;;  %1388 = vmatpush.bf16.msra.mxu1 %v3782_v0  ;;  %v5361_v38 = vld [vmem:[#allocation25_spill] sm:$0xff]  ;;  %v5363_v16 = vld [vmem:[#allocation27_spill] sm:$0xff]  ;;  %v5364_v50 = vld [vmem:[#allocation28_spill] sm:$0xff] }
 0x147   :  { %1401 = vmatpush.bf16.msra.mxu2 %v3819_v13  ;;  %1414 = vmatpush.bf16.msra.mxu3 %v3784_v1  ;;  %v1102_v47 = vadd.f32 %v3390_v54, %v1101_v61  ;;  %v5366_v61 = vld [vmem:[#allocation30_spill] sm:$0xff]  ;;  %v5369_v31 = vld [vmem:[#allocation33_spill] sm:$0xff] }
 0x148   :  { %v4478_v48 = vadd.f32 %v1114_v49, %v1113_v45  ;;  %v5362_v49 = vld [vmem:[#allocation26_spill] sm:$0xff]  ;;  %v5365_v45 = vld [vmem:[#allocation29_spill] sm:$0xff] }
 0x149   :  { %v1106_v3 = vsel %vm1105_vm7, %v3390_v54, %v1102_v47  ;;  %v5352_v54 = vld [vmem:[#allocation11_spill] sm:$0xff] }
 0x14a   :  { %3393 = vtanh.f32 %v4478_v48  ;;  %1376 = vmatpush.bf16.msra.mxu0 %v3796_v5  ;;  %1389 = vmatpush.bf16.msra.mxu1 %v3809_v9  ;;  %v1111_v18 = vsel %vm1108_vm8, %v1110_v56, %v1106_v3  ;;  %v5367_v47 = vld [vmem:[#allocation31_spill] sm:$0xff]  ;;  %v5370_v3 = vld [vmem:[#allocation34_spill] sm:$0xff] }
 0x14b   :  { %1402 = vmatpush.bf16.msra.mxu2 %v3875_v30  ;;  %1415 = vmatpush.bf16.msra.mxu3 %v3811_v10  ;;  %v5371_v56 = vld [vmem:[#allocation35_spill] sm:$0xff] }
 0x14e   :  { %1377 = vmatpush.bf16.msra.mxu0 %v5350_v33  ;;  %1390 = vmatpush.bf16.msra.mxu1 %v3861_v24 }
 0x14f   :  { %1403 = vmatpush.bf16.msra.mxu2 %v5351_v46  ;;  %1416 = vmatpush.bf16.msra.mxu3 %v3863_v25 }
 0x150   :  { %v3394_v22 = vpop.eup %3393 }
 0x151   :  { %v1117_v6 = vmul.f32 %v3394_v22, %v1111_v18  ;;  %v5372_v22 = vld [vmem:[#allocation36_spill] sm:$0xff]  ;;  %v5373_v18 = vld [vmem:[#allocation37_spill] sm:$0xff] }
 0x152   :  { %1378 = vmatpush.bf16.msra.mxu0 %v3888_v34  ;;  %1391 = vmatpush.bf16.msra.mxu1 %v3890_v35 }
 0x153   :  { %1119 = vst [vmem:[%s5146_s5 + $0x78] sm:$0xff] %v1117_v6  ;;  %v1185_v59 = vpack.c.bf16 %v1117_v6, %v1117_v6  ;;  %1404 = vmatpush.bf16.msra.mxu2 %v3921_v44  ;;  %1417 = vmatpush.bf16.msra.mxu3 %v3907_v41  ;;  %v5374_v6 = vld [vmem:[#allocation38_spill] sm:$0xff] }
 0x155   :  { %1194 = vmatmul.bf16.vlgmr.msrb.gmra.mxu0 %v1185_v59  ;;  %1207 = vmatmul.bf16.vlgmr.msrb.gmra.mxu1 %v1185_v59 }
 0x156   :  { %1220 = vmatmul.bf16.vlgmr.msrb.gmra.mxu2 %v1185_v59  ;;  %1233 = vmatmul.bf16.vlgmr.msrb.gmra.mxu3 %v1185_v59  ;;  %v5375_v59 = vld [vmem:[#allocation39_spill] sm:$0xff] }
 0x157   :  { %1379 = vmatpush.bf16.msra.mxu0 %v5352_v54  ;;  %1392 = vmatpush.bf16.msra.mxu1 %v3950_v51 }
 0x158   :  { %1405 = vmatpush.bf16.msra.mxu2 %v3952_v52  ;;  %1418 = vmatpush.bf16.msra.mxu3 %v3964_v58 }
 0x15b   :  { %1380 = vmatpush.bf16.msra.mxu0 %v3977_v63  ;;  %1393 = vmatpush.bf16.msra.mxu1 %v3979_v2 }
 0x15c   :  { %1406 = vmatpush.bf16.msra.mxu2 %v3991_v7  ;;  %1419 = vmatpush.bf16.msra.mxu3 %v4002_v14 }
 0x15f   :  { %1381 = vmatpush.bf16.msra.mxu0 %v4014_v19  ;;  %1394 = vmatpush.bf16.msra.mxu1 %v4027_v27 }
 0x160   :  { %1407 = vmatpush.bf16.msra.mxu2 %v4029_v28  ;;  %1420 = vmatpush.bf16.msra.mxu3 %v4032_v29 }
 0x163   :  { %1382 = vmatpush.bf16.msra.mxu0 %v4049_v36  ;;  %1395 = vmatpush.bf16.msra.mxu1 %v4064_v42 }
 0x164   :  { %1408 = vmatpush.bf16.msra.mxu2 %v4066_v43  ;;  %1421 = vmatpush.bf16.msra.mxu3 %v4077_v26 }
 0x167   :  { %1436 = vmatpush.bf16.msrb.mxu0 %v4081_v55  ;;  %1449 = vmatpush.bf16.msrb.mxu1 %v4083_v57 }
 0x168   :  { %1462 = vmatpush.bf16.msrb.mxu2 %v4086_v53  ;;  %1475 = vmatpush.bf16.msrb.mxu3 %v4090_v8 }
 0x16b   :  { %1437 = vmatpush.bf16.msrb.mxu0 %v5353_v12  ;;  %1450 = vmatpush.bf16.msrb.mxu1 %v5354_v62 }
 0x16c   :  { %1463 = vmatpush.bf16.msrb.mxu2 %v5355_v23  ;;  %1476 = vmatpush.bf16.msrb.mxu3 %v5356_v15 }
 0x16f   :  { %1438 = vmatpush.bf16.msrb.mxu0 %v5357_v39  ;;  %1451 = vmatpush.bf16.msrb.mxu1 %v5358_v40 }
 0x170   :  { %1464 = vmatpush.bf16.msrb.mxu2 %v5359_v4  ;;  %1477 = vmatpush.bf16.msrb.mxu3 %v5360_v37 }
 0x173   :  { %1439 = vmatpush.bf16.msrb.mxu0 %v5361_v38  ;;  %1452 = vmatpush.bf16.msrb.mxu1 %v5362_v49 }
 0x174   :  { %1465 = vmatpush.bf16.msrb.mxu2 %v5363_v16  ;;  %1478 = vmatpush.bf16.msrb.mxu3 %v5364_v50  ;;  %v5384_v50 = vld [vmem:[#allocation46_spill] sm:$0xff] }
 0x177   :  { %1440 = vmatpush.bf16.msrb.mxu0 %v5365_v45  ;;  %1453 = vmatpush.bf16.msrb.mxu1 %v5366_v61  ;;  %v5377_v61 = vld [vmem:[#allocation41_spill] sm:$0xff] }
 0x178   :  { %1466 = vmatpush.bf16.msrb.mxu2 %v5367_v47  ;;  %1479 = vmatpush.bf16.msrb.mxu3 %v5368_v17  ;;  %v5378_v47 = vld [vmem:[#allocation42_spill] sm:$0xff]  ;;  %v5379_v17 = vld [vmem:[#allocation43_spill] sm:$0xff] }
 0x17b   :  { %1441 = vmatpush.bf16.msrb.mxu0 %v5369_v31  ;;  %1454 = vmatpush.bf16.msrb.mxu1 %v5370_v3  ;;  %v5380_v31 = vld [vmem:[#allocation44_spill] sm:$0xff]  ;;  %v5381_v3 = vld [vmem:[#allocation47_spill] sm:$0xff] }
 0x17c   :  { %1467 = vmatpush.bf16.msrb.mxu2 %v5371_v56  ;;  %1480 = vmatpush.bf16.msrb.mxu3 %v5372_v22  ;;  %v5382_v56 = vld [vmem:[#allocation45_spill] sm:$0xff] }
 0x17d   :  { %v204_v45 = vadd.f32 %v5382_v56, %v5381_v3  ;;  %v5383_v22 = vld [vmem:[#allocation49_spill] sm:$0xff] }
 0x17f   :  { %1442 = vmatpush.bf16.msrb.mxu0 %v5373_v18  ;;  %1455 = vmatpush.bf16.msrb.mxu1 %v5374_v6  ;;  %v233_v18 = vadd.f32 %v5384_v50, %v5383_v22 }
 0x180   :  { %1468 = vmatpush.bf16.msrb.mxu2 %v5375_v59  ;;  %1481 = vmatpush.bf16.msrb.mxu3 %v5376_v32 }
 0x183   :  { %1443 = vmatpush.bf16.msrb.mxu0 %v5377_v61  ;;  %1456 = vmatpush.bf16.msrb.mxu1 %v5378_v47  ;;  %v5385_v61 = vld [vmem:[#allocation50_spill] sm:$0xff] }
 0x184   :  { %1469 = vmatpush.bf16.msrb.mxu2 %v5379_v17  ;;  %1482 = vmatpush.bf16.msrb.mxu3 %v5380_v31  ;;  %v291_v47 = vadd.f32 %v5385_v61, %v4250_v20 }
 0x1c1   :  { %v1134_v16 = vpop.f32.mrf.mxu0  ;;  %v1147_v6 = vpop.f32.mrf.mxu1 }
 0x1c2   :  { %v1177_v49 = vadd.f32 %v1134_v16, %v204_v45  ;;  %v1178_v59 = vadd.f32 %v1147_v6, %v233_v18 }
 0x1c4   :  { %v3234_v38 = vmul.f32 -1.442695, %v1177_v49  ;;  %v3235_v32 = vmul.f32 -1.442695, %v1178_v59 }
 0x1c6   :  { %3395 = vpow2.f32 %v3234_v38  ;;  %v5386_v38 = vld [vmem:[#allocation48_spill] sm:$0xff] }
 0x1c7   :  { %3397 = vpow2.f32 %v3235_v32  ;;  %v262_v45 = vadd.f32 %v5386_v38, %v4245_v21 }
 0x1c8   :  { %v1160_v17 = vpop.f32.mrf.mxu2  ;;  %v1173_v37 = vpop.f32.mrf.mxu3 }
 0x1c9   :  { %v1180_v31 = vadd.f32 %v1173_v37, %v291_v47  ;;  %v1136_v4 = vpop.f32.mrf.mxu0  ;;  %v1149_v40 = vpop.f32.mrf.mxu1  ;;  %v1179_v6 = vadd.f32 %v1160_v17, %v262_v45  ;;  %v5387_v37 = vld [vmem:[#allocation105_spill] sm:$0xff] }
 0x1ca   :  { %v5388_v40 = vld [vmem:[#allocation106_spill] sm:$0xff] }
 0x1cb   :  { %v3236_v56 = vmul.f32 -1.442695, %v1180_v31 }
 0x1cc   :  { %v3396_v3 = vpop.eup %3395 }
 0x1cd   :  { %v3398_v39 = vpop.eup %3397  ;;  %v1245_v50 = vadd.f32 1.0, %v3396_v3  ;;  %3399 = vpow2.f32 %v3236_v56 }
 0x1ce   :  { %v1264_v22 = vadd.f32 1.0, %v3398_v39 }
 0x1cf   :  { %3401 = vrcp.f32 %v1245_v50  ;;  %v1255_v38 = vand.u32 2147483647, %v1245_v50  ;;  %v1257_v45 = vand.u32 2147483648, %v1245_v50  ;;  %vm1251_vm12 = vweird.f32 %v1245_v50 }
 0x1d0   :  { %3403 = vrcp.f32 %v1264_v22  ;;  %v1162_v49 = vpop.f32.mrf.mxu2  ;;  %v1175_v16 = vpop.f32.mrf.mxu3  ;;  %v1276_v17 = vand.u32 2147483648, %v1264_v22  ;;  %vm1270_vm11 = vweird.f32 %v1264_v22 }
 0x1d1   :  { %vm1256_vm14 = vcmp.eq.f32.partialorder %v1255_v38, 8.507059e+37 }
 0x1d2   :  { %v1195_v61 = vpop.f32.mrf.mxu0  ;;  %v1208_v32 = vpop.f32.mrf.mxu1  ;;  %v1277_v8 = vor.u32 1.1754944e-38, %v1276_v17 }
 0x1d3   :  { %v3400_v18 = vpop.eup %3399  ;;  %v1238_v4 = vadd.f32 %v1195_v61, %v5387_v37  ;;  %v1239_v47 = vadd.f32 %v1208_v32, %v5388_v40  ;;  %v1274_v37 = vand.u32 2147483647, %v1264_v22 }
 0x1d4   :  { %v4557_v31 = vadd.f32 1.0, %v3400_v18 }
 0x1d5   :  { %v3402_v3 = vpop.eup %3401  ;;  %v3237_v59 = vmul.f32 -1.442695, %v1238_v4  ;;  %v3238_v39 = vmul.f32 -1.442695, %v1239_v47  ;;  %v5389_v4 = vld [vmem:[#allocation108_spill] sm:$0xff]  ;;  %vm1275_vm0 = vcmp.eq.f32.partialorder %v1274_v37, 8.507059e+37 }
 0x1d6   :  { %v3404_v56 = vpop.eup %3403  ;;  %v1247_v20 = vmul.f32 %v3402_v3, %v1245_v50  ;;  %3405 = vrcp.f32 %v4557_v31  ;;  %vm1252_vm9 = vweird.f32 %v3402_v3  ;;  %vm1290_vm2 = vweird.f32 %v4557_v31 }
 0x1d7   :  { %v1266_v49 = vmul.f32 %v3404_v56, %v1264_v22  ;;  %3407 = vtanh.f32 %v1179_v6  ;;  %vm1271_vm10 = vweird.f32 %v3404_v56  ;;  %vm1253_vm13 = vmor %vm1251_vm12, %vm1252_vm9 }
 0x1d8   :  { %v1248_v16 = vsub.f32 1.0, %v1247_v20  ;;  %3409 = vpow2.f32 %v3237_v59  ;;  %vm1272_vm15 = vmor %vm1270_vm11, %vm1271_vm10 }
 0x1d9   :  { %v1267_v21 = vsub.f32 1.0, %v1266_v49  ;;  %3411 = vpow2.f32 %v3238_v39  ;;  %v1221_v61 = vpop.f32.mrf.mxu2  ;;  %v1234_v32 = vpop.f32.mrf.mxu3  ;;  %v1258_v39 = vor.u32 1.1754944e-38, %v1257_v45 }
 0x1da   :  { %v1249_v18 = vmul.f32 %v3402_v3, %v1248_v16  ;;  %v1241_v40 = vadd.f32 %v1234_v32, %v5389_v4  ;;  %v1197_v47 = vpop.f32.mrf.mxu0  ;;  %v1210_v15 = vpop.f32.mrf.mxu1 }
 0x1db   :  { %v1268_v23 = vmul.f32 %v3404_v56, %v1267_v21 }
 0x1dc   :  { %v3406_v62 = vpop.eup %3405  ;;  %v1250_v20 = vadd.f32 %v3402_v3, %v1249_v18  ;;  %v3239_v6 = vmul.f32 -1.442695, %v1241_v40 }
 0x1dd   :  { %v3408_v59 = vpop.eup %3407  ;;  %v1269_v49 = vadd.f32 %v3404_v56, %v1268_v23  ;;  %v1286_v16 = vmul.f32 %v3406_v62, %v4557_v31  ;;  %vm1291_vm1 = vweird.f32 %v3406_v62 }
 0x1de   :  { %v3410_v12 = vpop.eup %3409  ;;  %v1254_v32 = vsel %vm1253_vm13, %v3402_v3, %v1250_v20  ;;  %3413 = vpow2.f32 %v3239_v6  ;;  %vm1292_vm3 = vmor %vm1290_vm2, %vm1291_vm1 }
 0x1df   :  { %v3412_v21 = vpop.eup %3411  ;;  %v1259_v15 = vsel %vm1256_vm14, %v1258_v39, %v1254_v32  ;;  %v1273_v4 = vsel %vm1272_vm15, %v3404_v56, %v1269_v49  ;;  %v1287_v22 = vsub.f32 1.0, %v1286_v16  ;;  %v1308_v18 = vadd.f32 1.0, %v3410_v12 }
 0x1e0   :  { %v1278_v50 = vsel %vm1275_vm0, %v1277_v8, %v1273_v4  ;;  %v1301_v40 = vmul.f32 %v3408_v59, %v1259_v15  ;;  %v1327_v47 = vadd.f32 1.0, %v3412_v21  ;;  %v1296_v56 = vand.u32 2147483648, %v4557_v31 }
 0x1e1   :  { %v1300_v38 = vmul.f32 %v1278_v50, %v4454_v11  ;;  %v1288_v45 = vmul.f32 %v3406_v62, %v1287_v22  ;;  %3415 = vrcp.f32 %v1308_v18  ;;  %v1223_v23 = vpop.f32.mrf.mxu2  ;;  %v1236_v53 = vpop.f32.mrf.mxu3  ;;  %v1294_v8 = vand.u32 2147483647, %v4557_v31  ;;  %v5390_v11 = vld [vmem:[#allocation107_spill] sm:$0xff] }
 0x1e2   :  { %3417 = vrcp.f32 %v1327_v47  ;;  %v1240_v37 = vadd.f32 %v1221_v61, %v5390_v11  ;;  %v1297_v39 = vor.u32 1.1754944e-38, %v1296_v56  ;;  %v1339_v15 = vand.u32 2147483648, %v1327_v47 }
 0x1e3   :  { %v4563_v57 = vadd.f32 %v1301_v40, %v1300_v38  ;;  %v1289_v17 = vadd.f32 %v3406_v62, %v1288_v45  ;;  %vm1295_vm4 = vcmp.eq.f32.partialorder %v1294_v8, 8.507059e+37  ;;  %v1320_v4 = vand.u32 2147483648, %v1308_v18 }
 0x1e4   :  { %v3414_v3 = vpop.eup %3413  ;;  %v1318_v61 = vand.u32 2147483647, %v1308_v18  ;;  %v1337_v45 = vand.u32 2147483647, %v1327_v47  ;;  %vm1314_vm7 = vweird.f32 %v1308_v18  ;;  %vm1333_vm8 = vweird.f32 %v1327_v47 }
 0x1e5   :  { %3419 = vtanh.f32 %v4563_v57  ;;  %v4567_v12 = vadd.f32 1.0, %v3414_v3  ;;  %v1293_v59 = vsel %vm1292_vm3, %v3406_v62, %v1289_v17  ;;  %v1321_v17 = vor.u32 1.1754944e-38, %v1320_v4 }
 0x1e6   :  { %v1298_v22 = vsel %vm1295_vm4, %v1297_v39, %v1293_v59  ;;  %v1340_v11 = vor.u32 1.1754944e-38, %v1339_v15  ;;  %vm1319_vm11 = vcmp.eq.f32.partialorder %v1318_v61, 8.507059e+37  ;;  %vm1338_vm12 = vcmp.eq.f32.partialorder %v1337_v45, 8.507059e+37  ;;  %v5391_v61 = vld [vmem:[#allocation14_spill] sm:$0xff] }
 0x1e7   :  { %v3416_v20 = vpop.eup %3415  ;;  %3421 = vrcp.f32 %v4567_v12  ;;  %vm1353_vm14 = vweird.f32 %v4567_v12  ;;  %v5395_v45 = vld [vmem:[#allocation18_spill] sm:$0xff] }
 0x1e8   :  { %v3418_v53 = vpop.eup %3417  ;;  %v1310_v6 = vmul.f32 %v3416_v20, %v1308_v18  ;;  %3423 = vtanh.f32 %v1240_v37  ;;  %vm1315_vm5 = vweird.f32 %v3416_v20 }
 0x1e9   :  { %v1329_v49 = vmul.f32 %v3418_v53, %v1327_v47  ;;  %vm1334_vm6 = vweird.f32 %v3418_v53  ;;  %vm1316_vm9 = vmor %vm1314_vm7, %vm1315_vm5 }
 0x1ea   :  { %v1311_v16 = vsub.f32 1.0, %v1310_v6  ;;  %vm1335_vm10 = vmor %vm1333_vm8, %vm1334_vm6 }
 0x1eb   :  { %v3420_v32 = vpop.eup %3419  ;;  %v1330_v21 = vsub.f32 1.0, %v1329_v49 }
 0x1ec   :  { %v1312_v31 = vmul.f32 %v3416_v20, %v1311_v16  ;;  %v1304_v50 = vmul.f32 %v3420_v32, %v1298_v22 }
 0x1ed   :  { %v3422_v40 = vpop.eup %3421  ;;  %v1331_v38 = vmul.f32 %v3418_v53, %v1330_v21 }
 0x1ee   :  { %v1313_v23 = vadd.f32 %v3416_v20, %v1312_v31  ;;  %v1349_v62 = vmul.f32 %v3422_v40, %v4567_v12  ;;  %1368 = vst [vmem:[%s5146_s5 + $0x10] sm:$0xff] %v1304_v50  ;;  %v1374_v3 = vpack.c.bf16 %v1304_v50, %v1304_v50  ;;  %v3424_v8 = vpop.eup %3423  ;;  %vm1354_vm13 = vweird.f32 %v3422_v40  ;;  %v5392_v50 = vld [vmem:[#allocation15_spill] sm:$0xff] }
 0x1ef   :  { %v1332_v56 = vadd.f32 %v3418_v53, %v1331_v38  ;;  %vm1355_vm15 = vmor %vm1353_vm14, %vm1354_vm13  ;;  %v5394_v38 = vld [vmem:[#allocation17_spill] sm:$0xff] }
 0x1f0   :  { %v1317_v37 = vsel %vm1316_vm9, %v3416_v20, %v1313_v23  ;;  %v1350_v6 = vsub.f32 1.0, %v1349_v62  ;;  %1383 = vmatmul.bf16.vlgmr.msra.gmra.mxu0 %v1374_v3  ;;  %1396 = vmatmul.bf16.vlgmr.msra.gmra.mxu1 %v1374_v3  ;;  %v5396_v23 = vld [vmem:[#allocation19_spill] sm:$0xff]  ;;  %v5397_v62 = vld [vmem:[#allocation20_spill] sm:$0xff] }
 0x1f1   :  { %v1322_v18 = vsel %vm1319_vm11, %v1321_v17, %v1317_v37  ;;  %v1336_v59 = vsel %vm1335_vm10, %v3418_v53, %v1332_v56  ;;  %1409 = vmatmul.bf16.vlgmr.msra.gmra.mxu2 %v1374_v3  ;;  %1422 = vmatmul.bf16.vlgmr.msra.gmra.mxu3 %v1374_v3  ;;  %v1359_v53 = vand.u32 2147483648, %v4567_v12  ;;  %v5398_v3 = vld [vmem:[#allocation21_spill] sm:$0xff]  ;;  %v5399_v17 = vld [vmem:[#allocation22_spill] sm:$0xff]  ;;  %v5400_v56 = vld [vmem:[#allocation23_spill] sm:$0xff] }
 0x1f2   :  { %v1341_v39 = vsel %vm1338_vm12, %v1340_v11, %v1336_v59  ;;  %v1364_v49 = vmul.f32 %v3424_v8, %v1322_v18  ;;  %v1351_v16 = vmul.f32 %v3422_v40, %v1350_v6  ;;  %1625 = vmatpush.bf16.msra.mxu0 %v3771_v60  ;;  %1638 = vmatpush.bf16.msra.mxu1 %v3782_v0  ;;  %v5401_v8 = vld [vmem:[#allocation24_spill] sm:$0xff]  ;;  %v5402_v11 = vld [vmem:[#allocation25_spill] sm:$0xff]  ;;  %v5403_v37 = vld [vmem:[#allocation26_spill] sm:$0xff] }
 0x1f3   :  { %v1363_v47 = vmul.f32 %v1341_v39, %v4478_v48  ;;  %1651 = vmatpush.bf16.msra.mxu2 %v3819_v13  ;;  %1664 = vmatpush.bf16.msra.mxu3 %v3784_v1  ;;  %v1357_v48 = vand.u32 2147483647, %v4567_v12  ;;  %v1360_v15 = vor.u32 1.1754944e-38, %v1359_v53  ;;  %v5404_v6 = vld [vmem:[#allocation27_spill] sm:$0xff]  ;;  %v5405_v18 = vld [vmem:[#allocation28_spill] sm:$0xff]  ;;  %v5406_v59 = vld [vmem:[#allocation29_spill] sm:$0xff] }
 0x1f4   :  { %v1352_v32 = vadd.f32 %v3422_v40, %v1351_v16  ;;  %v5407_v39 = vld [vmem:[#allocation30_spill] sm:$0xff]  ;;  %v5409_v16 = vld [vmem:[#allocation32_spill] sm:$0xff]  ;;  %v5412_v53 = vld [vmem:[#allocation35_spill] sm:$0xff] }
 0x1f5   :  { %v4582_v20 = vadd.f32 %v1364_v49, %v1363_v47  ;;  %vm1358_vm0 = vcmp.eq.f32.partialorder %v1357_v48, 8.507059e+37  ;;  %v5408_v49 = vld [vmem:[#allocation31_spill] sm:$0xff]  ;;  %v5410_v47 = vld [vmem:[#allocation33_spill] sm:$0xff]  ;;  %v5413_v48 = vld [vmem:[#allocation36_spill] sm:$0xff] }
 0x1f6   :  { %1626 = vmatpush.bf16.msra.mxu0 %v3796_v5  ;;  %1639 = vmatpush.bf16.msra.mxu1 %v3809_v9  ;;  %v1356_v21 = vsel %vm1355_vm15, %v3422_v40, %v1352_v32  ;;  %v5393_v40 = vld [vmem:[#allocation16_spill] sm:$0xff]  ;;  %v5411_v32 = vld [vmem:[#allocation34_spill] sm:$0xff] }
 0x1f7   :  { %3425 = vtanh.f32 %v4582_v20  ;;  %1652 = vmatpush.bf16.msra.mxu2 %v3875_v30  ;;  %1665 = vmatpush.bf16.msra.mxu3 %v3811_v10  ;;  %v1361_v22 = vsel %vm1358_vm0, %v1360_v15, %v1356_v21  ;;  %v5414_v21 = vld [vmem:[#allocation37_spill] sm:$0xff]  ;;  %v5415_v15 = vld [vmem:[#allocation38_spill] sm:$0xff] }
 0x1fa   :  { %1627 = vmatpush.bf16.msra.mxu0 %v5350_v33  ;;  %1640 = vmatpush.bf16.msra.mxu1 %v3861_v24 }
 0x1fb   :  { %1653 = vmatpush.bf16.msra.mxu2 %v5351_v46  ;;  %1666 = vmatpush.bf16.msra.mxu3 %v3863_v25 }
 0x1fd   :  { %v3426_v4 = vpop.eup %3425 }
 0x1fe   :  { %v1367_v31 = vmul.f32 %v3426_v4, %v1361_v22  ;;  %1628 = vmatpush.bf16.msra.mxu0 %v3888_v34  ;;  %1641 = vmatpush.bf16.msra.mxu1 %v3890_v35  ;;  %v5416_v4 = vld [vmem:[#allocation39_spill] sm:$0xff]  ;;  %v5417_v22 = vld [vmem:[#allocation40_spill] sm:$0xff] }
 0x1ff   :  { %1654 = vmatpush.bf16.msra.mxu2 %v3921_v44  ;;  %1667 = vmatpush.bf16.msra.mxu3 %v3907_v41 }
 0x200   :  { %1369 = vst [vmem:[%s5146_s5 + $0x68] sm:$0xff] %v1367_v31  ;;  %v1435_v12 = vpack.c.bf16 %v1367_v31, %v1367_v31  ;;  %v5418_v31 = vld [vmem:[#allocation41_spill] sm:$0xff] }
 0x202   :  { %1444 = vmatmul.bf16.vlgmr.msrb.gmra.mxu0 %v1435_v12  ;;  %1457 = vmatmul.bf16.vlgmr.msrb.gmra.mxu1 %v1435_v12 }
 0x203   :  { %1470 = vmatmul.bf16.vlgmr.msrb.gmra.mxu2 %v1435_v12  ;;  %1483 = vmatmul.bf16.vlgmr.msrb.gmra.mxu3 %v1435_v12  ;;  %v5419_v12 = vld [vmem:[#allocation42_spill] sm:$0xff] }
 0x204   :  { %1629 = vmatpush.bf16.msra.mxu0 %v5352_v54  ;;  %1642 = vmatpush.bf16.msra.mxu1 %v3950_v51 }
 0x205   :  { %1655 = vmatpush.bf16.msra.mxu2 %v3952_v52  ;;  %1668 = vmatpush.bf16.msra.mxu3 %v3964_v58 }
 0x208   :  { %1630 = vmatpush.bf16.msra.mxu0 %v3977_v63  ;;  %1643 = vmatpush.bf16.msra.mxu1 %v3979_v2 }
 0x209   :  { %1656 = vmatpush.bf16.msra.mxu2 %v3991_v7  ;;  %1669 = vmatpush.bf16.msra.mxu3 %v4002_v14 }
 0x20c   :  { %1631 = vmatpush.bf16.msra.mxu0 %v4014_v19  ;;  %1644 = vmatpush.bf16.msra.mxu1 %v4027_v27 }
 0x20d   :  { %1657 = vmatpush.bf16.msra.mxu2 %v4029_v28  ;;  %1670 = vmatpush.bf16.msra.mxu3 %v4032_v29 }
 0x210   :  { %1632 = vmatpush.bf16.msra.mxu0 %v4049_v36  ;;  %1645 = vmatpush.bf16.msra.mxu1 %v4064_v42 }
 0x211   :  { %1658 = vmatpush.bf16.msra.mxu2 %v4066_v43  ;;  %1671 = vmatpush.bf16.msra.mxu3 %v4077_v26 }
 0x214   :  { %1686 = vmatpush.bf16.msrb.mxu0 %v4081_v55  ;;  %1699 = vmatpush.bf16.msrb.mxu1 %v5391_v61 }
 0x215   :  { %1712 = vmatpush.bf16.msrb.mxu2 %v5392_v50  ;;  %1725 = vmatpush.bf16.msrb.mxu3 %v5393_v40 }
 0x218   :  { %1687 = vmatpush.bf16.msrb.mxu0 %v5394_v38  ;;  %1700 = vmatpush.bf16.msrb.mxu1 %v5395_v45 }
 0x219   :  { %1713 = vmatpush.bf16.msrb.mxu2 %v5396_v23  ;;  %1726 = vmatpush.bf16.msrb.mxu3 %v5397_v62 }
 0x21c   :  { %1688 = vmatpush.bf16.msrb.mxu0 %v5398_v3  ;;  %1701 = vmatpush.bf16.msrb.mxu1 %v5399_v17 }
 0x21d   :  { %1714 = vmatpush.bf16.msrb.mxu2 %v5400_v56  ;;  %1727 = vmatpush.bf16.msrb.mxu3 %v5401_v8 }
 0x220   :  { %1689 = vmatpush.bf16.msrb.mxu0 %v5402_v11  ;;  %1702 = vmatpush.bf16.msrb.mxu1 %v5403_v37 }
 0x221   :  { %1715 = vmatpush.bf16.msrb.mxu2 %v5404_v6  ;;  %1728 = vmatpush.bf16.msrb.mxu3 %v5405_v18  ;;  %v5424_v18 = vld [vmem:[#allocation57_spill] sm:$0xff] }
 0x224   :  { %1690 = vmatpush.bf16.msrb.mxu0 %v5406_v59  ;;  %1703 = vmatpush.bf16.msrb.mxu1 %v5407_v39  ;;  %v5423_v39 = vld [vmem:[#allocation52_spill] sm:$0xff] }
 0x225   :  { %1716 = vmatpush.bf16.msrb.mxu2 %v5408_v49  ;;  %1729 = vmatpush.bf16.msrb.mxu3 %v5409_v16  ;;  %v5420_v16 = vld [vmem:[#allocation43_spill] sm:$0xff] }
 0x226   :  { %v5422_v49 = vld [vmem:[#allocation51_spill] sm:$0xff] }
 0x228   :  { %1691 = vmatpush.bf16.msrb.mxu0 %v5410_v47  ;;  %1704 = vmatpush.bf16.msrb.mxu1 %v5411_v32  ;;  %v5421_v47 = vld [vmem:[#allocation44_spill] sm:$0xff] }
 0x229   :  { %1717 = vmatpush.bf16.msrb.mxu2 %v5412_v53  ;;  %1730 = vmatpush.bf16.msrb.mxu3 %v5413_v48 }
 0x22c   :  { %1692 = vmatpush.bf16.msrb.mxu0 %v5414_v21  ;;  %1705 = vmatpush.bf16.msrb.mxu1 %v5415_v15 }
 0x22d   :  { %1718 = vmatpush.bf16.msrb.mxu2 %v5416_v4  ;;  %1731 = vmatpush.bf16.msrb.mxu3 %v5417_v22 }
 0x230   :  { %1693 = vmatpush.bf16.msrb.mxu0 %v5418_v31  ;;  %1706 = vmatpush.bf16.msrb.mxu1 %v5419_v12 }
 0x231   :  { %1719 = vmatpush.bf16.msrb.mxu2 %v5420_v16  ;;  %1732 = vmatpush.bf16.msrb.mxu3 %v5421_v47 }
 0x26d   :  { %v1384_v32 = vpop.f32.mrf.mxu0  ;;  %v1397_v53 = vpop.f32.mrf.mxu1 }
 0x26e   :  { %v1427_v48 = vadd.f32 %v1384_v32, %v5422_v49  ;;  %v1428_v21 = vadd.f32 %v1397_v53, %v5423_v39  ;;  %v5425_v32 = vld [vmem:[#allocation75_spill] sm:$0xff]  ;;  %v5426_v53 = vld [vmem:[#allocation100_spill] sm:$0xff] }
 0x270   :  { %v3240_v59 = vmul.f32 -1.442695, %v1427_v48  ;;  %v3241_v15 = vmul.f32 -1.442695, %v1428_v21  ;;  %v5427_v48 = vld [vmem:[#allocation76_spill] sm:$0xff]  ;;  %v5428_v21 = vld [vmem:[#allocation102_spill] sm:$0xff] }
 0x272   :  { %3427 = vpow2.f32 %v3240_v59  ;;  %v330_v59 = vadd.f32 %v5426_v53, %v5425_v32 }
 0x273   :  { %3429 = vpow2.f32 %v3241_v15  ;;  %v359_v15 = vadd.f32 %v5428_v21, %v5427_v48 }
 0x274   :  { %v1410_v4 = vpop.f32.mrf.mxu2  ;;  %v1423_v22 = vpop.f32.mrf.mxu3 }
 0x275   :  { %v1430_v31 = vadd.f32 %v1423_v22, %v5424_v18  ;;  %v1386_v6 = vpop.f32.mrf.mxu0  ;;  %v1399_v12 = vpop.f32.mrf.mxu1  ;;  %v5429_v22 = vld [vmem:[#allocation55_spill] sm:$0xff] }
 0x277   :  { %v3242_v37 = vmul.f32 -1.442695, %v1430_v31  ;;  %v1429_v31 = vadd.f32 %v1410_v4, %v5429_v22 }
 0x278   :  { %v3428_v16 = vpop.eup %3427 }
 0x279   :  { %v3430_v11 = vpop.eup %3429  ;;  %v1495_v47 = vadd.f32 1.0, %v3428_v16  ;;  %3431 = vpow2.f32 %v3242_v37 }
 0x27a   :  { %v1514_v8 = vadd.f32 1.0, %v3430_v11 }
 0x27b   :  { %3433 = vrcp.f32 %v1495_v47  ;;  %v1505_v4 = vand.u32 2147483647, %v1495_v47  ;;  %vm1501_vm3 = vweird.f32 %v1495_v47 }
 0x27c   :  { %3435 = vrcp.f32 %v1514_v8  ;;  %v1412_v49 = vpop.f32.mrf.mxu2  ;;  %v1425_v39 = vpop.f32.mrf.mxu3  ;;  %v1526_v45 = vand.u32 2147483648, %v1514_v8  ;;  %vm1520_vm4 = vweird.f32 %v1514_v8 }
 0x27d   :  { %v5430_v49 = vld [vmem:[#allocation82_spill] sm:$0xff]  ;;  %v5431_v39 = vld [vmem:[#allocation104_spill] sm:$0xff]  ;;  %vm1506_vm7 = vcmp.eq.f32.partialorder %v1505_v4, 8.507059e+37  ;;  %v5432_v4 = vld [vmem:[#allocation81_spill] sm:$0xff] }
 0x27e   :  { %v417_v53 = vadd.f32 %v5431_v39, %v5430_v49 }
 0x27f   :  { %v3432_v56 = vpop.eup %3431  ;;  %v1445_v18 = vpop.f32.mrf.mxu0 }
 0x280   :  { %v1458_v6 = vpop.f32.mrf.mxu1  ;;  %v4659_v12 = vadd.f32 1.0, %v3432_v56  ;;  %v1488_v16 = vadd.f32 %v1445_v18, %v330_v59  ;;  %v1507_v56 = vand.u32 2147483648, %v1495_v47  ;;  %v1524_v59 = vand.u32 2147483647, %v1514_v8 }
 0x281   :  { %v1489_v37 = vadd.f32 %v1458_v6, %v359_v15  ;;  %v3434_v11 = vpop.eup %3433 }
 0x282   :  { %v3436_v17 = vpop.eup %3435  ;;  %v1497_v3 = vmul.f32 %v3434_v11, %v1495_v47  ;;  %3437 = vrcp.f32 %v4659_v12  ;;  %v3243_v21 = vmul.f32 -1.442695, %v1488_v16  ;;  %vm1502_vm1 = vweird.f32 %v3434_v11 }
 0x283   :  { %v1516_v32 = vmul.f32 %v3436_v17, %v1514_v8  ;;  %3439 = vtanh.f32 %v1429_v31  ;;  %v3244_v48 = vmul.f32 -1.442695, %v1489_v37  ;;  %vm1521_vm2 = vweird.f32 %v3436_v17  ;;  %vm1503_vm5 = vmor %vm1501_vm3, %vm1502_vm1 }
 0x284   :  { %v1498_v62 = vsub.f32 1.0, %v1497_v3  ;;  %3441 = vpow2.f32 %v3243_v21  ;;  %vm1522_vm6 = vmor %vm1520_vm4, %vm1521_vm2  ;;  %v1527_v21 = vor.u32 1.1754944e-38, %v1526_v45  ;;  %vm1525_vm8 = vcmp.eq.f32.partialorder %v1524_v59, 8.507059e+37  ;;  %v5433_v59 = vld [vmem:[#allocation103_spill] sm:$0xff] }
 0x285   :  { %v1517_v23 = vsub.f32 1.0, %v1516_v32  ;;  %3443 = vpow2.f32 %v3244_v48  ;;  %v1508_v32 = vor.u32 1.1754944e-38, %v1507_v56  ;;  %vm1540_vm10 = vweird.f32 %v4659_v12 }
 0x286   :  { %v1499_v22 = vmul.f32 %v3434_v11, %v1498_v62  ;;  %v1471_v15 = vpop.f32.mrf.mxu2  ;;  %v1484_v18 = vpop.f32.mrf.mxu3 }
 0x287   :  { %v1518_v6 = vmul.f32 %v3436_v17, %v1517_v23  ;;  %v1491_v38 = vadd.f32 %v1484_v18, %v417_v53  ;;  %v1447_v39 = vpop.f32.mrf.mxu0 }
 0x288   :  { %v1460_v49 = vpop.f32.mrf.mxu1  ;;  %v3438_v3 = vpop.eup %3437  ;;  %v1500_v31 = vadd.f32 %v3434_v11, %v1499_v22 }
 0x289   :  { %v1519_v16 = vadd.f32 %v3436_v17, %v1518_v6  ;;  %v1536_v62 = vmul.f32 %v3438_v3, %v4659_v12  ;;  %v3440_v37 = vpop.eup %3439  ;;  %v3245_v23 = vmul.f32 -1.442695, %v1491_v38  ;;  %vm1541_vm9 = vweird.f32 %v3438_v3 }
 0x28a   :  { %v1504_v40 = vsel %vm1503_vm5, %v3434_v11, %v1500_v31  ;;  %v3442_v18 = vpop.eup %3441  ;;  %v1546_v38 = vand.u32 2147483648, %v4659_v12  ;;  %vm1542_vm11 = vmor %vm1540_vm10, %vm1541_vm9 }
 0x28b   :  { %v1509_v48 = vsel %vm1506_vm7, %v1508_v32, %v1504_v40  ;;  %v1523_v53 = vsel %vm1522_vm6, %v3436_v17, %v1519_v16  ;;  %v1537_v49 = vsub.f32 1.0, %v1536_v62  ;;  %3445 = vpow2.f32 %v3245_v23  ;;  %v3444_v8 = vpop.eup %3443 }
 0x28c   :  { %v1528_v22 = vsel %vm1525_vm8, %v1527_v21, %v1523_v53  ;;  %v1551_v47 = vmul.f32 %v3440_v37, %v1509_v48  ;;  %v1558_v39 = vadd.f32 1.0, %v3442_v18  ;;  %v4667_v50 = vadd.f32 1.0, %v3444_v8 }
 0x28d   :  { %v1550_v56 = vmul.f32 %v1528_v22, %v4563_v57  ;;  %v1538_v6 = vmul.f32 %v3438_v3, %v1537_v49  ;;  %v1544_v57 = vand.u32 2147483647, %v4659_v12  ;;  %v1547_v62 = vor.u32 1.1754944e-38, %v1546_v38 }
 0x28e   :  { %v1473_v61 = vpop.f32.mrf.mxu2  ;;  %v1486_v45 = vpop.f32.mrf.mxu3  ;;  %3447 = vrcp.f32 %v1558_v39  ;;  %v1570_v8 = vand.u32 2147483648, %v1558_v39  ;;  %vm1564_vm15 = vweird.f32 %v1558_v39  ;;  %vm1583_vm0 = vweird.f32 %v4667_v50 }
 0x28f   :  { %v4669_v11 = vadd.f32 %v1551_v47, %v1550_v56  ;;  %v1539_v40 = vadd.f32 %v3438_v3, %v1538_v6  ;;  %3449 = vrcp.f32 %v4667_v50  ;;  %v388_v61 = vadd.f32 %v5433_v59, %v5432_v4  ;;  %v5462_v4 = vld [vmem:[#allocation42_spill] sm:$0xff] }
 0x290   :  { %vm1545_vm12 = vcmp.eq.f32.partialorder %v1544_v57, 8.507059e+37  ;;  %v1589_v47 = vand.u32 2147483648, %v4667_v50  ;;  %v1568_v56 = vand.u32 2147483647, %v1558_v39  ;;  %v1571_v57 = vor.u32 1.1754944e-38, %v1570_v8 }
 0x291   :  { %3451 = vtanh.f32 %v4669_v11  ;;  %v3446_v17 = vpop.eup %3445  ;;  %v1543_v32 = vsel %vm1542_vm11, %v3438_v3, %v1539_v40  ;;  %v1490_v37 = vadd.f32 %v1471_v15, %v388_v61  ;;  %v1587_v40 = vand.u32 2147483647, %v4667_v50 }
 0x292   :  { %v4678_v31 = vadd.f32 1.0, %v3446_v17  ;;  %v1548_v49 = vsel %vm1545_vm12, %v1547_v62, %v1543_v32  ;;  %v1590_v61 = vor.u32 1.1754944e-38, %v1589_v47  ;;  %vm1569_vm3 = vcmp.eq.f32.partialorder %v1568_v56, 8.507059e+37  ;;  %v5434_v56 = vld [vmem:[#allocation14_spill] sm:$0xff] }
 0x293   :  { %vm1588_vm4 = vcmp.eq.f32.partialorder %v1587_v40, 8.507059e+37  ;;  %v5438_v40 = vld [vmem:[#allocation18_spill] sm:$0xff] }
 0x294   :  { %v3448_v16 = vpop.eup %3447  ;;  %3453 = vrcp.f32 %v4678_v31  ;;  %vm1603_vm6 = vweird.f32 %v4678_v31 }
 0x295   :  { %v3450_v21 = vpop.eup %3449  ;;  %v1560_v23 = vmul.f32 %v3448_v16, %v1558_v39  ;;  %3455 = vtanh.f32 %v1490_v37  ;;  %vm1565_vm13 = vweird.f32 %v3448_v16 }
 0x296   :  { %v1579_v53 = vmul.f32 %v3450_v21, %v4667_v50  ;;  %vm1584_vm14 = vweird.f32 %v3450_v21  ;;  %vm1566_vm1 = vmor %vm1564_vm15, %vm1565_vm13 }
 0x297   :  { %v3452_v48 = vpop.eup %3451  ;;  %v1561_v12 = vsub.f32 1.0, %v1560_v23  ;;  %vm1585_vm2 = vmor %vm1583_vm0, %vm1584_vm14 }
 0x298   :  { %v1554_v18 = vmul.f32 %v3452_v48, %v1548_v49  ;;  %v1580_v22 = vsub.f32 1.0, %v1579_v53 }
 0x299   :  { %v1562_v3 = vmul.f32 %v3448_v16, %v1561_v12  ;;  %v1609_v12 = vand.u32 2147483648, %v4678_v31 }
 0x29a   :  { %1618 = vst [vmem:[%s5146_s5 + $0x20] sm:$0xff] %v1554_v18  ;;  %v1624_v15 = vpack.c.bf16 %v1554_v18, %v1554_v18  ;;  %v3454_v6 = vpop.eup %3453  ;;  %v1581_v45 = vmul.f32 %v3450_v21, %v1580_v22 }
 0x29b   :  { %v1563_v38 = vadd.f32 %v3448_v16, %v1562_v3  ;;  %v1599_v17 = vmul.f32 %v3454_v6, %v4678_v31  ;;  %v3456_v39 = vpop.eup %3455  ;;  %vm1604_vm5 = vweird.f32 %v3454_v6  ;;  %v1610_v22 = vor.u32 1.1754944e-38, %v1609_v12  ;;  %v5454_v12 = vld [vmem:[#allocation34_spill] sm:$0xff] }
 0x29c   :  { %1633 = vmatmul.bf16.vlgmr.msra.gmra.mxu0 %v1624_v15  ;;  %1646 = vmatmul.bf16.vlgmr.msra.gmra.mxu1 %v1624_v15  ;;  %v1582_v59 = vadd.f32 %v3450_v21, %v1581_v45  ;;  %vm1605_vm7 = vmor %vm1603_vm6, %vm1604_vm5  ;;  %v5437_v45 = vld [vmem:[#allocation17_spill] sm:$0xff] }
 0x29d   :  { %1659 = vmatmul.bf16.vlgmr.msra.gmra.mxu2 %v1624_v15  ;;  %1672 = vmatmul.bf16.vlgmr.msra.gmra.mxu3 %v1624_v15  ;;  %v1567_v32 = vsel %vm1566_vm1, %v3448_v16, %v1563_v38  ;;  %v1600_v62 = vsub.f32 1.0, %v1599_v17  ;;  %v5435_v15 = vld [vmem:[#allocation15_spill] sm:$0xff]  ;;  %v5440_v17 = vld [vmem:[#allocation20_spill] sm:$0xff] }
 0x29e   :  { %1875 = vmatpush.bf16.msra.mxu0 %v3771_v60  ;;  %1888 = vmatpush.bf16.msra.mxu1 %v3782_v0  ;;  %v1572_v37 = vsel %vm1569_vm3, %v1571_v57, %v1567_v32  ;;  %v1586_v23 = vsel %vm1585_vm2, %v3450_v21, %v1582_v59  ;;  %v5439_v38 = vld [vmem:[#allocation19_spill] sm:$0xff]  ;;  %v5441_v57 = vld [vmem:[#allocation21_spill] sm:$0xff]  ;;  %v5442_v59 = vld [vmem:[#allocation22_spill] sm:$0xff] }
 0x29f   :  { %1901 = vmatpush.bf16.msra.mxu2 %v3819_v13  ;;  %1914 = vmatpush.bf16.msra.mxu3 %v3784_v1  ;;  %v1591_v50 = vsel %vm1588_vm4, %v1590_v61, %v1586_v23  ;;  %v1614_v48 = vmul.f32 %v3456_v39, %v1572_v37  ;;  %v1601_v53 = vmul.f32 %v3454_v6, %v1600_v62  ;;  %v5443_v61 = vld [vmem:[#allocation23_spill] sm:$0xff]  ;;  %v5444_v32 = vld [vmem:[#allocation24_spill] sm:$0xff]  ;;  %v5445_v62 = vld [vmem:[#allocation25_spill] sm:$0xff] }
 0x2a0   :  { %v1613_v49 = vmul.f32 %v1591_v50, %v4582_v20  ;;  %v1607_v20 = vand.u32 2147483647, %v4678_v31  ;;  %v5446_v39 = vld [vmem:[#allocation26_spill] sm:$0xff]  ;;  %v5447_v37 = vld [vmem:[#allocation27_spill] sm:$0xff]  ;;  %v5448_v23 = vld [vmem:[#allocation28_spill] sm:$0xff] }
 0x2a1   :  { %v1602_v21 = vadd.f32 %v3454_v6, %v1601_v53  ;;  %v5449_v50 = vld [vmem:[#allocation29_spill] sm:$0xff]  ;;  %v5451_v53 = vld [vmem:[#allocation31_spill] sm:$0xff] }
 0x2a2   :  { %1876 = vmatpush.bf16.msra.mxu0 %v3796_v5  ;;  %1889 = vmatpush.bf16.msra.mxu1 %v3809_v9  ;;  %v4696_v16 = vadd.f32 %v1614_v48, %v1613_v49  ;;  %vm1608_vm8 = vcmp.eq.f32.partialorder %v1607_v20, 8.507059e+37  ;;  %v5450_v48 = vld [vmem:[#allocation30_spill] sm:$0xff]  ;;  %v5452_v49 = vld [vmem:[#allocation32_spill] sm:$0xff]  ;;  %v5455_v20 = vld [vmem:[#allocation35_spill] sm:$0xff] }
 0x2a3   :  { %1902 = vmatpush.bf16.msra.mxu2 %v3875_v30  ;;  %1915 = vmatpush.bf16.msra.mxu3 %v3811_v10  ;;  %v1606_v18 = vsel %vm1605_vm7, %v3454_v6, %v1602_v21  ;;  %v5436_v6 = vld [vmem:[#allocation16_spill] sm:$0xff]  ;;  %v5453_v21 = vld [vmem:[#allocation33_spill] sm:$0xff] }
 0x2a4   :  { %3457 = vtanh.f32 %v4696_v16  ;;  %v1611_v8 = vsel %vm1608_vm8, %v1610_v22, %v1606_v18  ;;  %v5456_v18 = vld [vmem:[#allocation36_spill] sm:$0xff]  ;;  %v5457_v22 = vld [vmem:[#allocation37_spill] sm:$0xff] }
 0x2a6   :  { %1877 = vmatpush.bf16.msra.mxu0 %v5350_v33  ;;  %1890 = vmatpush.bf16.msra.mxu1 %v3861_v24 }
 0x2a7   :  { %1903 = vmatpush.bf16.msra.mxu2 %v5351_v46  ;;  %1916 = vmatpush.bf16.msra.mxu3 %v3863_v25 }
 0x2aa   :  { %1878 = vmatpush.bf16.msra.mxu0 %v3888_v34  ;;  %1891 = vmatpush.bf16.msra.mxu1 %v3890_v35  ;;  %v3458_v47 = vpop.eup %3457 }
 0x2ab   :  { %1904 = vmatpush.bf16.msra.mxu2 %v3921_v44  ;;  %1917 = vmatpush.bf16.msra.mxu3 %v3907_v41  ;;  %v1617_v31 = vmul.f32 %v3458_v47, %v1611_v8  ;;  %v5458_v47 = vld [vmem:[#allocation38_spill] sm:$0xff]  ;;  %v5459_v8 = vld [vmem:[#allocation39_spill] sm:$0xff] }
 0x2ad   :  { %1619 = vst [vmem:[%s5146_s5 + $0x58] sm:$0xff] %v1617_v31  ;;  %v1685_v3 = vpack.c.bf16 %v1617_v31, %v1617_v31  ;;  %v5460_v31 = vld [vmem:[#allocation40_spill] sm:$0xff] }
 0x2ae   :  { %1879 = vmatpush.bf16.msra.mxu0 %v5352_v54  ;;  %1892 = vmatpush.bf16.msra.mxu1 %v3950_v51 }
 0x2af   :  { %1905 = vmatpush.bf16.msra.mxu2 %v3952_v52  ;;  %1918 = vmatpush.bf16.msra.mxu3 %v3964_v58 }
 0x2b0   :  { %1694 = vmatmul.bf16.vlgmr.msrb.gmra.mxu0 %v1685_v3  ;;  %1707 = vmatmul.bf16.vlgmr.msrb.gmra.mxu1 %v1685_v3 }
 0x2b1   :  { %1720 = vmatmul.bf16.vlgmr.msrb.gmra.mxu2 %v1685_v3  ;;  %1733 = vmatmul.bf16.vlgmr.msrb.gmra.mxu3 %v1685_v3  ;;  %v5461_v3 = vld [vmem:[#allocation41_spill] sm:$0xff] }
 0x2b2   :  { %1880 = vmatpush.bf16.msra.mxu0 %v3977_v63  ;;  %1893 = vmatpush.bf16.msra.mxu1 %v3979_v2 }
 0x2b3   :  { %1906 = vmatpush.bf16.msra.mxu2 %v3991_v7  ;;  %1919 = vmatpush.bf16.msra.mxu3 %v4002_v14 }
 0x2b6   :  { %1881 = vmatpush.bf16.msra.mxu0 %v4014_v19  ;;  %1894 = vmatpush.bf16.msra.mxu1 %v4027_v27 }
 0x2b7   :  { %1907 = vmatpush.bf16.msra.mxu2 %v4029_v28  ;;  %1920 = vmatpush.bf16.msra.mxu3 %v4032_v29 }
 0x2ba   :  { %1882 = vmatpush.bf16.msra.mxu0 %v4049_v36  ;;  %1895 = vmatpush.bf16.msra.mxu1 %v4064_v42 }
 0x2bb   :  { %1908 = vmatpush.bf16.msra.mxu2 %v4066_v43  ;;  %1921 = vmatpush.bf16.msra.mxu3 %v4077_v26 }
 0x2be   :  { %1936 = vmatpush.bf16.msrb.mxu0 %v4081_v55  ;;  %1949 = vmatpush.bf16.msrb.mxu1 %v5434_v56 }
 0x2bf   :  { %1962 = vmatpush.bf16.msrb.mxu2 %v5435_v15  ;;  %1975 = vmatpush.bf16.msrb.mxu3 %v5436_v6 }
 0x2c2   :  { %1937 = vmatpush.bf16.msrb.mxu0 %v5437_v45  ;;  %1950 = vmatpush.bf16.msrb.mxu1 %v5438_v40 }
 0x2c3   :  { %1963 = vmatpush.bf16.msrb.mxu2 %v5439_v38  ;;  %1976 = vmatpush.bf16.msrb.mxu3 %v5440_v17 }
 0x2c6   :  { %1938 = vmatpush.bf16.msrb.mxu0 %v5441_v57  ;;  %1951 = vmatpush.bf16.msrb.mxu1 %v5442_v59 }
 0x2c7   :  { %1964 = vmatpush.bf16.msrb.mxu2 %v5443_v61  ;;  %1977 = vmatpush.bf16.msrb.mxu3 %v5444_v32 }
 0x2ca   :  { %1939 = vmatpush.bf16.msrb.mxu0 %v5445_v62  ;;  %1952 = vmatpush.bf16.msrb.mxu1 %v5446_v39  ;;  %v5470_v39 = vld [vmem:[#allocation60_spill] sm:$0xff] }
 0x2cb   :  { %1965 = vmatpush.bf16.msrb.mxu2 %v5447_v37  ;;  %1978 = vmatpush.bf16.msrb.mxu3 %v5448_v23 }
 0x2ce   :  { %1940 = vmatpush.bf16.msrb.mxu0 %v5449_v50  ;;  %1953 = vmatpush.bf16.msrb.mxu1 %v5450_v48  ;;  %v5468_v48 = vld [vmem:[#allocation58_spill] sm:$0xff] }
 0x2cf   :  { %1966 = vmatpush.bf16.msrb.mxu2 %v5451_v53  ;;  %1979 = vmatpush.bf16.msrb.mxu3 %v5452_v49  ;;  %v5463_v49 = vld [vmem:[#allocation43_spill] sm:$0xff] }
 0x2d2   :  { %1941 = vmatpush.bf16.msrb.mxu0 %v5453_v21  ;;  %1954 = vmatpush.bf16.msrb.mxu1 %v5454_v12  ;;  %v5464_v21 = vld [vmem:[#allocation44_spill] sm:$0xff]  ;;  %v5465_v12 = vld [vmem:[#allocation47_spill] sm:$0xff] }
 0x2d3   :  { %1967 = vmatpush.bf16.msrb.mxu2 %v5455_v20  ;;  %1980 = vmatpush.bf16.msrb.mxu3 %v5456_v18  ;;  %v5466_v20 = vld [vmem:[#allocation56_spill] sm:$0xff]  ;;  %v5467_v18 = vld [vmem:[#allocation49_spill] sm:$0xff] }
 0x2d4   :  { %v209_v53 = vadd.f32 %v5466_v20, %v5465_v12 }
 0x2d6   :  { %1942 = vmatpush.bf16.msrb.mxu0 %v5457_v22  ;;  %1955 = vmatpush.bf16.msrb.mxu1 %v5458_v47  ;;  %v238_v22 = vadd.f32 %v5468_v48, %v5467_v18 }
 0x2d7   :  { %1968 = vmatpush.bf16.msrb.mxu2 %v5459_v8  ;;  %1981 = vmatpush.bf16.msrb.mxu3 %v5460_v31 }
 0x2da   :  { %1943 = vmatpush.bf16.msrb.mxu0 %v5461_v3  ;;  %1956 = vmatpush.bf16.msrb.mxu1 %v5462_v4  ;;  %v5469_v3 = vld [vmem:[#allocation54_spill] sm:$0xff] }
 0x2db   :  { %1969 = vmatpush.bf16.msrb.mxu2 %v5463_v49  ;;  %1982 = vmatpush.bf16.msrb.mxu3 %v5464_v21  ;;  %v296_v4 = vadd.f32 %v5470_v39, %v5469_v3 }
 0x319   :  { %v1634_v50 = vpop.f32.mrf.mxu0  ;;  %v1647_v47 = vpop.f32.mrf.mxu1 }
 0x31a   :  { %v1677_v23 = vadd.f32 %v1634_v50, %v209_v53  ;;  %v1678_v8 = vadd.f32 %v1647_v47, %v238_v22  ;;  %v5472_v53 = vld [vmem:[#allocation59_spill] sm:$0xff] }
 0x31c   :  { %v3246_v37 = vmul.f32 -1.442695, %v1677_v23  ;;  %v3247_v31 = vmul.f32 -1.442695, %v1678_v8 }
 0x31e   :  { %3459 = vpow2.f32 %v3246_v37  ;;  %v5471_v37 = vld [vmem:[#allocation53_spill] sm:$0xff] }
 0x31f   :  { %3461 = vpow2.f32 %v3247_v31  ;;  %v267_v22 = vadd.f32 %v5472_v53, %v5471_v37  ;;  %v5473_v31 = vld [vmem:[#allocation97_spill] sm:$0xff] }
 0x320   :  { %v1660_v49 = vpop.f32.mrf.mxu2  ;;  %v1673_v62 = vpop.f32.mrf.mxu3 }
 0x321   :  { %v1680_v21 = vadd.f32 %v1673_v62, %v296_v4  ;;  %v1636_v32 = vpop.f32.mrf.mxu0  ;;  %v1649_v61 = vpop.f32.mrf.mxu1  ;;  %v1679_v47 = vadd.f32 %v1660_v49, %v267_v22 }
 0x323   :  { %v3248_v20 = vmul.f32 -1.442695, %v1680_v21 }
 0x324   :  { %v3460_v12 = vpop.eup %3459 }
 0x325   :  { %v3462_v59 = vpop.eup %3461  ;;  %v1745_v48 = vadd.f32 1.0, %v3460_v12  ;;  %3463 = vpow2.f32 %v3248_v20 }
 0x326   :  { %v1764_v18 = vadd.f32 1.0, %v3462_v59 }
 0x327   :  { %3465 = vrcp.f32 %v1745_v48  ;;  %v1755_v37 = vand.u32 2147483647, %v1745_v48  ;;  %v1757_v49 = vand.u32 2147483648, %v1745_v48  ;;  %vm1751_vm12 = vweird.f32 %v1745_v48 }
 0x328   :  { %3467 = vrcp.f32 %v1764_v18  ;;  %v1662_v23 = vpop.f32.mrf.mxu2  ;;  %v1675_v50 = vpop.f32.mrf.mxu3  ;;  %v1776_v53 = vand.u32 2147483648, %v1764_v18  ;;  %v1774_v38 = vand.u32 2147483647, %v1764_v18  ;;  %vm1770_vm11 = vweird.f32 %v1764_v18 }
 0x329   :  { %v5474_v23 = vld [vmem:[#allocation98_spill] sm:$0xff]  ;;  %vm1756_vm15 = vcmp.eq.f32.partialorder %v1755_v37, 8.507059e+37 }
 0x32a   :  { %vm1775_vm0 = vcmp.eq.f32.partialorder %v1774_v38, 8.507059e+37 }
 0x32b   :  { %v3464_v39 = vpop.eup %3463 }
 0x32c   :  { %v4771_v8 = vadd.f32 1.0, %v3464_v39 }
 0x32d   :  { %v3466_v4 = vpop.eup %3465  ;;  %v1695_v32 = vpop.f32.mrf.mxu0 }
 0x32e   :  { %v1708_v61 = vpop.f32.mrf.mxu1  ;;  %v3468_v62 = vpop.eup %3467  ;;  %v1747_v21 = vmul.f32 %v3466_v4, %v1745_v48  ;;  %3469 = vrcp.f32 %v4771_v8  ;;  %v1738_v20 = vadd.f32 %v1695_v32, %v5473_v31  ;;  %vm1752_vm9 = vweird.f32 %v3466_v4 }
 0x32f   :  { %v1766_v12 = vmul.f32 %v3468_v62, %v1764_v18  ;;  %3471 = vtanh.f32 %v1679_v47  ;;  %v1739_v50 = vadd.f32 %v1708_v61, %v5474_v23  ;;  %vm1771_vm10 = vweird.f32 %v3468_v62  ;;  %vm1753_vm13 = vmor %vm1751_vm12, %vm1752_vm9  ;;  %v5475_v18 = vld [vmem:[#allocation101_spill] sm:$0xff] }
 0x330   :  { %v1748_v59 = vsub.f32 1.0, %v1747_v21  ;;  %v3249_v39 = vmul.f32 -1.442695, %v1738_v20  ;;  %v1758_v61 = vor.u32 1.1754944e-38, %v1757_v49  ;;  %vm1772_vm14 = vmor %vm1770_vm11, %vm1771_vm10  ;;  %v1796_v38 = vand.u32 2147483648, %v4771_v8 }
 0x331   :  { %v1767_v3 = vsub.f32 1.0, %v1766_v12  ;;  %v3250_v57 = vmul.f32 -1.442695, %v1739_v50  ;;  %vm1790_vm2 = vweird.f32 %v4771_v8 }
 0x332   :  { %v1749_v22 = vmul.f32 %v3466_v4, %v1748_v59  ;;  %3473 = vpow2.f32 %v3249_v39 }
 0x333   :  { %v1768_v17 = vmul.f32 %v3468_v62, %v1767_v3  ;;  %3475 = vpow2.f32 %v3250_v57  ;;  %v1777_v3 = vor.u32 1.1754944e-38, %v1776_v53 }
 0x334   :  { %v3470_v40 = vpop.eup %3469  ;;  %v1750_v45 = vadd.f32 %v3466_v4, %v1749_v22  ;;  %v1721_v47 = vpop.f32.mrf.mxu2 }
 0x335   :  { %v1734_v32 = vpop.f32.mrf.mxu3  ;;  %v1769_v21 = vadd.f32 %v3468_v62, %v1768_v17  ;;  %v1786_v12 = vmul.f32 %v3470_v40, %v4771_v8  ;;  %v1697_v59 = vpop.f32.mrf.mxu0  ;;  %vm1791_vm1 = vweird.f32 %v3470_v40 }
 0x336   :  { %v1710_v31 = vpop.f32.mrf.mxu1  ;;  %v3472_v20 = vpop.eup %3471  ;;  %v1754_v23 = vsel %vm1753_vm13, %v3466_v4, %v1750_v45  ;;  %v1741_v50 = vadd.f32 %v1734_v32, %v5475_v18  ;;  %vm1792_vm3 = vmor %vm1790_vm2, %vm1791_vm1 }
 0x337   :  { %v1759_v48 = vsel %vm1756_vm15, %v1758_v61, %v1754_v23  ;;  %v1773_v22 = vsel %vm1772_vm14, %v3468_v62, %v1769_v21  ;;  %v1787_v39 = vsub.f32 1.0, %v1786_v12  ;;  %v1797_v62 = vor.u32 1.1754944e-38, %v1796_v38 }
 0x338   :  { %v1778_v6 = vsel %vm1775_vm0, %v1777_v3, %v1773_v22  ;;  %v1801_v49 = vmul.f32 %v3472_v20, %v1759_v48  ;;  %v3251_v17 = vmul.f32 -1.442695, %v1741_v50  ;;  %v3474_v59 = vpop.eup %3473  ;;  %v5476_v3 = vld [vmem:[#allocation99_spill] sm:$0xff] }
 0x339   :  { %v1800_v15 = vmul.f32 %v1778_v6, %v4669_v11  ;;  %v1788_v57 = vmul.f32 %v3470_v40, %v1787_v39  ;;  %v3476_v31 = vpop.eup %3475  ;;  %v1808_v53 = vadd.f32 1.0, %v3474_v59  ;;  %v1794_v11 = vand.u32 2147483647, %v4771_v8 }
 0x33a   :  { %3477 = vpow2.f32 %v3251_v17  ;;  %v1827_v37 = vadd.f32 1.0, %v3476_v31  ;;  %v1740_v23 = vadd.f32 %v1721_v47, %v5476_v3 }
 0x33b   :  { %v4780_v26 = vadd.f32 %v1801_v49, %v1800_v15  ;;  %v1789_v45 = vadd.f32 %v3470_v40, %v1788_v57  ;;  %vm1795_vm4 = vcmp.eq.f32.partialorder %v1794_v11, 8.507059e+37  ;;  %v1820_v49 = vand.u32 2147483648, %v1808_v53 }
 0x33c   :  { %v1723_v4 = vpop.f32.mrf.mxu2  ;;  %v1839_v57 = vand.u32 2147483648, %v1827_v37  ;;  %v1818_v47 = vand.u32 2147483647, %v1808_v53  ;;  %vm1814_vm7 = vweird.f32 %v1808_v53  ;;  %vm1833_vm8 = vweird.f32 %v1827_v37 }
 0x33d   :  { %v1736_v32 = vpop.f32.mrf.mxu3  ;;  %3479 = vtanh.f32 %v4780_v26  ;;  %v1793_v15 = vsel %vm1792_vm3, %v3470_v40, %v1789_v45  ;;  %v1837_v45 = vand.u32 2147483647, %v1827_v37  ;;  %v1821_v38 = vor.u32 1.1754944e-38, %v1820_v49 }
 0x33e   :  { %3481 = vrcp.f32 %v1808_v53  ;;  %v1798_v12 = vsel %vm1795_vm4, %v1797_v62, %v1793_v15  ;;  %v1840_v15 = vor.u32 1.1754944e-38, %v1839_v57  ;;  %vm1819_vm11 = vcmp.eq.f32.partialorder %v1818_v47, 8.507059e+37  ;;  %v5478_v57 = vld [vmem:[#allocation15_spill] sm:$0xff]  ;;  %v5480_v47 = vld [vmem:[#allocation17_spill] sm:$0xff] }
 0x33f   :  { %3483 = vrcp.f32 %v1827_v37  ;;  %vm1838_vm12 = vcmp.eq.f32.partialorder %v1837_v45, 8.507059e+37  ;;  %v5482_v45 = vld [vmem:[#allocation19_spill] sm:$0xff] }
 0x340   :  { %v3478_v6 = vpop.eup %3477 }
 0x341   :  { %v4786_v61 = vadd.f32 1.0, %v3478_v6 }
 0x343   :  { %v3480_v21 = vpop.eup %3479  ;;  %3485 = vrcp.f32 %v4786_v61  ;;  %vm1853_vm14 = vweird.f32 %v4786_v61 }
 0x344   :  { %v3482_v20 = vpop.eup %3481  ;;  %v1804_v18 = vmul.f32 %v3480_v21, %v1798_v12  ;;  %3487 = vtanh.f32 %v1740_v23 }
 0x345   :  { %v3484_v50 = vpop.eup %3483  ;;  %v1810_v48 = vmul.f32 %v3482_v20, %v1808_v53  ;;  %vm1815_vm5 = vweird.f32 %v3482_v20 }
 0x346   :  { %v1829_v8 = vmul.f32 %v3484_v50, %v1827_v37  ;;  %1868 = vst [vmem:[%s5146_s5 + $0x30] sm:$0xff] %v1804_v18  ;;  %v1874_v40 = vpack.c.bf16 %v1804_v18, %v1804_v18  ;;  %vm1834_vm6 = vweird.f32 %v3484_v50  ;;  %vm1816_vm9 = vmor %vm1814_vm7, %vm1815_vm5 }
 0x347   :  { %v1811_v22 = vsub.f32 1.0, %v1810_v48  ;;  %vm1835_vm10 = vmor %vm1833_vm8, %vm1834_vm6 }
 0x348   :  { %v1830_v39 = vsub.f32 1.0, %v1829_v8  ;;  %1883 = vmatmul.bf16.vlgmr.msra.gmra.mxu0 %v1874_v40  ;;  %1896 = vmatmul.bf16.vlgmr.msra.gmra.mxu1 %v1874_v40 }
 0x349   :  { %v3486_v17 = vpop.eup %3485  ;;  %v1812_v59 = vmul.f32 %v3482_v20, %v1811_v22  ;;  %1909 = vmatmul.bf16.vlgmr.msra.gmra.mxu2 %v1874_v40  ;;  %1922 = vmatmul.bf16.vlgmr.msra.gmra.mxu3 %v1874_v40 }
 0x34a   :  { %v1831_v31 = vmul.f32 %v3484_v50, %v1830_v39  ;;  %v1849_v4 = vmul.f32 %v3486_v17, %v4786_v61  ;;  %2125 = vmatpush.bf16.msra.mxu0 %v3771_v60  ;;  %2138 = vmatpush.bf16.msra.mxu1 %v3782_v0  ;;  %v3488_v21 = vpop.eup %3487  ;;  %vm1854_vm13 = vweird.f32 %v3486_v17 }
 0x34b   :  { %v1813_v32 = vadd.f32 %v3482_v20, %v1812_v59  ;;  %2151 = vmatpush.bf16.msra.mxu2 %v3819_v13  ;;  %2164 = vmatpush.bf16.msra.mxu3 %v3784_v1  ;;  %vm1855_vm15 = vmor %vm1853_vm14, %vm1854_vm13  ;;  %v5479_v59 = vld [vmem:[#allocation16_spill] sm:$0xff] }
 0x34c   :  { %v1832_v11 = vadd.f32 %v3484_v50, %v1831_v31  ;;  %v1850_v6 = vsub.f32 1.0, %v1849_v4  ;;  %v5481_v31 = vld [vmem:[#allocation18_spill] sm:$0xff]  ;;  %v5483_v4 = vld [vmem:[#allocation20_spill] sm:$0xff] }
 0x34d   :  { %v1817_v62 = vsel %vm1816_vm9, %v3482_v20, %v1813_v32  ;;  %v5484_v32 = vld [vmem:[#allocation21_spill] sm:$0xff] }
 0x34e   :  { %v1822_v12 = vsel %vm1819_vm11, %v1821_v38, %v1817_v62  ;;  %v1836_v3 = vsel %vm1835_vm10, %v3484_v50, %v1832_v11  ;;  %2126 = vmatpush.bf16.msra.mxu0 %v3796_v5  ;;  %2139 = vmatpush.bf16.msra.mxu1 %v3809_v9  ;;  %v1851_v37 = vmul.f32 %v3486_v17, %v1850_v6  ;;  %v1859_v50 = vand.u32 2147483648, %v4786_v61  ;;  %v5485_v38 = vld [vmem:[#allocation22_spill] sm:$0xff]  ;;  %v5486_v11 = vld [vmem:[#allocation23_spill] sm:$0xff]  ;;  %v5487_v6 = vld [vmem:[#allocation24_spill] sm:$0xff] }
 0x34f   :  { %v1841_v53 = vsel %vm1838_vm12, %v1840_v15, %v1836_v3  ;;  %v1864_v23 = vmul.f32 %v3488_v21, %v1822_v12  ;;  %2152 = vmatpush.bf16.msra.mxu2 %v3875_v30  ;;  %2165 = vmatpush.bf16.msra.mxu3 %v3811_v10  ;;  %v5488_v15 = vld [vmem:[#allocation25_spill] sm:$0xff]  ;;  %v5489_v62 = vld [vmem:[#allocation26_spill] sm:$0xff]  ;;  %v5490_v21 = vld [vmem:[#allocation27_spill] sm:$0xff] }
 0x350   :  { %v1863_v18 = vmul.f32 %v1841_v53, %v4696_v16  ;;  %v1852_v20 = vadd.f32 %v3486_v17, %v1851_v37  ;;  %v1857_v16 = vand.u32 2147483647, %v4786_v61  ;;  %v1860_v40 = vor.u32 1.1754944e-38, %v1859_v50  ;;  %v5491_v12 = vld [vmem:[#allocation28_spill] sm:$0xff]  ;;  %v5492_v3 = vld [vmem:[#allocation29_spill] sm:$0xff]  ;;  %v5493_v53 = vld [vmem:[#allocation30_spill] sm:$0xff] }
 0x351   :  { %v5495_v37 = vld [vmem:[#allocation32_spill] sm:$0xff]  ;;  %v5498_v50 = vld [vmem:[#allocation35_spill] sm:$0xff] }
 0x352   :  { %v4804_v48 = vadd.f32 %v1864_v23, %v1863_v18  ;;  %2127 = vmatpush.bf16.msra.mxu0 %v5350_v33  ;;  %2140 = vmatpush.bf16.msra.mxu1 %v3861_v24  ;;  %v1856_v8 = vsel %vm1855_vm15, %v3486_v17, %v1852_v20  ;;  %vm1858_vm0 = vcmp.eq.f32.partialorder %v1857_v16, 8.507059e+37  ;;  %v5477_v17 = vld [vmem:[#allocation12_spill] sm:$0xff]  ;;  %v5494_v23 = vld [vmem:[#allocation31_spill] sm:$0xff]  ;;  %v5496_v18 = vld [vmem:[#allocation33_spill] sm:$0xff] }
 0x353   :  { %2153 = vmatpush.bf16.msra.mxu2 %v5351_v46  ;;  %2166 = vmatpush.bf16.msra.mxu3 %v3863_v25  ;;  %v1861_v39 = vsel %vm1858_vm0, %v1860_v40, %v1856_v8  ;;  %v5497_v20 = vld [vmem:[#allocation34_spill] sm:$0xff]  ;;  %v5499_v16 = vld [vmem:[#allocation36_spill] sm:$0xff]  ;;  %v5500_v8 = vld [vmem:[#allocation37_spill] sm:$0xff] }
 0x354   :  { %3489 = vtanh.f32 %v4804_v48  ;;  %v5501_v40 = vld [vmem:[#allocation38_spill] sm:$0xff] }
 0x356   :  { %2128 = vmatpush.bf16.msra.mxu0 %v3888_v34  ;;  %2141 = vmatpush.bf16.msra.mxu1 %v3890_v35 }
 0x357   :  { %2154 = vmatpush.bf16.msra.mxu2 %v3921_v44  ;;  %2167 = vmatpush.bf16.msra.mxu3 %v3907_v41 }
 0x35a   :  { %v3490_v22 = vpop.eup %3489  ;;  %2129 = vmatpush.bf16.msra.mxu0 %v5352_v54  ;;  %2142 = vmatpush.bf16.msra.mxu1 %v3950_v51 }
 0x35b   :  { %v1867_v49 = vmul.f32 %v3490_v22, %v1861_v39  ;;  %2155 = vmatpush.bf16.msra.mxu2 %v3952_v52  ;;  %2168 = vmatpush.bf16.msra.mxu3 %v3964_v58  ;;  %v5502_v22 = vld [vmem:[#allocation39_spill] sm:$0xff]  ;;  %v5503_v39 = vld [vmem:[#allocation40_spill] sm:$0xff] }
 0x35d   :  { %1869 = vst [vmem:[%s5146_s5 + $0x48] sm:$0xff] %v1867_v49  ;;  %v1935_v61 = vpack.c.bf16 %v1867_v49, %v1867_v49  ;;  %v5504_v49 = vld [vmem:[#allocation41_spill] sm:$0xff] }
 0x35e   :  { %2130 = vmatpush.bf16.msra.mxu0 %v3977_v63  ;;  %2143 = vmatpush.bf16.msra.mxu1 %v3979_v2 }
 0x35f   :  { %1944 = vmatmul.bf16.vlgmr.msrb.gmra.mxu0 %v1935_v61  ;;  %1957 = vmatmul.bf16.vlgmr.msrb.gmra.mxu1 %v1935_v61 }
 0x360   :  { %1970 = vmatmul.bf16.vlgmr.msrb.gmra.mxu2 %v1935_v61  ;;  %1983 = vmatmul.bf16.vlgmr.msrb.gmra.mxu3 %v1935_v61  ;;  %v5505_v61 = vld [vmem:[#allocation42_spill] sm:$0xff] }
 0x361   :  { %2156 = vmatpush.bf16.msra.mxu2 %v3991_v7  ;;  %2169 = vmatpush.bf16.msra.mxu3 %v4002_v14 }
 0x362   :  { %2131 = vmatpush.bf16.msra.mxu0 %v4014_v19  ;;  %2144 = vmatpush.bf16.msra.mxu1 %v4027_v27 }
 0x365   :  { %2157 = vmatpush.bf16.msra.mxu2 %v4029_v28  ;;  %2170 = vmatpush.bf16.msra.mxu3 %v4032_v29 }
 0x366   :  { %2132 = vmatpush.bf16.msra.mxu0 %v4049_v36  ;;  %2145 = vmatpush.bf16.msra.mxu1 %v4064_v42 }
 0x369   :  { %2158 = vmatpush.bf16.msra.mxu2 %v4066_v43  ;;  %2171 = vmatpush.bf16.msra.mxu3 %v5477_v17 }
 0x36a   :  { %2186 = vmatpush.bf16.msrb.mxu0 %v4081_v55  ;;  %2199 = vmatpush.bf16.msrb.mxu1 %v5434_v56 }
 0x36d   :  { %2212 = vmatpush.bf16.msrb.mxu2 %v5478_v57  ;;  %2225 = vmatpush.bf16.msrb.mxu3 %v5479_v59 }
 0x36e   :  { %2187 = vmatpush.bf16.msrb.mxu0 %v5480_v47  ;;  %2200 = vmatpush.bf16.msrb.mxu1 %v5481_v31 }
 0x371   :  { %2213 = vmatpush.bf16.msrb.mxu2 %v5482_v45  ;;  %2226 = vmatpush.bf16.msrb.mxu3 %v5483_v4 }
 0x372   :  { %2188 = vmatpush.bf16.msrb.mxu0 %v5484_v32  ;;  %2201 = vmatpush.bf16.msrb.mxu1 %v5485_v38 }
 0x375   :  { %2214 = vmatpush.bf16.msrb.mxu2 %v5486_v11  ;;  %2227 = vmatpush.bf16.msrb.mxu3 %v5487_v6  ;;  %v5516_v11 = vld [vmem:[#allocation82_spill] sm:$0xff] }
 0x376   :  { %2189 = vmatpush.bf16.msrb.mxu0 %v5488_v15  ;;  %2202 = vmatpush.bf16.msrb.mxu1 %v5489_v62 }
 0x379   :  { %2215 = vmatpush.bf16.msrb.mxu2 %v5490_v21  ;;  %2228 = vmatpush.bf16.msrb.mxu3 %v5491_v12  ;;  %v5510_v12 = vld [vmem:[#allocation65_spill] sm:$0xff] }
 0x37a   :  { %2190 = vmatpush.bf16.msrb.mxu0 %v5492_v3  ;;  %2203 = vmatpush.bf16.msrb.mxu1 %v5493_v53  ;;  %v5509_v53 = vld [vmem:[#allocation62_spill] sm:$0xff] }
 0x37d   :  { %2216 = vmatpush.bf16.msrb.mxu2 %v5494_v23  ;;  %2229 = vmatpush.bf16.msrb.mxu3 %v5495_v37  ;;  %v5506_v37 = vld [vmem:[#allocation43_spill] sm:$0xff]  ;;  %v5508_v23 = vld [vmem:[#allocation61_spill] sm:$0xff] }
 0x37e   :  { %2191 = vmatpush.bf16.msrb.mxu0 %v5496_v18  ;;  %2204 = vmatpush.bf16.msrb.mxu1 %v5497_v20  ;;  %v5507_v18 = vld [vmem:[#allocation44_spill] sm:$0xff] }
 0x381   :  { %2217 = vmatpush.bf16.msrb.mxu2 %v5498_v50  ;;  %2230 = vmatpush.bf16.msrb.mxu3 %v5499_v16 }
 0x382   :  { %2192 = vmatpush.bf16.msrb.mxu0 %v5500_v8  ;;  %2205 = vmatpush.bf16.msrb.mxu1 %v5501_v40 }
 0x385   :  { %2218 = vmatpush.bf16.msrb.mxu2 %v5502_v22  ;;  %2231 = vmatpush.bf16.msrb.mxu3 %v5503_v39 }
 0x386   :  { %2193 = vmatpush.bf16.msrb.mxu0 %v5504_v49  ;;  %2206 = vmatpush.bf16.msrb.mxu1 %v5505_v61 }
 0x389   :  { %2219 = vmatpush.bf16.msrb.mxu2 %v5506_v37  ;;  %2232 = vmatpush.bf16.msrb.mxu3 %v5507_v18 }
 0x3c5   :  { %v1884_v20 = vpop.f32.mrf.mxu0  ;;  %v1897_v50 = vpop.f32.mrf.mxu1 }
 0x3c6   :  { %v1927_v16 = vadd.f32 %v1884_v20, %v5508_v23  ;;  %v1928_v8 = vadd.f32 %v1897_v50, %v5509_v53  ;;  %v5511_v50 = vld [vmem:[#allocation63_spill] sm:$0xff] }
 0x3c8   :  { %v3252_v3 = vmul.f32 -1.442695, %v1927_v16  ;;  %v3253_v40 = vmul.f32 -1.442695, %v1928_v8 }
 0x3ca   :  { %3491 = vpow2.f32 %v3252_v3 }
 0x3cb   :  { %3493 = vpow2.f32 %v3253_v40 }
 0x3cc   :  { %v1910_v22 = vpop.f32.mrf.mxu2  ;;  %v1923_v39 = vpop.f32.mrf.mxu3 }
 0x3cd   :  { %v1930_v49 = vadd.f32 %v1923_v39, %v5510_v12  ;;  %v1886_v21 = vpop.f32.mrf.mxu0  ;;  %v1899_v61 = vpop.f32.mrf.mxu1  ;;  %v1929_v3 = vadd.f32 %v1910_v22, %v5511_v50  ;;  %v5513_v39 = vld [vmem:[#allocation92_spill] sm:$0xff] }
 0x3ce   :  { %v5512_v21 = vld [vmem:[#allocation75_spill] sm:$0xff] }
 0x3cf   :  { %v3254_v62 = vmul.f32 -1.442695, %v1930_v49  ;;  %v325_v49 = vadd.f32 %v5513_v39, %v5512_v21 }
 0x3d0   :  { %v3492_v37 = vpop.eup %3491 }
 0x3d1   :  { %v3494_v15 = vpop.eup %3493  ;;  %v1995_v18 = vadd.f32 1.0, %v3492_v37  ;;  %3495 = vpow2.f32 %v3254_v62  ;;  %v5514_v62 = vld [vmem:[#allocation76_spill] sm:$0xff] }
 0x3d2   :  { %v2014_v6 = vadd.f32 1.0, %v3494_v15  ;;  %v5515_v15 = vld [vmem:[#allocation94_spill] sm:$0xff] }
 0x3d3   :  { %3497 = vrcp.f32 %v1995_v18  ;;  %v354_v61 = vadd.f32 %v5515_v15, %v5514_v62  ;;  %v2005_v32 = vand.u32 2147483647, %v1995_v18  ;;  %v2007_v4 = vand.u32 2147483648, %v1995_v18 }
 0x3d4   :  { %3499 = vrcp.f32 %v2014_v6  ;;  %v1912_v23 = vpop.f32.mrf.mxu2  ;;  %v1925_v53 = vpop.f32.mrf.mxu3  ;;  %v2026_v31 = vand.u32 2147483648, %v2014_v6  ;;  %v2024_v21 = vand.u32 2147483647, %v2014_v6  ;;  %vm2020_vm3 = vweird.f32 %v2014_v6 }
 0x3d5   :  { %v5517_v23 = vld [vmem:[#allocation96_spill] sm:$0xff]  ;;  %vm2001_vm4 = vweird.f32 %v1995_v18  ;;  %vm2006_vm7 = vcmp.eq.f32.partialorder %v2005_v32, 8.507059e+37 }
 0x3d6   :  { %v412_v53 = vadd.f32 %v5517_v23, %v5516_v11  ;;  %vm2025_vm8 = vcmp.eq.f32.partialorder %v2024_v21, 8.507059e+37 }
 0x3d7   :  { %v3496_v20 = vpop.eup %3495 }
 0x3d8   :  { %v4873_v16 = vadd.f32 1.0, %v3496_v20 }
 0x3d9   :  { %v3498_v8 = vpop.eup %3497 }
 0x3da   :  { %v3500_v40 = vpop.eup %3499  ;;  %v1997_v12 = vmul.f32 %v3498_v8, %v1995_v18  ;;  %3501 = vrcp.f32 %v4873_v16  ;;  %vm2002_vm1 = vweird.f32 %v3498_v8  ;;  %v2046_v21 = vand.u32 2147483648, %v4873_v16 }
 0x3db   :  { %v2016_v37 = vmul.f32 %v3500_v40, %v2014_v6  ;;  %3503 = vtanh.f32 %v1929_v3  ;;  %vm2021_vm2 = vweird.f32 %v3500_v40  ;;  %vm2003_vm5 = vmor %vm2001_vm4, %vm2002_vm1  ;;  %v2008_v3 = vor.u32 1.1754944e-38, %v2007_v4 }
 0x3dc   :  { %v1998_v38 = vsub.f32 1.0, %v1997_v12  ;;  %v1945_v22 = vpop.f32.mrf.mxu0  ;;  %v1958_v20 = vpop.f32.mrf.mxu1  ;;  %vm2022_vm6 = vmor %vm2020_vm3, %vm2021_vm2  ;;  %vm2040_vm10 = vweird.f32 %v4873_v16 }
 0x3dd   :  { %v2017_v50 = vsub.f32 1.0, %v2016_v37  ;;  %v1988_v45 = vadd.f32 %v1945_v22, %v325_v49  ;;  %v1989_v59 = vadd.f32 %v1958_v20, %v354_v61 }
 0x3de   :  { %v1999_v47 = vmul.f32 %v3498_v8, %v1998_v38  ;;  %v2027_v38 = vor.u32 1.1754944e-38, %v2026_v31 }
 0x3df   :  { %v2018_v39 = vmul.f32 %v3500_v40, %v2017_v50  ;;  %v3255_v57 = vmul.f32 -1.442695, %v1988_v45  ;;  %v3256_v12 = vmul.f32 -1.442695, %v1989_v59 }
 0x3e0   :  { %v3502_v15 = vpop.eup %3501  ;;  %v2000_v62 = vadd.f32 %v3498_v8, %v1999_v47 }
 0x3e1   :  { %v2019_v23 = vadd.f32 %v3500_v40, %v2018_v39  ;;  %v2036_v37 = vmul.f32 %v3502_v15, %v4873_v16  ;;  %3505 = vpow2.f32 %v3255_v57  ;;  %v3504_v49 = vpop.eup %3503  ;;  %vm2041_vm9 = vweird.f32 %v3502_v15 }
 0x3e2   :  { %v2004_v22 = vsel %vm2003_vm5, %v3498_v8, %v2000_v62  ;;  %3507 = vpow2.f32 %v3256_v12  ;;  %vm2042_vm11 = vmor %vm2040_vm10, %vm2041_vm9 }
 0x3e3   :  { %v2009_v61 = vsel %vm2006_vm7, %v2008_v3, %v2004_v22  ;;  %v2023_v20 = vsel %vm2022_vm6, %v3500_v40, %v2019_v23  ;;  %v2037_v45 = vsub.f32 1.0, %v2036_v37  ;;  %v1971_v6 = vpop.f32.mrf.mxu2  ;;  %v1984_v47 = vpop.f32.mrf.mxu3  ;;  %v2047_v3 = vor.u32 1.1754944e-38, %v2046_v21  ;;  %v5518_v37 = vld [vmem:[#allocation81_spill] sm:$0xff] }
 0x3e4   :  { %v2028_v18 = vsel %vm2025_vm8, %v2027_v38, %v2023_v20  ;;  %v2051_v59 = vmul.f32 %v3504_v49, %v2009_v61  ;;  %v1991_v50 = vadd.f32 %v1984_v47, %v412_v53  ;;  %v1947_v4 = vpop.f32.mrf.mxu0  ;;  %v1960_v39 = vpop.f32.mrf.mxu1  ;;  %v2044_v53 = vand.u32 2147483647, %v4873_v16 }
 0x3e5   :  { %v2050_v11 = vmul.f32 %v2028_v18, %v4780_v26  ;;  %v2038_v57 = vmul.f32 %v3502_v15, %v2037_v45 }
 0x3e6   :  { %v3257_v56 = vmul.f32 -1.442695, %v1991_v50  ;;  %vm2045_vm12 = vcmp.eq.f32.partialorder %v2044_v53, 8.507059e+37 }
 0x3e7   :  { %v3506_v55 = vpop.eup %3505  ;;  %v4884_v31 = vadd.f32 %v2051_v59, %v2050_v11  ;;  %v2039_v8 = vadd.f32 %v3502_v15, %v2038_v57 }
 0x3e8   :  { %v3508_v32 = vpop.eup %3507  ;;  %v2058_v40 = vadd.f32 1.0, %v3506_v55  ;;  %3509 = vpow2.f32 %v3257_v56  ;;  %v5519_v55 = vld [vmem:[#allocation95_spill] sm:$0xff] }
 0x3e9   :  { %3511 = vtanh.f32 %v4884_v31  ;;  %v2077_v62 = vadd.f32 1.0, %v3508_v32  ;;  %v2043_v12 = vsel %vm2042_vm11, %v3502_v15, %v2039_v8  ;;  %v383_v56 = vadd.f32 %v5519_v55, %v5518_v37  ;;  %v5549_v37 = vld [vmem:[#allocation42_spill] sm:$0xff] }
 0x3ea   :  { %3513 = vrcp.f32 %v2058_v40  ;;  %v2048_v22 = vsel %vm2045_vm12, %v2047_v3, %v2043_v12  ;;  %v2070_v4 = vand.u32 2147483648, %v2058_v40  ;;  %v2068_v32 = vand.u32 2147483647, %v2058_v40 }
 0x3eb   :  { %3515 = vrcp.f32 %v2077_v62  ;;  %v1973_v26 = vpop.f32.mrf.mxu2  ;;  %v1986_v11 = vpop.f32.mrf.mxu3  ;;  %v1990_v20 = vadd.f32 %v1971_v6, %v383_v56  ;;  %v2089_v39 = vand.u32 2147483648, %v2077_v62  ;;  %v2087_v8 = vand.u32 2147483647, %v2077_v62 }
 0x3ec   :  { %vm2064_vm15 = vweird.f32 %v2058_v40  ;;  %vm2083_vm0 = vweird.f32 %v2077_v62  ;;  %v2071_v26 = vor.u32 1.1754944e-38, %v2070_v4  ;;  %vm2069_vm3 = vcmp.eq.f32.partialorder %v2068_v32, 8.507059e+37  ;;  %v5522_v32 = vld [vmem:[#allocation15_spill] sm:$0xff] }
 0x3ed   :  { %v2090_v3 = vor.u32 1.1754944e-38, %v2089_v39  ;;  %vm2088_vm4 = vcmp.eq.f32.partialorder %v2087_v8, 8.507059e+37  ;;  %v5520_v39 = vld [vmem:[#allocation13_spill] sm:$0xff] }
 0x3ee   :  { %v3510_v23 = vpop.eup %3509  ;;  %v5524_v8 = vld [vmem:[#allocation17_spill] sm:$0xff] }
 0x3ef   :  { %v3512_v49 = vpop.eup %3511  ;;  %v4892_v38 = vadd.f32 1.0, %v3510_v23 }
 0x3f0   :  { %v3514_v61 = vpop.eup %3513  ;;  %v2054_v45 = vmul.f32 %v3512_v49, %v2048_v22 }
 0x3f1   :  { %v3516_v16 = vpop.eup %3515  ;;  %v2060_v47 = vmul.f32 %v3514_v61, %v2058_v40  ;;  %3517 = vrcp.f32 %v4892_v38  ;;  %vm2065_vm13 = vweird.f32 %v3514_v61  ;;  %vm2103_vm6 = vweird.f32 %v4892_v38 }
 0x3f2   :  { %v2079_v18 = vmul.f32 %v3516_v16, %v2077_v62  ;;  %2118 = vst [vmem:[%s5146_s5 + $0x40] sm:$0xff] %v2054_v45  ;;  %v2124_v59 = vpack.c.bf16 %v2054_v45, %v2054_v45  ;;  %3519 = vtanh.f32 %v1990_v20  ;;  %vm2084_vm14 = vweird.f32 %v3516_v16  ;;  %vm2066_vm1 = vmor %vm2064_vm15, %vm2065_vm13 }
 0x3f3   :  { %v2061_v15 = vsub.f32 1.0, %v2060_v47  ;;  %vm2085_vm2 = vmor %vm2083_vm0, %vm2084_vm14 }
 0x3f4   :  { %v2080_v50 = vsub.f32 1.0, %v2079_v18  ;;  %2133 = vmatmul.bf16.vlgmr.msra.gmra.mxu0 %v2124_v59  ;;  %2146 = vmatmul.bf16.vlgmr.msra.gmra.mxu1 %v2124_v59 }
 0x3f5   :  { %v2062_v57 = vmul.f32 %v3514_v61, %v2061_v15  ;;  %2159 = vmatmul.bf16.vlgmr.msra.gmra.mxu2 %v2124_v59  ;;  %2172 = vmatmul.bf16.vlgmr.msra.gmra.mxu3 %v2124_v59 }
 0x3f6   :  { %v2081_v6 = vmul.f32 %v3516_v16, %v2080_v50  ;;  %2375 = vmatpush.bf16.msra.mxu0 %v3771_v60  ;;  %2388 = vmatpush.bf16.msra.mxu1 %v3782_v0 }
 0x3f7   :  { %v3518_v21 = vpop.eup %3517  ;;  %v2063_v53 = vadd.f32 %v3514_v61, %v2062_v57  ;;  %2401 = vmatpush.bf16.msra.mxu2 %v3819_v13  ;;  %2414 = vmatpush.bf16.msra.mxu3 %v3784_v1  ;;  %v5521_v57 = vld [vmem:[#allocation14_spill] sm:$0xff] }
 0x3f8   :  { %v2082_v11 = vadd.f32 %v3516_v16, %v2081_v6  ;;  %v2099_v12 = vmul.f32 %v3518_v21, %v4892_v38  ;;  %v3520_v40 = vpop.eup %3519  ;;  %vm2104_vm5 = vweird.f32 %v3518_v21  ;;  %v5523_v6 = vld [vmem:[#allocation16_spill] sm:$0xff] }
 0x3f9   :  { %v2067_v23 = vsel %vm2066_vm1, %v3514_v61, %v2063_v53  ;;  %vm2105_vm7 = vmor %vm2103_vm6, %vm2104_vm5  ;;  %v5526_v53 = vld [vmem:[#allocation19_spill] sm:$0xff] }
 0x3fa   :  { %v2072_v55 = vsel %vm2069_vm3, %v2071_v26, %v2067_v23  ;;  %v2086_v56 = vsel %vm2085_vm2, %v3516_v16, %v2082_v11  ;;  %v2100_v62 = vsub.f32 1.0, %v2099_v12  ;;  %2376 = vmatpush.bf16.msra.mxu0 %v3796_v5  ;;  %2389 = vmatpush.bf16.msra.mxu1 %v3809_v9  ;;  %v2109_v16 = vand.u32 2147483648, %v4892_v38  ;;  %v5527_v26 = vld [vmem:[#allocation20_spill] sm:$0xff]  ;;  %v5528_v11 = vld [vmem:[#allocation21_spill] sm:$0xff]  ;;  %v5529_v12 = vld [vmem:[#allocation22_spill] sm:$0xff] }
 0x3fb   :  { %v2091_v49 = vsel %vm2088_vm4, %v2090_v3, %v2086_v56  ;;  %v2114_v22 = vmul.f32 %v3520_v40, %v2072_v55  ;;  %2402 = vmatpush.bf16.msra.mxu2 %v3875_v30  ;;  %2415 = vmatpush.bf16.msra.mxu3 %v3811_v10  ;;  %v5530_v3 = vld [vmem:[#allocation23_spill] sm:$0xff]  ;;  %v5531_v23 = vld [vmem:[#allocation24_spill] sm:$0xff]  ;;  %v5532_v40 = vld [vmem:[#allocation25_spill] sm:$0xff] }
 0x3fc   :  { %v2113_v20 = vmul.f32 %v2091_v49, %v4804_v48  ;;  %v2101_v45 = vmul.f32 %v3518_v21, %v2100_v62  ;;  %v2107_v48 = vand.u32 2147483647, %v4892_v38  ;;  %v2110_v15 = vor.u32 1.1754944e-38, %v2109_v16  ;;  %v5533_v55 = vld [vmem:[#allocation26_spill] sm:$0xff]  ;;  %v5534_v56 = vld [vmem:[#allocation27_spill] sm:$0xff]  ;;  %v5535_v62 = vld [vmem:[#allocation28_spill] sm:$0xff] }
 0x3fd   :  { %v5536_v49 = vld [vmem:[#allocation29_spill] sm:$0xff]  ;;  %v5541_v16 = vld [vmem:[#allocation34_spill] sm:$0xff] }
 0x3fe   :  { %v4910_v61 = vadd.f32 %v2114_v22, %v2113_v20  ;;  %v2102_v47 = vadd.f32 %v3518_v21, %v2101_v45  ;;  %2377 = vmatpush.bf16.msra.mxu0 %v5350_v33  ;;  %2390 = vmatpush.bf16.msra.mxu1 %v3861_v24  ;;  %vm2108_vm8 = vcmp.eq.f32.partialorder %v2107_v48, 8.507059e+37  ;;  %v5537_v22 = vld [vmem:[#allocation30_spill] sm:$0xff]  ;;  %v5538_v20 = vld [vmem:[#allocation31_spill] sm:$0xff]  ;;  %v5539_v45 = vld [vmem:[#allocation32_spill] sm:$0xff] }
 0x3ff   :  { %2403 = vmatpush.bf16.msra.mxu2 %v5351_v46  ;;  %2416 = vmatpush.bf16.msra.mxu3 %v3863_v25  ;;  %v5542_v48 = vld [vmem:[#allocation35_spill] sm:$0xff] }
 0x400   :  { %3521 = vtanh.f32 %v4910_v61  ;;  %v2106_v18 = vsel %vm2105_vm7, %v3518_v21, %v2102_v47  ;;  %v5525_v21 = vld [vmem:[#allocation18_spill] sm:$0xff]  ;;  %v5540_v47 = vld [vmem:[#allocation33_spill] sm:$0xff] }
 0x401   :  { %v2111_v50 = vsel %vm2108_vm8, %v2110_v15, %v2106_v18  ;;  %v5543_v18 = vld [vmem:[#allocation36_spill] sm:$0xff]  ;;  %v5544_v15 = vld [vmem:[#allocation37_spill] sm:$0xff] }
 0x402   :  { %2378 = vmatpush.bf16.msra.mxu0 %v3888_v34  ;;  %2391 = vmatpush.bf16.msra.mxu1 %v3890_v35 }
 0x403   :  { %2404 = vmatpush.bf16.msra.mxu2 %v3921_v44  ;;  %2417 = vmatpush.bf16.msra.mxu3 %v3907_v41 }
 0x406   :  { %v3522_v59 = vpop.eup %3521  ;;  %2379 = vmatpush.bf16.msra.mxu0 %v5352_v54  ;;  %2392 = vmatpush.bf16.msra.mxu1 %v3950_v51 }
 0x407   :  { %v2117_v4 = vmul.f32 %v3522_v59, %v2111_v50  ;;  %2405 = vmatpush.bf16.msra.mxu2 %v3952_v52  ;;  %2418 = vmatpush.bf16.msra.mxu3 %v3964_v58  ;;  %v5545_v59 = vld [vmem:[#allocation38_spill] sm:$0xff]  ;;  %v5546_v50 = vld [vmem:[#allocation39_spill] sm:$0xff] }
 0x409   :  { %2119 = vst [vmem:[%s5146_s5 + $0x38] sm:$0xff] %v2117_v4  ;;  %v2185_v38 = vpack.c.bf16 %v2117_v4, %v2117_v4  ;;  %v5547_v4 = vld [vmem:[#allocation40_spill] sm:$0xff] }
 0x40a   :  { %2380 = vmatpush.bf16.msra.mxu0 %v3977_v63  ;;  %2393 = vmatpush.bf16.msra.mxu1 %v3979_v2 }
 0x40b   :  { %2194 = vmatmul.bf16.vlgmr.msrb.gmra.mxu0 %v2185_v38  ;;  %2207 = vmatmul.bf16.vlgmr.msrb.gmra.mxu1 %v2185_v38 }
 0x40c   :  { %2220 = vmatmul.bf16.vlgmr.msrb.gmra.mxu2 %v2185_v38  ;;  %2233 = vmatmul.bf16.vlgmr.msrb.gmra.mxu3 %v2185_v38  ;;  %v5548_v38 = vld [vmem:[#allocation41_spill] sm:$0xff] }
 0x40d   :  { %2406 = vmatpush.bf16.msra.mxu2 %v3991_v7  ;;  %2419 = vmatpush.bf16.msra.mxu3 %v4002_v14 }
 0x40e   :  { %2381 = vmatpush.bf16.msra.mxu0 %v4014_v19  ;;  %2394 = vmatpush.bf16.msra.mxu1 %v4027_v27 }
 0x411   :  { %2407 = vmatpush.bf16.msra.mxu2 %v4029_v28  ;;  %2420 = vmatpush.bf16.msra.mxu3 %v4032_v29 }
 0x412   :  { %2382 = vmatpush.bf16.msra.mxu0 %v4049_v36  ;;  %2395 = vmatpush.bf16.msra.mxu1 %v4064_v42 }
 0x415   :  { %2408 = vmatpush.bf16.msra.mxu2 %v4066_v43  ;;  %2421 = vmatpush.bf16.msra.mxu3 %v5477_v17 }
 0x416   :  { %2436 = vmatpush.bf16.msrb.mxu0 %v5520_v39  ;;  %2449 = vmatpush.bf16.msrb.mxu1 %v5521_v57 }
 0x419   :  { %2462 = vmatpush.bf16.msrb.mxu2 %v5522_v32  ;;  %2475 = vmatpush.bf16.msrb.mxu3 %v5523_v6 }
 0x41a   :  { %2437 = vmatpush.bf16.msrb.mxu0 %v5524_v8  ;;  %2450 = vmatpush.bf16.msrb.mxu1 %v5525_v21 }
 0x41d   :  { %2463 = vmatpush.bf16.msrb.mxu2 %v5526_v53  ;;  %2476 = vmatpush.bf16.msrb.mxu3 %v5527_v26 }
 0x41e   :  { %2438 = vmatpush.bf16.msrb.mxu0 %v5528_v11  ;;  %2451 = vmatpush.bf16.msrb.mxu1 %v5529_v12 }
 0x421   :  { %2464 = vmatpush.bf16.msrb.mxu2 %v5530_v3  ;;  %2477 = vmatpush.bf16.msrb.mxu3 %v5531_v23 }
 0x422   :  { %2439 = vmatpush.bf16.msrb.mxu0 %v5532_v40  ;;  %2452 = vmatpush.bf16.msrb.mxu1 %v5533_v55  ;;  %v5557_v55 = vld [vmem:[#allocation68_spill] sm:$0xff] }
 0x425   :  { %2465 = vmatpush.bf16.msrb.mxu2 %v5534_v56  ;;  %2478 = vmatpush.bf16.msrb.mxu3 %v5535_v62 }
 0x426   :  { %2440 = vmatpush.bf16.msrb.mxu0 %v5536_v49  ;;  %2453 = vmatpush.bf16.msrb.mxu1 %v5537_v22  ;;  %v5555_v22 = vld [vmem:[#allocation66_spill] sm:$0xff] }
 0x429   :  { %2466 = vmatpush.bf16.msrb.mxu2 %v5538_v20  ;;  %2479 = vmatpush.bf16.msrb.mxu3 %v5539_v45  ;;  %v5550_v45 = vld [vmem:[#allocation43_spill] sm:$0xff] }
 0x42a   :  { %2441 = vmatpush.bf16.msrb.mxu0 %v5540_v47  ;;  %2454 = vmatpush.bf16.msrb.mxu1 %v5541_v16  ;;  %v5551_v47 = vld [vmem:[#allocation44_spill] sm:$0xff]  ;;  %v5552_v16 = vld [vmem:[#allocation47_spill] sm:$0xff] }
 0x42d   :  { %2467 = vmatpush.bf16.msrb.mxu2 %v5542_v48  ;;  %2480 = vmatpush.bf16.msrb.mxu3 %v5543_v18  ;;  %v5553_v48 = vld [vmem:[#allocation64_spill] sm:$0xff]  ;;  %v5554_v18 = vld [vmem:[#allocation49_spill] sm:$0xff] }
 0x42e   :  { %2442 = vmatpush.bf16.msrb.mxu0 %v5544_v15  ;;  %2455 = vmatpush.bf16.msrb.mxu1 %v5545_v59  ;;  %v214_v20 = vadd.f32 %v5553_v48, %v5552_v16  ;;  %v243_v15 = vadd.f32 %v5555_v22, %v5554_v18 }
 0x431   :  { %2468 = vmatpush.bf16.msrb.mxu2 %v5546_v50  ;;  %2481 = vmatpush.bf16.msrb.mxu3 %v5547_v4 }
 0x432   :  { %2443 = vmatpush.bf16.msrb.mxu0 %v5548_v38  ;;  %2456 = vmatpush.bf16.msrb.mxu1 %v5549_v37  ;;  %v5556_v38 = vld [vmem:[#allocation54_spill] sm:$0xff] }
 0x433   :  { %v301_v37 = vadd.f32 %v5557_v55, %v5556_v38 }
 0x435   :  { %2469 = vmatpush.bf16.msrb.mxu2 %v5550_v45  ;;  %2482 = vmatpush.bf16.msrb.mxu3 %v5551_v47 }
 0x471   :  { %v2134_v49 = vpop.f32.mrf.mxu0  ;;  %v2147_v59 = vpop.f32.mrf.mxu1 }
 0x472   :  { %v2177_v62 = vadd.f32 %v2134_v49, %v214_v20  ;;  %v2178_v50 = vadd.f32 %v2147_v59, %v243_v15  ;;  %v5559_v20 = vld [vmem:[#allocation67_spill] sm:$0xff] }
 0x474   :  { %v3258_v56 = vmul.f32 -1.442695, %v2177_v62  ;;  %v3259_v4 = vmul.f32 -1.442695, %v2178_v50 }
 0x476   :  { %3523 = vpow2.f32 %v3258_v56  ;;  %v5558_v56 = vld [vmem:[#allocation53_spill] sm:$0xff] }
 0x477   :  { %3525 = vpow2.f32 %v3259_v4  ;;  %v272_v15 = vadd.f32 %v5559_v20, %v5558_v56  ;;  %v5560_v4 = vld [vmem:[#allocation89_spill] sm:$0xff] }
 0x478   :  { %v2160_v45 = vpop.f32.mrf.mxu2  ;;  %v2173_v40 = vpop.f32.mrf.mxu3 }
 0x479   :  { %v2180_v47 = vadd.f32 %v2173_v40, %v301_v37  ;;  %v2136_v23 = vpop.f32.mrf.mxu0  ;;  %v2149_v3 = vpop.f32.mrf.mxu1  ;;  %v2179_v59 = vadd.f32 %v2160_v45, %v272_v15 }
 0x47b   :  { %v3260_v48 = vmul.f32 -1.442695, %v2180_v47 }
 0x47c   :  { %v3524_v16 = vpop.eup %3523 }
 0x47d   :  { %v3526_v12 = vpop.eup %3525  ;;  %v2245_v22 = vadd.f32 1.0, %v3524_v16  ;;  %3527 = vpow2.f32 %v3260_v48 }
 0x47e   :  { %v2264_v18 = vadd.f32 1.0, %v3526_v12 }
 0x47f   :  { %3529 = vrcp.f32 %v2245_v22  ;;  %v2255_v56 = vand.u32 2147483647, %v2245_v22  ;;  %v2257_v45 = vand.u32 2147483648, %v2245_v22  ;;  %vm2251_vm12 = vweird.f32 %v2245_v22 }
 0x480   :  { %3531 = vrcp.f32 %v2264_v18  ;;  %v2162_v62 = vpop.f32.mrf.mxu2  ;;  %v2175_v49 = vpop.f32.mrf.mxu3  ;;  %v2276_v20 = vand.u32 2147483648, %v2264_v18  ;;  %v2274_v53 = vand.u32 2147483647, %v2264_v18  ;;  %vm2270_vm11 = vweird.f32 %v2264_v18 }
 0x481   :  { %v5561_v62 = vld [vmem:[#allocation90_spill] sm:$0xff]  ;;  %vm2256_vm15 = vcmp.eq.f32.partialorder %v2255_v56, 8.507059e+37 }
 0x482   :  { %vm2275_vm0 = vcmp.eq.f32.partialorder %v2274_v53, 8.507059e+37 }
 0x483   :  { %v3528_v55 = vpop.eup %3527 }
 0x484   :  { %v4983_v50 = vadd.f32 1.0, %v3528_v55 }
 0x485   :  { %v3530_v37 = vpop.eup %3529 }
 0x486   :  { %v3532_v23 = vpop.eup %3531  ;;  %v2247_v3 = vmul.f32 %v3530_v37, %v2245_v22  ;;  %3533 = vrcp.f32 %v4983_v50  ;;  %vm2252_vm9 = vweird.f32 %v3530_v37  ;;  %v2296_v53 = vand.u32 2147483648, %v4983_v50 }
 0x487   :  { %v2266_v40 = vmul.f32 %v3532_v23, %v2264_v18  ;;  %3535 = vtanh.f32 %v2179_v59  ;;  %vm2271_vm10 = vweird.f32 %v3532_v23  ;;  %vm2253_vm13 = vmor %vm2251_vm12, %vm2252_vm9  ;;  %v2258_v59 = vor.u32 1.1754944e-38, %v2257_v45  ;;  %v5562_v45 = vld [vmem:[#allocation93_spill] sm:$0xff] }
 0x488   :  { %v2195_v47 = vpop.f32.mrf.mxu0  ;;  %v2208_v16 = vpop.f32.mrf.mxu1  ;;  %v2248_v12 = vsub.f32 1.0, %v2247_v3  ;;  %vm2272_vm14 = vmor %vm2270_vm11, %vm2271_vm10  ;;  %vm2290_vm2 = vweird.f32 %v4983_v50 }
 0x489   :  { %v2238_v48 = vadd.f32 %v2195_v47, %v5560_v4  ;;  %v2239_v49 = vadd.f32 %v2208_v16, %v5561_v62  ;;  %v2267_v38 = vsub.f32 1.0, %v2266_v40  ;;  %v2277_v16 = vor.u32 1.1754944e-38, %v2276_v20 }
 0x48a   :  { %v2249_v15 = vmul.f32 %v3530_v37, %v2248_v12 }
 0x48b   :  { %v3261_v55 = vmul.f32 -1.442695, %v2238_v48  ;;  %v3262_v11 = vmul.f32 -1.442695, %v2239_v49  ;;  %v2268_v26 = vmul.f32 %v3532_v23, %v2267_v38 }
 0x48c   :  { %v3534_v21 = vpop.eup %3533  ;;  %v2250_v8 = vadd.f32 %v3530_v37, %v2249_v15 }
 0x48d   :  { %3537 = vpow2.f32 %v3261_v55  ;;  %v2269_v3 = vadd.f32 %v3532_v23, %v2268_v26  ;;  %v2286_v40 = vmul.f32 %v3534_v21, %v4983_v50  ;;  %v3536_v47 = vpop.eup %3535  ;;  %vm2291_vm1 = vweird.f32 %v3534_v21 }
 0x48e   :  { %3539 = vpow2.f32 %v3262_v11  ;;  %v2254_v12 = vsel %vm2253_vm13, %v3530_v37, %v2250_v8  ;;  %vm2292_vm3 = vmor %vm2290_vm2, %vm2291_vm1 }
 0x48f   :  { %v2221_v4 = vpop.f32.mrf.mxu2  ;;  %v2234_v38 = vpop.f32.mrf.mxu3  ;;  %v2259_v48 = vsel %vm2256_vm15, %v2258_v59, %v2254_v12  ;;  %v2273_v62 = vsel %vm2272_vm14, %v3532_v23, %v2269_v3  ;;  %v2287_v18 = vsub.f32 1.0, %v2286_v40  ;;  %v2294_v59 = vand.u32 2147483647, %v4983_v50 }
 0x490   :  { %v2197_v49 = vpop.f32.mrf.mxu0  ;;  %v2210_v22 = vpop.f32.mrf.mxu1  ;;  %v2278_v15 = vsel %vm2275_vm0, %v2277_v16, %v2273_v62  ;;  %v2301_v55 = vmul.f32 %v3536_v47, %v2259_v48  ;;  %v2241_v26 = vadd.f32 %v2234_v38, %v5562_v45  ;;  %v2297_v40 = vor.u32 1.1754944e-38, %v2296_v53  ;;  %v5563_v38 = vld [vmem:[#allocation91_spill] sm:$0xff] }
 0x491   :  { %v2300_v6 = vmul.f32 %v2278_v15, %v4884_v31  ;;  %v2288_v11 = vmul.f32 %v3534_v21, %v2287_v18  ;;  %vm2295_vm4 = vcmp.eq.f32.partialorder %v2294_v59, 8.507059e+37  ;;  %v2240_v48 = vadd.f32 %v2221_v4, %v5563_v38  ;;  %v5587_v38 = vld [vmem:[#allocation37_spill] sm:$0xff] }
 0x492   :  { %v3263_v57 = vmul.f32 -1.442695, %v2241_v26 }
 0x493   :  { %v3538_v32 = vpop.eup %3537  ;;  %v4991_v8 = vadd.f32 %v2301_v55, %v2300_v6  ;;  %v2289_v37 = vadd.f32 %v3534_v21, %v2288_v11 }
 0x494   :  { %v3540_v20 = vpop.eup %3539  ;;  %v2308_v56 = vadd.f32 1.0, %v3538_v32  ;;  %3541 = vpow2.f32 %v3263_v57 }
 0x495   :  { %v2327_v23 = vadd.f32 1.0, %v3540_v20  ;;  %3543 = vtanh.f32 %v4991_v8  ;;  %v2293_v6 = vsel %vm2292_vm3, %v3534_v21, %v2289_v37 }
 0x496   :  { %3545 = vrcp.f32 %v2308_v56  ;;  %v2298_v57 = vsel %vm2295_vm4, %v2297_v40, %v2293_v6  ;;  %v2320_v55 = vand.u32 2147483648, %v2308_v56  ;;  %v2318_v11 = vand.u32 2147483647, %v2308_v56 }
 0x497   :  { %v2223_v31 = vpop.f32.mrf.mxu2  ;;  %v2236_v3 = vpop.f32.mrf.mxu3  ;;  %3547 = vrcp.f32 %v2327_v23  ;;  %v2339_v45 = vand.u32 2147483648, %v2327_v23  ;;  %v2337_v20 = vand.u32 2147483647, %v2327_v23  ;;  %vm2314_vm7 = vweird.f32 %v2308_v56 }
 0x498   :  { %vm2333_vm8 = vweird.f32 %v2327_v23  ;;  %v2321_v59 = vor.u32 1.1754944e-38, %v2320_v55  ;;  %vm2319_vm11 = vcmp.eq.f32.partialorder %v2318_v11, 8.507059e+37  ;;  %v5596_v11 = vld [vmem:[#allocation70_spill] sm:$0xff] }
 0x499   :  { %v2340_v6 = vor.u32 1.1754944e-38, %v2339_v45  ;;  %vm2338_vm12 = vcmp.eq.f32.partialorder %v2337_v20, 8.507059e+37  ;;  %v5595_v45 = vld [vmem:[#allocation69_spill] sm:$0xff] }
 0x49a   :  { %v3542_v32 = vpop.eup %3541 }
 0x49b   :  { %v3544_v47 = vpop.eup %3543  ;;  %v4997_v16 = vadd.f32 1.0, %v3542_v32 }
 0x49c   :  { %v3546_v12 = vpop.eup %3545  ;;  %v2304_v62 = vmul.f32 %v3544_v47, %v2298_v57 }
 0x49d   :  { %v3548_v18 = vpop.eup %3547  ;;  %v2310_v49 = vmul.f32 %v3546_v12, %v2308_v56  ;;  %3549 = vrcp.f32 %v4997_v16  ;;  %vm2315_vm5 = vweird.f32 %v3546_v12  ;;  %vm2353_vm14 = vweird.f32 %v4997_v16 }
 0x49e   :  { %v2329_v50 = vmul.f32 %v3548_v18, %v2327_v23  ;;  %2368 = vst [vmem:[%s5146_s5 + $0x50] sm:$0xff] %v2304_v62  ;;  %v2374_v22 = vpack.c.bf16 %v2304_v62, %v2304_v62  ;;  %3551 = vtanh.f32 %v2240_v48  ;;  %vm2334_vm6 = vweird.f32 %v3548_v18  ;;  %vm2316_vm9 = vmor %vm2314_vm7, %vm2315_vm5  ;;  %v5588_v48 = vld [vmem:[#allocation38_spill] sm:$0xff]  ;;  %v5589_v62 = vld [vmem:[#allocation39_spill] sm:$0xff] }
 0x49f   :  { %v2311_v21 = vsub.f32 1.0, %v2310_v49  ;;  %vm2335_vm10 = vmor %vm2333_vm8, %vm2334_vm6  ;;  %v5591_v49 = vld [vmem:[#allocation41_spill] sm:$0xff] }
 0x4a0   :  { %v2330_v15 = vsub.f32 1.0, %v2329_v50  ;;  %2383 = vmatmul.bf16.vlgmr.msra.gmra.mxu0 %v2374_v22  ;;  %2396 = vmatmul.bf16.vlgmr.msra.gmra.mxu1 %v2374_v22  ;;  %v5592_v50 = vld [vmem:[#allocation42_spill] sm:$0xff] }
 0x4a1   :  { %v2312_v26 = vmul.f32 %v3546_v12, %v2311_v21  ;;  %2409 = vmatmul.bf16.vlgmr.msra.gmra.mxu2 %v2374_v22  ;;  %2422 = vmatmul.bf16.vlgmr.msra.gmra.mxu3 %v2374_v22  ;;  %v5593_v21 = vld [vmem:[#allocation43_spill] sm:$0xff]  ;;  %v5594_v22 = vld [vmem:[#allocation44_spill] sm:$0xff] }
 0x4a2   :  { %v2331_v4 = vmul.f32 %v3548_v18, %v2330_v15  ;;  %2625 = vmatpush.bf16.msra.mxu0 %v3771_v60  ;;  %2638 = vmatpush.bf16.msra.mxu1 %v3782_v0 }
 0x4a3   :  { %v3550_v37 = vpop.eup %3549  ;;  %v2313_v53 = vadd.f32 %v3546_v12, %v2312_v26  ;;  %2651 = vmatpush.bf16.msra.mxu2 %v3819_v13  ;;  %2664 = vmatpush.bf16.msra.mxu3 %v3784_v1 }
 0x4a4   :  { %v2332_v31 = vadd.f32 %v3548_v18, %v2331_v4  ;;  %v2349_v3 = vmul.f32 %v3550_v37, %v4997_v16  ;;  %v3552_v56 = vpop.eup %3551  ;;  %vm2354_vm13 = vweird.f32 %v3550_v37 }
 0x4a5   :  { %v2317_v40 = vsel %vm2316_vm9, %v3546_v12, %v2313_v53  ;;  %vm2355_vm15 = vmor %vm2353_vm14, %vm2354_vm13 }
 0x4a6   :  { %v2322_v60 = vsel %vm2319_vm11, %v2321_v59, %v2317_v40  ;;  %v2336_v32 = vsel %vm2335_vm10, %v3548_v18, %v2332_v31  ;;  %v2350_v0 = vsub.f32 1.0, %v2349_v3  ;;  %2626 = vmatpush.bf16.msra.mxu0 %v3796_v5  ;;  %2639 = vmatpush.bf16.msra.mxu1 %v3809_v9  ;;  %v2359_v5 = vand.u32 2147483648, %v4997_v16  ;;  %v5590_v18 = vld [vmem:[#allocation40_spill] sm:$0xff]  ;;  %v5597_v31 = vld [vmem:[#allocation73_spill] sm:$0xff] }
 0x4a7   :  { %v2341_v23 = vsel %vm2338_vm12, %v2340_v6, %v2336_v32  ;;  %v2364_v47 = vmul.f32 %v3552_v56, %v2322_v60  ;;  %2652 = vmatpush.bf16.msra.mxu2 %v3875_v30  ;;  %2665 = vmatpush.bf16.msra.mxu3 %v3811_v10  ;;  %v2357_v9 = vand.u32 2147483647, %v4997_v16  ;;  %v5586_v16 = vld [vmem:[#allocation36_spill] sm:$0xff] }
 0x4a8   :  { %v2363_v13 = vmul.f32 %v2341_v23, %v4910_v61  ;;  %v2351_v57 = vmul.f32 %v3550_v37, %v2350_v0  ;;  %v2360_v30 = vor.u32 1.1754944e-38, %v2359_v5  ;;  %v5584_v61 = vld [vmem:[#allocation34_spill] sm:$0xff] }
 0x4a9   :  { %vm2358_vm0 = vcmp.eq.f32.partialorder %v2357_v9, 8.507059e+37 }
 0x4aa   :  { %v5016_v1 = vadd.f32 %v2364_v47, %v2363_v13  ;;  %v2352_v12 = vadd.f32 %v3550_v37, %v2351_v57  ;;  %2627 = vmatpush.bf16.msra.mxu0 %v5350_v33  ;;  %2640 = vmatpush.bf16.msra.mxu1 %v3861_v24 }
 0x4ab   :  { %2653 = vmatpush.bf16.msra.mxu2 %v5351_v46  ;;  %2666 = vmatpush.bf16.msra.mxu3 %v3863_v25 }
 0x4ac   :  { %3553 = vtanh.f32 %v5016_v1  ;;  %v2356_v10 = vsel %vm2355_vm15, %v3550_v37, %v2352_v12  ;;  %v5598_v12 = vld [vmem:[#allocation71_spill] sm:$0xff] }
 0x4ad   :  { %v2361_v33 = vsel %vm2358_vm0, %v2360_v30, %v2356_v10 }
 0x4ae   :  { %2628 = vmatpush.bf16.msra.mxu0 %v3888_v34  ;;  %2641 = vmatpush.bf16.msra.mxu1 %v3890_v35  ;;  %v5564_v34 = vld [vmem:[#allocation14_spill] sm:$0xff]  ;;  %v5565_v35 = vld [vmem:[#allocation15_spill] sm:$0xff] }
 0x4af   :  { %2654 = vmatpush.bf16.msra.mxu2 %v3921_v44  ;;  %2667 = vmatpush.bf16.msra.mxu3 %v3907_v41  ;;  %v5566_v41 = vld [vmem:[#allocation16_spill] sm:$0xff]  ;;  %v5567_v44 = vld [vmem:[#allocation17_spill] sm:$0xff] }
 0x4b2   :  { %v3554_v24 = vpop.eup %3553  ;;  %2629 = vmatpush.bf16.msra.mxu0 %v5352_v54  ;;  %2642 = vmatpush.bf16.msra.mxu1 %v3950_v51  ;;  %v5568_v51 = vld [vmem:[#allocation18_spill] sm:$0xff]  ;;  %v5582_v54 = vld [vmem:[#allocation32_spill] sm:$0xff] }
 0x4b3   :  { %v2367_v46 = vmul.f32 %v3554_v24, %v2361_v33  ;;  %2655 = vmatpush.bf16.msra.mxu2 %v3952_v52  ;;  %2668 = vmatpush.bf16.msra.mxu3 %v3964_v58  ;;  %v5569_v52 = vld [vmem:[#allocation19_spill] sm:$0xff]  ;;  %v5570_v58 = vld [vmem:[#allocation20_spill] sm:$0xff] }
 0x4b4   :  { %v5599_v24 = vld [vmem:[#allocation75_spill] sm:$0xff]  ;;  %v5600_v33 = vld [vmem:[#allocation84_spill] sm:$0xff] }
 0x4b5   :  { %2369 = vst [vmem:[%s5146_s5 + $0x28] sm:$0xff] %v2367_v46  ;;  %v2435_v25 = vpack.c.bf16 %v2367_v46, %v2367_v46  ;;  %v320_v46 = vadd.f32 %v5600_v33, %v5599_v24 }
 0x4b6   :  { %2630 = vmatpush.bf16.msra.mxu0 %v3977_v63  ;;  %2643 = vmatpush.bf16.msra.mxu1 %v3979_v2  ;;  %v5571_v63 = vld [vmem:[#allocation21_spill] sm:$0xff]  ;;  %v5572_v2 = vld [vmem:[#allocation22_spill] sm:$0xff] }
 0x4b7   :  { %2444 = vmatmul.bf16.vlgmr.msrb.gmra.mxu0 %v2435_v25  ;;  %2457 = vmatmul.bf16.vlgmr.msrb.gmra.mxu1 %v2435_v25 }
 0x4b8   :  { %2470 = vmatmul.bf16.vlgmr.msrb.gmra.mxu2 %v2435_v25  ;;  %2483 = vmatmul.bf16.vlgmr.msrb.gmra.mxu3 %v2435_v25  ;;  %v5601_v25 = vld [vmem:[#allocation76_spill] sm:$0xff] }
 0x4b9   :  { %2656 = vmatpush.bf16.msra.mxu2 %v3991_v7  ;;  %2669 = vmatpush.bf16.msra.mxu3 %v4002_v14  ;;  %v5573_v7 = vld [vmem:[#allocation23_spill] sm:$0xff]  ;;  %v5574_v14 = vld [vmem:[#allocation24_spill] sm:$0xff] }
 0x4ba   :  { %2631 = vmatpush.bf16.msra.mxu0 %v4014_v19  ;;  %2644 = vmatpush.bf16.msra.mxu1 %v4027_v27  ;;  %v5575_v19 = vld [vmem:[#allocation25_spill] sm:$0xff]  ;;  %v5576_v27 = vld [vmem:[#allocation26_spill] sm:$0xff] }
 0x4bd   :  { %2657 = vmatpush.bf16.msra.mxu2 %v4029_v28  ;;  %2670 = vmatpush.bf16.msra.mxu3 %v4032_v29  ;;  %v5577_v28 = vld [vmem:[#allocation27_spill] sm:$0xff]  ;;  %v5578_v29 = vld [vmem:[#allocation28_spill] sm:$0xff] }
 0x4be   :  { %2632 = vmatpush.bf16.msra.mxu0 %v4049_v36  ;;  %2645 = vmatpush.bf16.msra.mxu1 %v4064_v42  ;;  %v5579_v36 = vld [vmem:[#allocation29_spill] sm:$0xff]  ;;  %v5580_v42 = vld [vmem:[#allocation30_spill] sm:$0xff] }
 0x4c1   :  { %2658 = vmatpush.bf16.msra.mxu2 %v4066_v43  ;;  %2671 = vmatpush.bf16.msra.mxu3 %v5477_v17  ;;  %v5581_v43 = vld [vmem:[#allocation31_spill] sm:$0xff]  ;;  %v5583_v17 = vld [vmem:[#allocation33_spill] sm:$0xff] }
 0x4c2   :  { %2686 = vmatpush.bf16.msrb.mxu0 %v5520_v39  ;;  %2699 = vmatpush.bf16.msrb.mxu1 %v5564_v34  ;;  %v5585_v39 = vld [vmem:[#allocation35_spill] sm:$0xff]  ;;  %v5602_v34 = vld [vmem:[#allocation86_spill] sm:$0xff] }
 0x4c5   :  { %2712 = vmatpush.bf16.msrb.mxu2 %v5565_v35  ;;  %2725 = vmatpush.bf16.msrb.mxu3 %v5566_v41  ;;  %v349_v35 = vadd.f32 %v5602_v34, %v5601_v25 }
 0x4c6   :  { %2687 = vmatpush.bf16.msrb.mxu0 %v5567_v44  ;;  %2700 = vmatpush.bf16.msrb.mxu1 %v5568_v51 }
 0x4c9   :  { %2713 = vmatpush.bf16.msrb.mxu2 %v5569_v52  ;;  %2726 = vmatpush.bf16.msrb.mxu3 %v5570_v58 }
 0x4ca   :  { %2688 = vmatpush.bf16.msrb.mxu0 %v5571_v63  ;;  %2701 = vmatpush.bf16.msrb.mxu1 %v5572_v2 }
 0x4cd   :  { %2714 = vmatpush.bf16.msrb.mxu2 %v5573_v7  ;;  %2727 = vmatpush.bf16.msrb.mxu3 %v5574_v14 }
 0x4ce   :  { %2689 = vmatpush.bf16.msrb.mxu0 %v5575_v19  ;;  %2702 = vmatpush.bf16.msrb.mxu1 %v5576_v27 }
 0x4d1   :  { %2715 = vmatpush.bf16.msrb.mxu2 %v5577_v28  ;;  %2728 = vmatpush.bf16.msrb.mxu3 %v5578_v29 }
 0x4d2   :  { %2690 = vmatpush.bf16.msrb.mxu0 %v5579_v36  ;;  %2703 = vmatpush.bf16.msrb.mxu1 %v5580_v42 }
 0x4d5   :  { %2716 = vmatpush.bf16.msrb.mxu2 %v5581_v43  ;;  %2729 = vmatpush.bf16.msrb.mxu3 %v5582_v54 }
 0x4d6   :  { %2691 = vmatpush.bf16.msrb.mxu0 %v5583_v17  ;;  %2704 = vmatpush.bf16.msrb.mxu1 %v5584_v61 }
 0x4d9   :  { %2717 = vmatpush.bf16.msrb.mxu2 %v5585_v39  ;;  %2730 = vmatpush.bf16.msrb.mxu3 %v5586_v16 }
 0x4da   :  { %2692 = vmatpush.bf16.msrb.mxu0 %v5587_v38  ;;  %2705 = vmatpush.bf16.msrb.mxu1 %v5588_v48  ;;  %v5603_v48 = vld [vmem:[#allocation82_spill] sm:$0xff] }
 0x4dd   :  { %2718 = vmatpush.bf16.msrb.mxu2 %v5589_v62  ;;  %2731 = vmatpush.bf16.msrb.mxu3 %v5590_v18  ;;  %v5604_v62 = vld [vmem:[#allocation88_spill] sm:$0xff] }
 0x4de   :  { %2693 = vmatpush.bf16.msrb.mxu0 %v5591_v49  ;;  %2706 = vmatpush.bf16.msrb.mxu1 %v5592_v50  ;;  %v407_v18 = vadd.f32 %v5604_v62, %v5603_v48 }
 0x4e1   :  { %2719 = vmatpush.bf16.msrb.mxu2 %v5593_v21  ;;  %2732 = vmatpush.bf16.msrb.mxu3 %v5594_v22 }
 0x51d   :  { %v2384_v15 = vpop.f32.mrf.mxu0  ;;  %v2397_v55 = vpop.f32.mrf.mxu1 }
 0x51e   :  { %v2427_v26 = vadd.f32 %v2384_v15, %v5595_v45  ;;  %v2428_v4 = vadd.f32 %v2397_v55, %v5596_v11 }
 0x520   :  { %v3264_v20 = vmul.f32 -1.442695, %v2427_v26  ;;  %v3265_v37 = vmul.f32 -1.442695, %v2428_v4 }
 0x522   :  { %3555 = vpow2.f32 %v3264_v20 }
 0x523   :  { %3557 = vpow2.f32 %v3265_v37 }
 0x524   :  { %v2410_v53 = vpop.f32.mrf.mxu2  ;;  %v2423_v59 = vpop.f32.mrf.mxu3 }
 0x525   :  { %v2430_v3 = vadd.f32 %v2423_v59, %v5597_v31  ;;  %v2386_v6 = vpop.f32.mrf.mxu0  ;;  %v2399_v40 = vpop.f32.mrf.mxu1  ;;  %v2429_v5 = vadd.f32 %v2410_v53, %v5598_v12 }
 0x527   :  { %v3266_v56 = vmul.f32 -1.442695, %v2430_v3 }
 0x528   :  { %v3556_v60 = vpop.eup %3555 }
 0x529   :  { %v3558_v32 = vpop.eup %3557  ;;  %v2495_v0 = vadd.f32 1.0, %v3556_v60  ;;  %3559 = vpow2.f32 %v3266_v56 }
 0x52a   :  { %v2514_v23 = vadd.f32 1.0, %v3558_v32 }
 0x52b   :  { %3561 = vrcp.f32 %v2495_v0  ;;  %v2505_v19 = vand.u32 2147483647, %v2495_v0  ;;  %v2507_v27 = vand.u32 2147483648, %v2495_v0  ;;  %vm2501_vm4 = vweird.f32 %v2495_v0 }
 0x52c   :  { %3563 = vrcp.f32 %v2514_v23  ;;  %v2412_v47 = vpop.f32.mrf.mxu2  ;;  %v2425_v13 = vpop.f32.mrf.mxu3  ;;  %v2526_v14 = vand.u32 2147483648, %v2514_v23  ;;  %v2524_v43 = vand.u32 2147483647, %v2514_v23  ;;  %vm2520_vm3 = vweird.f32 %v2514_v23 }
 0x52d   :  { %v2508_v61 = vor.u32 1.1754944e-38, %v2507_v27  ;;  %vm2506_vm7 = vcmp.eq.f32.partialorder %v2505_v19, 8.507059e+37 }
 0x52e   :  { %v2527_v49 = vor.u32 1.1754944e-38, %v2526_v14  ;;  %vm2525_vm8 = vcmp.eq.f32.partialorder %v2524_v43, 8.507059e+37 }
 0x52f   :  { %v3560_v57 = vpop.eup %3559 }
 0x530   :  { %v5085_v9 = vadd.f32 1.0, %v3560_v57 }
 0x531   :  { %v3562_v10 = vpop.eup %3561 }
 0x532   :  { %v3564_v30 = vpop.eup %3563  ;;  %v2497_v41 = vmul.f32 %v3562_v10, %v2495_v0  ;;  %3565 = vrcp.f32 %v5085_v9  ;;  %vm2502_vm1 = vweird.f32 %v3562_v10  ;;  %v2546_v0 = vand.u32 2147483648, %v5085_v9 }
 0x533   :  { %v2516_v44 = vmul.f32 %v3564_v30, %v2514_v23  ;;  %3567 = vtanh.f32 %v2429_v5  ;;  %vm2521_vm2 = vweird.f32 %v3564_v30  ;;  %vm2503_vm5 = vmor %vm2501_vm4, %vm2502_vm1  ;;  %vm2540_vm10 = vweird.f32 %v5085_v9  ;;  %v5605_v5 = vld [vmem:[#allocation81_spill] sm:$0xff] }
 0x534   :  { %v2445_v51 = vpop.f32.mrf.mxu0  ;;  %v2458_v52 = vpop.f32.mrf.mxu1  ;;  %v2498_v58 = vsub.f32 1.0, %v2497_v41  ;;  %vm2522_vm6 = vmor %vm2520_vm3, %vm2521_vm2  ;;  %v2544_v23 = vand.u32 2147483647, %v5085_v9  ;;  %v2547_v57 = vor.u32 1.1754944e-38, %v2546_v0 }
 0x535   :  { %v2488_v63 = vadd.f32 %v2445_v51, %v320_v46  ;;  %v2489_v2 = vadd.f32 %v2458_v52, %v349_v35  ;;  %v2517_v7 = vsub.f32 1.0, %v2516_v44 }
 0x536   :  { %v2499_v28 = vmul.f32 %v3562_v10, %v2498_v58  ;;  %vm2545_vm12 = vcmp.eq.f32.partialorder %v2544_v23, 8.507059e+37 }
 0x537   :  { %v3267_v29 = vmul.f32 -1.442695, %v2488_v63  ;;  %v3268_v36 = vmul.f32 -1.442695, %v2489_v2  ;;  %v2518_v42 = vmul.f32 %v3564_v30, %v2517_v7 }
 0x538   :  { %v3566_v54 = vpop.eup %3565  ;;  %v2500_v17 = vadd.f32 %v3562_v10, %v2499_v28 }
 0x539   :  { %3569 = vpow2.f32 %v3267_v29  ;;  %v2519_v39 = vadd.f32 %v3564_v30, %v2518_v42  ;;  %v2536_v16 = vmul.f32 %v3566_v54, %v5085_v9  ;;  %v3568_v38 = vpop.eup %3567  ;;  %vm2541_vm9 = vweird.f32 %v3566_v54 }
 0x53a   :  { %3571 = vpow2.f32 %v3268_v36  ;;  %v2504_v50 = vsel %vm2503_vm5, %v3562_v10, %v2500_v17  ;;  %vm2542_vm11 = vmor %vm2540_vm10, %vm2541_vm9  ;;  %v5606_v10 = vld [vmem:[#allocation87_spill] sm:$0xff] }
 0x53b   :  { %v2471_v21 = vpop.f32.mrf.mxu2  ;;  %v2484_v22 = vpop.f32.mrf.mxu3  ;;  %v2509_v15 = vsel %vm2506_vm7, %v2508_v61, %v2504_v50  ;;  %v2523_v55 = vsel %vm2522_vm6, %v3564_v30, %v2519_v39  ;;  %v2537_v45 = vsub.f32 1.0, %v2536_v16  ;;  %v378_v30 = vadd.f32 %v5606_v10, %v5605_v5 }
 0x53c   :  { %v2447_v26 = vpop.f32.mrf.mxu0  ;;  %v2460_v11 = vpop.f32.mrf.mxu1  ;;  %v2528_v4 = vsel %vm2525_vm8, %v2527_v49, %v2523_v55  ;;  %v2551_v20 = vmul.f32 %v3568_v38, %v2509_v15  ;;  %v2491_v37 = vadd.f32 %v2484_v22, %v407_v18 }
 0x53d   :  { %v2550_v53 = vmul.f32 %v2528_v4, %v4991_v8  ;;  %v2538_v59 = vmul.f32 %v3566_v54, %v2537_v45  ;;  %v2490_v34 = vadd.f32 %v2471_v21, %v378_v30 }
 0x53e   :  { %v3269_v3 = vmul.f32 -1.442695, %v2491_v37  ;;  %v5608_v37 = vld [vmem:[#allocation72_spill] sm:$0xff] }
 0x53f   :  { %v3570_v31 = vpop.eup %3569  ;;  %v5096_v40 = vadd.f32 %v2551_v20, %v2550_v53  ;;  %v2539_v60 = vadd.f32 %v3566_v54, %v2538_v59  ;;  %v5607_v20 = vld [vmem:[#allocation47_spill] sm:$0xff]  ;;  %v5609_v59 = vld [vmem:[#allocation49_spill] sm:$0xff] }
 0x540   :  { %v3572_v6 = vpop.eup %3571  ;;  %v2558_v56 = vadd.f32 1.0, %v3570_v31  ;;  %3573 = vpow2.f32 %v3269_v3  ;;  %v219_v53 = vadd.f32 %v5608_v37, %v5607_v20  ;;  %v5610_v31 = vld [vmem:[#allocation74_spill] sm:$0xff] }
 0x541   :  { %v2577_v32 = vadd.f32 1.0, %v3572_v6  ;;  %3575 = vtanh.f32 %v5096_v40  ;;  %v2543_v13 = vsel %vm2542_vm11, %v3566_v54, %v2539_v60  ;;  %v248_v3 = vadd.f32 %v5610_v31, %v5609_v59 }
 0x542   :  { %3577 = vrcp.f32 %v2558_v56  ;;  %v2548_v46 = vsel %vm2545_vm12, %v2547_v57, %v2543_v13  ;;  %v2570_v63 = vand.u32 2147483648, %v2558_v56  ;;  %v2568_v14 = vand.u32 2147483647, %v2558_v56 }
 0x543   :  { %v2473_v8 = vpop.f32.mrf.mxu2  ;;  %v2486_v47 = vpop.f32.mrf.mxu3  ;;  %3579 = vrcp.f32 %v2577_v32  ;;  %v2589_v2 = vand.u32 2147483648, %v2577_v32  ;;  %v2587_v27 = vand.u32 2147483647, %v2577_v32  ;;  %vm2564_vm15 = vweird.f32 %v2558_v56 }
 0x544   :  { %vm2583_vm0 = vweird.f32 %v2577_v32  ;;  %v2571_v36 = vor.u32 1.1754944e-38, %v2570_v63  ;;  %vm2569_vm3 = vcmp.eq.f32.partialorder %v2568_v14, 8.507059e+37  ;;  %v5611_v8 = vld [vmem:[#allocation54_spill] sm:$0xff] }
 0x545   :  { %v2590_v54 = vor.u32 1.1754944e-38, %v2589_v2  ;;  %vm2588_vm4 = vcmp.eq.f32.partialorder %v2587_v27, 8.507059e+37  ;;  %v5612_v47 = vld [vmem:[#allocation78_spill] sm:$0xff] }
 0x546   :  { %v3574_v12 = vpop.eup %3573  ;;  %v306_v13 = vadd.f32 %v5612_v47, %v5611_v8 }
 0x547   :  { %v3576_v24 = vpop.eup %3575  ;;  %v2597_v33 = vadd.f32 1.0, %v3574_v12 }
 0x548   :  { %v3578_v25 = vpop.eup %3577  ;;  %v2554_v35 = vmul.f32 %v3576_v24, %v2548_v46 }
 0x549   :  { %v3580_v41 = vpop.eup %3579  ;;  %v2560_v9 = vmul.f32 %v3578_v25, %v2558_v56  ;;  %3581 = vrcp.f32 %v2597_v33  ;;  %vm2565_vm13 = vweird.f32 %v3578_v25  ;;  %v2609_v22 = vand.u32 2147483648, %v2597_v33 }
 0x54a   :  { %v2579_v44 = vmul.f32 %v3580_v41, %v2577_v32  ;;  %2618 = vst [vmem:[%s5146_s5 + $0x60] sm:$0xff] %v2554_v35  ;;  %v2624_v52 = vpack.c.bf16 %v2554_v35, %v2554_v35  ;;  %3583 = vtanh.f32 %v2490_v34  ;;  %vm2584_vm14 = vweird.f32 %v3580_v41  ;;  %vm2566_vm1 = vmor %vm2564_vm15, %vm2565_vm13 }
 0x54b   :  { %v2561_v51 = vsub.f32 1.0, %v2560_v9  ;;  %vm2585_vm2 = vmor %vm2583_vm0, %vm2584_vm14  ;;  %vm2603_vm6 = vweird.f32 %v2597_v33  ;;  %v2607_v15 = vand.u32 2147483647, %v2597_v33  ;;  %v2610_v45 = vor.u32 1.1754944e-38, %v2609_v22  ;;  %v5613_v9 = vld [vmem:[#allocation53_spill] sm:$0xff] }
 0x54c   :  { %v2580_v58 = vsub.f32 1.0, %v2579_v44  ;;  %2633 = vmatmul.bf16.vlgmr.msra.gmra.mxu0 %v2624_v52  ;;  %2646 = vmatmul.bf16.vlgmr.msra.gmra.mxu1 %v2624_v52  ;;  %v5614_v44 = vld [vmem:[#allocation77_spill] sm:$0xff] }
 0x54d   :  { %v2562_v7 = vmul.f32 %v3578_v25, %v2561_v51  ;;  %2659 = vmatmul.bf16.vlgmr.msra.gmra.mxu2 %v2624_v52  ;;  %2672 = vmatmul.bf16.vlgmr.msra.gmra.mxu3 %v2624_v52  ;;  %vm2608_vm8 = vcmp.eq.f32.partialorder %v2607_v15, 8.507059e+37  ;;  %v277_v51 = vadd.f32 %v5614_v44, %v5613_v9 }
 0x54e   :  { %v2581_v19 = vmul.f32 %v3580_v41, %v2580_v58 }
 0x54f   :  { %v3582_v28 = vpop.eup %3581  ;;  %v2563_v29 = vadd.f32 %v3578_v25, %v2562_v7 }
 0x550   :  { %v2582_v42 = vadd.f32 %v3580_v41, %v2581_v19  ;;  %v2599_v43 = vmul.f32 %v3582_v28, %v2597_v33  ;;  %v3584_v61 = vpop.eup %3583  ;;  %vm2604_vm5 = vweird.f32 %v3582_v28 }
 0x551   :  { %v2567_v17 = vsel %vm2566_vm1, %v3578_v25, %v2563_v29  ;;  %vm2605_vm7 = vmor %vm2603_vm6, %vm2604_vm5 }
 0x552   :  { %v2572_v39 = vsel %vm2569_vm3, %v2571_v36, %v2567_v17  ;;  %v2586_v16 = vsel %vm2585_vm2, %v3580_v41, %v2582_v42  ;;  %v2600_v38 = vsub.f32 1.0, %v2599_v43  ;;  %v5615_v36 = vld [vmem:[#allocation79_spill] sm:$0xff]  ;;  %v5616_v43 = vld [vmem:[#allocation80_spill] sm:$0xff] }
 0x553   :  { %v2591_v48 = vsel %vm2588_vm4, %v2590_v54, %v2586_v16  ;;  %v2614_v62 = vmul.f32 %v3584_v61, %v2572_v39 }
 0x554   :  { %v2613_v18 = vmul.f32 %v2591_v48, %v5016_v1  ;;  %v2601_v49 = vmul.f32 %v3582_v28, %v2600_v38 }
 0x556   :  { %v5108_v50 = vadd.f32 %v2614_v62, %v2613_v18  ;;  %v2602_v21 = vadd.f32 %v3582_v28, %v2601_v49 }
 0x558   :  { %3585 = vtanh.f32 %v5108_v50  ;;  %v2606_v55 = vsel %vm2605_vm7, %v3582_v28, %v2602_v21 }
 0x559   :  { %v2611_v11 = vsel %vm2608_vm8, %v2610_v45, %v2606_v55 }
 0x55e   :  { %v3586_v26 = vpop.eup %3585 }
 0x55f   :  { %v2617_v4 = vmul.f32 %v3586_v26, %v2611_v11 }
 0x561   :  { %2619 = vst [vmem:[%s5146_s5 + $0x18] sm:$0xff] %v2617_v4  ;;  %v2685_v1 = vpack.c.bf16 %v2617_v4, %v2617_v4 }
 0x563   :  { %2694 = vmatmul.bf16.vlgmr.msrb.gmra.mxu0 %v2685_v1  ;;  %2707 = vmatmul.bf16.vlgmr.msrb.gmra.mxu1 %v2685_v1 }
 0x564   :  { %2720 = vmatmul.bf16.vlgmr.msrb.gmra.mxu2 %v2685_v1  ;;  %2733 = vmatmul.bf16.vlgmr.msrb.gmra.mxu3 %v2685_v1 }
 0x5c9   :  { %v2634_v6 = vpop.f32.mrf.mxu0  ;;  %v2647_v56 = vpop.f32.mrf.mxu1 }
 0x5ca   :  { %v2677_v60 = vadd.f32 %v2634_v6, %v219_v53  ;;  %v2678_v32 = vadd.f32 %v2647_v56, %v248_v3 }
 0x5cc   :  { %v3270_v0 = vmul.f32 -1.442695, %v2677_v60  ;;  %v3271_v23 = vmul.f32 -1.442695, %v2678_v32  ;;  %v5617_v60 = vld [vmem:[#allocation85_spill] sm:$0xff] }
 0x5ce   :  { %3587 = vpow2.f32 %v3270_v0 }
 0x5cf   :  { %3589 = vpow2.f32 %v3271_v23 }
 0x5d0   :  { %v2660_v57 = vpop.f32.mrf.mxu2  ;;  %v2673_v12 = vpop.f32.mrf.mxu3 }
 0x5d1   :  { %v2680_v5 = vadd.f32 %v2673_v12, %v306_v13  ;;  %v2636_v10 = vpop.f32.mrf.mxu0  ;;  %v2649_v30 = vpop.f32.mrf.mxu1  ;;  %v2679_v58 = vadd.f32 %v2660_v57, %v277_v51 }
 0x5d3   :  { %v3272_v24 = vmul.f32 -1.442695, %v2680_v5 }
 0x5d4   :  { %v3588_v33 = vpop.eup %3587 }
 0x5d5   :  { %v3590_v46 = vpop.eup %3589  ;;  %v2745_v25 = vadd.f32 1.0, %v3588_v33  ;;  %3591 = vpow2.f32 %v3272_v24 }
 0x5d6   :  { %v2764_v34 = vadd.f32 1.0, %v3590_v46 }
 0x5d7   :  { %3593 = vrcp.f32 %v2745_v25  ;;  %v2755_v39 = vand.u32 2147483647, %v2745_v25  ;;  %v2757_v16 = vand.u32 2147483648, %v2745_v25  ;;  %vm2751_vm12 = vweird.f32 %v2745_v25 }
 0x5d8   :  { %3595 = vrcp.f32 %v2764_v34  ;;  %v2662_v35 = vpop.f32.mrf.mxu2  ;;  %v2675_v41 = vpop.f32.mrf.mxu3  ;;  %v2776_v61 = vand.u32 2147483648, %v2764_v34  ;;  %v2774_v49 = vand.u32 2147483647, %v2764_v34  ;;  %vm2770_vm11 = vweird.f32 %v2764_v34 }
 0x5d9   :  { %v2758_v15 = vor.u32 1.1754944e-38, %v2757_v16  ;;  %vm2756_vm15 = vcmp.eq.f32.partialorder %v2755_v39, 8.507059e+37 }
 0x5da   :  { %v2777_v11 = vor.u32 1.1754944e-38, %v2776_v61  ;;  %vm2775_vm0 = vcmp.eq.f32.partialorder %v2774_v49, 8.507059e+37 }
 0x5db   :  { %v3592_v52 = vpop.eup %3591 }
 0x5dc   :  { %v5122_v63 = vadd.f32 1.0, %v3592_v52  ;;  %v5618_v52 = vld [vmem:[#allocation83_spill] sm:$0xff] }
 0x5dd   :  { %v3594_v2 = vpop.eup %3593 }
 0x5de   :  { %v3596_v7 = vpop.eup %3595  ;;  %v2747_v14 = vmul.f32 %v3594_v2, %v2745_v25  ;;  %3597 = vrcp.f32 %v5122_v63  ;;  %vm2752_vm9 = vweird.f32 %v3594_v2  ;;  %v2796_v30 = vand.u32 2147483648, %v5122_v63 }
 0x5df   :  { %v2766_v19 = vmul.f32 %v3596_v7, %v2764_v34  ;;  %3599 = vtanh.f32 %v2679_v58  ;;  %vm2771_vm10 = vweird.f32 %v3596_v7  ;;  %vm2753_vm13 = vmor %vm2751_vm12, %vm2752_vm9  ;;  %vm2790_vm2 = vweird.f32 %v5122_v63 }
 0x5e0   :  { %v2695_v27 = vpop.f32.mrf.mxu0  ;;  %v2708_v28 = vpop.f32.mrf.mxu1  ;;  %v2748_v29 = vsub.f32 1.0, %v2747_v14  ;;  %vm2772_vm14 = vmor %vm2770_vm11, %vm2771_vm10  ;;  %v2794_v24 = vand.u32 2147483647, %v5122_v63  ;;  %v2797_v25 = vor.u32 1.1754944e-38, %v2796_v30 }
 0x5e1   :  { %v2738_v42 = vadd.f32 %v2695_v27, %v5615_v36  ;;  %v2739_v54 = vadd.f32 %v2708_v28, %v5616_v43  ;;  %v2767_v17 = vsub.f32 1.0, %v2766_v19 }
 0x5e2   :  { %v2749_v38 = vmul.f32 %v3594_v2, %v2748_v29  ;;  %vm2795_vm4 = vcmp.eq.f32.partialorder %v2794_v24, 8.507059e+37 }
 0x5e3   :  { %v3273_v48 = vmul.f32 -1.442695, %v2738_v42  ;;  %v3274_v62 = vmul.f32 -1.442695, %v2739_v54  ;;  %v2768_v18 = vmul.f32 %v3596_v7, %v2767_v17 }
 0x5e4   :  { %v3598_v21 = vpop.eup %3597  ;;  %v2750_v22 = vadd.f32 %v3594_v2, %v2749_v38 }
 0x5e5   :  { %3601 = vpow2.f32 %v3273_v48  ;;  %v2769_v55 = vadd.f32 %v3596_v7, %v2768_v18  ;;  %v2786_v45 = vmul.f32 %v3598_v21, %v5122_v63  ;;  %v3600_v26 = vpop.eup %3599  ;;  %vm2791_vm1 = vweird.f32 %v3598_v21 }
 0x5e6   :  { %3603 = vpow2.f32 %v3274_v62  ;;  %v2754_v4 = vsel %vm2753_vm13, %v3594_v2, %v2750_v22  ;;  %vm2792_vm3 = vmor %vm2790_vm2, %vm2791_vm1 }
 0x5e7   :  { %v2721_v1 = vpop.f32.mrf.mxu2  ;;  %v2734_v20 = vpop.f32.mrf.mxu3  ;;  %v2759_v37 = vsel %vm2756_vm15, %v2758_v15, %v2754_v4  ;;  %v2773_v53 = vsel %vm2772_vm14, %v3596_v7, %v2769_v55  ;;  %v2787_v59 = vsub.f32 1.0, %v2786_v45 }
 0x5e8   :  { %v2697_v31 = vpop.f32.mrf.mxu0  ;;  %v2710_v3 = vpop.f32.mrf.mxu1  ;;  %v2778_v6 = vsel %vm2775_vm0, %v2777_v11, %v2773_v53  ;;  %v2801_v56 = vmul.f32 %v3600_v26, %v2759_v37  ;;  %v2741_v32 = vadd.f32 %v2734_v20, %v5617_v60  ;;  %v2740_v58 = vadd.f32 %v2721_v1, %v5618_v52 }
 0x5e9   :  { %v2800_v0 = vmul.f32 %v2778_v6, %v5096_v40  ;;  %v2788_v23 = vmul.f32 %v3598_v21, %v2787_v59 }
 0x5ea   :  { %v3275_v47 = vmul.f32 -1.442695, %v2741_v32 }
 0x5eb   :  { %v3602_v8 = vpop.eup %3601  ;;  %v2802_v57 = vadd.f32 %v2801_v56, %v2800_v0  ;;  %v2789_v5 = vadd.f32 %v3598_v21, %v2788_v23 }
 0x5ec   :  { %v3604_v13 = vpop.eup %3603  ;;  %v2808_v12 = vadd.f32 1.0, %v3602_v8  ;;  %3605 = vpow2.f32 %v3275_v47 }
 0x5ed   :  { %v2827_v10 = vadd.f32 1.0, %v3604_v13  ;;  %3607 = vtanh.f32 %v2802_v57  ;;  %v2793_v46 = vsel %vm2792_vm3, %v3598_v21, %v2789_v5 }
 0x5ee   :  { %3609 = vrcp.f32 %v2808_v12  ;;  %v2798_v41 = vsel %vm2795_vm4, %v2797_v25, %v2793_v46  ;;  %v2820_v27 = vand.u32 2147483648, %v2808_v12  ;;  %v2818_v36 = vand.u32 2147483647, %v2808_v12 }
 0x5ef   :  { %v2723_v33 = vpop.f32.mrf.mxu2  ;;  %v2736_v40 = vpop.f32.mrf.mxu3  ;;  %3611 = vrcp.f32 %v2827_v10  ;;  %v2839_v28 = vand.u32 2147483648, %v2827_v10  ;;  %v2837_v43 = vand.u32 2147483647, %v2827_v10  ;;  %vm2814_vm7 = vweird.f32 %v2808_v12 }
 0x5f0   :  { %vm2833_vm8 = vweird.f32 %v2827_v10  ;;  %v2821_v61 = vor.u32 1.1754944e-38, %v2820_v27  ;;  %vm2819_vm11 = vcmp.eq.f32.partialorder %v2818_v36, 8.507059e+37 }
 0x5f1   :  { %v2840_v38 = vor.u32 1.1754944e-38, %v2839_v28  ;;  %vm2838_vm12 = vcmp.eq.f32.partialorder %v2837_v43, 8.507059e+37 }
 0x5f2   :  { %v3606_v34 = vpop.eup %3605 }
 0x5f3   :  { %v3608_v35 = vpop.eup %3607  ;;  %v2847_v9 = vadd.f32 1.0, %v3606_v34 }
 0x5f4   :  { %v3610_v44 = vpop.eup %3609  ;;  %v2804_v51 = vmul.f32 %v3608_v35, %v2798_v41 }
 0x5f5   :  { %v3612_v2 = vpop.eup %3611  ;;  %v2810_v7 = vmul.f32 %v3610_v44, %v2808_v12  ;;  %3613 = vrcp.f32 %v2847_v9  ;;  %vm2815_vm5 = vweird.f32 %v3610_v44  ;;  %v2859_v4 = vand.u32 2147483648, %v2847_v9 }
 0x5f6   :  { %2868 = vst [vmem:[%s5146_s5 + $0x70] sm:$0xff] %v2804_v51  ;;  %v2829_v63 = vmul.f32 %v3612_v2, %v2827_v10  ;;  %3615 = vtanh.f32 %v2740_v58  ;;  %vm2834_vm6 = vweird.f32 %v3612_v2  ;;  %vm2816_vm9 = vmor %vm2814_vm7, %vm2815_vm5  ;;  %vm2853_vm14 = vweird.f32 %v2847_v9 }
 0x5f7   :  { %v2811_v14 = vsub.f32 1.0, %v2810_v7  ;;  %vm2835_vm10 = vmor %vm2833_vm8, %vm2834_vm6  ;;  %v2857_v1 = vand.u32 2147483647, %v2847_v9  ;;  %v2860_v37 = vor.u32 1.1754944e-38, %v2859_v4 }
 0x5f8   :  { %v2830_v19 = vsub.f32 1.0, %v2829_v63 }
 0x5f9   :  { %v2812_v29 = vmul.f32 %v3610_v44, %v2811_v14  ;;  %vm2858_vm0 = vcmp.eq.f32.partialorder %v2857_v1, 8.507059e+37 }
 0x5fa   :  { %v2831_v42 = vmul.f32 %v3612_v2, %v2830_v19 }
 0x5fb   :  { %v3614_v54 = vpop.eup %3613  ;;  %v2813_v17 = vadd.f32 %v3610_v44, %v2812_v29 }
 0x5fc   :  { %v2832_v39 = vadd.f32 %v3612_v2, %v2831_v42  ;;  %v2849_v16 = vmul.f32 %v3614_v54, %v2847_v9  ;;  %v3616_v62 = vpop.eup %3615  ;;  %vm2854_vm13 = vweird.f32 %v3614_v54 }
 0x5fd   :  { %v2817_v48 = vsel %vm2816_vm9, %v3610_v44, %v2813_v17  ;;  %vm2855_vm15 = vmor %vm2853_vm14, %vm2854_vm13 }
 0x5fe   :  { %v2822_v18 = vsel %vm2819_vm11, %v2821_v61, %v2817_v48  ;;  %v2836_v49 = vsel %vm2835_vm10, %v3612_v2, %v2832_v39  ;;  %v2850_v21 = vsub.f32 1.0, %v2849_v16 }
 0x5ff   :  { %v2841_v22 = vsel %vm2838_vm12, %v2840_v38, %v2836_v49  ;;  %v2864_v15 = vmul.f32 %v3616_v62, %v2822_v18 }
 0x600   :  { %v2863_v55 = vmul.f32 %v2841_v22, %v5108_v50  ;;  %v2851_v45 = vmul.f32 %v3614_v54, %v2850_v21 }
 0x602   :  { %v2865_v26 = vadd.f32 %v2864_v15, %v2863_v55  ;;  %v2852_v11 = vadd.f32 %v3614_v54, %v2851_v45 }
 0x604   :  { %3617 = vtanh.f32 %v2865_v26  ;;  %v2856_v20 = vsel %vm2855_vm15, %v3614_v54, %v2852_v11 }
 0x605   :  { %v2861_v59 = vsel %vm2858_vm0, %v2860_v37, %v2856_v20 }
 0x60a   :  { %v3618_v53 = vpop.eup %3617 }
 0x60b   :  { %v2867_v31 = vmul.f32 %v3618_v53, %v2861_v59 }
 0x60d   :  { %2869 = vst [vmem:[%s5146_s5 + $0x8] sm:$0xff] %v2867_v31 }
 0x60e   :  { %2874 = vsyncpa [#allocation4], 1 }
 0x60f   :  { %2875 = vsyncpa [#allocation6], 1 }

// kernel: birnn_forward.3
= control target key start
LH: loop header
LB: loop body
LE: loop exit
PB: predicated region body
PF: predicated region fallthrough
CT: control target
= control target key end

     0   :  { %12 = vsyncpa [#allocation4], 0  ;;  %s6792_s0 = inlined_call_operand.vmem [shape: f32[64,256], index: 0, kind: input, shape index: {}]   ;;  %s6793_s1 = inlined_call_operand.hbm [shape: bf16[256,1024], index: 1, kind: input, shape index: {}]   ;;  %s6794_s2 = inlined_call_operand.hbm [shape: bf16[128,512], index: 2, kind: input, shape index: {}]   ;;  %s6795_s3 = inlined_call_operand.hbm [shape: bf16[128,512], index: 3, kind: input, shape index: {}]   ;;  %s6796_s4 = inlined_call_operand.vmem [shape: f32[1,1024], index: 4, kind: input, shape index: {}]   ;;  %s6797_s5 = inlined_call_operand.hbm [shape: bf16[256,128], index: 5, kind: input, shape index: {}]   ;;  %s6798_s6 = inlined_call_operand.vmem [shape: f32[1,128], index: 6, kind: input, shape index: {}]   ;;  %s6799_s7 = inlined_call_operand.vmem [shape: f32[8,128], index: 7, kind: output, shape index: {}]  }
   0x1   :  { %13 = vsyncpa [#allocation6], 0  ;;  %s34_s26 = sshll.u32 %s6794_s2, 4  ;;  %s35_s26 = int_to_ptr.hbm [resolvable:$true] %s34_s26 }
   0x2   :  { %14 = vsyncpa [#allocation9], 0  ;;  %s5421_s27 = smov [#allocation5]   ;;  %s21_s8 = sshll.u32 %s6793_s1, 4  ;;  %s22_s8 = int_to_ptr.hbm [resolvable:$true] %s21_s8 }
   0x3   :  { %s36_s28 = sshll.u32 %s5421_s27, 4  ;;  %s5422_s9 = smov 256   ;;  %s37_s28 = int_to_ptr.vmem [resolvable:$true] %s36_s28 }
   0x4   :  { %s5423_s10 = smov 16   ;;  %s5424_s11 = smov [#allocation3]  }
   0x5   :  { %42 = dma.hbm_to_vmem [thread:$0]  %s35_s26, 4096, %s37_s28, [#allocation6], %s5422_s9, %s5422_s9, %s5423_s10  }
   0x6   :  { %s23_s12 = sshll.u32 %s5424_s11, 4  ;;  %s5425_s13 = smov 512   ;;  %s24_s12 = int_to_ptr.vmem [resolvable:$true] %s23_s12 }
   0x7   :  { %s5426_s14 = smov 32   ;;  %s47_s16 = sshll.u32 %s6795_s3, 4  ;;  %s48_s16 = int_to_ptr.hbm [resolvable:$true] %s47_s16 }
   0x8   :  { %29 = dma.hbm_to_vmem [thread:$0]  %s22_s8, 16384, %s24_s12, [#allocation4], %s5425_s13, %s5425_s13, %s5426_s14  }
   0x9   :  { %s5427_s17 = smov [#allocation7]   ;;  %s62_s20 = sshll.u32 %s6797_s5, 4  ;;  %s63_s20 = int_to_ptr.hbm [resolvable:$true] %s62_s20 }
   0xa   :  { %s49_s18 = sshll.u32 %s5427_s17, 4  ;;  %s5428_s21 = smov [#allocation8]   ;;  %s50_s18 = int_to_ptr.vmem [resolvable:$true] %s49_s18 }
   0xb   :  { %55 = dma.hbm_to_vmem [thread:$0]  %s48_s16, 4096, %s50_s18, [#allocation6], %s5422_s9, %s5422_s9, %s5423_s10  }
   0xc   :  { %s64_s22 = sshll.u32 %s5428_s21, 4  ;;  %s5429_s23 = smov 64   ;;  %s65_s22 = int_to_ptr.vmem [resolvable:$true] %s64_s22 }
   0xd   :  { %s5430_s24 = smov 4  }
   0xe   :  { %70 = dma.hbm_to_vmem [thread:$0]  %s63_s20, 2048, %s65_s22, [#allocation9], %s5429_s23, %s5429_s23, %s5430_s24  }
   0xf   :  { %5415 = dma.done.wait [#allocation4], 16384  }
  0x10   :  { %5416 = vsyncadd [#allocation4], 4294950912 }
  0x11   :  { %5417 = dma.done.wait [#allocation6], 8192  }
  0x12   :  { %5418 = vsyncadd [#allocation6], 4294959104 }
  0x13   :  { %5419 = dma.done.wait [#allocation9], 2048  }
  0x14   :  { %5420 = vsyncadd [#allocation9], 4294965248  ;;  %v4188_v0 = vld [vmem:[#allocation3 + $0x1c0] sm:$0xf]  ;;  %v4898_v5 = vld [vmem:[#allocation3 + $0x1c4] sm:$0xf] }
  0x15   :  { %v4902_v1 = vld [vmem:[#allocation3 + $0x1dc] sm:$0xf0]  ;;  %v4190_v6 = vld [vmem:[#allocation3 + $0x1e0] sm:$0xf0] }
  0x16   :  { %v4444_v2 = vld [vmem:[#allocation3 + $0x3c0] sm:$0xf]  ;;  %v4189_v3 = vor.u32 %v4902_v1, %v4188_v0  ;;  %v4193_v8 = vor.u32 %v4898_v5, %v4190_v6  ;;  %v4962_v9 = vld [vmem:[#allocation3 + $0x3c4] sm:$0xf] }
  0x17   :  { %v4966_v4 = vld [vmem:[#allocation3 + $0x3dc] sm:$0xf0]  ;;  %v4446_v10 = vld [vmem:[#allocation3 + $0x3e0] sm:$0xf0] }
  0x18   :  { %v4445_v7 = vor.u32 %v4966_v4, %v4444_v2  ;;  %v4156_v11 = vld [vmem:[#allocation3 + $0x180] sm:$0xf]  ;;  %900 = vmatpush.bf16.msra.mxu0 %v4189_v3  ;;  %v4449_v12 = vor.u32 %v4962_v9, %v4446_v10  ;;  %958 = vmatpush.bf16.msra.mxu2 %v4193_v8  ;;  %v4890_v18 = vld [vmem:[#allocation3 + $0x184] sm:$0xf] }
  0x19   :  { %v4894_v13 = vld [vmem:[#allocation3 + $0x19c] sm:$0xf0]  ;;  %v4158_v19 = vld [vmem:[#allocation3 + $0x1a0] sm:$0xf0] }
  0x1a   :  { %v4412_v14 = vld [vmem:[#allocation3 + $0x380] sm:$0xf]  ;;  %929 = vmatpush.bf16.msra.mxu1 %v4445_v7  ;;  %v4157_v16 = vor.u32 %v4894_v13, %v4156_v11  ;;  %v4954_v20 = vld [vmem:[#allocation3 + $0x384] sm:$0xf]  ;;  %987 = vmatpush.bf16.msra.mxu3 %v4449_v12  ;;  %v4161_v21 = vor.u32 %v4890_v18, %v4158_v19 }
  0x1b   :  { %v4958_v15 = vld [vmem:[#allocation3 + $0x39c] sm:$0xf0]  ;;  %v4414_v22 = vld [vmem:[#allocation3 + $0x3a0] sm:$0xf0] }
  0x1c   :  { %v4413_v17 = vor.u32 %v4958_v15, %v4412_v14  ;;  %v4124_v23 = vld [vmem:[#allocation3 + $0x140] sm:$0xf]  ;;  %v4417_v25 = vor.u32 %v4954_v20, %v4414_v22  ;;  %v4882_v28 = vld [vmem:[#allocation3 + $0x144] sm:$0xf]  ;;  %901 = vmatpush.bf16.msra.mxu0 %v4157_v16  ;;  %959 = vmatpush.bf16.msra.mxu2 %v4161_v21 }
  0x1d   :  { %v4886_v24 = vld [vmem:[#allocation3 + $0x15c] sm:$0xf0]  ;;  %v4126_v30 = vld [vmem:[#allocation3 + $0x160] sm:$0xf0] }
  0x1e   :  { %v4380_v26 = vld [vmem:[#allocation3 + $0x340] sm:$0xf]  ;;  %v4125_v29 = vor.u32 %v4886_v24, %v4124_v23  ;;  %v4946_v31 = vld [vmem:[#allocation3 + $0x344] sm:$0xf]  ;;  %930 = vmatpush.bf16.msra.mxu1 %v4413_v17  ;;  %v4129_v34 = vor.u32 %v4882_v28, %v4126_v30  ;;  %988 = vmatpush.bf16.msra.mxu3 %v4417_v25  ;;  %v4903_v30 = vld [vmem:[#allocation3 + $0x1e4] sm:$0xf0] }
  0x1f   :  { %v4950_v27 = vld [vmem:[#allocation3 + $0x35c] sm:$0xf0]  ;;  %v4382_v32 = vld [vmem:[#allocation3 + $0x360] sm:$0xf0] }
  0x20   :  { %v4381_v33 = vor.u32 %v4950_v27, %v4380_v26  ;;  %v4092_v35 = vld [vmem:[#allocation3 + $0x100] sm:$0xf]  ;;  %v4385_v38 = vor.u32 %v4946_v31, %v4382_v32  ;;  %v4874_v40 = vld [vmem:[#allocation3 + $0x104] sm:$0xf]  ;;  %902 = vmatpush.bf16.msra.mxu0 %v4125_v29  ;;  %960 = vmatpush.bf16.msra.mxu2 %v4129_v34  ;;  %v4196_v29 = vld [vmem:[#allocation3 + $0x1c8] sm:$0xf] }
  0x21   :  { %v4878_v36 = vld [vmem:[#allocation3 + $0x11c] sm:$0xf0]  ;;  %v4094_v41 = vld [vmem:[#allocation3 + $0x120] sm:$0xf0]  ;;  %v92_v32 = vld [vmem:[%s6792_s0 + $0x10] sm:$0xff] }
  0x22   :  { %v4348_v37 = vld [vmem:[#allocation3 + $0x300] sm:$0xf]  ;;  %v4938_v42 = vld [vmem:[#allocation3 + $0x304] sm:$0xf]  ;;  %v4093_v44 = vor.u32 %v4878_v36, %v4092_v35  ;;  %931 = vmatpush.bf16.msra.mxu1 %v4381_v33  ;;  %v4097_v46 = vor.u32 %v4874_v40, %v4094_v41  ;;  %989 = vmatpush.bf16.msra.mxu3 %v4385_v38  ;;  %v4452_v33 = vld [vmem:[#allocation3 + $0x3c8] sm:$0xf]  ;;  %v4197_v40 = vor.u32 %v4903_v30, %v4196_v29 }
  0x23   :  { %v4942_v39 = vld [vmem:[#allocation3 + $0x31c] sm:$0xf0]  ;;  %v4350_v43 = vld [vmem:[#allocation3 + $0x320] sm:$0xf0]  ;;  %v4967_v34 = vld [vmem:[#allocation3 + $0x3e4] sm:$0xf0] }
  0x24   :  { %v4349_v45 = vor.u32 %v4942_v39, %v4348_v37  ;;  %v4060_v47 = vld [vmem:[#allocation3 + $0xc0] sm:$0xf]  ;;  %v4353_v50 = vor.u32 %v4938_v42, %v4350_v43  ;;  %v4866_v52 = vld [vmem:[#allocation3 + $0xc4] sm:$0xf]  ;;  %903 = vmatpush.bf16.msra.mxu0 %v4093_v44  ;;  %961 = vmatpush.bf16.msra.mxu2 %v4097_v46  ;;  %v91_v37 = vld [vmem:[%s6792_s0 + $0x8] sm:$0xff] }
  0x25   :  { %v4870_v48 = vld [vmem:[#allocation3 + $0xdc] sm:$0xf0]  ;;  %v4062_v53 = vld [vmem:[#allocation3 + $0xe0] sm:$0xf0]  ;;  %v93_v38 = vld [vmem:[%s6792_s0 + $0x18] sm:$0xff] }
  0x26   :  { %v4316_v49 = vld [vmem:[#allocation3 + $0x2c0] sm:$0xf]  ;;  %v4930_v54 = vld [vmem:[#allocation3 + $0x2c4] sm:$0xf]  ;;  %v4061_v56 = vor.u32 %v4870_v48, %v4060_v47  ;;  %932 = vmatpush.bf16.msra.mxu1 %v4349_v45  ;;  %v4065_v58 = vor.u32 %v4866_v52, %v4062_v53  ;;  %990 = vmatpush.bf16.msra.mxu3 %v4353_v50  ;;  %v4963_v41 = vld [vmem:[#allocation3 + $0x3cc] sm:$0xf]  ;;  %v4453_v45 = vor.u32 %v4967_v34, %v4452_v33 }
  0x27   :  { %v4934_v51 = vld [vmem:[#allocation3 + $0x2dc] sm:$0xf0]  ;;  %v4318_v55 = vld [vmem:[#allocation3 + $0x2e0] sm:$0xf0]  ;;  %v4899_v42 = vld [vmem:[#allocation3 + $0x1cc] sm:$0xf] }
  0x28   :  { %v4317_v57 = vor.u32 %v4934_v51, %v4316_v49  ;;  %v4028_v59 = vld [vmem:[#allocation3 + $0x80] sm:$0xf]  ;;  %v4321_v62 = vor.u32 %v4930_v54, %v4318_v55  ;;  %v4858_v0 = vld [vmem:[#allocation3 + $0x84] sm:$0xf]  ;;  %904 = vmatpush.bf16.msra.mxu0 %v4061_v56  ;;  %962 = vmatpush.bf16.msra.mxu2 %v4065_v58  ;;  %v4198_v43 = vld [vmem:[#allocation3 + $0x1e8] sm:$0xf0]  ;;  %v5498_v49 = vpack.c.bf16 %v93_v38, %v91_v37 }
  0x29   :  { %v4862_v60 = vld [vmem:[#allocation3 + $0x9c] sm:$0xf0]  ;;  %v4030_v1 = vld [vmem:[#allocation3 + $0xa0] sm:$0xf0]  ;;  %v4454_v46 = vld [vmem:[#allocation3 + $0x3e8] sm:$0xf0]  ;;  %v4201_v52 = vor.u32 %v4899_v42, %v4198_v43 }
  0x2a   :  { %v4284_v61 = vld [vmem:[#allocation3 + $0x280] sm:$0xf]  ;;  %v4922_v2 = vld [vmem:[#allocation3 + $0x284] sm:$0xf]  ;;  %v4029_v4 = vor.u32 %v4862_v60, %v4028_v59  ;;  %933 = vmatpush.bf16.msra.mxu1 %v4317_v57  ;;  %v4033_v6 = vor.u32 %v4858_v0, %v4030_v1  ;;  %991 = vmatpush.bf16.msra.mxu3 %v4321_v62  ;;  %v4164_v47 = vld [vmem:[#allocation3 + $0x188] sm:$0xf]  ;;  %v4457_v53 = vor.u32 %v4963_v41, %v4454_v46 }
  0x2b   :  { %v4926_v63 = vld [vmem:[#allocation3 + $0x29c] sm:$0xf0]  ;;  %v4286_v3 = vld [vmem:[#allocation3 + $0x2a0] sm:$0xf0]  ;;  %v4895_v48 = vld [vmem:[#allocation3 + $0x1a4] sm:$0xf0] }
  0x2c   :  { %v4285_v5 = vor.u32 %v4926_v63, %v4284_v61  ;;  %v3996_v7 = vld [vmem:[#allocation3 + $0x40] sm:$0xf]  ;;  %v4289_v10 = vor.u32 %v4922_v2, %v4286_v3  ;;  %v4850_v12 = vld [vmem:[#allocation3 + $0x44] sm:$0xf]  ;;  %905 = vmatpush.bf16.msra.mxu0 %v4029_v4  ;;  %963 = vmatpush.bf16.msra.mxu2 %v4033_v6  ;;  %v4420_v50 = vld [vmem:[#allocation3 + $0x388] sm:$0xf]  ;;  %v4165_v54 = vor.u32 %v4895_v48, %v4164_v47 }
  0x2d   :  { %v4854_v8 = vld [vmem:[#allocation3 + $0x5c] sm:$0xf0]  ;;  %v3998_v13 = vld [vmem:[#allocation3 + $0x60] sm:$0xf0]  ;;  %v4959_v51 = vld [vmem:[#allocation3 + $0x3a4] sm:$0xf0] }
  0x2e   :  { %v4252_v9 = vld [vmem:[#allocation3 + $0x240] sm:$0xf]  ;;  %v4914_v14 = vld [vmem:[#allocation3 + $0x244] sm:$0xf]  ;;  %v3997_v16 = vor.u32 %v4854_v8, %v3996_v7  ;;  %934 = vmatpush.bf16.msra.mxu1 %v4285_v5  ;;  %v4001_v20 = vor.u32 %v4850_v12, %v3998_v13  ;;  %992 = vmatpush.bf16.msra.mxu3 %v4289_v10  ;;  %v4955_v55 = vld [vmem:[#allocation3 + $0x38c] sm:$0xf]  ;;  %v4421_v58 = vor.u32 %v4959_v51, %v4420_v50 }
  0x2f   :  { %v4918_v11 = vld [vmem:[#allocation3 + $0x25c] sm:$0xf0]  ;;  %v4254_v15 = vld [vmem:[#allocation3 + $0x260] sm:$0xf0]  ;;  %v4891_v56 = vld [vmem:[#allocation3 + $0x18c] sm:$0xf] }
  0x30   :  { %v3964_v17 = vld [vmem:[#allocation3] sm:$0xf]  ;;  %v4253_v19 = vor.u32 %v4918_v11, %v4252_v9  ;;  %v4842_v23 = vld [vmem:[#allocation3 + $0x4] sm:$0xf]  ;;  %v4257_v24 = vor.u32 %v4914_v14, %v4254_v15  ;;  %906 = vmatpush.bf16.msra.mxu0 %v3997_v16  ;;  %964 = vmatpush.bf16.msra.mxu2 %v4001_v20  ;;  %v4166_v57 = vld [vmem:[#allocation3 + $0x1a8] sm:$0xf0] }
  0x31   :  { %v4846_v18 = vld [vmem:[#allocation3 + $0x1c] sm:$0xf0]  ;;  %v3966_v25 = vld [vmem:[#allocation3 + $0x20] sm:$0xf0]  ;;  %v4422_v59 = vld [vmem:[#allocation3 + $0x3a8] sm:$0xf0]  ;;  %v4169_v0 = vor.u32 %v4891_v56, %v4166_v57 }
  0x32   :  { %v4220_v21 = vld [vmem:[#allocation3 + $0x200] sm:$0xf]  ;;  %v4906_v26 = vld [vmem:[#allocation3 + $0x204] sm:$0xf]  ;;  %v3965_v31 = vor.u32 %v4846_v18, %v3964_v17  ;;  %935 = vmatpush.bf16.msra.mxu1 %v4253_v19  ;;  %v3969_v36 = vor.u32 %v4842_v23, %v3966_v25  ;;  %993 = vmatpush.bf16.msra.mxu3 %v4257_v24  ;;  %v4132_v60 = vld [vmem:[#allocation3 + $0x148] sm:$0xf]  ;;  %v4425_v1 = vor.u32 %v4955_v55, %v4422_v59 }
  0x33   :  { %v4910_v22 = vld [vmem:[#allocation3 + $0x21c] sm:$0xf0]  ;;  %v4222_v27 = vld [vmem:[#allocation3 + $0x220] sm:$0xf0]  ;;  %v4887_v61 = vld [vmem:[#allocation3 + $0x164] sm:$0xf0] }
  0x34   :  { %v90_v28 = vld [vmem:[%s6792_s0] sm:$0xff]  ;;  %v4221_v35 = vor.u32 %v4910_v22, %v4220_v21  ;;  %v4225_v39 = vor.u32 %v4906_v26, %v4222_v27  ;;  %907 = vmatpush.bf16.msra.mxu0 %v3965_v31  ;;  %965 = vmatpush.bf16.msra.mxu2 %v3969_v36  ;;  %v4388_v62 = vld [vmem:[#allocation3 + $0x348] sm:$0xf]  ;;  %v4133_v2 = vor.u32 %v4887_v61, %v4132_v60  ;;  %v4947_v3 = vld [vmem:[#allocation3 + $0x34c] sm:$0xf] }
  0x35   :  { %v5496_v44 = vpack.c.bf16 %v92_v32, %v90_v28  ;;  %v4951_v63 = vld [vmem:[#allocation3 + $0x364] sm:$0xf0]  ;;  %v4883_v4 = vld [vmem:[#allocation3 + $0x14c] sm:$0xf]  ;;  %v94_v13 = vld [vmem:[%s6792_s0 + $0x20] sm:$0xff] }
  0x36   :  { %936 = vmatpush.bf16.msra.mxu1 %v4221_v35  ;;  %994 = vmatpush.bf16.msra.mxu3 %v4225_v39  ;;  %v4134_v5 = vld [vmem:[#allocation3 + $0x168] sm:$0xf0]  ;;  %v4389_v6 = vor.u32 %v4951_v63, %v4388_v62  ;;  %v4100_v8 = vld [vmem:[#allocation3 + $0x108] sm:$0xf]  ;;  %v96_v23 = vld [vmem:[%s6792_s0 + $0x30] sm:$0xff] }
  0x37   :  { %908 = vmatmul.bf16.vlgmr.msra.gmra.mxu0 %v5496_v44  ;;  %966 = vmatmul.bf16.vlgmr.msra.gmra.mxu2 %v5496_v44  ;;  %v4390_v7 = vld [vmem:[#allocation3 + $0x368] sm:$0xf0]  ;;  %v4879_v9 = vld [vmem:[#allocation3 + $0x124] sm:$0xf0]  ;;  %v4137_v12 = vor.u32 %v4883_v4, %v4134_v5  ;;  %v97_v27 = vld [vmem:[%s6792_s0 + $0x38] sm:$0xff]  ;;  %v5516_v34 = vpack.c.bf16 %v96_v23, %v94_v13 }
  0x38   :  { %1016 = vmatpush.bf16.msrb.mxu0 %v4197_v40  ;;  %1074 = vmatpush.bf16.msrb.mxu2 %v4201_v52  ;;  %v4356_v10 = vld [vmem:[#allocation3 + $0x308] sm:$0xf]  ;;  %v4393_v14 = vor.u32 %v4947_v3, %v4390_v7  ;;  %v4101_v15 = vor.u32 %v4879_v9, %v4100_v8  ;;  %v4939_v16 = vld [vmem:[#allocation3 + $0x30c] sm:$0xf]  ;;  %v100_v13 = vld [vmem:[%s6792_s0 + $0x50] sm:$0xff] }
  0x39   :  { %937 = vmatmul.bf16.vlgmr.msra.gmra.mxu1 %v5498_v49  ;;  %995 = vmatmul.bf16.vlgmr.msra.gmra.mxu3 %v5498_v49  ;;  %v4943_v11 = vld [vmem:[#allocation3 + $0x324] sm:$0xf0]  ;;  %v4875_v17 = vld [vmem:[#allocation3 + $0x10c] sm:$0xf] }
  0x3a   :  { %1045 = vmatpush.bf16.msrb.mxu1 %v4453_v45  ;;  %1103 = vmatpush.bf16.msrb.mxu3 %v4457_v53  ;;  %v4102_v18 = vld [vmem:[#allocation3 + $0x128] sm:$0xf0]  ;;  %v4357_v19 = vor.u32 %v4943_v11, %v4356_v10  ;;  %v4068_v21 = vld [vmem:[#allocation3 + $0xc8] sm:$0xf] }
  0x3b   :  { %v4358_v20 = vld [vmem:[#allocation3 + $0x328] sm:$0xf0]  ;;  %v4871_v22 = vld [vmem:[#allocation3 + $0xe4] sm:$0xf0]  ;;  %v4105_v28 = vor.u32 %v4875_v17, %v4102_v18 }
  0x3c   :  { %1017 = vmatpush.bf16.msrb.mxu0 %v4165_v54  ;;  %1075 = vmatpush.bf16.msrb.mxu2 %v4169_v0  ;;  %v4324_v24 = vld [vmem:[#allocation3 + $0x2c8] sm:$0xf]  ;;  %v4361_v29 = vor.u32 %v4939_v16, %v4358_v20  ;;  %v4069_v30 = vor.u32 %v4871_v22, %v4068_v21  ;;  %v4931_v31 = vld [vmem:[#allocation3 + $0x2cc] sm:$0xf]  ;;  %v4204_v20 = vld [vmem:[#allocation3 + $0x1d0] sm:$0xf] }
  0x3d   :  { %v4935_v25 = vld [vmem:[#allocation3 + $0x2e4] sm:$0xf0]  ;;  %v4867_v32 = vld [vmem:[#allocation3 + $0xcc] sm:$0xf]  ;;  %v4904_v21 = vld [vmem:[#allocation3 + $0x1ec] sm:$0xf0] }
  0x3e   :  { %1046 = vmatpush.bf16.msrb.mxu1 %v4421_v58  ;;  %1104 = vmatpush.bf16.msrb.mxu3 %v4425_v1  ;;  %v95_v26 = vld [vmem:[%s6792_s0 + $0x28] sm:$0xff]  ;;  %v4325_v35 = vor.u32 %v4935_v25, %v4324_v24  ;;  %v4460_v22 = vld [vmem:[#allocation3 + $0x3d0] sm:$0xf]  ;;  %v4205_v23 = vor.u32 %v4904_v21, %v4204_v20  ;;  %v4964_v25 = vld [vmem:[#allocation3 + $0x3d4] sm:$0xf] }
  0x3f   :  { %v4070_v33 = vld [vmem:[#allocation3 + $0xe8] sm:$0xf0]  ;;  %v4036_v37 = vld [vmem:[#allocation3 + $0x88] sm:$0xf]  ;;  %v5518_v39 = vpack.c.bf16 %v97_v27, %v95_v26  ;;  %v4968_v24 = vld [vmem:[#allocation3 + $0x3ec] sm:$0xf0] }
  0x40   :  { %1018 = vmatpush.bf16.msrb.mxu0 %v4133_v2  ;;  %1076 = vmatpush.bf16.msrb.mxu2 %v4137_v12  ;;  %v4326_v36 = vld [vmem:[#allocation3 + $0x2e8] sm:$0xf0]  ;;  %v4863_v38 = vld [vmem:[#allocation3 + $0xa4] sm:$0xf0]  ;;  %v4073_v42 = vor.u32 %v4867_v32, %v4070_v33  ;;  %v98_v12 = vld [vmem:[%s6792_s0 + $0x40] sm:$0xff]  ;;  %v4461_v27 = vor.u32 %v4968_v24, %v4460_v22 }
  0x41   :  { %v4292_v40 = vld [vmem:[#allocation3 + $0x288] sm:$0xf]  ;;  %v4329_v43 = vor.u32 %v4931_v31, %v4326_v36  ;;  %v4037_v45 = vor.u32 %v4863_v38, %v4036_v37  ;;  %v4923_v47 = vld [vmem:[#allocation3 + $0x28c] sm:$0xf]  ;;  %v5536_v18 = vpack.c.bf16 %v100_v13, %v98_v12  ;;  %v4462_v26 = vld [vmem:[#allocation3 + $0x3f0] sm:$0xf0] }
  0x42   :  { %1047 = vmatpush.bf16.msrb.mxu1 %v4389_v6  ;;  %1105 = vmatpush.bf16.msrb.mxu3 %v4393_v14  ;;  %v4927_v41 = vld [vmem:[#allocation3 + $0x2a4] sm:$0xf0]  ;;  %v4294_v48 = vld [vmem:[#allocation3 + $0x2a8] sm:$0xf0]  ;;  %v4428_v31 = vld [vmem:[#allocation3 + $0x390] sm:$0xf] }
  0x43   :  { %v4293_v46 = vor.u32 %v4927_v41, %v4292_v40  ;;  %v4004_v50 = vld [vmem:[#allocation3 + $0x48] sm:$0xf]  ;;  %v4297_v53 = vor.u32 %v4923_v47, %v4294_v48  ;;  %v4859_v56 = vld [vmem:[#allocation3 + $0x8c] sm:$0xf]  ;;  %v4960_v33 = vld [vmem:[#allocation3 + $0x3ac] sm:$0xf0] }
  0x44   :  { %1019 = vmatpush.bf16.msrb.mxu0 %v4101_v15  ;;  %1077 = vmatpush.bf16.msrb.mxu2 %v4105_v28  ;;  %v4855_v51 = vld [vmem:[#allocation3 + $0x64] sm:$0xf0]  ;;  %v4038_v57 = vld [vmem:[#allocation3 + $0xa8] sm:$0xf0]  ;;  %v101_v15 = vld [vmem:[%s6792_s0 + $0x58] sm:$0xff]  ;;  %v4465_v28 = vor.u32 %v4964_v25, %v4462_v26  ;;  %v4429_v37 = vor.u32 %v4960_v33, %v4428_v31 }
  0x45   :  { %v4260_v52 = vld [vmem:[#allocation3 + $0x248] sm:$0xf]  ;;  %v4005_v54 = vor.u32 %v4855_v51, %v4004_v50  ;;  %v4041_v59 = vor.u32 %v4859_v56, %v4038_v57  ;;  %v4915_v60 = vld [vmem:[#allocation3 + $0x24c] sm:$0xf]  ;;  %v4430_v36 = vld [vmem:[#allocation3 + $0x3b0] sm:$0xf0] }
  0x46   :  { %1048 = vmatpush.bf16.msrb.mxu1 %v4357_v19  ;;  %1106 = vmatpush.bf16.msrb.mxu3 %v4361_v29  ;;  %v4919_v55 = vld [vmem:[#allocation3 + $0x264] sm:$0xf0]  ;;  %v4262_v61 = vld [vmem:[#allocation3 + $0x268] sm:$0xf0]  ;;  %v4172_v29 = vld [vmem:[#allocation3 + $0x190] sm:$0xf] }
  0x47   :  { %913 = vmatmul.bf16.gmra.mxu0 %v5516_v34  ;;  %971 = vmatmul.bf16.gmra.mxu2 %v5516_v34  ;;  %v4261_v58 = vor.u32 %v4919_v55, %v4260_v52  ;;  %v3972_v62 = vld [vmem:[#allocation3 + $0x8] sm:$0xf]  ;;  %v4851_v2 = vld [vmem:[#allocation3 + $0x4c] sm:$0xf]  ;;  %v4265_v4 = vor.u32 %v4915_v60, %v4262_v61  ;;  %v4900_v40 = vld [vmem:[#allocation3 + $0x1d4] sm:$0xf] }
  0x48   :  { %1020 = vmatpush.bf16.msrb.mxu0 %v4069_v30  ;;  %1078 = vmatpush.bf16.msrb.mxu2 %v4073_v42  ;;  %v4847_v63 = vld [vmem:[#allocation3 + $0x24] sm:$0xf0]  ;;  %v4006_v3 = vld [vmem:[#allocation3 + $0x68] sm:$0xf0]  ;;  %v4896_v30 = vld [vmem:[#allocation3 + $0x1ac] sm:$0xf0] }
  0x49   :  { %942 = vmatmul.bf16.gmra.mxu1 %v5518_v39  ;;  %1000 = vmatmul.bf16.gmra.mxu3 %v5518_v39  ;;  %v4228_v0 = vld [vmem:[#allocation3 + $0x208] sm:$0xf]  ;;  %v3973_v5 = vor.u32 %v4847_v63, %v3972_v62  ;;  %v4009_v6 = vor.u32 %v4851_v2, %v4006_v3  ;;  %v4843_v7 = vld [vmem:[#allocation3 + $0xc] sm:$0xf]  ;;  %v4173_v32 = vor.u32 %v4896_v30, %v4172_v29  ;;  %v4206_v41 = vld [vmem:[#allocation3 + $0x1f0] sm:$0xf0] }
  0x4a   :  { %1049 = vmatpush.bf16.msrb.mxu1 %v4325_v35  ;;  %1107 = vmatpush.bf16.msrb.mxu3 %v4329_v43  ;;  %v4911_v1 = vld [vmem:[#allocation3 + $0x224] sm:$0xf0]  ;;  %v3974_v8 = vld [vmem:[#allocation3 + $0x28] sm:$0xf0]  ;;  %v4956_v35 = vld [vmem:[#allocation3 + $0x394] sm:$0xf]  ;;  %v4209_v42 = vor.u32 %v4900_v40, %v4206_v41 }
  0x4b   :  { %v4229_v9 = vor.u32 %v4911_v1, %v4228_v0  ;;  %v4907_v10 = vld [vmem:[#allocation3 + $0x20c] sm:$0xf]  ;;  %v3977_v16 = vor.u32 %v4843_v7, %v3974_v8  ;;  %v4433_v38 = vor.u32 %v4956_v35, %v4430_v36  ;;  %v102_v43 = vld [vmem:[%s6792_s0 + $0x60] sm:$0xff]  ;;  %v105_v47 = vld [vmem:[%s6792_s0 + $0x78] sm:$0xff] }
  0x4c   :  { %1021 = vmatpush.bf16.msrb.mxu0 %v4037_v45  ;;  %1079 = vmatpush.bf16.msrb.mxu2 %v4041_v59  ;;  %v4230_v11 = vld [vmem:[#allocation3 + $0x228] sm:$0xf0]  ;;  %v104_v45 = vld [vmem:[%s6792_s0 + $0x70] sm:$0xff] }
  0x4d   :  { %v99_v14 = vld [vmem:[%s6792_s0 + $0x48] sm:$0xff]  ;;  %v4233_v17 = vor.u32 %v4907_v10, %v4230_v11  ;;  %v5556_v48 = vpack.c.bf16 %v104_v45, %v102_v43  ;;  %v4140_v51 = vld [vmem:[#allocation3 + $0x150] sm:$0xf]  ;;  %v4948_v56 = vld [vmem:[#allocation3 + $0x354] sm:$0xf] }
  0x4e   :  { %1050 = vmatpush.bf16.msrb.mxu1 %v4293_v46  ;;  %1108 = vmatpush.bf16.msrb.mxu3 %v4297_v53  ;;  %v5538_v19 = vpack.c.bf16 %v101_v15, %v99_v14  ;;  %v103_v46 = vld [vmem:[%s6792_s0 + $0x68] sm:$0xff]  ;;  %v4888_v52 = vld [vmem:[#allocation3 + $0x16c] sm:$0xf0]  ;;  %v4398_v57 = vld [vmem:[#allocation3 + $0x370] sm:$0xf0] }
  0x4f   :  { %v5558_v50 = vpack.c.bf16 %v105_v47, %v103_v46  ;;  %v4396_v53 = vld [vmem:[#allocation3 + $0x350] sm:$0xf]  ;;  %v4401_v59 = vor.u32 %v4948_v56, %v4398_v57  ;;  %v4892_v60 = vld [vmem:[#allocation3 + $0x194] sm:$0xf] }
  0x50   :  { %1022 = vmatpush.bf16.msrb.mxu0 %v4005_v54  ;;  %1080 = vmatpush.bf16.msrb.mxu2 %v4009_v6  ;;  %v4141_v54 = vor.u32 %v4888_v52, %v4140_v51  ;;  %v4952_v55 = vld [vmem:[#allocation3 + $0x36c] sm:$0xf0]  ;;  %v4174_v61 = vld [vmem:[#allocation3 + $0x1b0] sm:$0xf0] }
  0x51   :  { %v4108_v62 = vld [vmem:[#allocation3 + $0x110] sm:$0xf]  ;;  %v4177_v63 = vor.u32 %v4892_v60, %v4174_v61  ;;  %v4366_v6 = vld [vmem:[#allocation3 + $0x330] sm:$0xf0] }
  0x52   :  { %1051 = vmatpush.bf16.msrb.mxu1 %v4261_v58  ;;  %1109 = vmatpush.bf16.msrb.mxu3 %v4265_v4  ;;  %v4397_v58 = vor.u32 %v4952_v55, %v4396_v53  ;;  %v4880_v0 = vld [vmem:[#allocation3 + $0x12c] sm:$0xf0]  ;;  %v4884_v7 = vld [vmem:[#allocation3 + $0x154] sm:$0xf] }
  0x53   :  { %v4364_v1 = vld [vmem:[#allocation3 + $0x310] sm:$0xf]  ;;  %v4109_v3 = vor.u32 %v4880_v0, %v4108_v62  ;;  %v4876_v22 = vld [vmem:[#allocation3 + $0x114] sm:$0xf] }
  0x54   :  { %1023 = vmatpush.bf16.msrb.mxu0 %v3973_v5  ;;  %1081 = vmatpush.bf16.msrb.mxu2 %v3977_v16  ;;  %v4944_v2 = vld [vmem:[#allocation3 + $0x32c] sm:$0xf0]  ;;  %v4940_v5 = vld [vmem:[#allocation3 + $0x314] sm:$0xf] }
  0x55   :  { %v4365_v4 = vor.u32 %v4944_v2, %v4364_v1  ;;  %v4369_v8 = vor.u32 %v4940_v5, %v4366_v6  ;;  %v4076_v11 = vld [vmem:[#allocation3 + $0xd0] sm:$0xf]  ;;  %v4932_v16 = vld [vmem:[#allocation3 + $0x2d4] sm:$0xf]  ;;  %v4212_v6 = vld [vmem:[#allocation3 + $0x1d8] sm:$0xf] }
  0x56   :  { %1052 = vmatpush.bf16.msrb.mxu1 %v4229_v9  ;;  %1110 = vmatpush.bf16.msrb.mxu3 %v4233_v17  ;;  %v4142_v9 = vld [vmem:[#allocation3 + $0x170] sm:$0xf0]  ;;  %v4872_v12 = vld [vmem:[#allocation3 + $0xec] sm:$0xf0] }
  0x57   :  { %918 = vmatmul.bf16.gmra.mxu0 %v5536_v18  ;;  %976 = vmatmul.bf16.gmra.mxu2 %v5536_v18  ;;  %v4145_v10 = vor.u32 %v4884_v7, %v4142_v9  ;;  %v4332_v13 = vld [vmem:[#allocation3 + $0x2d0] sm:$0xf]  ;;  %v4077_v14 = vor.u32 %v4872_v12, %v4076_v11  ;;  %v4334_v17 = vld [vmem:[#allocation3 + $0x2f0] sm:$0xf0]  ;;  %v4905_v7 = vld [vmem:[#allocation3 + $0x1f4] sm:$0xf0] }
  0x58   :  { %1132 = vmatpush.bf16.msra.mxu0 %v4205_v23  ;;  %1190 = vmatpush.bf16.msra.mxu2 %v4209_v42  ;;  %v4936_v15 = vld [vmem:[#allocation3 + $0x2ec] sm:$0xf0]  ;;  %v4337_v21 = vor.u32 %v4932_v16, %v4334_v17  ;;  %v4110_v23 = vld [vmem:[#allocation3 + $0x130] sm:$0xf0]  ;;  %v4213_v9 = vor.u32 %v4905_v7, %v4212_v6  ;;  %v4965_v12 = vld [vmem:[#allocation3 + $0x3dc] sm:$0xf] }
  0x59   :  { %947 = vmatmul.bf16.gmra.mxu1 %v5538_v19  ;;  %1005 = vmatmul.bf16.gmra.mxu3 %v5538_v19  ;;  %v4333_v20 = vor.u32 %v4936_v15, %v4332_v13  ;;  %v4044_v24 = vld [vmem:[#allocation3 + $0x90] sm:$0xf]  ;;  %v4113_v25 = vor.u32 %v4876_v22, %v4110_v23  ;;  %v4924_v31 = vld [vmem:[#allocation3 + $0x294] sm:$0xf]  ;;  %v4470_v13 = vld [vmem:[#allocation3 + $0x3f8] sm:$0xf0] }
  0x5a   :  { %1161 = vmatpush.bf16.msra.mxu1 %v4461_v27  ;;  %1219 = vmatpush.bf16.msra.mxu3 %v4465_v28  ;;  %v4864_v26 = vld [vmem:[#allocation3 + $0xac] sm:$0xf0]  ;;  %v4868_v33 = vld [vmem:[#allocation3 + $0xd4] sm:$0xf]  ;;  %v4473_v15 = vor.u32 %v4965_v12, %v4470_v13  ;;  %v4897_v16 = vld [vmem:[#allocation3 + $0x1b4] sm:$0xf0] }
  0x5b   :  { %v4300_v27 = vld [vmem:[#allocation3 + $0x290] sm:$0xf]  ;;  %v4045_v29 = vor.u32 %v4864_v26, %v4044_v24  ;;  %v4078_v36 = vld [vmem:[#allocation3 + $0xf0] sm:$0xf0]  ;;  %v4436_v17 = vld [vmem:[#allocation3 + $0x398] sm:$0xf] }
  0x5c   :  { %1133 = vmatpush.bf16.msra.mxu0 %v4173_v32  ;;  %1191 = vmatpush.bf16.msra.mxu2 %v4177_v63  ;;  %v4928_v28 = vld [vmem:[#allocation3 + $0x2ac] sm:$0xf0]  ;;  %v4302_v32 = vld [vmem:[#allocation3 + $0x2b0] sm:$0xf0]  ;;  %v4957_v23 = vld [vmem:[#allocation3 + $0x39c] sm:$0xf] }
  0x5d   :  { %v4301_v30 = vor.u32 %v4928_v28, %v4300_v27  ;;  %v4305_v35 = vor.u32 %v4924_v31, %v4302_v32  ;;  %v4856_v40 = vld [vmem:[#allocation3 + $0x6c] sm:$0xf0]  ;;  %v4860_v45 = vld [vmem:[#allocation3 + $0x94] sm:$0xf]  ;;  %v4438_v24 = vld [vmem:[#allocation3 + $0x3b8] sm:$0xf0] }
  0x5e   :  { %1162 = vmatpush.bf16.msra.mxu1 %v4429_v37  ;;  %1220 = vmatpush.bf16.msra.mxu3 %v4433_v38  ;;  %v4081_v37 = vor.u32 %v4868_v33, %v4078_v36  ;;  %v4012_v38 = vld [vmem:[#allocation3 + $0x50] sm:$0xf]  ;;  %v4046_v46 = vld [vmem:[#allocation3 + $0xb0] sm:$0xf0]  ;;  %v4441_v26 = vor.u32 %v4957_v23, %v4438_v24  ;;  %v4214_v27 = vld [vmem:[#allocation3 + $0x1f8] sm:$0xf0] }
  0x5f   :  { %v4268_v41 = vld [vmem:[#allocation3 + $0x250] sm:$0xf]  ;;  %v4013_v42 = vor.u32 %v4856_v40, %v4012_v38  ;;  %v4049_v51 = vor.u32 %v4860_v45, %v4046_v46  ;;  %v4916_v52 = vld [vmem:[#allocation3 + $0x254] sm:$0xf]  ;;  %v4404_v31 = vld [vmem:[#allocation3 + $0x358] sm:$0xf] }
  0x60   :  { %1134 = vmatpush.bf16.msra.mxu0 %v4141_v54  ;;  %1192 = vmatpush.bf16.msra.mxu2 %v4145_v10  ;;  %v4920_v43 = vld [vmem:[#allocation3 + $0x26c] sm:$0xf0]  ;;  %v4270_v53 = vld [vmem:[#allocation3 + $0x270] sm:$0xf0]  ;;  %v4969_v10 = vld [vmem:[#allocation3 + $0x3f4] sm:$0xf0] }
  0x61   :  { %v4269_v47 = vor.u32 %v4920_v43, %v4268_v41  ;;  %v3980_v54 = vld [vmem:[#allocation3 + $0x10] sm:$0xf]  ;;  %v4273_v55 = vor.u32 %v4916_v52, %v4270_v53  ;;  %v4852_v61 = vld [vmem:[#allocation3 + $0x54] sm:$0xf]  ;;  %v4953_v33 = vld [vmem:[#allocation3 + $0x374] sm:$0xf0] }
  0x62   :  { %1163 = vmatpush.bf16.msra.mxu1 %v4397_v58  ;;  %1221 = vmatpush.bf16.msra.mxu3 %v4401_v59  ;;  %v4848_v56 = vld [vmem:[#allocation3 + $0x2c] sm:$0xf0]  ;;  %v4014_v62 = vld [vmem:[#allocation3 + $0x70] sm:$0xf0]  ;;  %v5583_v36 = vld [vmem:[%s6796_s4] sm:$0xff] }
  0x63   :  { %v4236_v57 = vld [vmem:[#allocation3 + $0x210] sm:$0xf]  ;;  %v3981_v59 = vor.u32 %v4848_v56, %v3980_v54  ;;  %v4017_v63 = vor.u32 %v4852_v61, %v4014_v62  ;;  %v4844_v0 = vld [vmem:[#allocation3 + $0x14] sm:$0xf]  ;;  %v4406_v38 = vld [vmem:[#allocation3 + $0x378] sm:$0xf0] }
  0x64   :  { %1135 = vmatpush.bf16.msra.mxu0 %v4109_v3  ;;  %1193 = vmatpush.bf16.msra.mxu2 %v4113_v25  ;;  %v4912_v58 = vld [vmem:[#allocation3 + $0x22c] sm:$0xf0]  ;;  %v3982_v1 = vld [vmem:[#allocation3 + $0x30] sm:$0xf0]  ;;  %v4901_v25 = vld [vmem:[#allocation3 + $0x1dc] sm:$0xf] }
  0x65   :  { %v4237_v60 = vor.u32 %v4912_v58, %v4236_v57  ;;  %v4908_v2 = vld [vmem:[#allocation3 + $0x214] sm:$0xf]  ;;  %v3985_v3 = vor.u32 %v4844_v0, %v3982_v1  ;;  %v4217_v28 = vor.u32 %v4901_v25, %v4214_v27  ;;  %v4893_v40 = vld [vmem:[#allocation3 + $0x19c] sm:$0xf]  ;;  %v4116_v43 = vld [vmem:[#allocation3 + $0x118] sm:$0xf] }
  0x66   :  { %1164 = vmatpush.bf16.msra.mxu1 %v4365_v4  ;;  %1222 = vmatpush.bf16.msra.mxu3 %v4369_v8  ;;  %v4238_v4 = vld [vmem:[#allocation3 + $0x230] sm:$0xf0]  ;;  %v4468_v8 = vld [vmem:[#allocation3 + $0x3d8] sm:$0xf]  ;;  %v5586_v46 = vperm.slane %v5583_v36, 0  ;;  %v5595_v62 = vperm.slane %v5583_v36, 1 }
  0x67   :  { %923 = vmatmul.bf16.gmra.mxu0 %v5556_v48  ;;  %981 = vmatmul.bf16.gmra.mxu2 %v5556_v48  ;;  %v4241_v5 = vor.u32 %v4908_v2, %v4238_v4  ;;  %v4469_v11 = vor.u32 %v4969_v10, %v4468_v8  ;;  %v4881_v45 = vld [vmem:[#allocation3 + $0x134] sm:$0xf0]  ;;  %v4885_v61 = vld [vmem:[#allocation3 + $0x15c] sm:$0xf] }
  0x68   :  { %1136 = vmatpush.bf16.msra.mxu0 %v4077_v14  ;;  %1194 = vmatpush.bf16.msra.mxu2 %v4081_v37  ;;  %v4180_v14 = vld [vmem:[#allocation3 + $0x198] sm:$0xf]  ;;  %v4949_v37 = vld [vmem:[#allocation3 + $0x35c] sm:$0xf] }
  0x69   :  { %952 = vmatmul.bf16.gmra.mxu1 %v5558_v50  ;;  %1010 = vmatmul.bf16.gmra.mxu3 %v5558_v50  ;;  %v4409_v41 = vor.u32 %v4949_v37, %v4406_v38  ;;  %v4372_v52 = vld [vmem:[#allocation3 + $0x318] sm:$0xf]  ;;  %v4150_v0 = vld [vmem:[#allocation3 + $0x178] sm:$0xf0] }
  0x6a   :  { %1165 = vmatpush.bf16.msra.mxu1 %v4333_v20  ;;  %1223 = vmatpush.bf16.msra.mxu3 %v4337_v21  ;;  %v4961_v20 = vld [vmem:[#allocation3 + $0x3b4] sm:$0xf0]  ;;  %v4181_v21 = vor.u32 %v4897_v16, %v4180_v14  ;;  %v4153_v1 = vor.u32 %v4885_v61, %v4150_v0  ;;  %v4933_v16 = vld [vmem:[#allocation3 + $0x2dc] sm:$0xf] }
  0x6b   :  { %v4437_v22 = vor.u32 %v4961_v20, %v4436_v17  ;;  %v4945_v53 = vld [vmem:[#allocation3 + $0x334] sm:$0xf0]  ;;  %v4342_v17 = vld [vmem:[#allocation3 + $0x2f8] sm:$0xf0] }
  0x6c   :  { %1137 = vmatpush.bf16.msra.mxu0 %v4045_v29  ;;  %1195 = vmatpush.bf16.msra.mxu2 %v4049_v51  ;;  %v4148_v29 = vld [vmem:[#allocation3 + $0x158] sm:$0xf]  ;;  %v4117_v51 = vor.u32 %v4881_v45, %v4116_v43  ;;  %v4373_v54 = vor.u32 %v4945_v53, %v4372_v52  ;;  %v4877_v20 = vld [vmem:[#allocation3 + $0x11c] sm:$0xf] }
  0x6d   :  { %v4084_v2 = vld [vmem:[#allocation3 + $0xd8] sm:$0xf]  ;;  %v4869_v43 = vld [vmem:[#allocation3 + $0xdc] sm:$0xf] }
  0x6e   :  { %1166 = vmatpush.bf16.msra.mxu1 %v4301_v30  ;;  %1224 = vmatpush.bf16.msra.mxu3 %v4305_v35  ;;  %v4889_v30 = vld [vmem:[#allocation3 + $0x174] sm:$0xf0]  ;;  %v4405_v35 = vor.u32 %v4953_v33, %v4404_v31  ;;  %v4054_v61 = vld [vmem:[#allocation3 + $0xb8] sm:$0xf0] }
  0x6f   :  { %v4149_v32 = vor.u32 %v4889_v30, %v4148_v29  ;;  %v4340_v4 = vld [vmem:[#allocation3 + $0x2d8] sm:$0xf] }
  0x70   :  { %1138 = vmatpush.bf16.msra.mxu0 %v4013_v42  ;;  %1196 = vmatpush.bf16.msra.mxu2 %v4017_v63  ;;  %v4182_v42 = vld [vmem:[#allocation3 + $0x1b8] sm:$0xf0]  ;;  %v4937_v6 = vld [vmem:[#allocation3 + $0x2f4] sm:$0xf0] }
  0x71   :  { %v4341_v8 = vor.u32 %v4937_v6, %v4340_v4  ;;  %v4052_v23 = vld [vmem:[#allocation3 + $0x98] sm:$0xf] }
  0x72   :  { %1167 = vmatpush.bf16.msra.mxu1 %v4269_v47  ;;  %1225 = vmatpush.bf16.msra.mxu3 %v4273_v55  ;;  %v4185_v47 = vor.u32 %v4893_v40, %v4182_v42  ;;  %v4865_v24 = vld [vmem:[#allocation3 + $0xb4] sm:$0xf0]  ;;  %v4310_v42 = vld [vmem:[#allocation3 + $0x2b8] sm:$0xf0] }
  0x73   :  { %v4308_v27 = vld [vmem:[#allocation3 + $0x298] sm:$0xf] }
  0x74   :  { %1139 = vmatpush.bf16.msra.mxu0 %v3981_v59  ;;  %1197 = vmatpush.bf16.msra.mxu2 %v3985_v3  ;;  %v4941_v59 = vld [vmem:[#allocation3 + $0x31c] sm:$0xf]  ;;  %v4873_v3 = vld [vmem:[#allocation3 + $0xf4] sm:$0xf0] }
  0x75   :  { %v4020_v52 = vld [vmem:[#allocation3 + $0x58] sm:$0xf] }
  0x76   :  { %1168 = vmatpush.bf16.msra.mxu1 %v4237_v60  ;;  %1226 = vmatpush.bf16.msra.mxu3 %v4241_v5  ;;  %v4374_v60 = vld [vmem:[#allocation3 + $0x338] sm:$0xf0]  ;;  %v4085_v5 = vor.u32 %v4873_v3, %v4084_v2  ;;  %v4857_v53 = vld [vmem:[#allocation3 + $0x74] sm:$0xf0] }
  0x77   :  { %1024 = vmatmul.bf16.vlgmr.msrb.gmra.mxu0 %v5496_v44  ;;  %1082 = vmatmul.bf16.vlgmr.msrb.gmra.mxu2 %v5496_v44  ;;  %v4377_v63 = vor.u32 %v4941_v59, %v4374_v60  ;;  %v4861_v60 = vld [vmem:[#allocation3 + $0x9c] sm:$0xf] }
  0x78   :  { %1248 = vmatpush.bf16.msrb.mxu0 %v4213_v9  ;;  %1306 = vmatpush.bf16.msrb.mxu2 %v4217_v28  ;;  %v4929_v28 = vld [vmem:[#allocation3 + $0x2b4] sm:$0xf0]  ;;  %v4057_v2 = vor.u32 %v4861_v60, %v4054_v61 }
  0x79   :  { %1053 = vmatmul.bf16.vlgmr.msrb.gmra.mxu1 %v5498_v49  ;;  %1111 = vmatmul.bf16.vlgmr.msrb.gmra.mxu3 %v5498_v49  ;;  %v4309_v29 = vor.u32 %v4929_v28, %v4308_v27 }
  0x7a   :  { %1277 = vmatpush.bf16.msrb.mxu1 %v4469_v11  ;;  %1335 = vmatpush.bf16.msrb.mxu3 %v4473_v15 }
  0x7c   :  { %1249 = vmatpush.bf16.msrb.mxu0 %v4181_v21  ;;  %1307 = vmatpush.bf16.msrb.mxu2 %v4185_v47  ;;  %v4345_v21 = vor.u32 %v4933_v16, %v4342_v17  ;;  %v4086_v47 = vld [vmem:[#allocation3 + $0xf8] sm:$0xf0] }
  0x7e   :  { %1278 = vmatpush.bf16.msrb.mxu1 %v4437_v22  ;;  %1336 = vmatpush.bf16.msrb.mxu3 %v4441_v26  ;;  %v4118_v22 = vld [vmem:[#allocation3 + $0x138] sm:$0xf0]  ;;  %v4053_v26 = vor.u32 %v4865_v24, %v4052_v23 }
  0x7f   :  { %v4121_v25 = vor.u32 %v4877_v20, %v4118_v22  ;;  %v4853_v20 = vld [vmem:[#allocation3 + $0x5c] sm:$0xf] }
  0x80   :  { %1250 = vmatpush.bf16.msrb.mxu0 %v4149_v32  ;;  %1308 = vmatpush.bf16.msrb.mxu2 %v4153_v1  ;;  %v4845_v24 = vld [vmem:[#allocation3 + $0x1c] sm:$0xf] }
  0x82   :  { %1279 = vmatpush.bf16.msrb.mxu1 %v4405_v35  ;;  %1337 = vmatpush.bf16.msrb.mxu3 %v4409_v41  ;;  %v4925_v41 = vld [vmem:[#allocation3 + $0x29c] sm:$0xf] }
  0x83   :  { %v4313_v45 = vor.u32 %v4925_v41, %v4310_v42  ;;  %v4588_v42 = vld [vmem:[#allocation5 + $0xe0] sm:$0xf] }
  0x84   :  { %1251 = vmatpush.bf16.msrb.mxu0 %v4117_v51  ;;  %1309 = vmatpush.bf16.msrb.mxu2 %v4121_v25  ;;  %v4089_v51 = vor.u32 %v4869_v43, %v4086_v47  ;;  %v3990_v25 = vld [vmem:[#allocation3 + $0x38] sm:$0xf0]  ;;  %v5000_v43 = vld [vmem:[#allocation5 + $0xec] sm:$0xf0] }
  0x85   :  { %v5630_v47 = vor.u32 %v5000_v43, %v4588_v42 }
  0x86   :  { %1280 = vmatpush.bf16.msrb.mxu1 %v4373_v54  ;;  %1338 = vmatpush.bf16.msrb.mxu3 %v4377_v63  ;;  %v4276_v54 = vld [vmem:[#allocation3 + $0x258] sm:$0xf] }
  0x87   :  { %1029 = vmatmul.bf16.gmra.mxu0 %v5516_v34  ;;  %1087 = vmatmul.bf16.gmra.mxu2 %v5516_v34 }
  0x88   :  { %1252 = vmatpush.bf16.msrb.mxu0 %v4085_v5  ;;  %1310 = vmatpush.bf16.msrb.mxu2 %v4089_v51  ;;  %v4590_v51 = vld [vmem:[#allocation5 + $0xf0] sm:$0xf0] }
  0x89   :  { %1058 = vmatmul.bf16.gmra.mxu1 %v5518_v39  ;;  %1116 = vmatmul.bf16.gmra.mxu3 %v5518_v39 }
  0x8a   :  { %1281 = vmatpush.bf16.msrb.mxu1 %v4341_v8  ;;  %1339 = vmatpush.bf16.msrb.mxu3 %v4345_v21  ;;  %v4278_v8 = vld [vmem:[#allocation3 + $0x278] sm:$0xf0] }
  0x8b   :  { %v4022_v21 = vld [vmem:[#allocation3 + $0x78] sm:$0xf0] }
  0x8c   :  { %1253 = vmatpush.bf16.msrb.mxu0 %v4053_v26  ;;  %1311 = vmatpush.bf16.msrb.mxu2 %v4057_v2  ;;  %v4025_v22 = vor.u32 %v4853_v20, %v4022_v21  ;;  %v4909_v26 = vld [vmem:[#allocation3 + $0x21c] sm:$0xf] }
  0x8e   :  { %1282 = vmatpush.bf16.msrb.mxu1 %v4309_v29  ;;  %1340 = vmatpush.bf16.msrb.mxu3 %v4313_v45  ;;  %v4998_v45 = vld [vmem:[#allocation5 + $0xe4] sm:$0xf] }
  0x90   :  { %1312 = vmatpush.bf16.msrb.mxu2 %v4025_v22  ;;  %v4995_v22 = vld [vmem:[#allocation5 + $0xcc] sm:$0xf] }
  0x97   :  { %1034 = vmatmul.bf16.gmra.mxu0 %v5536_v18  ;;  %1092 = vmatmul.bf16.gmra.mxu2 %v5536_v18 }
  0x99   :  { %1063 = vmatmul.bf16.gmra.mxu1 %v5538_v19  ;;  %1121 = vmatmul.bf16.gmra.mxu3 %v5538_v19 }
  0xa7   :  { %1039 = vmatmul.bf16.gmra.mxu0 %v5556_v48  ;;  %1097 = vmatmul.bf16.gmra.mxu2 %v5556_v48 }
  0xa9   :  { %1068 = vmatmul.bf16.gmra.mxu1 %v5558_v50  ;;  %1126 = vmatmul.bf16.gmra.mxu3 %v5558_v50 }
  0xb4   :  { %v909_v55 = vpop.f32.mrf.mxu0 }
  0xb5   :  { %v910_v56 = vadd.f32 %v909_v55, %v5586_v46  ;;  %v4021_v55 = vor.u32 %v4857_v53, %v4020_v52  ;;  %v5632_v53 = vor.u32 %v4998_v45, %v4590_v51 }
  0xb6   :  { %v938_v57 = vpop.f32.mrf.mxu1 }
  0xb7   :  { %v5589_v58 = vadd.f32 %v938_v57, %v910_v56  ;;  %1140 = vmatmul.bf16.vlgmr.msra.gmra.mxu0 %v5496_v44  ;;  %1198 = vmatmul.bf16.vlgmr.msra.gmra.mxu2 %v5496_v44  ;;  %v4921_v56 = vld [vmem:[#allocation3 + $0x274] sm:$0xf0] }
  0xb8   :  { %v4277_v59 = vor.u32 %v4921_v56, %v4276_v54  ;;  %1254 = vmatpush.bf16.msrb.mxu0 %v4021_v55 }
  0xb9   :  { %6879 = vst [vmem:[#allocation13_spill] sm:$0xff] %v5589_v58  ;;  %1169 = vmatmul.bf16.vlgmr.msra.gmra.mxu1 %v5498_v49  ;;  %1227 = vmatmul.bf16.vlgmr.msra.gmra.mxu3 %v5498_v49 }
  0xba   :  { %v967_v7 = vpop.f32.mrf.mxu2  ;;  %1283 = vmatpush.bf16.msrb.mxu1 %v4277_v59 }
  0xbb   :  { %v968_v9 = vadd.f32 %v967_v7, %v5595_v62  ;;  %v4917_v7 = vld [vmem:[#allocation3 + $0x25c] sm:$0xf] }
  0xbc   :  { %v996_v10 = vpop.f32.mrf.mxu3  ;;  %v911_v11 = vpop.f32.mrf.mxu0 }
  0xbd   :  { %v912_v12 = vadd.f32 %v911_v11, %v5586_v46  ;;  %v5600_v14 = vadd.f32 %v996_v10, %v968_v9  ;;  %v3988_v9 = vld [vmem:[#allocation3 + $0x18] sm:$0xf]  ;;  %v4281_v10 = vor.u32 %v4917_v7, %v4278_v8  ;;  %v4574_v7 = vld [vmem:[#allocation5 + $0xd0] sm:$0xf0] }
  0xbe   :  { %v940_v13 = vpop.f32.mrf.mxu1  ;;  %v4849_v11 = vld [vmem:[#allocation3 + $0x34] sm:$0xf0] }
  0xbf   :  { %6880 = vst [vmem:[#allocation14_spill] sm:$0xff] %v5600_v14  ;;  %v5602_v15 = vadd.f32 %v940_v13, %v912_v12  ;;  %v4244_v12 = vld [vmem:[#allocation3 + $0x218] sm:$0xf]  ;;  %v3989_v16 = vor.u32 %v4849_v11, %v3988_v9  ;;  %1341 = vmatpush.bf16.msrb.mxu3 %v4281_v10 }
  0xc0   :  { %v4913_v13 = vld [vmem:[#allocation3 + $0x234] sm:$0xf0] }
  0xc1   :  { %6881 = vst [vmem:[#allocation15_spill] sm:$0xff] %v5602_v15  ;;  %v4245_v17 = vor.u32 %v4913_v13, %v4244_v12  ;;  %1255 = vmatpush.bf16.msrb.mxu0 %v3989_v16  ;;  %v4710_v15 = vld [vmem:[#allocation7 + $0xd8] sm:$0xf0] }
  0xc2   :  { %v969_v30 = vpop.f32.mrf.mxu2 }
  0xc3   :  { %v970_v31 = vadd.f32 %v969_v30, %v5595_v62  ;;  %1284 = vmatpush.bf16.msrb.mxu1 %v4245_v17  ;;  %v4246_v30 = vld [vmem:[#allocation3 + $0x238] sm:$0xf0] }
  0xc4   :  { %v998_v32 = vpop.f32.mrf.mxu3  ;;  %v914_v33 = vpop.f32.mrf.mxu0 }
  0xc5   :  { %v915_v35 = vadd.f32 %v914_v33, %v5586_v46  ;;  %v5606_v38 = vadd.f32 %v998_v32, %v970_v31  ;;  %v3993_v33 = vor.u32 %v4845_v24, %v3990_v25  ;;  %1656 = vmatpush.bf16.msra.mxu0 %v5630_v47  ;;  %v4596_v24 = vld [vmem:[#allocation5 + $0xe8] sm:$0xf] }
  0xc6   :  { %v943_v37 = vpop.f32.mrf.mxu1 }
  0xc7   :  { %6882 = vst [vmem:[#allocation16_spill] sm:$0xff] %v5606_v38  ;;  %v5608_v40 = vadd.f32 %v943_v37, %v915_v35  ;;  %1145 = vmatmul.bf16.gmra.mxu0 %v5516_v34  ;;  %1203 = vmatmul.bf16.gmra.mxu2 %v5516_v34  ;;  %v4249_v35 = vor.u32 %v4909_v26, %v4246_v30  ;;  %v5001_v26 = vld [vmem:[#allocation5 + $0xf4] sm:$0xf0]  ;;  %v4990_v30 = vld [vmem:[#allocation5 + $0xa4] sm:$0xf] }
  0xc8   :  { %1313 = vmatpush.bf16.msrb.mxu2 %v3993_v33  ;;  %1669 = vmatpush.bf16.msra.mxu1 %v5632_v53  ;;  %v5027_v38 = vld [vmem:[#allocation7 + $0xcc] sm:$0xf] }
  0xc9   :  { %6883 = vst [vmem:[#allocation17_spill] sm:$0xff] %v5608_v40  ;;  %1174 = vmatmul.bf16.gmra.mxu1 %v5518_v39  ;;  %1232 = vmatmul.bf16.gmra.mxu3 %v5518_v39 }
  0xca   :  { %v972_v57 = vpop.f32.mrf.mxu2  ;;  %1342 = vmatpush.bf16.msrb.mxu3 %v4249_v35 }
  0xcb   :  { %v973_v63 = vadd.f32 %v972_v57, %v5595_v62 }
  0xcc   :  { %v1001_v0 = vpop.f32.mrf.mxu3  ;;  %v916_v1 = vpop.f32.mrf.mxu0 }
  0xcd   :  { %v917_v3 = vadd.f32 %v916_v1, %v5586_v46  ;;  %v5616_v5 = vadd.f32 %v1001_v0, %v973_v63  ;;  %v4999_v63 = vld [vmem:[#allocation5 + $0xec] sm:$0xf]  ;;  %v4598_v0 = vld [vmem:[#allocation5 + $0xf8] sm:$0xf0]  ;;  %v4572_v1 = vld [vmem:[#allocation5 + $0xc0] sm:$0xf] }
  0xce   :  { %v945_v4 = vpop.f32.mrf.mxu1  ;;  %v5642_v2 = vor.u32 %v4999_v63, %v4598_v0  ;;  %v4566_v63 = vld [vmem:[#allocation5 + $0xb8] sm:$0xf0] }
  0xcf   :  { %6884 = vst [vmem:[#allocation18_spill] sm:$0xff] %v5616_v5  ;;  %v5618_v6 = vadd.f32 %v945_v4, %v917_v3  ;;  %v4996_v3 = vld [vmem:[#allocation5 + $0xcc] sm:$0xf0]  ;;  %v4994_v4 = vld [vmem:[#allocation5 + $0xc4] sm:$0xf] }
  0xd0   :  { %v5644_v8 = vor.u32 %v4996_v3, %v4572_v1  ;;  %v5646_v9 = vor.u32 %v4994_v4, %v4574_v7  ;;  %1695 = vmatpush.bf16.msra.mxu3 %v5642_v2  ;;  %v4540_v1 = vld [vmem:[#allocation5 + $0x80] sm:$0xf]  ;;  %v4988_v4 = vld [vmem:[#allocation5 + $0x8c] sm:$0xf0]  ;;  %v4986_v7 = vld [vmem:[#allocation5 + $0x84] sm:$0xf] }
  0xd1   :  { %6885 = vst [vmem:[#allocation19_spill] sm:$0xff] %v5618_v6  ;;  %v5028_v6 = vld [vmem:[#allocation7 + $0xcc] sm:$0xf0] }
  0xd2   :  { %v974_v23 = vpop.f32.mrf.mxu2  ;;  %1657 = vmatpush.bf16.msra.mxu0 %v5644_v8  ;;  %1670 = vmatpush.bf16.msra.mxu1 %v5646_v9 }
  0xd3   :  { %v975_v27 = vadd.f32 %v974_v23, %v5595_v62  ;;  %v4582_v23 = vld [vmem:[#allocation5 + $0xd8] sm:$0xf0] }
  0xd4   :  { %v1003_v28 = vpop.f32.mrf.mxu3  ;;  %v919_v29 = vpop.f32.mrf.mxu0  ;;  %v5660_v25 = vor.u32 %v4995_v22, %v4582_v23 }
  0xd5   :  { %v920_v31 = vadd.f32 %v919_v29, %v5586_v46  ;;  %v5622_v37 = vadd.f32 %v1003_v28, %v975_v27  ;;  %v5663_v27 = vor.u32 %v5001_v26, %v4596_v24  ;;  %v4556_v28 = vld [vmem:[#allocation5 + $0xa0] sm:$0xf]  ;;  %v4992_v29 = vld [vmem:[#allocation5 + $0xac] sm:$0xf0] }
  0xd6   :  { %v948_v32 = vpop.f32.mrf.mxu1  ;;  %1696 = vmatpush.bf16.msra.mxu3 %v5660_v25 }
  0xd7   :  { %6886 = vst [vmem:[#allocation20_spill] sm:$0xff] %v5622_v37  ;;  %v5624_v41 = vadd.f32 %v948_v32, %v920_v31  ;;  %1150 = vmatmul.bf16.gmra.mxu0 %v5536_v18  ;;  %1208 = vmatmul.bf16.gmra.mxu2 %v5536_v18  ;;  %v5666_v31 = vor.u32 %v4992_v29, %v4556_v28  ;;  %v4558_v32 = vld [vmem:[#allocation5 + $0xb0] sm:$0xf0] }
  0xd8   :  { %1682 = vmatpush.bf16.msra.mxu2 %v5663_v27  ;;  %v5669_v35 = vor.u32 %v4990_v30, %v4558_v32  ;;  %v4987_v32 = vld [vmem:[#allocation5 + $0x8c] sm:$0xf] }
  0xd9   :  { %6887 = vst [vmem:[#allocation21_spill] sm:$0xff] %v5624_v41  ;;  %1179 = vmatmul.bf16.gmra.mxu1 %v5538_v19  ;;  %1237 = vmatmul.bf16.gmra.mxu3 %v5538_v19  ;;  %v4718_v41 = vld [vmem:[#allocation7 + $0xf0] sm:$0xf0] }
  0xda   :  { %v977_v52 = vpop.f32.mrf.mxu2  ;;  %1658 = vmatpush.bf16.msra.mxu0 %v5666_v31  ;;  %1671 = vmatpush.bf16.msra.mxu1 %v5669_v35 }
  0xdb   :  { %v978_v54 = vadd.f32 %v977_v52, %v5595_v62 }
  0xdc   :  { %v1006_v55 = vpop.f32.mrf.mxu3  ;;  %v921_v56 = vpop.f32.mrf.mxu0 }
  0xdd   :  { %v922_v57 = vadd.f32 %v921_v56, %v5586_v46  ;;  %v5638_v60 = vadd.f32 %v1006_v55, %v978_v54  ;;  %v4580_v55 = vld [vmem:[#allocation5 + $0xc8] sm:$0xf]  ;;  %v4997_v56 = vld [vmem:[#allocation5 + $0xd4] sm:$0xf0] }
  0xde   :  { %v950_v59 = vpop.f32.mrf.mxu1  ;;  %v5679_v0 = vor.u32 %v4997_v56, %v4580_v55  ;;  %v4524_v55 = vld [vmem:[#allocation5 + $0x60] sm:$0xf]  ;;  %v4984_v56 = vld [vmem:[#allocation5 + $0x6c] sm:$0xf0] }
  0xdf   :  { %6888 = vst [vmem:[#allocation22_spill] sm:$0xff] %v5638_v60  ;;  %v5640_v61 = vadd.f32 %v950_v59, %v922_v57  ;;  %v4991_v59 = vld [vmem:[#allocation5 + $0xac] sm:$0xf]  ;;  %v5030_v60 = vld [vmem:[#allocation7 + $0xe4] sm:$0xf] }
  0xe0   :  { %v5681_v3 = vor.u32 %v4991_v59, %v4566_v63  ;;  %1683 = vmatpush.bf16.msra.mxu2 %v5679_v0  ;;  %v4982_v59 = vld [vmem:[#allocation5 + $0x64] sm:$0xf]  ;;  %v5715_v63 = vor.u32 %v4984_v56, %v4524_v55 }
  0xe1   :  { %6889 = vst [vmem:[#allocation23_spill] sm:$0xff] %v5640_v61  ;;  %v4971_v61 = vld [vmem:[#allocation5 + $0xc] sm:$0xf] }
  0xe2   :  { %v979_v10 = vpop.f32.mrf.mxu2  ;;  %1697 = vmatpush.bf16.msra.mxu3 %v5681_v3 }
  0xe3   :  { %v980_v11 = vadd.f32 %v979_v10, %v5595_v62  ;;  %v4542_v10 = vld [vmem:[#allocation5 + $0x90] sm:$0xf0] }
  0xe4   :  { %v1008_v12 = vpop.f32.mrf.mxu3  ;;  %v924_v13 = vpop.f32.mrf.mxu0 }
  0xe5   :  { %v925_v16 = vadd.f32 %v924_v13, %v5586_v46  ;;  %v5653_v20 = vadd.f32 %v1008_v12, %v980_v11  ;;  %v5687_v11 = vor.u32 %v4988_v4, %v4540_v1  ;;  %v5689_v12 = vor.u32 %v4986_v7, %v4542_v10  ;;  %v4564_v13 = vld [vmem:[#allocation5 + $0xa8] sm:$0xf]  ;;  %v4526_v1 = vld [vmem:[#allocation5 + $0x70] sm:$0xf0]  ;;  %v4985_v7 = vld [vmem:[#allocation5 + $0x74] sm:$0xf0] }
  0xe6   :  { %v953_v17 = vpop.f32.mrf.mxu1  ;;  %v4532_v4 = vld [vmem:[#allocation5 + $0x68] sm:$0xf]  ;;  %v5718_v10 = vor.u32 %v4982_v59, %v4526_v1  ;;  %v4510_v59 = vld [vmem:[#allocation5 + $0x50] sm:$0xf0] }
  0xe7   :  { %6890 = vst [vmem:[#allocation24_spill] sm:$0xff] %v5653_v20  ;;  %v5655_v21 = vadd.f32 %v953_v17, %v925_v16  ;;  %1155 = vmatmul.bf16.gmra.mxu0 %v5556_v48  ;;  %1213 = vmatmul.bf16.gmra.mxu2 %v5556_v48  ;;  %v4993_v16 = vld [vmem:[#allocation5 + $0xb4] sm:$0xf0]  ;;  %v4516_v1 = vld [vmem:[#allocation5 + $0x48] sm:$0xf] }
  0xe8   :  { %1659 = vmatpush.bf16.msra.mxu0 %v5687_v11  ;;  %1672 = vmatpush.bf16.msra.mxu1 %v5689_v12  ;;  %v5694_v22 = vor.u32 %v4993_v16, %v4564_v13  ;;  %v5720_v13 = vor.u32 %v4985_v7, %v4532_v4  ;;  %v4983_v16 = vld [vmem:[#allocation5 + $0x6c] sm:$0xf]  ;;  %v4981_v4 = vld [vmem:[#allocation5 + $0x54] sm:$0xf0] }
  0xe9   :  { %6891 = vst [vmem:[#allocation25_spill] sm:$0xff] %v5655_v21  ;;  %1184 = vmatmul.bf16.gmra.mxu1 %v5558_v50  ;;  %1242 = vmatmul.bf16.gmra.mxu3 %v5558_v50 }
  0xea   :  { %v982_v33 = vpop.f32.mrf.mxu2  ;;  %1684 = vmatpush.bf16.msra.mxu2 %v5694_v22 }
  0xeb   :  { %v983_v42 = vadd.f32 %v982_v33, %v5595_v62  ;;  %v4550_v33 = vld [vmem:[#allocation5 + $0x98] sm:$0xf0] }
  0xec   :  { %v1011_v43 = vpop.f32.mrf.mxu3  ;;  %v926_v45 = vpop.f32.mrf.mxu0  ;;  %1660 = vmatpush.bf16.msra.mxu0 %v5715_v63  ;;  %1673 = vmatpush.bf16.msra.mxu1 %v5718_v10 }
  0xed   :  { %v927_v51 = vadd.f32 %v926_v45, %v5586_v46  ;;  %v5675_v54 = vadd.f32 %v1011_v43, %v983_v42  ;;  %v5684_v46 = vperm.slane %v5583_v36, 2  ;;  %v4548_v42 = vld [vmem:[#allocation5 + $0x88] sm:$0xf]  ;;  %v5704_v45 = vor.u32 %v4987_v32, %v4550_v33  ;;  %v4508_v33 = vld [vmem:[#allocation5 + $0x40] sm:$0xf] }
  0xee   :  { %v955_v52 = vpop.f32.mrf.mxu1 }
  0xef   :  { %6892 = vst [vmem:[#allocation26_spill] sm:$0xff] %v5675_v54  ;;  %v5677_v57 = vadd.f32 %v955_v52, %v927_v51  ;;  %v4989_v51 = vld [vmem:[#allocation5 + $0x94] sm:$0xf0]  ;;  %1698 = vmatpush.bf16.msra.mxu3 %v5704_v45  ;;  %v4502_v54 = vld [vmem:[#allocation5 + $0x38] sm:$0xf0] }
  0xf0   :  { %6894 = vst [vmem:[#allocation28_spill] sm:$0xff] %v5684_v46  ;;  %v5711_v52 = vor.u32 %v4989_v51, %v4548_v42  ;;  %v4980_v42 = vld [vmem:[#allocation5 + $0x4c] sm:$0xf0]  ;;  %v4978_v51 = vld [vmem:[#allocation5 + $0x44] sm:$0xf] }
  0xf1   :  { %6893 = vst [vmem:[#allocation27_spill] sm:$0xff] %v5677_v57  ;;  %v5734_v56 = vor.u32 %v4980_v42, %v4508_v33  ;;  %v5736_v7 = vor.u32 %v4978_v51, %v4510_v59  ;;  %v4494_v42 = vld [vmem:[#allocation5 + $0x30] sm:$0xf0]  ;;  %v4500_v51 = vld [vmem:[#allocation5 + $0x28] sm:$0xf] }
  0xf2   :  { %v984_v17 = vpop.f32.mrf.mxu2  ;;  %1685 = vmatpush.bf16.msra.mxu2 %v5711_v52  ;;  %v4977_v59 = vld [vmem:[#allocation5 + $0x34] sm:$0xf0]  ;;  %v4975_v57 = vld [vmem:[#allocation5 + $0x2c] sm:$0xf] }
  0xf3   :  { %v985_v23 = vadd.f32 %v984_v17, %v5595_v62  ;;  %v5709_v62 = vperm.slane %v5583_v36, 3  ;;  %v4534_v17 = vld [vmem:[#allocation5 + $0x78] sm:$0xf0]  ;;  %1661 = vmatpush.bf16.msra.mxu0 %v5734_v56  ;;  %1674 = vmatpush.bf16.msra.mxu1 %v5736_v7 }
  0xf4   :  { %v1013_v24 = vpop.f32.mrf.mxu3  ;;  %v1025_v26 = vpop.f32.mrf.mxu0 }
  0xf5   :  { %v1026_v28 = vadd.f32 %v1025_v26, %v5684_v46  ;;  %v5699_v30 = vadd.f32 %v1013_v24, %v985_v23  ;;  %6897 = vst [vmem:[#allocation31_spill] sm:$0xff] %v5709_v62  ;;  %v5724_v26 = vor.u32 %v4983_v16, %v4534_v17  ;;  %v4979_v16 = vld [vmem:[#allocation5 + $0x4c] sm:$0xf]  ;;  %v4518_v17 = vld [vmem:[#allocation5 + $0x58] sm:$0xf0] }
  0xf6   :  { %v1054_v29 = vpop.f32.mrf.mxu1  ;;  %1686 = vmatpush.bf16.msra.mxu2 %v5720_v13 }
  0xf7   :  { %6895 = vst [vmem:[#allocation29_spill] sm:$0xff] %v5699_v30  ;;  %v5701_v43 = vadd.f32 %v1054_v29, %v1026_v28  ;;  %1256 = vmatmul.bf16.vlgmr.msrb.gmra.mxu0 %v5496_v44  ;;  %1314 = vmatmul.bf16.vlgmr.msrb.gmra.mxu2 %v5496_v44  ;;  %v5751_v30 = vor.u32 %v4977_v59, %v4500_v51 }
  0xf8   :  { %1699 = vmatpush.bf16.msra.mxu3 %v5724_v26 }
  0xf9   :  { %6896 = vst [vmem:[#allocation30_spill] sm:$0xff] %v5701_v43  ;;  %1285 = vmatmul.bf16.vlgmr.msrb.gmra.mxu1 %v5498_v49  ;;  %1343 = vmatmul.bf16.vlgmr.msrb.gmra.mxu3 %v5498_v49 }
  0xfa   :  { %v1083_v44 = vpop.f32.mrf.mxu2 }
  0xfb   :  { %v1084_v49 = vadd.f32 %v1083_v44, %v5709_v62  ;;  %v5738_v44 = vor.u32 %v4981_v4, %v4516_v1 }
  0xfc   :  { %v1112_v23 = vpop.f32.mrf.mxu3  ;;  %v1027_v24 = vpop.f32.mrf.mxu0 }
  0xfd   :  { %v1028_v28 = vadd.f32 %v1027_v24, %v5684_v46  ;;  %v5728_v32 = vadd.f32 %v1112_v23, %v1084_v49  ;;  %v5741_v49 = vor.u32 %v4979_v16, %v4518_v17  ;;  %1687 = vmatpush.bf16.msra.mxu2 %v5738_v44  ;;  %v4492_v23 = vld [vmem:[#allocation5 + $0x20] sm:$0xf]  ;;  %v4976_v24 = vld [vmem:[#allocation5 + $0x2c] sm:$0xf0] }
  0xfe   :  { %v1056_v29 = vpop.f32.mrf.mxu1  ;;  %v5746_v33 = vor.u32 %v4976_v24, %v4492_v23  ;;  %v5755_v23 = vor.u32 %v4975_v57, %v4502_v54  ;;  %v4484_v54 = vld [vmem:[#allocation5 + $0x8] sm:$0xf]  ;;  %v4973_v57 = vld [vmem:[#allocation5 + $0x14] sm:$0xf0] }
  0xff   :  { %6898 = vst [vmem:[#allocation32_spill] sm:$0xff] %v5728_v32  ;;  %v5732_v55 = vadd.f32 %v1056_v29, %v1028_v28  ;;  %v4974_v28 = vld [vmem:[#allocation5 + $0x24] sm:$0xf]  ;;  %1700 = vmatpush.bf16.msra.mxu3 %v5741_v49 }
 0x100   :  { %v5749_v17 = vor.u32 %v4974_v28, %v4494_v42  ;;  %1662 = vmatpush.bf16.msra.mxu0 %v5746_v33  ;;  %v4972_v28 = vld [vmem:[#allocation5 + $0xc] sm:$0xf0]  ;;  %v4970_v42 = vld [vmem:[#allocation5 + $0x4] sm:$0xf] }
 0x101   :  { %6899 = vst [vmem:[#allocation33_spill] sm:$0xff] %v5732_v55  ;;  %1688 = vmatpush.bf16.msra.mxu2 %v5751_v30  ;;  %v4708_v55 = vld [vmem:[#allocation7 + $0xc8] sm:$0xf]  ;;  %v5022_v32 = vld [vmem:[#allocation7 + $0xa4] sm:$0xf] }
 0x102   :  { %v1085_v29 = vpop.f32.mrf.mxu2  ;;  %1675 = vmatpush.bf16.msra.mxu1 %v5749_v17 }
 0x103   :  { %v1086_v1 = vadd.f32 %v1085_v29, %v5709_v62  ;;  %v4476_v29 = vld [vmem:[#allocation5] sm:$0xf]  ;;  %1701 = vmatpush.bf16.msra.mxu3 %v5755_v23 }
 0x104   :  { %v1114_v4 = vpop.f32.mrf.mxu3  ;;  %v1030_v16 = vpop.f32.mrf.mxu0  ;;  %v5765_v59 = vor.u32 %v4972_v28, %v4476_v29  ;;  %v5032_v28 = vld [vmem:[#allocation7 + $0xec] sm:$0xf0] }
 0x105   :  { %v1031_v21 = vadd.f32 %v1030_v16, %v5684_v46  ;;  %v5757_v24 = vadd.f32 %v1114_v4, %v1086_v1  ;;  %v4478_v16 = vld [vmem:[#allocation5 + $0x10] sm:$0xf0]  ;;  %v5771_v4 = vor.u32 %v4973_v57, %v4484_v54  ;;  %v5033_v54 = vld [vmem:[#allocation7 + $0xf4] sm:$0xf0]  ;;  %v5031_v57 = vld [vmem:[#allocation7 + $0xec] sm:$0xf] }
 0x106   :  { %v1059_v20 = vpop.f32.mrf.mxu1  ;;  %v5769_v1 = vor.u32 %v4970_v42, %v4478_v16  ;;  %1663 = vmatpush.bf16.msra.mxu0 %v5765_v59  ;;  %v5781_v42 = vor.u32 %v5030_v60, %v4718_v41  ;;  %v4724_v16 = vld [vmem:[#allocation7 + $0xe8] sm:$0xf] }
 0x107   :  { %6900 = vst [vmem:[#allocation34_spill] sm:$0xff] %v5757_v24  ;;  %v5761_v51 = vadd.f32 %v1059_v20, %v1031_v21  ;;  %1261 = vmatmul.bf16.gmra.mxu0 %v5516_v34  ;;  %1319 = vmatmul.bf16.gmra.mxu2 %v5516_v34  ;;  %v4486_v20 = vld [vmem:[#allocation5 + $0x18] sm:$0xf0]  ;;  %v4716_v21 = vld [vmem:[#allocation7 + $0xe0] sm:$0xf] }
 0x108   :  { %v5775_v29 = vor.u32 %v4971_v61, %v4486_v20  ;;  %1676 = vmatpush.bf16.msra.mxu1 %v5769_v1  ;;  %1689 = vmatpush.bf16.msra.mxu2 %v5771_v4  ;;  %v5779_v34 = vor.u32 %v5032_v28, %v4716_v21  ;;  %6904 = vst [vmem:[#allocation38_spill] sm:$0xff] %v5781_v42  ;;  %v4726_v61 = vld [vmem:[#allocation7 + $0xf8] sm:$0xf0]  ;;  %v4700_v20 = vld [vmem:[#allocation7 + $0xc0] sm:$0xf] }
 0x109   :  { %6901 = vst [vmem:[#allocation35_spill] sm:$0xff] %v5761_v51  ;;  %1290 = vmatmul.bf16.gmra.mxu1 %v5518_v39  ;;  %1348 = vmatmul.bf16.gmra.mxu3 %v5518_v39  ;;  %v5784_v39 = vor.u32 %v5033_v54, %v4724_v16  ;;  %v5789_v41 = vor.u32 %v5031_v57, %v4726_v61  ;;  %v5026_v21 = vld [vmem:[#allocation7 + $0xc4] sm:$0xf]  ;;  %v4702_v28 = vld [vmem:[#allocation7 + $0xd0] sm:$0xf0] }
 0x10a   :  { %6902 = vst [vmem:[#allocation36_spill] sm:$0xff] %v5775_v29  ;;  %v1088_v37 = vpop.f32.mrf.mxu2  ;;  %1702 = vmatpush.bf16.msra.mxu3 %v5775_v29  ;;  %1876 = vmatpush.bf16.msrb.mxu0 %v5779_v34  ;;  %v5791_v60 = vor.u32 %v5028_v6, %v4700_v20  ;;  %v5795_v24 = vor.u32 %v5026_v21, %v4702_v28  ;;  %v4684_v20 = vld [vmem:[#allocation7 + $0xa0] sm:$0xf]  ;;  %v4686_v28 = vld [vmem:[#allocation7 + $0xb0] sm:$0xf0] }
 0x10b   :  { %6903 = vst [vmem:[#allocation37_spill] sm:$0xff] %v5779_v34  ;;  %v1089_v51 = vadd.f32 %v1088_v37, %v5709_v62  ;;  %v5029_v37 = vld [vmem:[#allocation7 + $0xd4] sm:$0xf0]  ;;  %v5802_v6 = vor.u32 %v5027_v38, %v4710_v15  ;;  %v5023_v38 = vld [vmem:[#allocation7 + $0xac] sm:$0xf] }
 0x10c   :  { %6905 = vst [vmem:[#allocation39_spill] sm:$0xff] %v5784_v39  ;;  %v1117_v5 = vpop.f32.mrf.mxu3  ;;  %v1032_v40 = vpop.f32.mrf.mxu0  ;;  %1889 = vmatpush.bf16.msrb.mxu1 %v5781_v42  ;;  %1902 = vmatpush.bf16.msrb.mxu2 %v5784_v39  ;;  %v5800_v57 = vor.u32 %v5029_v37, %v4708_v55  ;;  %v5811_v55 = vor.u32 %v5022_v32, %v4686_v28  ;;  %v4670_v32 = vld [vmem:[#allocation7 + $0x90] sm:$0xf0]  ;;  %v4676_v28 = vld [vmem:[#allocation7 + $0x88] sm:$0xf] }
 0x10d   :  { %6906 = vst [vmem:[#allocation40_spill] sm:$0xff] %v5789_v41  ;;  %v1033_v16 = vadd.f32 %v1032_v40, %v5684_v46  ;;  %v5797_v43 = vadd.f32 %v1117_v5, %v1089_v51  ;;  %v5024_v40 = vld [vmem:[#allocation7 + $0xac] sm:$0xf0]  ;;  %v4692_v5 = vld [vmem:[#allocation7 + $0xa8] sm:$0xf] }
 0x10e   :  { %6907 = vst [vmem:[#allocation41_spill] sm:$0xff] %v5791_v60  ;;  %v1061_v54 = vpop.f32.mrf.mxu1  ;;  %1915 = vmatpush.bf16.msrb.mxu3 %v5789_v41  ;;  %1877 = vmatpush.bf16.msrb.mxu0 %v5791_v60  ;;  %v5808_v21 = vor.u32 %v5024_v40, %v4684_v20  ;;  %v5025_v51 = vld [vmem:[#allocation7 + $0xb4] sm:$0xf0]  ;;  %v5018_v20 = vld [vmem:[#allocation7 + $0x84] sm:$0xf] }
 0x10f   :  { %6908 = vst [vmem:[#allocation42_spill] sm:$0xff] %v5795_v24  ;;  %v5804_v61 = vadd.f32 %v1061_v54, %v1033_v16  ;;  %v5813_v15 = vor.u32 %v5025_v51, %v4692_v5  ;;  %v4694_v16 = vld [vmem:[#allocation7 + $0xb8] sm:$0xf0]  ;;  %v5021_v5 = vld [vmem:[#allocation7 + $0x94] sm:$0xf0] }
 0x110   :  { %6909 = vst [vmem:[#allocation43_spill] sm:$0xff] %v5797_v43  ;;  %1890 = vmatpush.bf16.msrb.mxu1 %v5795_v24  ;;  %1903 = vmatpush.bf16.msrb.mxu2 %v5800_v57  ;;  %v5816_v54 = vor.u32 %v5023_v38, %v4694_v16  ;;  %v5020_v43 = vld [vmem:[#allocation7 + $0x8c] sm:$0xf0]  ;;  %v5019_v16 = vld [vmem:[#allocation7 + $0x8c] sm:$0xf] }
 0x111   :  { %6910 = vst [vmem:[#allocation44_spill] sm:$0xff] %v5800_v57  ;;  %v4678_v57 = vld [vmem:[#allocation7 + $0x98] sm:$0xf0]  ;;  %v4652_v60 = vld [vmem:[#allocation7 + $0x60] sm:$0xf] }
 0x112   :  { %6911 = vst [vmem:[#allocation45_spill] sm:$0xff] %v5802_v6  ;;  %1916 = vmatpush.bf16.msrb.mxu3 %v5802_v6  ;;  %v1090_v37 = vpop.f32.mrf.mxu2  ;;  %1878 = vmatpush.bf16.msrb.mxu0 %v5808_v21 }
 0x113   :  { %6912 = vst [vmem:[#allocation46_spill] sm:$0xff] %v5804_v61  ;;  %v4668_v61 = vld [vmem:[#allocation7 + $0x80] sm:$0xf]  ;;  %v1091_v40 = vadd.f32 %v1090_v37, %v5709_v62  ;;  %v5828_v37 = vor.u32 %v5018_v20, %v4670_v32  ;;  %v4662_v32 = vld [vmem:[#allocation7 + $0x78] sm:$0xf0] }
 0x114   :  { %6913 = vst [vmem:[#allocation47_spill] sm:$0xff] %v5808_v21  ;;  %v1119_v14 = vpop.f32.mrf.mxu3  ;;  %v1035_v58 = vpop.f32.mrf.mxu0  ;;  %1891 = vmatpush.bf16.msrb.mxu1 %v5811_v55  ;;  %1904 = vmatpush.bf16.msrb.mxu2 %v5813_v15  ;;  %v5823_v38 = vor.u32 %v5020_v43, %v4668_v61  ;;  %v5830_v21 = vor.u32 %v5021_v5, %v4676_v28  ;;  %v4654_v43 = vld [vmem:[#allocation7 + $0x70] sm:$0xf0]  ;;  %v4660_v61 = vld [vmem:[#allocation7 + $0x68] sm:$0xf] }
 0x115   :  { %6914 = vst [vmem:[#allocation48_spill] sm:$0xff] %v5811_v55  ;;  %v1036_v51 = vadd.f32 %v1035_v58, %v5684_v46  ;;  %v5825_v24 = vadd.f32 %v1119_v14, %v1091_v40  ;;  %v5835_v58 = vor.u32 %v5019_v16, %v4678_v57  ;;  %v5014_v14 = vld [vmem:[#allocation7 + $0x64] sm:$0xf]  ;;  %v5015_v40 = vld [vmem:[#allocation7 + $0x6c] sm:$0xf] }
 0x116   :  { %6915 = vst [vmem:[#allocation49_spill] sm:$0xff] %v5813_v15  ;;  %v1064_v6 = vpop.f32.mrf.mxu1  ;;  %1917 = vmatpush.bf16.msrb.mxu3 %v5816_v54  ;;  %v5016_v15 = vld [vmem:[#allocation7 + $0x6c] sm:$0xf0]  ;;  %1879 = vmatpush.bf16.msrb.mxu0 %v5823_v38  ;;  %v5845_v57 = vor.u32 %v5014_v14, %v4654_v43  ;;  %v5850_v5 = vor.u32 %v5015_v40, %v4662_v32 }
 0x117   :  { %6916 = vst [vmem:[#allocation50_spill] sm:$0xff] %v5816_v54  ;;  %v5832_v55 = vadd.f32 %v1064_v6, %v1036_v51  ;;  %1266 = vmatmul.bf16.gmra.mxu0 %v5536_v18  ;;  %1324 = vmatmul.bf16.gmra.mxu2 %v5536_v18  ;;  %v5841_v20 = vor.u32 %v5016_v15, %v4652_v60  ;;  %v5017_v6 = vld [vmem:[#allocation7 + $0x74] sm:$0xf0]  ;;  %v5012_v51 = vld [vmem:[#allocation7 + $0x4c] sm:$0xf0] }
 0x118   :  { %6917 = vst [vmem:[#allocation51_spill] sm:$0xff] %v5823_v38  ;;  %1892 = vmatpush.bf16.msrb.mxu1 %v5828_v37  ;;  %1905 = vmatpush.bf16.msrb.mxu2 %v5830_v21  ;;  %v5847_v28 = vor.u32 %v5017_v6, %v4660_v61  ;;  %v5010_v60 = vld [vmem:[#allocation7 + $0x44] sm:$0xf]  ;;  %v5011_v61 = vld [vmem:[#allocation7 + $0x4c] sm:$0xf] }
 0x119   :  { %6918 = vst [vmem:[#allocation52_spill] sm:$0xff] %v5825_v24  ;;  %1295 = vmatmul.bf16.gmra.mxu1 %v5538_v19  ;;  %1353 = vmatmul.bf16.gmra.mxu3 %v5538_v19  ;;  %v4636_v19 = vld [vmem:[#allocation7 + $0x40] sm:$0xf]  ;;  %v4638_v24 = vld [vmem:[#allocation7 + $0x50] sm:$0xf0] }
 0x11a   :  { %6919 = vst [vmem:[#allocation53_spill] sm:$0xff] %v5828_v37  ;;  %v1093_v18 = vpop.f32.mrf.mxu2  ;;  %1918 = vmatpush.bf16.msrb.mxu3 %v5835_v58  ;;  %v4644_v37 = vld [vmem:[#allocation7 + $0x48] sm:$0xf]  ;;  %1880 = vmatpush.bf16.msrb.mxu0 %v5841_v20  ;;  %v5858_v43 = vor.u32 %v5012_v51, %v4636_v19  ;;  %v4646_v6 = vld [vmem:[#allocation7 + $0x58] sm:$0xf0]  ;;  %v5864_v32 = vor.u32 %v5010_v60, %v4638_v24 }
 0x11b   :  { %6920 = vst [vmem:[#allocation54_spill] sm:$0xff] %v5830_v21  ;;  %v1094_v15 = vadd.f32 %v1093_v18, %v5709_v62  ;;  %v5013_v21 = vld [vmem:[#allocation7 + $0x54] sm:$0xf0]  ;;  %v5006_v19 = vld [vmem:[#allocation7 + $0x24] sm:$0xf] }
 0x11c   :  { %6921 = vst [vmem:[#allocation55_spill] sm:$0xff] %v5832_v55  ;;  %v1122_v16 = vpop.f32.mrf.mxu3  ;;  %v5853_v55 = vpop.f32.mrf.mxu0  ;;  %1893 = vmatpush.bf16.msrb.mxu1 %v5845_v57  ;;  %1906 = vmatpush.bf16.msrb.mxu2 %v5847_v28  ;;  %v5866_v18 = vor.u32 %v5013_v21, %v4644_v37  ;;  %v4622_v51 = vld [vmem:[#allocation7 + $0x30] sm:$0xf0]  ;;  %v5009_v38 = vld [vmem:[#allocation7 + $0x34] sm:$0xf0] }
 0x11d   :  { %6922 = vst [vmem:[#allocation56_spill] sm:$0xff] %v5835_v58  ;;  %v5860_v40 = vadd.f32 %v1122_v16, %v1094_v15  ;;  %v4628_v58 = vld [vmem:[#allocation7 + $0x28] sm:$0xf]  ;;  %v5007_v16 = vld [vmem:[#allocation7 + $0x2c] sm:$0xf]  ;;  %v5876_v24 = vor.u32 %v5006_v19, %v4622_v51 }
 0x11e   :  { %6923 = vst [vmem:[#allocation57_spill] sm:$0xff] %v5841_v20  ;;  %v5855_v14 = vpop.f32.mrf.mxu1  ;;  %1919 = vmatpush.bf16.msrb.mxu3 %v5850_v5  ;;  %v5008_v20 = vld [vmem:[#allocation7 + $0x2c] sm:$0xf0]  ;;  %1881 = vmatpush.bf16.msrb.mxu0 %v5858_v43  ;;  %v5878_v21 = vor.u32 %v5009_v38, %v4628_v58  ;;  %v5003_v58 = vld [vmem:[#allocation7 + $0xc] sm:$0xf] }
 0x11f   :  { %6924 = vst [vmem:[#allocation58_spill] sm:$0xff] %v5845_v57 }
 0x120   :  { %6925 = vst [vmem:[#allocation59_spill] sm:$0xff] %v5847_v28  ;;  %1894 = vmatpush.bf16.msrb.mxu1 %v5864_v32  ;;  %1907 = vmatpush.bf16.msrb.mxu2 %v5866_v18  ;;  %v5005_v28 = vld [vmem:[#allocation7 + $0x14] sm:$0xf0] }
 0x121   :  { %6926 = vst [vmem:[#allocation60_spill] sm:$0xff] %v5850_v5  ;;  %v4606_v5 = vld [vmem:[#allocation7 + $0x10] sm:$0xf0] }
 0x122   :  { %6927 = vst [vmem:[#allocation61_spill] sm:$0xff] %v5853_v55  ;;  %v5869_v55 = vor.u32 %v5011_v61, %v4646_v6  ;;  %v5880_v37 = vpop.f32.mrf.mxu2  ;;  %v4604_v61 = vld [vmem:[#allocation7] sm:$0xf]  ;;  %v5004_v6 = vld [vmem:[#allocation7 + $0xc] sm:$0xf0] }
 0x123   :  { %6928 = vst [vmem:[#allocation62_spill] sm:$0xff] %v5855_v14  ;;  %v4620_v14 = vld [vmem:[#allocation7 + $0x20] sm:$0xf]  ;;  %v5889_v38 = vor.u32 %v5004_v6, %v4604_v61 }
 0x124   :  { %6929 = vst [vmem:[#allocation63_spill] sm:$0xff] %v5858_v43  ;;  %v5872_v15 = vor.u32 %v5008_v20, %v4620_v14  ;;  %1920 = vmatpush.bf16.msrb.mxu3 %v5869_v55  ;;  %v5002_v20 = vld [vmem:[#allocation7 + $0x4] sm:$0xf]  ;;  %v5885_v14 = vpop.f32.mrf.mxu3  ;;  %v1040_v43 = vpop.f32.mrf.mxu0  ;;  %1895 = vmatpush.bf16.msrb.mxu1 %v5876_v24 }
 0x125   :  { %6930 = vst [vmem:[#allocation64_spill] sm:$0xff] %v5860_v40  ;;  %v4630_v40 = vld [vmem:[#allocation7 + $0x38] sm:$0xf0]  ;;  %v1041_v19 = vadd.f32 %v1040_v43, %v5684_v46  ;;  %1908 = vmatpush.bf16.msrb.mxu2 %v5878_v21 }
 0x126   :  { %6931 = vst [vmem:[#allocation65_spill] sm:$0xff] %v5864_v32  ;;  %v5883_v60 = vor.u32 %v5007_v16, %v4630_v40  ;;  %v4612_v32 = vld [vmem:[#allocation7 + $0x8] sm:$0xf]  ;;  %v1069_v51 = vpop.f32.mrf.mxu1  ;;  %1882 = vmatpush.bf16.msrb.mxu0 %v5872_v15  ;;  %v5893_v40 = vor.u32 %v5002_v20, %v4606_v5 }
 0x127   :  { %6932 = vst [vmem:[#allocation66_spill] sm:$0xff] %v5866_v18  ;;  %v5895_v16 = vor.u32 %v5005_v28, %v4612_v32  ;;  %1271 = vmatmul.bf16.gmra.mxu0 %v5556_v48  ;;  %1329 = vmatmul.bf16.gmra.mxu2 %v5556_v48  ;;  %v5918_v48 = vperm.slane %v5583_v36, 4 }
 0x128   :  { %6933 = vst [vmem:[#allocation67_spill] sm:$0xff] %v5869_v55  ;;  %1921 = vmatpush.bf16.msrb.mxu3 %v5883_v60  ;;  %1896 = vmatpush.bf16.msrb.mxu1 %v5893_v40 }
 0x129   :  { %6934 = vst [vmem:[#allocation68_spill] sm:$0xff] %v5872_v15  ;;  %1300 = vmatmul.bf16.gmra.mxu1 %v5558_v50  ;;  %1358 = vmatmul.bf16.gmra.mxu3 %v5558_v50 }
 0x12a   :  { %6935 = vst [vmem:[#allocation69_spill] sm:$0xff] %v5876_v24  ;;  %1883 = vmatpush.bf16.msrb.mxu0 %v5889_v38  ;;  %1909 = vmatpush.bf16.msrb.mxu2 %v5895_v16  ;;  %v1098_v28 = vpop.f32.mrf.mxu2 }
 0x12b   :  { %6936 = vst [vmem:[#allocation70_spill] sm:$0xff] %v5878_v21  ;;  %v1099_v5 = vadd.f32 %v1098_v28, %v5709_v62  ;;  %v5431_v28 = vmov 0  }
 0x12c   :  { %6937 = vst [vmem:[#allocation71_spill] sm:$0xff] %v5880_v37  ;;  %v4614_v37 = vld [vmem:[#allocation7 + $0x18] sm:$0xf0]  ;;  %v1127_v32 = vpop.f32.mrf.mxu3 }
 0x12d   :  { %6938 = vst [vmem:[#allocation72_spill] sm:$0xff] %v5883_v60  ;;  %v5901_v43 = vor.u32 %v5003_v58, %v4614_v37  ;;  %v5911_v37 = vpop.f32.mrf.mxu0  ;;  %v5915_v6 = vadd.f32 %v1127_v32, %v1099_v5  ;;  %v5930_v5 = vld [vmem:[%s6796_s4] sm:$0xff] }
 0x12e   :  { %6939 = vst [vmem:[#allocation73_spill] sm:$0xff] %v5885_v14  ;;  %v5897_v14 = vadd.f32 %v1069_v51, %v1041_v19  ;;  %v5913_v61 = vpop.f32.mrf.mxu1  ;;  %v5933_v36 = vperm.slane %v5930_v5, 5 }
 0x12f   :  { %6940 = vst [vmem:[#allocation74_spill] sm:$0xff] %v5889_v38  ;;  %1922 = vmatpush.bf16.msrb.mxu3 %v5901_v43 }
 0x130   :  { %6941 = vst [vmem:[#allocation75_spill] sm:$0xff] %v5893_v40 }
 0x131   :  { %6942 = vst [vmem:[#allocation76_spill] sm:$0xff] %v5895_v16 }
 0x132   :  { %6943 = vst [vmem:[#allocation77_spill] sm:$0xff] %v5897_v14  ;;  %v5920_v50 = vpop.f32.mrf.mxu2 }
 0x133   :  { %6944 = vst [vmem:[#allocation78_spill] sm:$0xff] %v5901_v43 }
 0x134   :  { %6945 = vst [vmem:[#allocation79_spill] sm:$0xff] %v5911_v37  ;;  %v5922_v20 = vpop.f32.mrf.mxu3 }
 0x135   :  { %6946 = vst [vmem:[#allocation80_spill] sm:$0xff] %v5913_v61  ;;  %v1141_v19 = vpop.f32.mrf.mxu0 }
 0x136   :  { %6947 = vst [vmem:[#allocation81_spill] sm:$0xff] %v5915_v6  ;;  %v1142_v51 = vadd.f32 %v1141_v19, %v5918_v48  ;;  %v1170_v58 = vpop.f32.mrf.mxu1  ;;  %v6965_v6 = vld [vmem:[#allocation41_spill] sm:$0xff] }
 0x137   :  { %6948 = vst [vmem:[#allocation82_spill] sm:$0xff] %v5918_v48  ;;  %1664 = vmatmul.bf16.vlgmr.msra.gmra.mxu0 %v5431_v28  ;;  %1690 = vmatmul.bf16.vlgmr.msra.gmra.mxu2 %v5431_v28 }
 0x138   :  { %6949 = vst [vmem:[#allocation83_spill] sm:$0xff] %v5920_v50  ;;  %v5925_v14 = vadd.f32 %v1170_v58, %v1142_v51  ;;  %2063 = vmatpush.bf16.msra.mxu0 %v5630_v47  ;;  %2089 = vmatpush.bf16.msra.mxu2 %v5663_v27 }
 0x139   :  { %6950 = vst [vmem:[#allocation84_spill] sm:$0xff] %v5922_v20  ;;  %1677 = vmatmul.bf16.vlgmr.msra.gmra.mxu1 %v5431_v28  ;;  %1703 = vmatmul.bf16.vlgmr.msra.gmra.mxu3 %v5431_v28 }
 0x13a   :  { %6951 = vst [vmem:[#allocation85_spill] sm:$0xff] %v5925_v14  ;;  %2076 = vmatpush.bf16.msra.mxu1 %v5632_v53  ;;  %v1199_v32 = vpop.f32.mrf.mxu2  ;;  %2102 = vmatpush.bf16.msra.mxu3 %v5642_v2 }
 0x13b   :  { %6952 = vst [vmem:[#allocation86_spill] sm:$0xff] %v5933_v36  ;;  %v1200_v19 = vadd.f32 %v1199_v32, %v5933_v36 }
 0x13c   :  { %v1228_v51 = vpop.f32.mrf.mxu3  ;;  %2064 = vmatpush.bf16.msra.mxu0 %v5644_v8  ;;  %2090 = vmatpush.bf16.msra.mxu2 %v5679_v0 }
 0x13d   :  { %v5940_v58 = vpop.f32.mrf.mxu0  ;;  %v5945_v61 = vadd.f32 %v1228_v51, %v1200_v19 }
 0x13e   :  { %6953 = vst [vmem:[#allocation87_spill] sm:$0xff] %v5940_v58  ;;  %v5942_v14 = vpop.f32.mrf.mxu1  ;;  %2077 = vmatpush.bf16.msra.mxu1 %v5646_v9  ;;  %2103 = vmatpush.bf16.msra.mxu3 %v5660_v25 }
 0x13f   :  { %6954 = vst [vmem:[#allocation88_spill] sm:$0xff] %v5942_v14 }
 0x140   :  { %6955 = vst [vmem:[#allocation89_spill] sm:$0xff] %v5945_v61  ;;  %2065 = vmatpush.bf16.msra.mxu0 %v5666_v31  ;;  %2091 = vmatpush.bf16.msra.mxu2 %v5694_v22 }
 0x142   :  { %2078 = vmatpush.bf16.msra.mxu1 %v5669_v35  ;;  %v5953_v32 = vpop.f32.mrf.mxu2  ;;  %2104 = vmatpush.bf16.msra.mxu3 %v5681_v3 }
 0x143   :  { %6956 = vst [vmem:[#allocation90_spill] sm:$0xff] %v5953_v32 }
 0x144   :  { %v5956_v37 = vpop.f32.mrf.mxu3  ;;  %2066 = vmatpush.bf16.msra.mxu0 %v5687_v11  ;;  %2092 = vmatpush.bf16.msra.mxu2 %v5711_v52 }
 0x145   :  { %6957 = vst [vmem:[#allocation91_spill] sm:$0xff] %v5956_v37  ;;  %v1146_v19 = vpop.f32.mrf.mxu0 }
 0x146   :  { %v1147_v51 = vadd.f32 %v1146_v19, %v5918_v48  ;;  %v1175_v61 = vpop.f32.mrf.mxu1  ;;  %2079 = vmatpush.bf16.msra.mxu1 %v5689_v12  ;;  %2105 = vmatpush.bf16.msra.mxu3 %v5704_v45 }
 0x147   :  { %1884 = vmatmul.bf16.vlgmr.msrb.gmra.mxu0 %v5431_v28  ;;  %1910 = vmatmul.bf16.vlgmr.msrb.gmra.mxu2 %v5431_v28 }
 0x148   :  { %v5962_v20 = vadd.f32 %v1175_v61, %v1147_v51  ;;  %2067 = vmatpush.bf16.msra.mxu0 %v5715_v63  ;;  %2093 = vmatpush.bf16.msra.mxu2 %v5720_v13 }
 0x149   :  { %1897 = vmatmul.bf16.vlgmr.msrb.gmra.mxu1 %v5431_v28  ;;  %1923 = vmatmul.bf16.vlgmr.msrb.gmra.mxu3 %v5431_v28 }
 0x14a   :  { %6958 = vst [vmem:[#allocation92_spill] sm:$0xff] %v5962_v20  ;;  %2080 = vmatpush.bf16.msra.mxu1 %v5718_v10  ;;  %v1204_v19 = vpop.f32.mrf.mxu2  ;;  %2106 = vmatpush.bf16.msra.mxu3 %v5724_v26 }
 0x14b   :  { %v1205_v50 = vadd.f32 %v1204_v19, %v5933_v36 }
 0x14c   :  { %v1233_v37 = vpop.f32.mrf.mxu3  ;;  %2068 = vmatpush.bf16.msra.mxu0 %v5734_v56  ;;  %2094 = vmatpush.bf16.msra.mxu2 %v5738_v44 }
 0x14d   :  { %v5970_v61 = vpop.f32.mrf.mxu0  ;;  %v5975_v14 = vadd.f32 %v1233_v37, %v1205_v50 }
 0x14e   :  { %6959 = vst [vmem:[#allocation93_spill] sm:$0xff] %v5970_v61  ;;  %v5972_v51 = vpop.f32.mrf.mxu1  ;;  %2081 = vmatpush.bf16.msra.mxu1 %v5736_v7  ;;  %2107 = vmatpush.bf16.msra.mxu3 %v5741_v49  ;;  %v6973_v61 = vld [vmem:[#allocation48_spill] sm:$0xff] }
 0x14f   :  { %6960 = vst [vmem:[#allocation94_spill] sm:$0xff] %v5972_v51 }
 0x150   :  { %6961 = vst [vmem:[#allocation95_spill] sm:$0xff] %v5975_v14  ;;  %2069 = vmatpush.bf16.msra.mxu0 %v5746_v33  ;;  %2095 = vmatpush.bf16.msra.mxu2 %v5751_v30 }
 0x152   :  { %2082 = vmatpush.bf16.msra.mxu1 %v5749_v17  ;;  %v5983_v28 = vpop.f32.mrf.mxu2  ;;  %2108 = vmatpush.bf16.msra.mxu3 %v5755_v23 }
 0x153   :  { %6962 = vst [vmem:[#allocation96_spill] sm:$0xff] %v5983_v28  ;;  %v6972_v28 = vld [vmem:[#allocation47_spill] sm:$0xff] }
 0x154   :  { %v5986_v19 = vpop.f32.mrf.mxu3  ;;  %2070 = vmatpush.bf16.msra.mxu0 %v5765_v59  ;;  %2096 = vmatpush.bf16.msra.mxu2 %v5771_v4 }
 0x155   :  { %6963 = vst [vmem:[#allocation97_spill] sm:$0xff] %v5986_v19  ;;  %v1151_v37 = vpop.f32.mrf.mxu0  ;;  %v6970_v19 = vld [vmem:[#allocation45_spill] sm:$0xff] }
 0x156   :  { %v1152_v50 = vadd.f32 %v1151_v37, %v5918_v48  ;;  %v1180_v32 = vpop.f32.mrf.mxu1  ;;  %2083 = vmatpush.bf16.msra.mxu1 %v5769_v1  ;;  %2109 = vmatpush.bf16.msra.mxu3 %v5775_v29 }
 0x158   :  { %v5992_v58 = vadd.f32 %v1180_v32, %v1152_v50  ;;  %2124 = vmatpush.bf16.msrb.mxu0 %v5779_v34  ;;  %2150 = vmatpush.bf16.msrb.mxu2 %v5784_v39  ;;  %v6967_v32 = vld [vmem:[#allocation42_spill] sm:$0xff]  ;;  %v6968_v50 = vld [vmem:[#allocation44_spill] sm:$0xff] }
 0x15a   :  { %6964 = vst [vmem:[#allocation98_spill] sm:$0xff] %v5992_v58  ;;  %2137 = vmatpush.bf16.msrb.mxu1 %v5781_v42  ;;  %2163 = vmatpush.bf16.msrb.mxu3 %v5789_v41  ;;  %v1209_v37 = vpop.f32.mrf.mxu2  ;;  %v6974_v58 = vld [vmem:[#allocation49_spill] sm:$0xff] }
 0x15b   :  { %v1210_v14 = vadd.f32 %v1209_v37, %v5933_v36 }
 0x15c   :  { %2125 = vmatpush.bf16.msrb.mxu0 %v6965_v6  ;;  %v1238_v20 = vpop.f32.mrf.mxu3  ;;  %2151 = vmatpush.bf16.msrb.mxu2 %v6968_v50 }
 0x15d   :  { %v6001_v46 = vpop.f32.mrf.mxu0  ;;  %v6008_v51 = vadd.f32 %v1238_v20, %v1210_v14 }
 0x15e   :  { %6966 = vst [vmem:[#allocation99_spill] sm:$0xff] %v6001_v46  ;;  %2138 = vmatpush.bf16.msrb.mxu1 %v6967_v32  ;;  %v6005_v62 = vpop.f32.mrf.mxu1  ;;  %2164 = vmatpush.bf16.msrb.mxu3 %v6970_v19  ;;  %v6976_v46 = vld [vmem:[#allocation51_spill] sm:$0xff]  ;;  %v6979_v19 = vld [vmem:[#allocation54_spill] sm:$0xff] }
 0x15f   :  { %6969 = vst [vmem:[#allocation100_spill] sm:$0xff] %v6005_v62  ;;  %v6978_v62 = vld [vmem:[#allocation53_spill] sm:$0xff] }
 0x160   :  { %6971 = vst [vmem:[#allocation101_spill] sm:$0xff] %v6008_v51  ;;  %2126 = vmatpush.bf16.msrb.mxu0 %v6972_v28  ;;  %2152 = vmatpush.bf16.msrb.mxu2 %v6974_v58  ;;  %v6980_v51 = vld [vmem:[#allocation56_spill] sm:$0xff]  ;;  %v6982_v58 = vld [vmem:[#allocation57_spill] sm:$0xff] }
 0x161   :  { %v6986_v28 = vld [vmem:[#allocation65_spill] sm:$0xff] }
 0x162   :  { %2139 = vmatpush.bf16.msrb.mxu1 %v6973_v61  ;;  %2165 = vmatpush.bf16.msrb.mxu3 %v5816_v54  ;;  %v6014_v37 = vpop.f32.mrf.mxu2  ;;  %v6985_v54 = vld [vmem:[#allocation63_spill] sm:$0xff] }
 0x163   :  { %6975 = vst [vmem:[#allocation102_spill] sm:$0xff] %v6014_v37  ;;  %v6983_v37 = vld [vmem:[#allocation59_spill] sm:$0xff] }
 0x164   :  { %2127 = vmatpush.bf16.msrb.mxu0 %v6976_v46  ;;  %v6017_v32 = vpop.f32.mrf.mxu3  ;;  %2153 = vmatpush.bf16.msrb.mxu2 %v6979_v19  ;;  %v6984_v46 = vld [vmem:[#allocation60_spill] sm:$0xff] }
 0x165   :  { %6977 = vst [vmem:[#allocation103_spill] sm:$0xff] %v6017_v32  ;;  %v1156_v50 = vpop.f32.mrf.mxu0 }
 0x166   :  { %2140 = vmatpush.bf16.msrb.mxu1 %v6978_v62  ;;  %v1157_v14 = vadd.f32 %v1156_v50, %v5918_v48  ;;  %v1185_v20 = vpop.f32.mrf.mxu1  ;;  %2166 = vmatpush.bf16.msrb.mxu3 %v6980_v51  ;;  %v7012_v51 = vld [vmem:[#allocation32_spill] sm:$0xff] }
 0x168   :  { %v6023_v61 = vadd.f32 %v1185_v20, %v1157_v14  ;;  %2128 = vmatpush.bf16.msrb.mxu0 %v6982_v58  ;;  %2154 = vmatpush.bf16.msrb.mxu2 %v6983_v37 }
 0x16a   :  { %6981 = vst [vmem:[#allocation104_spill] sm:$0xff] %v6023_v61  ;;  %2141 = vmatpush.bf16.msrb.mxu1 %v5845_v57  ;;  %2167 = vmatpush.bf16.msrb.mxu3 %v6984_v46  ;;  %v1214_v32 = vpop.f32.mrf.mxu2 }
 0x16b   :  { %v1215_v19 = vadd.f32 %v1214_v32, %v5933_v36  ;;  %v6044_v32 = vperm.slane %v5930_v5, 6 }
 0x16c   :  { %2129 = vmatpush.bf16.msrb.mxu0 %v6985_v54  ;;  %v1243_v62 = vpop.f32.mrf.mxu3  ;;  %2155 = vmatpush.bf16.msrb.mxu2 %v5866_v18 }
 0x16d   :  { %v6031_v50 = vpop.f32.mrf.mxu0  ;;  %v6038_v20 = vadd.f32 %v1243_v62, %v1215_v19  ;;  %6988 = vst [vmem:[#allocation106_spill] sm:$0xff] %v6044_v32 }
 0x16e   :  { %2142 = vmatpush.bf16.msrb.mxu1 %v6986_v28  ;;  %v6035_v14 = vpop.f32.mrf.mxu1  ;;  %2168 = vmatpush.bf16.msrb.mxu3 %v5869_v55 }
 0x16f   :  { %6987 = vst [vmem:[#allocation105_spill] sm:$0xff] %v6038_v20 }
 0x170   :  { %2130 = vmatpush.bf16.msrb.mxu0 %v5872_v15  ;;  %2156 = vmatpush.bf16.msrb.mxu2 %v5878_v21 }
 0x172   :  { %2143 = vmatpush.bf16.msrb.mxu1 %v5876_v24  ;;  %2169 = vmatpush.bf16.msrb.mxu3 %v5883_v60  ;;  %v6047_v61 = vpop.f32.mrf.mxu2  ;;  %v6059_v60 = vperm.slane %v5930_v5, 7 }
 0x174   :  { %2131 = vmatpush.bf16.msrb.mxu0 %v5889_v38  ;;  %v6050_v18 = vpop.f32.mrf.mxu3  ;;  %2157 = vmatpush.bf16.msrb.mxu2 %v5895_v16  ;;  %6990 = vst [vmem:[#allocation108_spill] sm:$0xff] %v6059_v60 }
 0x175   :  { %v1257_v55 = vpop.f32.mrf.mxu0 }
 0x176   :  { %2144 = vmatpush.bf16.msrb.mxu1 %v5893_v40  ;;  %v1258_v62 = vadd.f32 %v1257_v55, %v6044_v32  ;;  %v1286_v19 = vpop.f32.mrf.mxu1  ;;  %2170 = vmatpush.bf16.msrb.mxu3 %v5901_v43 }
 0x178   :  { %v6056_v20 = vadd.f32 %v1286_v19, %v1258_v62 }
 0x17a   :  { %6989 = vst [vmem:[#allocation107_spill] sm:$0xff] %v6056_v20  ;;  %v1315_v21 = vpop.f32.mrf.mxu2 }
 0x17b   :  { %v1316_v38 = vadd.f32 %v1315_v21, %v6059_v60 }
 0x17c   :  { %v1344_v24 = vpop.f32.mrf.mxu3 }
 0x17d   :  { %v6062_v15 = vpop.f32.mrf.mxu0  ;;  %v6066_v40 = vadd.f32 %v1344_v24, %v1316_v38 }
 0x17e   :  { %6991 = vst [vmem:[#allocation109_spill] sm:$0xff] %v6062_v15  ;;  %v6064_v28 = vpop.f32.mrf.mxu1 }
 0x17f   :  { %6992 = vst [vmem:[#allocation110_spill] sm:$0xff] %v6064_v28 }
 0x180   :  { %6993 = vst [vmem:[#allocation111_spill] sm:$0xff] %v6066_v40 }
 0x182   :  { %v6068_v16 = vpop.f32.mrf.mxu2 }
 0x183   :  { %6994 = vst [vmem:[#allocation112_spill] sm:$0xff] %v6068_v16 }
 0x184   :  { %v6070_v55 = vpop.f32.mrf.mxu3 }
 0x185   :  { %6995 = vst [vmem:[#allocation113_spill] sm:$0xff] %v6070_v55  ;;  %v1262_v43 = vpop.f32.mrf.mxu0 }
 0x186   :  { %v1263_v62 = vadd.f32 %v1262_v43, %v6044_v32  ;;  %v1291_v19 = vpop.f32.mrf.mxu1 }
 0x188   :  { %v6073_v5 = vadd.f32 %v1291_v19, %v1263_v62 }
 0x18a   :  { %6996 = vst [vmem:[#allocation114_spill] sm:$0xff] %v6073_v5  ;;  %v1320_v20 = vpop.f32.mrf.mxu2 }
 0x18b   :  { %v1321_v21 = vadd.f32 %v1320_v20, %v6059_v60 }
 0x18c   :  { %v1349_v54 = vpop.f32.mrf.mxu3 }
 0x18d   :  { %v6076_v46 = vpop.f32.mrf.mxu0  ;;  %v6080_v24 = vadd.f32 %v1349_v54, %v1321_v21 }
 0x18e   :  { %6997 = vst [vmem:[#allocation115_spill] sm:$0xff] %v6076_v46  ;;  %v6078_v15 = vpop.f32.mrf.mxu1 }
 0x18f   :  { %6998 = vst [vmem:[#allocation116_spill] sm:$0xff] %v6078_v15 }
 0x190   :  { %6999 = vst [vmem:[#allocation117_spill] sm:$0xff] %v6080_v24 }
 0x192   :  { %v6082_v38 = vpop.f32.mrf.mxu2 }
 0x193   :  { %7000 = vst [vmem:[#allocation118_spill] sm:$0xff] %v6082_v38 }
 0x194   :  { %v6084_v40 = vpop.f32.mrf.mxu3 }
 0x195   :  { %7001 = vst [vmem:[#allocation119_spill] sm:$0xff] %v6084_v40  ;;  %v1267_v28 = vpop.f32.mrf.mxu0 }
 0x196   :  { %v1268_v43 = vadd.f32 %v1267_v28, %v6044_v32  ;;  %v1296_v55 = vpop.f32.mrf.mxu1 }
 0x198   :  { %v6087_v62 = vadd.f32 %v1296_v55, %v1268_v43 }
 0x19a   :  { %7002 = vst [vmem:[#allocation120_spill] sm:$0xff] %v6087_v62  ;;  %v1325_v19 = vpop.f32.mrf.mxu2 }
 0x19b   :  { %v1326_v20 = vadd.f32 %v1325_v19, %v6059_v60 }
 0x19c   :  { %v1354_v16 = vpop.f32.mrf.mxu3 }
 0x19d   :  { %v6090_v5 = vpop.f32.mrf.mxu0  ;;  %v6094_v54 = vadd.f32 %v1354_v16, %v1326_v20 }
 0x19e   :  { %7003 = vst [vmem:[#allocation121_spill] sm:$0xff] %v6090_v5  ;;  %v6092_v46 = vpop.f32.mrf.mxu1 }
 0x19f   :  { %7004 = vst [vmem:[#allocation122_spill] sm:$0xff] %v6092_v46 }
 0x1a0   :  { %7005 = vst [vmem:[#allocation123_spill] sm:$0xff] %v6094_v54 }
 0x1a2   :  { %v6096_v21 = vpop.f32.mrf.mxu2 }
 0x1a3   :  { %7006 = vst [vmem:[#allocation124_spill] sm:$0xff] %v6096_v21 }
 0x1a4   :  { %v6098_v24 = vpop.f32.mrf.mxu3 }
 0x1a5   :  { %7007 = vst [vmem:[#allocation125_spill] sm:$0xff] %v6098_v24  ;;  %v1272_v15 = vpop.f32.mrf.mxu0  ;;  %v7010_v24 = vld [vmem:[#allocation13_spill] sm:$0xff] }
 0x1a6   :  { %v1273_v28 = vadd.f32 %v1272_v15, %v6044_v32  ;;  %v1301_v40 = vpop.f32.mrf.mxu1  ;;  %v7011_v15 = vld [vmem:[#allocation14_spill] sm:$0xff] }
 0x1a8   :  { %v6101_v55 = vadd.f32 %v1301_v40, %v1273_v28 }
 0x1aa   :  { %7008 = vst [vmem:[#allocation126_spill] sm:$0xff] %v6101_v55  ;;  %v1330_v43 = vpop.f32.mrf.mxu2 }
 0x1ab   :  { %v1331_v19 = vadd.f32 %v1330_v43, %v6059_v60 }
 0x1ac   :  { %v1359_v38 = vpop.f32.mrf.mxu3 }
 0x1ad   :  { %v6104_v62 = vpop.f32.mrf.mxu0  ;;  %v6108_v16 = vadd.f32 %v1359_v38, %v1331_v19  ;;  %v1159_v19 = vadd.f32 %v6031_v50, %v5918_v48  ;;  %v7043_v48 = vld [vmem:[#allocation75_spill] sm:$0xff] }
 0x1ae   :  { %v6106_v5 = vpop.f32.mrf.mxu1 }
 0x1af   :  { %7009 = vst [vmem:[#allocation127_spill] sm:$0xff] %v6108_v16 }
 0x1b2   :  { %v1332_v20 = vpop.f32.mrf.mxu2 }
 0x1b4   :  { %v1361_v54 = vpop.f32.mrf.mxu3 }
 0x1b5   :  { %v1665_v46 = vpop.f32.mrf.mxu0 }
 0x1b6   :  { %v1708_v21 = vadd.f32 %v1665_v46, %v7010_v24  ;;  %v1678_v37 = vpop.f32.mrf.mxu1  ;;  %v1217_v46 = vadd.f32 %v6047_v61, %v5933_v36 }
 0x1b7   :  { %v1709_v57 = vadd.f32 %v1678_v37, %v7011_v15 }
 0x1b8   :  { %v4730_v40 = vmul.f32 -1.442695, %v1708_v21 }
 0x1b9   :  { %v4731_v28 = vmul.f32 -1.442695, %v1709_v57  ;;  %v1188_v57 = vadd.f32 %v6035_v14, %v1159_v19 }
 0x1ba   :  { %5062 = vpow2.f32 %v4730_v40  ;;  %v1691_v43 = vpop.f32.mrf.mxu2  ;;  %v1333_v40 = vadd.f32 %v1332_v20, %v6059_v60 }
 0x1bb   :  { %5064 = vpow2.f32 %v4731_v28 }
 0x1bc   :  { %v1704_v55 = vpop.f32.mrf.mxu3 }
 0x1bd   :  { %v1667_v58 = vpop.f32.mrf.mxu0  ;;  %v1711_v6 = vadd.f32 %v1704_v55, %v7012_v51  ;;  %v1246_v51 = vadd.f32 %v6050_v18, %v1217_v46  ;;  %v1362_v18 = vadd.f32 %v1361_v54, %v1333_v40 }
 0x1be   :  { %v1680_v41 = vpop.f32.mrf.mxu1 }
 0x1bf   :  { %v4732_v16 = vmul.f32 -1.442695, %v1711_v6 }
 0x1c0   :  { %v5063_v38 = vpop.eup %5062 }
 0x1c1   :  { %v5065_v39 = vpop.eup %5064  ;;  %v1935_v37 = vadd.f32 1.0, %v5063_v38  ;;  %5066 = vpow2.f32 %v4732_v16  ;;  %v7013_v38 = vld [vmem:[#allocation30_spill] sm:$0xff] }
 0x1c2   :  { %v1954_v24 = vadd.f32 1.0, %v5065_v39  ;;  %v1693_v58 = vpop.f32.mrf.mxu2  ;;  %v1710_v39 = vadd.f32 %v1691_v43, %v7013_v38 }
 0x1c3   :  { %5068 = vrcp.f32 %v1935_v37  ;;  %vm1941_vm1 = vweird.f32 %v1935_v37 }
 0x1c4   :  { %5070 = vrcp.f32 %v1954_v24  ;;  %v1706_v41 = vpop.f32.mrf.mxu3  ;;  %v1966_v20 = vand.u32 2147483648, %v1954_v24  ;;  %vm1960_vm3 = vweird.f32 %v1954_v24 }
 0x1c5   :  { %v1885_v21 = vpop.f32.mrf.mxu0 }
 0x1c6   :  { %v1928_v55 = vadd.f32 %v1885_v21, %v1188_v57  ;;  %v1898_v15 = vpop.f32.mrf.mxu1  ;;  %v1945_v57 = vand.u32 2147483647, %v1935_v37  ;;  %v1947_v21 = vand.u32 2147483648, %v1935_v37 }
 0x1c7   :  { %v1929_v50 = vadd.f32 %v1898_v15, %v1246_v51  ;;  %v5067_v6 = vpop.eup %5066 }
 0x1c8   :  { %v4733_v28 = vmul.f32 -1.442695, %v1928_v55  ;;  %v6121_v16 = vadd.f32 1.0, %v5067_v6  ;;  %vm1946_vm4 = vcmp.eq.f32.partialorder %v1945_v57, 8.507059e+37 }
 0x1c9   :  { %v5069_v61 = vpop.eup %5068  ;;  %v4734_v36 = vmul.f32 -1.442695, %v1929_v50  ;;  %v1964_v50 = vand.u32 2147483647, %v1954_v24 }
 0x1ca   :  { %v5071_v14 = vpop.eup %5070  ;;  %v1937_v19 = vmul.f32 %v5069_v61, %v1935_v37  ;;  %5072 = vpow2.f32 %v4733_v28  ;;  %v1911_v51 = vpop.f32.mrf.mxu2  ;;  %vm1942_vm0 = vweird.f32 %v5069_v61  ;;  %v1275_v28 = vadd.f32 %v6104_v62, %v6044_v32 }
 0x1cb   :  { %v1956_v58 = vmul.f32 %v5071_v14, %v1954_v24  ;;  %5074 = vrcp.f32 %v6121_v16  ;;  %vm1961_vm2 = vweird.f32 %v5071_v14  ;;  %vm1943_vm5 = vmor %vm1941_vm1, %vm1942_vm0  ;;  %vm1965_vm7 = vcmp.eq.f32.partialorder %v1964_v50, 8.507059e+37 }
 0x1cc   :  { %v1938_v46 = vsub.f32 1.0, %v1937_v19  ;;  %5076 = vpow2.f32 %v4734_v36  ;;  %v1924_v55 = vpop.f32.mrf.mxu3  ;;  %vm1962_vm6 = vmor %vm1960_vm3, %vm1961_vm2  ;;  %vm1980_vm9 = vweird.f32 %v6121_v16 }
 0x1cd   :  { %v1957_v41 = vsub.f32 1.0, %v1956_v58  ;;  %5078 = vtanh.f32 %v1710_v39  ;;  %v1887_v43 = vpop.f32.mrf.mxu0  ;;  %v1931_v6 = vadd.f32 %v1924_v55, %v1362_v18  ;;  %v1967_v39 = vor.u32 1.1754944e-38, %v1966_v20 }
 0x1ce   :  { %v1939_v15 = vmul.f32 %v5069_v61, %v1938_v46  ;;  %v1900_v38 = vpop.f32.mrf.mxu1  ;;  %v1948_v58 = vor.u32 1.1754944e-38, %v1947_v21 }
 0x1cf   :  { %v1958_v60 = vmul.f32 %v5071_v14, %v1957_v41  ;;  %v4735_v40 = vmul.f32 -1.442695, %v1931_v6 }
 0x1d0   :  { %v5073_v54 = vpop.eup %5072  ;;  %v1940_v36 = vadd.f32 %v5069_v61, %v1939_v15 }
 0x1d1   :  { %v5075_v19 = vpop.eup %5074  ;;  %v1959_v46 = vadd.f32 %v5071_v14, %v1958_v60  ;;  %v1998_v43 = vadd.f32 1.0, %v5073_v54  ;;  %5080 = vpow2.f32 %v4735_v40 }
 0x1d2   :  { %v5077_v18 = vpop.eup %5076  ;;  %v1944_v55 = vsel %vm1943_vm5, %v5069_v61, %v1940_v36  ;;  %v1976_v62 = vmul.f32 %v5075_v19, %v6121_v16  ;;  %v1913_v38 = vpop.f32.mrf.mxu2  ;;  %v1304_v61 = vadd.f32 %v6106_v5, %v1275_v28  ;;  %vm1981_vm8 = vweird.f32 %v5075_v19 }
 0x1d3   :  { %v5079_v37 = vpop.eup %5078  ;;  %v1949_v41 = vsel %vm1946_vm4, %v1948_v58, %v1944_v55  ;;  %v1963_v24 = vsel %vm1962_vm6, %v5071_v14, %v1959_v46  ;;  %5082 = vrcp.f32 %v1998_v43  ;;  %v2017_v57 = vadd.f32 1.0, %v5077_v18  ;;  %vm6137_vm10 = vmor %vm1980_vm9, %vm1981_vm8 }
 0x1d4   :  { %v1968_v15 = vsel %vm1965_vm7, %v1967_v39, %v1963_v24  ;;  %v1991_v6 = vmul.f32 %v5079_v37, %v1949_v41  ;;  %v1977_v20 = vsub.f32 1.0, %v1976_v62  ;;  %v1926_v60 = vpop.f32.mrf.mxu3  ;;  %v1984_v36 = vand.u32 2147483647, %v6121_v16 }
 0x1d5   :  { %v1990_v32 = vmul.f32 0.0, %v1968_v15  ;;  %5084 = vrcp.f32 %v2017_v57  ;;  %v1986_v39 = vand.u32 2147483648, %v6121_v16  ;;  %v1930_v58 = vadd.f32 %v1911_v51, %v1304_v61 }
 0x1d6   :  { %v1978_v21 = vmul.f32 %v5075_v19, %v1977_v20  ;;  %v2010_v41 = vand.u32 2147483648, %v1998_v43  ;;  %vm1985_vm11 = vcmp.eq.f32.partialorder %v1984_v36, 8.507059e+37  ;;  %v2008_v16 = vand.u32 2147483647, %v1998_v43 }
 0x1d7   :  { %v6129_v54 = vadd.f32 %v1991_v6, %v1990_v32  ;;  %v5081_v50 = vpop.eup %5080  ;;  %v1987_v37 = vor.u32 1.1754944e-38, %v1986_v39  ;;  %v2029_v6 = vand.u32 2147483648, %v2017_v57  ;;  %vm2004_vm13 = vweird.f32 %v1998_v43 }
 0x1d8   :  { %v1979_v40 = vadd.f32 %v5075_v19, %v1978_v21  ;;  %v6134_v46 = vadd.f32 1.0, %v5081_v50  ;;  %v2027_v20 = vand.u32 2147483647, %v2017_v57  ;;  %vm2023_vm15 = vweird.f32 %v2017_v57 }
 0x1d9   :  { %v5083_v14 = vpop.eup %5082  ;;  %5086 = vtanh.f32 %v6129_v54  ;;  %vm2009_vm1 = vcmp.eq.f32.partialorder %v2008_v16, 8.507059e+37 }
 0x1da   :  { %v2000_v18 = vmul.f32 %v5083_v14, %v1998_v43  ;;  %5088 = vrcp.f32 %v6134_v46  ;;  %v1983_v62 = vsel %vm6137_vm10, %v5075_v19, %v1979_v40  ;;  %vm2005_vm12 = vweird.f32 %v5083_v14 }
 0x1db   :  { %v5085_v55 = vpop.eup %5084  ;;  %5090 = vtanh.f32 %v1930_v58  ;;  %v1988_v38 = vsel %vm1985_vm11, %v1987_v37, %v1983_v62  ;;  %vm2006_vm0 = vmor %vm2004_vm13, %vm2005_vm12  ;;  %v2011_v19 = vor.u32 1.1754944e-38, %v2010_v41  ;;  %vm2028_vm3 = vcmp.eq.f32.partialorder %v2027_v20, 8.507059e+37 }
 0x1dc   :  { %v2001_v5 = vsub.f32 1.0, %v2000_v18  ;;  %v2019_v28 = vmul.f32 %v5085_v55, %v2017_v57  ;;  %vm2024_vm14 = vweird.f32 %v5085_v55  ;;  %v2030_v18 = vor.u32 1.1754944e-38, %v2029_v6 }
 0x1dd   :  { %vm2025_vm2 = vmor %vm2023_vm15, %vm2024_vm14  ;;  %v2049_v41 = vand.u32 2147483648, %v6134_v46  ;;  %vm2043_vm5 = vweird.f32 %v6134_v46 }
 0x1de   :  { %v2020_v51 = vsub.f32 1.0, %v2019_v28  ;;  %v2002_v24 = vmul.f32 %v5083_v14, %v2001_v5 }
 0x1df   :  { %v5087_v15 = vpop.eup %5086 }
 0x1e0   :  { %v2021_v60 = vmul.f32 %v5085_v55, %v2020_v51  ;;  %v2003_v21 = vadd.f32 %v5083_v14, %v2002_v24  ;;  %v1994_v61 = vmul.f32 %v5087_v15, %v1988_v38  ;;  %v5089_v50 = vpop.eup %5088  ;;  %v2047_v24 = vand.u32 2147483647, %v6134_v46 }
 0x1e1   :  { %v2039_v39 = vmul.f32 %v5089_v50, %v6134_v46  ;;  %v5091_v58 = vpop.eup %5090  ;;  %vm2044_vm4 = vweird.f32 %v5089_v50  ;;  %v2050_v15 = vor.u32 1.1754944e-38, %v2049_v41  ;;  %v7035_v41 = vld [vmem:[#allocation65_spill] sm:$0xff] }
 0x1e2   :  { %v2007_v40 = vsel %vm2006_vm0, %v5083_v14, %v2003_v21  ;;  %v2022_v36 = vadd.f32 %v5085_v55, %v2021_v60  ;;  %v2062_v43 = vpack.c.bf16 %v1994_v61, %v1994_v61  ;;  %vm2045_vm6 = vmor %vm2043_vm5, %vm2044_vm4  ;;  %vm2048_vm7 = vcmp.eq.f32.partialorder %v2047_v24, 8.507059e+37  ;;  %v7016_v60 = vld [vmem:[#allocation39_spill] sm:$0xff]  ;;  %v7017_v21 = vld [vmem:[#allocation40_spill] sm:$0xff] }
 0x1e3   :  { %v2012_v32 = vsel %vm2009_vm1, %v2011_v19, %v2007_v40  ;;  %v2040_v62 = vsub.f32 1.0, %v2039_v39  ;;  %v7018_v61 = vld [vmem:[#allocation41_spill] sm:$0xff]  ;;  %v7020_v19 = vld [vmem:[#allocation44_spill] sm:$0xff]  ;;  %v7036_v24 = vld [vmem:[#allocation66_spill] sm:$0xff] }
 0x1e4   :  { %v2026_v5 = vsel %vm2025_vm2, %v5085_v55, %v2022_v36  ;;  %v2054_v28 = vmul.f32 %v5091_v58, %v2012_v32  ;;  %2071 = vmatmul.bf16.vlgmr.msra.gmra.mxu0 %v2062_v43  ;;  %2084 = vmatmul.bf16.vlgmr.msra.gmra.mxu1 %v2062_v43  ;;  %v7021_v40 = vld [vmem:[#allocation45_spill] sm:$0xff]  ;;  %v7022_v36 = vld [vmem:[#allocation47_spill] sm:$0xff]  ;;  %v7023_v39 = vld [vmem:[#allocation48_spill] sm:$0xff] }
 0x1e5   :  { %v2031_v37 = vsel %vm2028_vm3, %v2030_v18, %v2026_v5  ;;  %v2041_v51 = vmul.f32 %v5089_v50, %v2040_v62  ;;  %2097 = vmatmul.bf16.vlgmr.msra.gmra.mxu2 %v2062_v43  ;;  %2110 = vmatmul.bf16.vlgmr.msra.gmra.mxu3 %v2062_v43  ;;  %v7024_v58 = vld [vmem:[#allocation49_spill] sm:$0xff]  ;;  %v7025_v18 = vld [vmem:[#allocation50_spill] sm:$0xff]  ;;  %v7026_v32 = vld [vmem:[#allocation51_spill] sm:$0xff] }
 0x1e6   :  { %v2053_v57 = vmul.f32 0.0, %v2031_v37  ;;  %2311 = vmatpush.bf16.msra.mxu0 %v5630_v47  ;;  %2324 = vmatpush.bf16.msra.mxu1 %v5632_v53  ;;  %v7027_v43 = vld [vmem:[#allocation53_spill] sm:$0xff]  ;;  %v7028_v5 = vld [vmem:[#allocation54_spill] sm:$0xff] }
 0x1e7   :  { %2337 = vmatpush.bf16.msra.mxu2 %v5663_v27  ;;  %2350 = vmatpush.bf16.msra.mxu3 %v5642_v2  ;;  %v2042_v55 = vadd.f32 %v5089_v50, %v2041_v51  ;;  %v7030_v62 = vld [vmem:[#allocation57_spill] sm:$0xff]  ;;  %v7031_v37 = vld [vmem:[#allocation58_spill] sm:$0xff]  ;;  %v7033_v51 = vld [vmem:[#allocation60_spill] sm:$0xff] }
 0x1e8   :  { %v6147_v14 = vadd.f32 %v2054_v28, %v2053_v57  ;;  %v7029_v28 = vld [vmem:[#allocation56_spill] sm:$0xff]  ;;  %v7032_v57 = vld [vmem:[#allocation59_spill] sm:$0xff] }
 0x1e9   :  { %v2046_v16 = vsel %vm2045_vm6, %v5089_v50, %v2042_v55  ;;  %v7019_v50 = vld [vmem:[#allocation42_spill] sm:$0xff]  ;;  %v7034_v55 = vld [vmem:[#allocation63_spill] sm:$0xff] }
 0x1ea   :  { %5092 = vtanh.f32 %v6147_v14  ;;  %2312 = vmatpush.bf16.msra.mxu0 %v5644_v8  ;;  %2325 = vmatpush.bf16.msra.mxu1 %v5646_v9  ;;  %v2051_v20 = vsel %vm2048_vm7, %v2050_v15, %v2046_v16  ;;  %v7037_v16 = vld [vmem:[#allocation67_spill] sm:$0xff]  ;;  %v7038_v15 = vld [vmem:[#allocation68_spill] sm:$0xff] }
 0x1eb   :  { %2338 = vmatpush.bf16.msra.mxu2 %v5679_v0  ;;  %2351 = vmatpush.bf16.msra.mxu3 %v5660_v25 }
 0x1ee   :  { %2313 = vmatpush.bf16.msra.mxu0 %v5666_v31  ;;  %2326 = vmatpush.bf16.msra.mxu1 %v5669_v35 }
 0x1ef   :  { %2339 = vmatpush.bf16.msra.mxu2 %v5694_v22  ;;  %2352 = vmatpush.bf16.msra.mxu3 %v5681_v3 }
 0x1f0   :  { %v5093_v6 = vpop.eup %5092 }
 0x1f1   :  { %v2057_v46 = vmul.f32 %v5093_v6, %v2051_v20  ;;  %v7039_v6 = vld [vmem:[#allocation69_spill] sm:$0xff]  ;;  %v7040_v20 = vld [vmem:[#allocation70_spill] sm:$0xff] }
 0x1f2   :  { %2314 = vmatpush.bf16.msra.mxu0 %v5687_v11  ;;  %2327 = vmatpush.bf16.msra.mxu1 %v5689_v12 }
 0x1f3   :  { %v2123_v38 = vpack.c.bf16 %v2057_v46, %v2057_v46  ;;  %2340 = vmatpush.bf16.msra.mxu2 %v5711_v52  ;;  %2353 = vmatpush.bf16.msra.mxu3 %v5704_v45  ;;  %v7041_v46 = vld [vmem:[#allocation72_spill] sm:$0xff] }
 0x1f5   :  { %2132 = vmatmul.bf16.vlgmr.msrb.gmra.mxu0 %v2123_v38  ;;  %2145 = vmatmul.bf16.vlgmr.msrb.gmra.mxu1 %v2123_v38 }
 0x1f6   :  { %2158 = vmatmul.bf16.vlgmr.msrb.gmra.mxu2 %v2123_v38  ;;  %2171 = vmatmul.bf16.vlgmr.msrb.gmra.mxu3 %v2123_v38  ;;  %v7042_v38 = vld [vmem:[#allocation74_spill] sm:$0xff] }
 0x1f7   :  { %2315 = vmatpush.bf16.msra.mxu0 %v5715_v63  ;;  %2328 = vmatpush.bf16.msra.mxu1 %v5718_v10 }
 0x1f8   :  { %2341 = vmatpush.bf16.msra.mxu2 %v5720_v13  ;;  %2354 = vmatpush.bf16.msra.mxu3 %v5724_v26 }
 0x1fb   :  { %2316 = vmatpush.bf16.msra.mxu0 %v5734_v56  ;;  %2329 = vmatpush.bf16.msra.mxu1 %v5736_v7 }
 0x1fc   :  { %2342 = vmatpush.bf16.msra.mxu2 %v5738_v44  ;;  %2355 = vmatpush.bf16.msra.mxu3 %v5741_v49 }
 0x1ff   :  { %2317 = vmatpush.bf16.msra.mxu0 %v5746_v33  ;;  %2330 = vmatpush.bf16.msra.mxu1 %v5749_v17 }
 0x200   :  { %2343 = vmatpush.bf16.msra.mxu2 %v5751_v30  ;;  %2356 = vmatpush.bf16.msra.mxu3 %v5755_v23 }
 0x203   :  { %2318 = vmatpush.bf16.msra.mxu0 %v5765_v59  ;;  %2331 = vmatpush.bf16.msra.mxu1 %v5769_v1 }
 0x204   :  { %2344 = vmatpush.bf16.msra.mxu2 %v5771_v4  ;;  %2357 = vmatpush.bf16.msra.mxu3 %v5775_v29 }
 0x207   :  { %2372 = vmatpush.bf16.msrb.mxu0 %v5779_v34  ;;  %2385 = vmatpush.bf16.msrb.mxu1 %v5781_v42 }
 0x208   :  { %2398 = vmatpush.bf16.msrb.mxu2 %v7016_v60  ;;  %2411 = vmatpush.bf16.msrb.mxu3 %v7017_v21 }
 0x20b   :  { %2373 = vmatpush.bf16.msrb.mxu0 %v7018_v61  ;;  %2386 = vmatpush.bf16.msrb.mxu1 %v7019_v50 }
 0x20c   :  { %2399 = vmatpush.bf16.msrb.mxu2 %v7020_v19  ;;  %2412 = vmatpush.bf16.msrb.mxu3 %v7021_v40 }
 0x20f   :  { %2374 = vmatpush.bf16.msrb.mxu0 %v7022_v36  ;;  %2387 = vmatpush.bf16.msrb.mxu1 %v7023_v39 }
 0x210   :  { %2400 = vmatpush.bf16.msrb.mxu2 %v7024_v58  ;;  %2413 = vmatpush.bf16.msrb.mxu3 %v7025_v18 }
 0x213   :  { %2375 = vmatpush.bf16.msrb.mxu0 %v7026_v32  ;;  %2388 = vmatpush.bf16.msrb.mxu1 %v7027_v43 }
 0x214   :  { %2401 = vmatpush.bf16.msrb.mxu2 %v7028_v5  ;;  %2414 = vmatpush.bf16.msrb.mxu3 %v7029_v28  ;;  %v7048_v28 = vld [vmem:[#allocation34_spill] sm:$0xff] }
 0x217   :  { %2376 = vmatpush.bf16.msrb.mxu0 %v7030_v62  ;;  %2389 = vmatpush.bf16.msrb.mxu1 %v7031_v37  ;;  %v7047_v37 = vld [vmem:[#allocation16_spill] sm:$0xff] }
 0x218   :  { %2402 = vmatpush.bf16.msrb.mxu2 %v7032_v57  ;;  %2415 = vmatpush.bf16.msrb.mxu3 %v7033_v51  ;;  %v7044_v51 = vld [vmem:[#allocation76_spill] sm:$0xff]  ;;  %v7046_v57 = vld [vmem:[#allocation15_spill] sm:$0xff] }
 0x21b   :  { %2377 = vmatpush.bf16.msrb.mxu0 %v7034_v55  ;;  %2390 = vmatpush.bf16.msrb.mxu1 %v7035_v41  ;;  %v7045_v55 = vld [vmem:[#allocation78_spill] sm:$0xff] }
 0x21c   :  { %2403 = vmatpush.bf16.msrb.mxu2 %v7036_v24  ;;  %2416 = vmatpush.bf16.msrb.mxu3 %v7037_v16 }
 0x21f   :  { %2378 = vmatpush.bf16.msrb.mxu0 %v7038_v15  ;;  %2391 = vmatpush.bf16.msrb.mxu1 %v7039_v6 }
 0x220   :  { %2404 = vmatpush.bf16.msrb.mxu2 %v7040_v20  ;;  %2417 = vmatpush.bf16.msrb.mxu3 %v7041_v46 }
 0x223   :  { %2379 = vmatpush.bf16.msrb.mxu0 %v7042_v38  ;;  %2392 = vmatpush.bf16.msrb.mxu1 %v7043_v48 }
 0x224   :  { %2405 = vmatpush.bf16.msrb.mxu2 %v7044_v51  ;;  %2418 = vmatpush.bf16.msrb.mxu3 %v7045_v55 }
 0x261   :  { %v2072_v41 = vpop.f32.mrf.mxu0  ;;  %v2085_v24 = vpop.f32.mrf.mxu1 }
 0x262   :  { %v2115_v16 = vadd.f32 %v2072_v41, %v7046_v57  ;;  %v2116_v15 = vadd.f32 %v2085_v24, %v7047_v37 }
 0x264   :  { %v4736_v62 = vmul.f32 -1.442695, %v2115_v16  ;;  %v4737_v6 = vmul.f32 -1.442695, %v2116_v15  ;;  %v7050_v15 = vld [vmem:[#allocation105_spill] sm:$0xff] }
 0x266   :  { %5094 = vpow2.f32 %v4736_v62  ;;  %v7049_v62 = vld [vmem:[#allocation104_spill] sm:$0xff] }
 0x267   :  { %5096 = vpow2.f32 %v4737_v6 }
 0x268   :  { %v2098_v20 = vpop.f32.mrf.mxu2  ;;  %v2111_v46 = vpop.f32.mrf.mxu3 }
 0x269   :  { %v2118_v38 = vadd.f32 %v2111_v46, %v7048_v28  ;;  %v2074_v5 = vpop.f32.mrf.mxu0  ;;  %v2087_v48 = vpop.f32.mrf.mxu1  ;;  %v7051_v28 = vld [vmem:[#allocation33_spill] sm:$0xff] }
 0x26a   :  { %v2117_v5 = vadd.f32 %v2098_v20, %v7051_v28  ;;  %v7052_v28 = vld [vmem:[#allocation127_spill] sm:$0xff] }
 0x26b   :  { %v4738_v43 = vmul.f32 -1.442695, %v2118_v38 }
 0x26c   :  { %v5095_v51 = vpop.eup %5094 }
 0x26d   :  { %v5097_v32 = vpop.eup %5096  ;;  %v2183_v55 = vadd.f32 1.0, %v5095_v51  ;;  %5098 = vpow2.f32 %v4738_v43 }
 0x26e   :  { %v2202_v18 = vadd.f32 1.0, %v5097_v32 }
 0x26f   :  { %5100 = vrcp.f32 %v2183_v55  ;;  %v2193_v39 = vand.u32 2147483647, %v2183_v55  ;;  %v2195_v36 = vand.u32 2147483648, %v2183_v55  ;;  %vm2189_vm11 = vweird.f32 %v2183_v55 }
 0x270   :  { %5102 = vrcp.f32 %v2202_v18  ;;  %v2100_v57 = vpop.f32.mrf.mxu2  ;;  %v2113_v37 = vpop.f32.mrf.mxu3  ;;  %vm2208_vm10 = vweird.f32 %v2202_v18 }
 0x271   :  { %vm2194_vm13 = vcmp.eq.f32.partialorder %v2193_v39, 8.507059e+37 }
 0x272   :  { %v2133_v41 = vpop.f32.mrf.mxu0  ;;  %v2146_v24 = vpop.f32.mrf.mxu1 }
 0x273   :  { %v2176_v16 = vadd.f32 %v2133_v41, %v7049_v62  ;;  %v2177_v6 = vadd.f32 %v2146_v24, %v7050_v15  ;;  %v5099_v58 = vpop.eup %5098  ;;  %v2214_v15 = vand.u32 2147483648, %v2202_v18 }
 0x274   :  { %v6221_v48 = vadd.f32 1.0, %v5099_v58 }
 0x275   :  { %v4739_v46 = vmul.f32 -1.442695, %v2176_v16  ;;  %v5101_v38 = vpop.eup %5100  ;;  %v4740_v51 = vmul.f32 -1.442695, %v2177_v6  ;;  %v2212_v6 = vand.u32 2147483647, %v2202_v18 }
 0x276   :  { %v5103_v43 = vpop.eup %5102  ;;  %v2185_v32 = vmul.f32 %v5101_v38, %v2183_v55  ;;  %5104 = vrcp.f32 %v6221_v48  ;;  %vm2190_vm8 = vweird.f32 %v5101_v38  ;;  %vm2228_vm1 = vweird.f32 %v6221_v48 }
 0x277   :  { %v2204_v57 = vmul.f32 %v5103_v43, %v2202_v18  ;;  %5106 = vtanh.f32 %v2117_v5  ;;  %vm2209_vm9 = vweird.f32 %v5103_v43  ;;  %vm2191_vm12 = vmor %vm2189_vm11, %vm2190_vm8  ;;  %vm2213_vm15 = vcmp.eq.f32.partialorder %v2212_v6, 8.507059e+37  ;;  %v7053_v6 = vld [vmem:[#allocation126_spill] sm:$0xff] }
 0x278   :  { %v2186_v37 = vsub.f32 1.0, %v2185_v32  ;;  %5108 = vpow2.f32 %v4739_v46  ;;  %vm2210_vm14 = vmor %vm2208_vm10, %vm2209_vm9 }
 0x279   :  { %v2159_v41 = vpop.f32.mrf.mxu2  ;;  %v2172_v62 = vpop.f32.mrf.mxu3  ;;  %v2205_v24 = vsub.f32 1.0, %v2204_v57  ;;  %5110 = vpow2.f32 %v4740_v51  ;;  %v2196_v57 = vor.u32 1.1754944e-38, %v2195_v36 }
 0x27a   :  { %v2135_v58 = vpop.f32.mrf.mxu0  ;;  %v2148_v20 = vpop.f32.mrf.mxu1  ;;  %v2187_v16 = vmul.f32 %v5101_v38, %v2186_v37  ;;  %v2179_v40 = vadd.f32 %v2172_v62, %v7052_v28  ;;  %v2215_v37 = vor.u32 1.1754944e-38, %v2214_v15 }
 0x27b   :  { %v2206_v19 = vmul.f32 %v5103_v43, %v2205_v24 }
 0x27c   :  { %v5105_v50 = vpop.eup %5104  ;;  %v2188_v5 = vadd.f32 %v5101_v38, %v2187_v16  ;;  %v4741_v46 = vmul.f32 -1.442695, %v2179_v40 }
 0x27d   :  { %v5107_v32 = vpop.eup %5106  ;;  %v2207_v61 = vadd.f32 %v5103_v43, %v2206_v19  ;;  %v2224_v51 = vmul.f32 %v5105_v50, %v6221_v48  ;;  %vm2229_vm0 = vweird.f32 %v5105_v50 }
 0x27e   :  { %v5109_v58 = vpop.eup %5108  ;;  %v2192_v20 = vsel %vm2191_vm12, %v5101_v38, %v2188_v5  ;;  %5112 = vpow2.f32 %v4741_v46  ;;  %vm2230_vm2 = vmor %vm2228_vm1, %vm2229_vm0 }
 0x27f   :  { %v5111_v62 = vpop.eup %5110  ;;  %v2197_v24 = vsel %vm2194_vm13, %v2196_v57, %v2192_v20  ;;  %v2211_v28 = vsel %vm2210_vm14, %v5103_v43, %v2207_v61  ;;  %v2225_v18 = vsub.f32 1.0, %v2224_v51  ;;  %v2246_v16 = vadd.f32 1.0, %v5109_v58 }
 0x280   :  { %v2216_v55 = vsel %vm2213_vm15, %v2215_v37, %v2211_v28  ;;  %v2239_v40 = vmul.f32 %v5107_v32, %v2197_v24  ;;  %v2265_v21 = vadd.f32 1.0, %v5111_v62  ;;  %v2234_v61 = vand.u32 2147483648, %v6221_v48 }
 0x281   :  { %v2161_v60 = vpop.f32.mrf.mxu2  ;;  %v2174_v39 = vpop.f32.mrf.mxu3  ;;  %v2238_v19 = vmul.f32 %v2216_v55, %v6129_v54  ;;  %v2226_v36 = vmul.f32 %v5105_v50, %v2225_v18  ;;  %5114 = vrcp.f32 %v2246_v16  ;;  %v2178_v54 = vadd.f32 %v2159_v41, %v7053_v6 }
 0x282   :  { %5116 = vrcp.f32 %v2265_v21  ;;  %v2232_v60 = vand.u32 2147483647, %v6221_v48  ;;  %v2235_v51 = vor.u32 1.1754944e-38, %v2234_v61  ;;  %v2277_v24 = vand.u32 2147483648, %v2265_v21 }
 0x283   :  { %v6227_v42 = vadd.f32 %v2239_v40, %v2238_v19  ;;  %v2227_v15 = vadd.f32 %v5105_v50, %v2226_v36  ;;  %v2258_v28 = vand.u32 2147483648, %v2246_v16  ;;  %v2256_v41 = vand.u32 2147483647, %v2246_v16 }
 0x284   :  { %v5113_v38 = vpop.eup %5112  ;;  %vm2233_vm3 = vcmp.eq.f32.partialorder %v2232_v60, 8.507059e+37  ;;  %v2275_v19 = vand.u32 2147483647, %v2265_v21  ;;  %vm2252_vm6 = vweird.f32 %v2246_v16  ;;  %vm2271_vm7 = vweird.f32 %v2265_v21 }
 0x285   :  { %5118 = vtanh.f32 %v6227_v42  ;;  %v6231_v43 = vadd.f32 1.0, %v5113_v38  ;;  %v2231_v57 = vsel %vm2230_vm2, %v5105_v50, %v2227_v15  ;;  %v2259_v15 = vor.u32 1.1754944e-38, %v2258_v28 }
 0x286   :  { %v2236_v18 = vsel %vm2233_vm3, %v2235_v51, %v2231_v57  ;;  %v2278_v6 = vor.u32 1.1754944e-38, %v2277_v24  ;;  %vm2257_vm10 = vcmp.eq.f32.partialorder %v2256_v41, 8.507059e+37  ;;  %vm2276_vm11 = vcmp.eq.f32.partialorder %v2275_v19, 8.507059e+37  ;;  %v7054_v41 = vld [vmem:[#allocation38_spill] sm:$0xff] }
 0x287   :  { %v5115_v5 = vpop.eup %5114  ;;  %5120 = vrcp.f32 %v6231_v43  ;;  %vm2291_vm13 = vweird.f32 %v6231_v43  ;;  %v7058_v19 = vld [vmem:[#allocation42_spill] sm:$0xff] }
 0x288   :  { %v5117_v46 = vpop.eup %5116  ;;  %v2248_v32 = vmul.f32 %v5115_v5, %v2246_v16  ;;  %5122 = vtanh.f32 %v2178_v54  ;;  %vm2253_vm4 = vweird.f32 %v5115_v5 }
 0x289   :  { %v2267_v58 = vmul.f32 %v5117_v46, %v2265_v21  ;;  %vm2272_vm5 = vweird.f32 %v5117_v46  ;;  %vm2254_vm8 = vmor %vm2252_vm6, %vm2253_vm4 }
 0x28a   :  { %v2249_v37 = vsub.f32 1.0, %v2248_v32  ;;  %vm2273_vm9 = vmor %vm2271_vm7, %vm2272_vm5 }
 0x28b   :  { %v5119_v20 = vpop.eup %5118  ;;  %v2268_v62 = vsub.f32 1.0, %v2267_v58 }
 0x28c   :  { %v2250_v48 = vmul.f32 %v5115_v5, %v2249_v37  ;;  %v2242_v55 = vmul.f32 %v5119_v20, %v2236_v18  ;;  %v2297_v20 = vand.u32 2147483648, %v6231_v43 }
 0x28d   :  { %v5121_v40 = vpop.eup %5120  ;;  %v2269_v39 = vmul.f32 %v5117_v46, %v2268_v62 }
 0x28e   :  { %v2251_v36 = vadd.f32 %v5115_v5, %v2250_v48  ;;  %v2287_v50 = vmul.f32 %v5121_v40, %v6231_v43  ;;  %v2310_v38 = vpack.c.bf16 %v2242_v55, %v2242_v55  ;;  %v5123_v60 = vpop.eup %5122  ;;  %vm2292_vm12 = vweird.f32 %v5121_v40  ;;  %v7055_v55 = vld [vmem:[#allocation39_spill] sm:$0xff] }
 0x28f   :  { %v2270_v61 = vadd.f32 %v5117_v46, %v2269_v39  ;;  %vm2293_vm14 = vmor %vm2291_vm13, %vm2292_vm12  ;;  %v2298_v24 = vor.u32 1.1754944e-38, %v2297_v20  ;;  %v7057_v39 = vld [vmem:[#allocation41_spill] sm:$0xff]  ;;  %v7075_v20 = vld [vmem:[#allocation66_spill] sm:$0xff] }
 0x290   :  { %v2255_v54 = vsel %vm2254_vm8, %v5115_v5, %v2251_v36  ;;  %v2288_v32 = vsub.f32 1.0, %v2287_v50  ;;  %2319 = vmatmul.bf16.vlgmr.msra.gmra.mxu0 %v2310_v38  ;;  %2332 = vmatmul.bf16.vlgmr.msra.gmra.mxu1 %v2310_v38  ;;  %v7059_v36 = vld [vmem:[#allocation44_spill] sm:$0xff]  ;;  %v7060_v50 = vld [vmem:[#allocation45_spill] sm:$0xff] }
 0x291   :  { %v2260_v57 = vsel %vm2257_vm10, %v2259_v15, %v2255_v54  ;;  %v2274_v51 = vsel %vm2273_vm9, %v5117_v46, %v2270_v61  ;;  %2345 = vmatmul.bf16.vlgmr.msra.gmra.mxu2 %v2310_v38  ;;  %2358 = vmatmul.bf16.vlgmr.msra.gmra.mxu3 %v2310_v38  ;;  %v7061_v38 = vld [vmem:[#allocation47_spill] sm:$0xff]  ;;  %v7062_v15 = vld [vmem:[#allocation48_spill] sm:$0xff]  ;;  %v7063_v61 = vld [vmem:[#allocation49_spill] sm:$0xff] }
 0x292   :  { %v2279_v16 = vsel %vm2276_vm11, %v2278_v6, %v2274_v51  ;;  %v2302_v58 = vmul.f32 %v5123_v60, %v2260_v57  ;;  %v2289_v37 = vmul.f32 %v5121_v40, %v2288_v32  ;;  %2559 = vmatpush.bf16.msra.mxu0 %v5630_v47  ;;  %2572 = vmatpush.bf16.msra.mxu1 %v5632_v53  ;;  %v7064_v60 = vld [vmem:[#allocation50_spill] sm:$0xff]  ;;  %v7065_v6 = vld [vmem:[#allocation51_spill] sm:$0xff]  ;;  %v7066_v54 = vld [vmem:[#allocation53_spill] sm:$0xff] }
 0x293   :  { %v2301_v21 = vmul.f32 %v2279_v16, %v6147_v14  ;;  %2585 = vmatpush.bf16.msra.mxu2 %v5663_v27  ;;  %2598 = vmatpush.bf16.msra.mxu3 %v5642_v2  ;;  %v2295_v14 = vand.u32 2147483647, %v6231_v43  ;;  %v7067_v32 = vld [vmem:[#allocation54_spill] sm:$0xff]  ;;  %v7068_v57 = vld [vmem:[#allocation56_spill] sm:$0xff]  ;;  %v7069_v51 = vld [vmem:[#allocation57_spill] sm:$0xff] }
 0x294   :  { %v2290_v46 = vadd.f32 %v5121_v40, %v2289_v37  ;;  %v7070_v16 = vld [vmem:[#allocation58_spill] sm:$0xff]  ;;  %v7072_v37 = vld [vmem:[#allocation60_spill] sm:$0xff] }
 0x295   :  { %v6243_v5 = vadd.f32 %v2302_v58, %v2301_v21  ;;  %vm2296_vm15 = vcmp.eq.f32.partialorder %v2295_v14, 8.507059e+37  ;;  %v7071_v58 = vld [vmem:[#allocation59_spill] sm:$0xff] }
 0x296   :  { %2560 = vmatpush.bf16.msra.mxu0 %v5644_v8  ;;  %2573 = vmatpush.bf16.msra.mxu1 %v5646_v9  ;;  %v2294_v62 = vsel %vm2293_vm14, %v5121_v40, %v2290_v46  ;;  %v7056_v40 = vld [vmem:[#allocation40_spill] sm:$0xff]  ;;  %v7073_v21 = vld [vmem:[#allocation63_spill] sm:$0xff]  ;;  %v7074_v46 = vld [vmem:[#allocation65_spill] sm:$0xff] }
 0x297   :  { %5124 = vtanh.f32 %v6243_v5  ;;  %2586 = vmatpush.bf16.msra.mxu2 %v5679_v0  ;;  %2599 = vmatpush.bf16.msra.mxu3 %v5660_v25  ;;  %v2299_v18 = vsel %vm2296_vm15, %v2298_v24, %v2294_v62  ;;  %v7076_v14 = vld [vmem:[#allocation67_spill] sm:$0xff]  ;;  %v7077_v62 = vld [vmem:[#allocation68_spill] sm:$0xff]  ;;  %v7078_v24 = vld [vmem:[#allocation69_spill] sm:$0xff] }
 0x29a   :  { %2561 = vmatpush.bf16.msra.mxu0 %v5666_v31  ;;  %2574 = vmatpush.bf16.msra.mxu1 %v5669_v35 }
 0x29b   :  { %2587 = vmatpush.bf16.msra.mxu2 %v5694_v22  ;;  %2600 = vmatpush.bf16.msra.mxu3 %v5681_v3 }
 0x29d   :  { %v5125_v28 = vpop.eup %5124 }
 0x29e   :  { %v2305_v48 = vmul.f32 %v5125_v28, %v2299_v18  ;;  %2562 = vmatpush.bf16.msra.mxu0 %v5687_v11  ;;  %2575 = vmatpush.bf16.msra.mxu1 %v5689_v12  ;;  %v7079_v28 = vld [vmem:[#allocation70_spill] sm:$0xff]  ;;  %v7080_v18 = vld [vmem:[#allocation72_spill] sm:$0xff] }
 0x29f   :  { %2588 = vmatpush.bf16.msra.mxu2 %v5711_v52  ;;  %2601 = vmatpush.bf16.msra.mxu3 %v5704_v45 }
 0x2a0   :  { %v2371_v43 = vpack.c.bf16 %v2305_v48, %v2305_v48  ;;  %v7081_v48 = vld [vmem:[#allocation74_spill] sm:$0xff] }
 0x2a2   :  { %2380 = vmatmul.bf16.vlgmr.msrb.gmra.mxu0 %v2371_v43  ;;  %2393 = vmatmul.bf16.vlgmr.msrb.gmra.mxu1 %v2371_v43 }
 0x2a3   :  { %2406 = vmatmul.bf16.vlgmr.msrb.gmra.mxu2 %v2371_v43  ;;  %2419 = vmatmul.bf16.vlgmr.msrb.gmra.mxu3 %v2371_v43  ;;  %v7082_v43 = vld [vmem:[#allocation75_spill] sm:$0xff] }
 0x2a4   :  { %2563 = vmatpush.bf16.msra.mxu0 %v5715_v63  ;;  %2576 = vmatpush.bf16.msra.mxu1 %v5718_v10 }
 0x2a5   :  { %2589 = vmatpush.bf16.msra.mxu2 %v5720_v13  ;;  %2602 = vmatpush.bf16.msra.mxu3 %v5724_v26 }
 0x2a8   :  { %2564 = vmatpush.bf16.msra.mxu0 %v5734_v56  ;;  %2577 = vmatpush.bf16.msra.mxu1 %v5736_v7 }
 0x2a9   :  { %2590 = vmatpush.bf16.msra.mxu2 %v5738_v44  ;;  %2603 = vmatpush.bf16.msra.mxu3 %v5741_v49 }
 0x2ac   :  { %2565 = vmatpush.bf16.msra.mxu0 %v5746_v33  ;;  %2578 = vmatpush.bf16.msra.mxu1 %v5749_v17 }
 0x2ad   :  { %2591 = vmatpush.bf16.msra.mxu2 %v5751_v30  ;;  %2604 = vmatpush.bf16.msra.mxu3 %v5755_v23 }
 0x2b0   :  { %2566 = vmatpush.bf16.msra.mxu0 %v5765_v59  ;;  %2579 = vmatpush.bf16.msra.mxu1 %v5769_v1 }
 0x2b1   :  { %2592 = vmatpush.bf16.msra.mxu2 %v5771_v4  ;;  %2605 = vmatpush.bf16.msra.mxu3 %v5775_v29 }
 0x2b4   :  { %2620 = vmatpush.bf16.msrb.mxu0 %v5779_v34  ;;  %2633 = vmatpush.bf16.msrb.mxu1 %v7054_v41 }
 0x2b5   :  { %2646 = vmatpush.bf16.msrb.mxu2 %v7055_v55  ;;  %2659 = vmatpush.bf16.msrb.mxu3 %v7056_v40 }
 0x2b8   :  { %2621 = vmatpush.bf16.msrb.mxu0 %v7057_v39  ;;  %2634 = vmatpush.bf16.msrb.mxu1 %v7058_v19 }
 0x2b9   :  { %2647 = vmatpush.bf16.msrb.mxu2 %v7059_v36  ;;  %2660 = vmatpush.bf16.msrb.mxu3 %v7060_v50  ;;  %v7096_v50 = vld [vmem:[#allocation35_spill] sm:$0xff] }
 0x2bc   :  { %2622 = vmatpush.bf16.msrb.mxu0 %v7061_v38  ;;  %2635 = vmatpush.bf16.msrb.mxu1 %v7062_v15  ;;  %v7095_v15 = vld [vmem:[#allocation124_spill] sm:$0xff] }
 0x2bd   :  { %2648 = vmatpush.bf16.msrb.mxu2 %v7063_v61  ;;  %2661 = vmatpush.bf16.msrb.mxu3 %v7064_v60  ;;  %v7088_v60 = vld [vmem:[#allocation82_spill] sm:$0xff]  ;;  %v7089_v61 = vld [vmem:[#allocation99_spill] sm:$0xff] }
 0x2c0   :  { %2623 = vmatpush.bf16.msrb.mxu0 %v7065_v6  ;;  %2636 = vmatpush.bf16.msrb.mxu1 %v7066_v54 }
 0x2c1   :  { %2649 = vmatpush.bf16.msrb.mxu2 %v7067_v32  ;;  %2662 = vmatpush.bf16.msrb.mxu3 %v7068_v57  ;;  %v7087_v57 = vld [vmem:[#allocation43_spill] sm:$0xff] }
 0x2c4   :  { %2624 = vmatpush.bf16.msrb.mxu0 %v7069_v51  ;;  %2637 = vmatpush.bf16.msrb.mxu1 %v7070_v16  ;;  %v7086_v16 = vld [vmem:[#allocation18_spill] sm:$0xff] }
 0x2c5   :  { %2650 = vmatpush.bf16.msrb.mxu2 %v7071_v58  ;;  %2663 = vmatpush.bf16.msrb.mxu3 %v7072_v37  ;;  %v7083_v37 = vld [vmem:[#allocation76_spill] sm:$0xff]  ;;  %v7085_v58 = vld [vmem:[#allocation17_spill] sm:$0xff] }
 0x2c8   :  { %2625 = vmatpush.bf16.msrb.mxu0 %v7073_v21  ;;  %2638 = vmatpush.bf16.msrb.mxu1 %v7074_v46  ;;  %v7084_v21 = vld [vmem:[#allocation78_spill] sm:$0xff] }
 0x2c9   :  { %2651 = vmatpush.bf16.msrb.mxu2 %v7075_v20  ;;  %2664 = vmatpush.bf16.msrb.mxu3 %v7076_v14 }
 0x2cc   :  { %2626 = vmatpush.bf16.msrb.mxu0 %v7077_v62  ;;  %2639 = vmatpush.bf16.msrb.mxu1 %v7078_v24 }
 0x2cd   :  { %2652 = vmatpush.bf16.msrb.mxu2 %v7079_v28  ;;  %2665 = vmatpush.bf16.msrb.mxu3 %v7080_v18 }
 0x2d0   :  { %2627 = vmatpush.bf16.msrb.mxu0 %v7081_v48  ;;  %2640 = vmatpush.bf16.msrb.mxu1 %v7082_v43 }
 0x2d1   :  { %2653 = vmatpush.bf16.msrb.mxu2 %v7083_v37  ;;  %2666 = vmatpush.bf16.msrb.mxu3 %v7084_v21 }
 0x30d   :  { %v2320_v46 = vpop.f32.mrf.mxu0  ;;  %v2333_v20 = vpop.f32.mrf.mxu1 }
 0x30e   :  { %v2363_v14 = vadd.f32 %v2320_v46, %v7085_v58  ;;  %v2364_v62 = vadd.f32 %v2333_v20, %v7086_v16  ;;  %v1154_v58 = vadd.f32 %v7089_v61, %v7088_v60  ;;  %v7090_v46 = vld [vmem:[#allocation86_spill] sm:$0xff] }
 0x30f   :  { %v7091_v16 = vld [vmem:[#allocation102_spill] sm:$0xff] }
 0x310   :  { %v4742_v51 = vmul.f32 -1.442695, %v2363_v14  ;;  %v4743_v24 = vmul.f32 -1.442695, %v2364_v62  ;;  %v1212_v20 = vadd.f32 %v7091_v16, %v7090_v46 }
 0x312   :  { %5126 = vpow2.f32 %v4742_v51 }
 0x313   :  { %5128 = vpow2.f32 %v4743_v24  ;;  %v7092_v24 = vld [vmem:[#allocation100_spill] sm:$0xff] }
 0x314   :  { %v2346_v28 = vpop.f32.mrf.mxu2  ;;  %v2359_v18 = vpop.f32.mrf.mxu3 }
 0x315   :  { %v2366_v48 = vadd.f32 %v2359_v18, %v7087_v57  ;;  %v2322_v32 = vpop.f32.mrf.mxu0  ;;  %v2335_v43 = vpop.f32.mrf.mxu1  ;;  %v1183_v57 = vadd.f32 %v7092_v24, %v1154_v58  ;;  %v2365_v61 = vadd.f32 %v2346_v28, %v7096_v50  ;;  %v7097_v58 = vld [vmem:[#allocation125_spill] sm:$0xff] }
 0x316   :  { %v7093_v32 = vld [vmem:[#allocation103_spill] sm:$0xff]  ;;  %v7094_v43 = vld [vmem:[#allocation108_spill] sm:$0xff] }
 0x317   :  { %v4744_v54 = vmul.f32 -1.442695, %v2366_v48  ;;  %v1241_v18 = vadd.f32 %v7093_v32, %v1212_v20 }
 0x318   :  { %v5127_v37 = vpop.eup %5126 }
 0x319   :  { %v5129_v6 = vpop.eup %5128  ;;  %v2431_v21 = vadd.f32 1.0, %v5127_v37  ;;  %5130 = vpow2.f32 %v4744_v54  ;;  %v1328_v37 = vadd.f32 %v7095_v15, %v7094_v43 }
 0x31a   :  { %v2450_v14 = vadd.f32 1.0, %v5129_v6 }
 0x31b   :  { %5132 = vrcp.f32 %v2431_v21  ;;  %v2441_v39 = vand.u32 2147483647, %v2431_v21  ;;  %v2443_v50 = vand.u32 2147483648, %v2431_v21  ;;  %vm2437_vm2 = vweird.f32 %v2431_v21 }
 0x31c   :  { %5134 = vrcp.f32 %v2450_v14  ;;  %v2348_v51 = vpop.f32.mrf.mxu2  ;;  %v2361_v62 = vpop.f32.mrf.mxu3  ;;  %v2462_v19 = vand.u32 2147483648, %v2450_v14  ;;  %vm2456_vm3 = vweird.f32 %v2450_v14 }
 0x31d   :  { %v1357_v62 = vadd.f32 %v7097_v58, %v1328_v37  ;;  %vm2442_vm6 = vcmp.eq.f32.partialorder %v2441_v39, 8.507059e+37  ;;  %v7099_v39 = vld [vmem:[#allocation121_spill] sm:$0xff] }
 0x31f   :  { %v5131_v48 = vpop.eup %5130  ;;  %v2381_v54 = vpop.f32.mrf.mxu0 }
 0x320   :  { %v2394_v38 = vpop.f32.mrf.mxu1  ;;  %v6321_v60 = vadd.f32 1.0, %v5131_v48  ;;  %v2424_v16 = vadd.f32 %v2381_v54, %v1183_v57  ;;  %v2460_v57 = vand.u32 2147483647, %v2450_v14 }
 0x321   :  { %v2425_v6 = vadd.f32 %v2394_v38, %v1241_v18  ;;  %v5133_v46 = vpop.eup %5132 }
 0x322   :  { %v5135_v36 = vpop.eup %5134  ;;  %v2433_v51 = vmul.f32 %v5133_v46, %v2431_v21  ;;  %5136 = vrcp.f32 %v6321_v60  ;;  %v4745_v32 = vmul.f32 -1.442695, %v2424_v16  ;;  %vm2438_vm0 = vweird.f32 %v5133_v46 }
 0x323   :  { %v2452_v20 = vmul.f32 %v5135_v36, %v2450_v14  ;;  %5138 = vtanh.f32 %v2365_v61  ;;  %v4746_v15 = vmul.f32 -1.442695, %v2425_v6  ;;  %vm2457_vm1 = vweird.f32 %v5135_v36  ;;  %vm2439_vm4 = vmor %vm2437_vm2, %vm2438_vm0 }
 0x324   :  { %v2434_v24 = vsub.f32 1.0, %v2433_v51  ;;  %5140 = vpow2.f32 %v4745_v32  ;;  %v2444_v16 = vor.u32 1.1754944e-38, %v2443_v50  ;;  %vm2458_vm5 = vmor %vm2456_vm3, %vm2457_vm1  ;;  %v2463_v32 = vor.u32 1.1754944e-38, %v2462_v19 }
 0x325   :  { %v2453_v43 = vsub.f32 1.0, %v2452_v20  ;;  %5142 = vpow2.f32 %v4746_v15  ;;  %vm2461_vm7 = vcmp.eq.f32.partialorder %v2460_v57, 8.507059e+37  ;;  %vm2476_vm9 = vweird.f32 %v6321_v60 }
 0x326   :  { %v2435_v28 = vmul.f32 %v5133_v46, %v2434_v24  ;;  %v2407_v38 = vpop.f32.mrf.mxu2  ;;  %v2420_v18 = vpop.f32.mrf.mxu3 }
 0x327   :  { %v2454_v48 = vmul.f32 %v5135_v36, %v2453_v43  ;;  %v2427_v54 = vadd.f32 %v2420_v18, %v1357_v62  ;;  %v2383_v37 = vpop.f32.mrf.mxu0 }
 0x328   :  { %v2396_v58 = vpop.f32.mrf.mxu1  ;;  %v5137_v51 = vpop.eup %5136  ;;  %v2436_v61 = vadd.f32 %v5133_v46, %v2435_v28 }
 0x329   :  { %v2455_v6 = vadd.f32 %v5135_v36, %v2454_v48  ;;  %v2472_v20 = vmul.f32 %v5137_v51, %v6321_v60  ;;  %v5139_v24 = vpop.eup %5138  ;;  %v4747_v43 = vmul.f32 -1.442695, %v2427_v54  ;;  %vm2477_vm8 = vweird.f32 %v5137_v51 }
 0x32a   :  { %v2440_v40 = vsel %vm2439_vm4, %v5133_v46, %v2436_v61  ;;  %v5141_v37 = vpop.eup %5140  ;;  %v7098_v46 = vld [vmem:[#allocation106_spill] sm:$0xff]  ;;  %vm2478_vm10 = vmor %vm2476_vm9, %vm2477_vm8 }
 0x32b   :  { %v2445_v15 = vsel %vm2442_vm6, %v2444_v16, %v2440_v40  ;;  %v2459_v62 = vsel %vm2458_vm5, %v5135_v36, %v2455_v6  ;;  %v2473_v18 = vsub.f32 1.0, %v2472_v20  ;;  %5144 = vpow2.f32 %v4747_v43  ;;  %v5143_v14 = vpop.eup %5142  ;;  %v7100_v61 = vld [vmem:[#allocation122_spill] sm:$0xff] }
 0x32c   :  { %v2464_v28 = vsel %vm2461_vm7, %v2463_v32, %v2459_v62  ;;  %v2487_v21 = vmul.f32 %v5139_v24, %v2445_v15  ;;  %v2494_v58 = vadd.f32 1.0, %v5141_v37  ;;  %v6328_v55 = vadd.f32 1.0, %v5143_v14 }
 0x32d   :  { %v2486_v50 = vmul.f32 %v2464_v28, %v6227_v42  ;;  %v2474_v48 = vmul.f32 %v5137_v51, %v2473_v18  ;;  %v1270_v54 = vadd.f32 %v7099_v39, %v7098_v46  ;;  %v2482_v36 = vand.u32 2147483648, %v6321_v60  ;;  %v7129_v46 = vld [vmem:[#allocation75_spill] sm:$0xff] }
 0x32e   :  { %v2409_v41 = vpop.f32.mrf.mxu2  ;;  %v2422_v19 = vpop.f32.mrf.mxu3  ;;  %5146 = vrcp.f32 %v2494_v58  ;;  %vm2500_vm14 = vweird.f32 %v2494_v58  ;;  %vm2519_vm15 = vweird.f32 %v6328_v55 }
 0x32f   :  { %v6332_v40 = vadd.f32 %v2487_v21, %v2486_v50  ;;  %5148 = vrcp.f32 %v6328_v55  ;;  %v2475_v42 = vadd.f32 %v5137_v51, %v2474_v48  ;;  %v2480_v41 = vand.u32 2147483647, %v6321_v60 }
 0x330   :  { %v1299_v16 = vadd.f32 %v7100_v61, %v1270_v54  ;;  %v2483_v32 = vor.u32 1.1754944e-38, %v2482_v36  ;;  %v2504_v50 = vand.u32 2147483647, %v2494_v58  ;;  %v2506_v48 = vand.u32 2147483648, %v2494_v58 }
 0x331   :  { %5150 = vtanh.f32 %v6332_v40  ;;  %v5145_v57 = vpop.eup %5144  ;;  %v2479_v20 = vsel %vm2478_vm10, %v5137_v51, %v2475_v42  ;;  %vm2481_vm11 = vcmp.eq.f32.partialorder %v2480_v41, 8.507059e+37  ;;  %v2525_v51 = vand.u32 2147483648, %v6328_v55 }
 0x332   :  { %v6340_v6 = vadd.f32 1.0, %v5145_v57  ;;  %v2426_v43 = vadd.f32 %v2407_v38, %v1299_v16  ;;  %v2484_v28 = vsel %vm2481_vm11, %v2483_v32, %v2479_v20  ;;  %v2523_v36 = vand.u32 2147483647, %v6328_v55 }
 0x333   :  { %v2507_v41 = vor.u32 1.1754944e-38, %v2506_v48  ;;  %v2526_v16 = vor.u32 1.1754944e-38, %v2525_v51  ;;  %vm2505_vm2 = vcmp.eq.f32.partialorder %v2504_v50, 8.507059e+37 }
 0x334   :  { %v5147_v24 = vpop.eup %5146  ;;  %5152 = vrcp.f32 %v6340_v6  ;;  %vm2524_vm3 = vcmp.eq.f32.partialorder %v2523_v36, 8.507059e+37  ;;  %vm2539_vm5 = vweird.f32 %v6340_v6  ;;  %v7105_v36 = vld [vmem:[#allocation42_spill] sm:$0xff] }
 0x335   :  { %v5149_v15 = vpop.eup %5148  ;;  %v2496_v62 = vmul.f32 %v5147_v24, %v2494_v58  ;;  %5154 = vtanh.f32 %v2426_v43  ;;  %vm2501_vm12 = vweird.f32 %v5147_v24 }
 0x336   :  { %v2515_v37 = vmul.f32 %v5149_v15, %v6328_v55  ;;  %vm2520_vm13 = vweird.f32 %v5149_v15  ;;  %vm2502_vm0 = vmor %vm2500_vm14, %vm2501_vm12 }
 0x337   :  { %v5151_v18 = vpop.eup %5150  ;;  %v2497_v21 = vsub.f32 1.0, %v2496_v62  ;;  %vm2521_vm1 = vmor %vm2519_vm15, %vm2520_vm13 }
 0x338   :  { %v2490_v60 = vmul.f32 %v5151_v18, %v2484_v28  ;;  %v2516_v14 = vsub.f32 1.0, %v2515_v37 }
 0x339   :  { %v2498_v19 = vmul.f32 %v5147_v24, %v2497_v21  ;;  %v2545_v21 = vand.u32 2147483648, %v6340_v6 }
 0x33a   :  { %v2558_v38 = vpack.c.bf16 %v2490_v60, %v2490_v60  ;;  %v5153_v39 = vpop.eup %5152  ;;  %v2517_v54 = vmul.f32 %v5149_v15, %v2516_v14 }
 0x33b   :  { %v2499_v42 = vadd.f32 %v5147_v24, %v2498_v19  ;;  %v2535_v57 = vmul.f32 %v5153_v39, %v6340_v6  ;;  %v5155_v58 = vpop.eup %5154  ;;  %vm2540_vm4 = vweird.f32 %v5153_v39  ;;  %v2546_v14 = vor.u32 1.1754944e-38, %v2545_v21  ;;  %v7101_v19 = vld [vmem:[#allocation38_spill] sm:$0xff]  ;;  %v7121_v21 = vld [vmem:[#allocation65_spill] sm:$0xff] }
 0x33c   :  { %2567 = vmatmul.bf16.vlgmr.msra.gmra.mxu0 %v2558_v38  ;;  %2580 = vmatmul.bf16.vlgmr.msra.gmra.mxu1 %v2558_v38  ;;  %v2518_v61 = vadd.f32 %v5149_v15, %v2517_v54  ;;  %vm2541_vm6 = vmor %vm2539_vm5, %vm2540_vm4  ;;  %v7104_v54 = vld [vmem:[#allocation41_spill] sm:$0xff] }
 0x33d   :  { %2593 = vmatmul.bf16.vlgmr.msra.gmra.mxu2 %v2558_v38  ;;  %2606 = vmatmul.bf16.vlgmr.msra.gmra.mxu3 %v2558_v38  ;;  %v2503_v20 = vsel %vm2502_vm0, %v5147_v24, %v2499_v42  ;;  %v2536_v32 = vsub.f32 1.0, %v2535_v57  ;;  %v7102_v38 = vld [vmem:[#allocation39_spill] sm:$0xff]  ;;  %v7106_v42 = vld [vmem:[#allocation44_spill] sm:$0xff]  ;;  %v7107_v57 = vld [vmem:[#allocation45_spill] sm:$0xff] }
 0x33e   :  { %2807 = vmatpush.bf16.msra.mxu0 %v5630_v47  ;;  %2820 = vmatpush.bf16.msra.mxu1 %v5632_v53  ;;  %v2508_v43 = vsel %vm2505_vm2, %v2507_v41, %v2503_v20  ;;  %v2522_v62 = vsel %vm2521_vm1, %v5149_v15, %v2518_v61  ;;  %v7108_v41 = vld [vmem:[#allocation47_spill] sm:$0xff]  ;;  %v7109_v61 = vld [vmem:[#allocation48_spill] sm:$0xff]  ;;  %v7111_v20 = vld [vmem:[#allocation50_spill] sm:$0xff] }
 0x33f   :  { %2833 = vmatpush.bf16.msra.mxu2 %v5663_v27  ;;  %2846 = vmatpush.bf16.msra.mxu3 %v5642_v2  ;;  %v2527_v55 = vsel %vm2524_vm3, %v2526_v16, %v2522_v62  ;;  %v2550_v18 = vmul.f32 %v5155_v58, %v2508_v43  ;;  %v2537_v37 = vmul.f32 %v5153_v39, %v2536_v32  ;;  %v7110_v16 = vld [vmem:[#allocation49_spill] sm:$0xff]  ;;  %v7112_v32 = vld [vmem:[#allocation51_spill] sm:$0xff]  ;;  %v7114_v43 = vld [vmem:[#allocation54_spill] sm:$0xff] }
 0x340   :  { %v2549_v28 = vmul.f32 %v2527_v55, %v6243_v5  ;;  %v2543_v5 = vand.u32 2147483647, %v6340_v6  ;;  %v7113_v58 = vld [vmem:[#allocation53_spill] sm:$0xff]  ;;  %v7115_v62 = vld [vmem:[#allocation56_spill] sm:$0xff] }
 0x341   :  { %v2538_v15 = vadd.f32 %v5153_v39, %v2537_v37  ;;  %v7116_v55 = vld [vmem:[#allocation57_spill] sm:$0xff]  ;;  %v7118_v37 = vld [vmem:[#allocation59_spill] sm:$0xff] }
 0x342   :  { %2808 = vmatpush.bf16.msra.mxu0 %v5644_v8  ;;  %2821 = vmatpush.bf16.msra.mxu1 %v5646_v9  ;;  %v6355_v24 = vadd.f32 %v2550_v18, %v2549_v28  ;;  %vm2544_vm7 = vcmp.eq.f32.partialorder %v2543_v5, 8.507059e+37  ;;  %v7117_v18 = vld [vmem:[#allocation58_spill] sm:$0xff]  ;;  %v7119_v28 = vld [vmem:[#allocation60_spill] sm:$0xff] }
 0x343   :  { %2834 = vmatpush.bf16.msra.mxu2 %v5679_v0  ;;  %2847 = vmatpush.bf16.msra.mxu3 %v5660_v25  ;;  %v2542_v60 = vsel %vm2541_vm6, %v5153_v39, %v2538_v15  ;;  %v7103_v39 = vld [vmem:[#allocation40_spill] sm:$0xff]  ;;  %v7120_v15 = vld [vmem:[#allocation63_spill] sm:$0xff]  ;;  %v7122_v5 = vld [vmem:[#allocation66_spill] sm:$0xff] }
 0x344   :  { %5156 = vtanh.f32 %v6355_v24  ;;  %v2547_v48 = vsel %vm2544_vm7, %v2546_v14, %v2542_v60  ;;  %v7123_v60 = vld [vmem:[#allocation67_spill] sm:$0xff]  ;;  %v7124_v14 = vld [vmem:[#allocation68_spill] sm:$0xff] }
 0x346   :  { %2809 = vmatpush.bf16.msra.mxu0 %v5666_v31  ;;  %2822 = vmatpush.bf16.msra.mxu1 %v5669_v35 }
 0x347   :  { %2835 = vmatpush.bf16.msra.mxu2 %v5694_v22  ;;  %2848 = vmatpush.bf16.msra.mxu3 %v5681_v3 }
 0x34a   :  { %2810 = vmatpush.bf16.msra.mxu0 %v5687_v11  ;;  %2823 = vmatpush.bf16.msra.mxu1 %v5689_v12  ;;  %v5157_v50 = vpop.eup %5156 }
 0x34b   :  { %2836 = vmatpush.bf16.msra.mxu2 %v5711_v52  ;;  %2849 = vmatpush.bf16.msra.mxu3 %v5704_v45  ;;  %v2553_v6 = vmul.f32 %v5157_v50, %v2547_v48  ;;  %v7125_v50 = vld [vmem:[#allocation69_spill] sm:$0xff]  ;;  %v7126_v48 = vld [vmem:[#allocation70_spill] sm:$0xff] }
 0x34d   :  { %v2619_v51 = vpack.c.bf16 %v2553_v6, %v2553_v6  ;;  %v7127_v6 = vld [vmem:[#allocation72_spill] sm:$0xff] }
 0x34e   :  { %2811 = vmatpush.bf16.msra.mxu0 %v5715_v63  ;;  %2824 = vmatpush.bf16.msra.mxu1 %v5718_v10 }
 0x34f   :  { %2837 = vmatpush.bf16.msra.mxu2 %v5720_v13  ;;  %2850 = vmatpush.bf16.msra.mxu3 %v5724_v26 }
 0x350   :  { %2628 = vmatmul.bf16.vlgmr.msrb.gmra.mxu0 %v2619_v51  ;;  %2641 = vmatmul.bf16.vlgmr.msrb.gmra.mxu1 %v2619_v51 }
 0x351   :  { %2654 = vmatmul.bf16.vlgmr.msrb.gmra.mxu2 %v2619_v51  ;;  %2667 = vmatmul.bf16.vlgmr.msrb.gmra.mxu3 %v2619_v51  ;;  %v7128_v51 = vld [vmem:[#allocation74_spill] sm:$0xff] }
 0x352   :  { %2812 = vmatpush.bf16.msra.mxu0 %v5734_v56  ;;  %2825 = vmatpush.bf16.msra.mxu1 %v5736_v7 }
 0x353   :  { %2838 = vmatpush.bf16.msra.mxu2 %v5738_v44  ;;  %2851 = vmatpush.bf16.msra.mxu3 %v5741_v49 }
 0x356   :  { %2813 = vmatpush.bf16.msra.mxu0 %v5746_v33  ;;  %2826 = vmatpush.bf16.msra.mxu1 %v5749_v17 }
 0x357   :  { %2839 = vmatpush.bf16.msra.mxu2 %v5751_v30  ;;  %2852 = vmatpush.bf16.msra.mxu3 %v5755_v23 }
 0x35a   :  { %2814 = vmatpush.bf16.msra.mxu0 %v5765_v59  ;;  %2827 = vmatpush.bf16.msra.mxu1 %v5769_v1 }
 0x35b   :  { %2840 = vmatpush.bf16.msra.mxu2 %v5771_v4  ;;  %2853 = vmatpush.bf16.msra.mxu3 %v5775_v29 }
 0x35e   :  { %2868 = vmatpush.bf16.msrb.mxu0 %v5779_v34  ;;  %2881 = vmatpush.bf16.msrb.mxu1 %v7101_v19 }
 0x35f   :  { %2894 = vmatpush.bf16.msrb.mxu2 %v7102_v38  ;;  %2907 = vmatpush.bf16.msrb.mxu3 %v7103_v39 }
 0x362   :  { %2869 = vmatpush.bf16.msrb.mxu0 %v7104_v54  ;;  %2882 = vmatpush.bf16.msrb.mxu1 %v7105_v36 }
 0x363   :  { %2895 = vmatpush.bf16.msrb.mxu2 %v7106_v42  ;;  %2908 = vmatpush.bf16.msrb.mxu3 %v7107_v57 }
 0x366   :  { %2870 = vmatpush.bf16.msrb.mxu0 %v7108_v41  ;;  %2883 = vmatpush.bf16.msrb.mxu1 %v7109_v61 }
 0x367   :  { %2896 = vmatpush.bf16.msrb.mxu2 %v7110_v16  ;;  %2909 = vmatpush.bf16.msrb.mxu3 %v7111_v20 }
 0x36a   :  { %2871 = vmatpush.bf16.msrb.mxu0 %v7112_v32  ;;  %2884 = vmatpush.bf16.msrb.mxu1 %v7113_v58 }
 0x36b   :  { %2897 = vmatpush.bf16.msrb.mxu2 %v7114_v43  ;;  %2910 = vmatpush.bf16.msrb.mxu3 %v7115_v62  ;;  %v7134_v62 = vld [vmem:[#allocation52_spill] sm:$0xff] }
 0x36e   :  { %2872 = vmatpush.bf16.msrb.mxu0 %v7116_v55  ;;  %2885 = vmatpush.bf16.msrb.mxu1 %v7117_v18  ;;  %v7133_v18 = vld [vmem:[#allocation20_spill] sm:$0xff] }
 0x36f   :  { %2898 = vmatpush.bf16.msrb.mxu2 %v7118_v37  ;;  %2911 = vmatpush.bf16.msrb.mxu3 %v7119_v28  ;;  %v7130_v28 = vld [vmem:[#allocation76_spill] sm:$0xff]  ;;  %v7132_v37 = vld [vmem:[#allocation19_spill] sm:$0xff] }
 0x372   :  { %2873 = vmatpush.bf16.msrb.mxu0 %v7120_v15  ;;  %2886 = vmatpush.bf16.msrb.mxu1 %v7121_v21  ;;  %v7131_v15 = vld [vmem:[#allocation78_spill] sm:$0xff] }
 0x373   :  { %2899 = vmatpush.bf16.msrb.mxu2 %v7122_v5  ;;  %2912 = vmatpush.bf16.msrb.mxu3 %v7123_v60 }
 0x376   :  { %2874 = vmatpush.bf16.msrb.mxu0 %v7124_v14  ;;  %2887 = vmatpush.bf16.msrb.mxu1 %v7125_v50 }
 0x377   :  { %2900 = vmatpush.bf16.msrb.mxu2 %v7126_v48  ;;  %2913 = vmatpush.bf16.msrb.mxu3 %v7127_v6 }
 0x37a   :  { %2875 = vmatpush.bf16.msrb.mxu0 %v7128_v51  ;;  %2888 = vmatpush.bf16.msrb.mxu1 %v7129_v46 }
 0x37b   :  { %2901 = vmatpush.bf16.msrb.mxu2 %v7130_v28  ;;  %2914 = vmatpush.bf16.msrb.mxu3 %v7131_v15 }
 0x3b9   :  { %v2568_v21 = vpop.f32.mrf.mxu0  ;;  %v2581_v5 = vpop.f32.mrf.mxu1 }
 0x3ba   :  { %v2611_v60 = vadd.f32 %v2568_v21, %v7132_v37  ;;  %v2612_v14 = vadd.f32 %v2581_v5, %v7133_v18  ;;  %v7135_v5 = vld [vmem:[#allocation46_spill] sm:$0xff] }
 0x3bc   :  { %v4748_v55 = vmul.f32 -1.442695, %v2611_v60  ;;  %v4749_v50 = vmul.f32 -1.442695, %v2612_v14 }
 0x3be   :  { %5158 = vpow2.f32 %v4748_v55 }
 0x3bf   :  { %5160 = vpow2.f32 %v4749_v50 }
 0x3c0   :  { %v2594_v48 = vpop.f32.mrf.mxu2  ;;  %v2607_v6 = vpop.f32.mrf.mxu3 }
 0x3c1   :  { %v2614_v51 = vadd.f32 %v2607_v6, %v7134_v62  ;;  %v2570_v43 = vpop.f32.mrf.mxu0  ;;  %v2583_v46 = vpop.f32.mrf.mxu1  ;;  %v2613_v55 = vadd.f32 %v2594_v48, %v7135_v5 }
 0x3c3   :  { %v4750_v58 = vmul.f32 -1.442695, %v2614_v51  ;;  %v7137_v51 = vld [vmem:[#allocation101_spill] sm:$0xff] }
 0x3c4   :  { %v5159_v28 = vpop.eup %5158 }
 0x3c5   :  { %v5161_v32 = vpop.eup %5160  ;;  %v2679_v15 = vadd.f32 1.0, %v5159_v28  ;;  %5162 = vpow2.f32 %v4750_v58 }
 0x3c6   :  { %v2698_v20 = vadd.f32 1.0, %v5161_v32  ;;  %v7136_v32 = vld [vmem:[#allocation98_spill] sm:$0xff] }
 0x3c7   :  { %5164 = vrcp.f32 %v2679_v15  ;;  %v2689_v61 = vand.u32 2147483647, %v2679_v15  ;;  %v2691_v48 = vand.u32 2147483648, %v2679_v15  ;;  %vm2685_vm11 = vweird.f32 %v2679_v15 }
 0x3c8   :  { %5166 = vrcp.f32 %v2698_v20  ;;  %v2596_v37 = vpop.f32.mrf.mxu2  ;;  %v2609_v18 = vpop.f32.mrf.mxu3  ;;  %v2710_v16 = vand.u32 2147483648, %v2698_v20  ;;  %v2708_v42 = vand.u32 2147483647, %v2698_v20  ;;  %vm2704_vm10 = vweird.f32 %v2698_v20 }
 0x3c9   :  { %vm2690_vm14 = vcmp.eq.f32.partialorder %v2689_v61, 8.507059e+37 }
 0x3ca   :  { %vm2709_vm15 = vcmp.eq.f32.partialorder %v2708_v42, 8.507059e+37 }
 0x3cb   :  { %v5163_v21 = vpop.eup %5162 }
 0x3cc   :  { %v6423_v60 = vadd.f32 1.0, %v5163_v21 }
 0x3cd   :  { %v5165_v14 = vpop.eup %5164  ;;  %v2629_v50 = vpop.f32.mrf.mxu0 }
 0x3ce   :  { %v2642_v62 = vpop.f32.mrf.mxu1  ;;  %v5167_v43 = vpop.eup %5166  ;;  %v2681_v46 = vmul.f32 %v5165_v14, %v2679_v15  ;;  %5168 = vrcp.f32 %v6423_v60  ;;  %v2672_v58 = vadd.f32 %v2629_v50, %v7136_v32  ;;  %vm2686_vm8 = vweird.f32 %v5165_v14 }
 0x3cf   :  { %v2700_v6 = vmul.f32 %v5167_v43, %v2698_v20  ;;  %5170 = vtanh.f32 %v2613_v55  ;;  %v2673_v37 = vadd.f32 %v2642_v62, %v7137_v51  ;;  %vm2705_vm9 = vweird.f32 %v5167_v43  ;;  %vm2687_vm12 = vmor %vm2685_vm11, %vm2686_vm8  ;;  %v7138_v20 = vld [vmem:[#allocation123_spill] sm:$0xff] }
 0x3d0   :  { %v2682_v28 = vsub.f32 1.0, %v2681_v46  ;;  %v4751_v5 = vmul.f32 -1.442695, %v2672_v58  ;;  %v2692_v62 = vor.u32 1.1754944e-38, %v2691_v48  ;;  %vm2706_vm13 = vmor %vm2704_vm10, %vm2705_vm9  ;;  %v2711_v51 = vor.u32 1.1754944e-38, %v2710_v16 }
 0x3d1   :  { %v2701_v18 = vsub.f32 1.0, %v2700_v6  ;;  %v4752_v41 = vmul.f32 -1.442695, %v2673_v37  ;;  %v2730_v42 = vand.u32 2147483648, %v6423_v60  ;;  %vm2724_vm1 = vweird.f32 %v6423_v60 }
 0x3d2   :  { %v2683_v21 = vmul.f32 %v5165_v14, %v2682_v28  ;;  %5172 = vpow2.f32 %v4751_v5 }
 0x3d3   :  { %v2702_v57 = vmul.f32 %v5167_v43, %v2701_v18  ;;  %5174 = vpow2.f32 %v4752_v41 }
 0x3d4   :  { %v5169_v36 = vpop.eup %5168  ;;  %v2684_v54 = vadd.f32 %v5165_v14, %v2683_v21  ;;  %v2655_v55 = vpop.f32.mrf.mxu2 }
 0x3d5   :  { %v2668_v50 = vpop.f32.mrf.mxu3  ;;  %v2703_v46 = vadd.f32 %v5167_v43, %v2702_v57  ;;  %v2720_v6 = vmul.f32 %v5169_v36, %v6423_v60  ;;  %v2631_v28 = vpop.f32.mrf.mxu0  ;;  %vm2725_vm0 = vweird.f32 %v5169_v36 }
 0x3d6   :  { %v2644_v32 = vpop.f32.mrf.mxu1  ;;  %v5171_v58 = vpop.eup %5170  ;;  %v2688_v37 = vsel %vm2687_vm12, %v5165_v14, %v2684_v54  ;;  %v2675_v18 = vadd.f32 %v2668_v50, %v7138_v20  ;;  %vm2726_vm2 = vmor %vm2724_vm1, %vm2725_vm0 }
 0x3d7   :  { %v2693_v15 = vsel %vm2690_vm14, %v2692_v62, %v2688_v37  ;;  %v2707_v21 = vsel %vm2706_vm13, %v5167_v43, %v2703_v46  ;;  %v2721_v5 = vsub.f32 1.0, %v2720_v6  ;;  %v2731_v43 = vor.u32 1.1754944e-38, %v2730_v42 }
 0x3d8   :  { %v2712_v39 = vsel %vm2709_vm15, %v2711_v51, %v2707_v21  ;;  %v2735_v48 = vmul.f32 %v5171_v58, %v2693_v15  ;;  %v4753_v57 = vmul.f32 -1.442695, %v2675_v18  ;;  %v5173_v28 = vpop.eup %5172  ;;  %v7139_v51 = vld [vmem:[#allocation120_spill] sm:$0xff] }
 0x3d9   :  { %v2734_v38 = vmul.f32 %v2712_v39, %v6332_v40  ;;  %v2722_v41 = vmul.f32 %v5169_v36, %v2721_v5  ;;  %v5175_v32 = vpop.eup %5174  ;;  %v2742_v16 = vadd.f32 1.0, %v5173_v28  ;;  %v2728_v40 = vand.u32 2147483647, %v6423_v60 }
 0x3da   :  { %5176 = vpow2.f32 %v4753_v57  ;;  %v2761_v54 = vadd.f32 1.0, %v5175_v32  ;;  %v2674_v37 = vadd.f32 %v2655_v55, %v7139_v51 }
 0x3db   :  { %v6432_v29 = vadd.f32 %v2735_v48, %v2734_v38  ;;  %v2723_v50 = vadd.f32 %v5169_v36, %v2722_v41  ;;  %vm2729_vm3 = vcmp.eq.f32.partialorder %v2728_v40, 8.507059e+37  ;;  %v2754_v57 = vand.u32 2147483648, %v2742_v16 }
 0x3dc   :  { %v2657_v61 = vpop.f32.mrf.mxu2  ;;  %v2773_v41 = vand.u32 2147483648, %v2761_v54  ;;  %v2752_v32 = vand.u32 2147483647, %v2742_v16  ;;  %v2771_v55 = vand.u32 2147483647, %v2761_v54  ;;  %vm2748_vm6 = vweird.f32 %v2742_v16 }
 0x3dd   :  { %v2670_v14 = vpop.f32.mrf.mxu3  ;;  %5178 = vtanh.f32 %v6432_v29  ;;  %v2727_v38 = vsel %vm2726_vm2, %v5169_v36, %v2723_v50  ;;  %vm2767_vm7 = vweird.f32 %v2761_v54  ;;  %v2755_v42 = vor.u32 1.1754944e-38, %v2754_v57 }
 0x3de   :  { %5180 = vrcp.f32 %v2742_v16  ;;  %v2732_v6 = vsel %vm2729_vm3, %v2731_v43, %v2727_v38  ;;  %v2774_v38 = vor.u32 1.1754944e-38, %v2773_v41  ;;  %vm2753_vm10 = vcmp.eq.f32.partialorder %v2752_v32, 8.507059e+37  ;;  %v7141_v41 = vld [vmem:[#allocation39_spill] sm:$0xff]  ;;  %v7143_v32 = vld [vmem:[#allocation41_spill] sm:$0xff] }
 0x3df   :  { %5182 = vrcp.f32 %v2761_v54  ;;  %vm2772_vm11 = vcmp.eq.f32.partialorder %v2771_v55, 8.507059e+37  ;;  %v7145_v55 = vld [vmem:[#allocation44_spill] sm:$0xff] }
 0x3e0   :  { %v5177_v39 = vpop.eup %5176 }
 0x3e1   :  { %v6438_v62 = vadd.f32 1.0, %v5177_v39 }
 0x3e3   :  { %v5179_v46 = vpop.eup %5178  ;;  %5184 = vrcp.f32 %v6438_v62  ;;  %vm2787_vm13 = vweird.f32 %v6438_v62 }
 0x3e4   :  { %v5181_v58 = vpop.eup %5180  ;;  %v2738_v20 = vmul.f32 %v5179_v46, %v2732_v6  ;;  %5186 = vtanh.f32 %v2674_v37 }
 0x3e5   :  { %v5183_v18 = vpop.eup %5182  ;;  %v2744_v15 = vmul.f32 %v5181_v58, %v2742_v16  ;;  %vm2749_vm4 = vweird.f32 %v5181_v58 }
 0x3e6   :  { %v2763_v60 = vmul.f32 %v5183_v18, %v2761_v54  ;;  %v2806_v21 = vpack.c.bf16 %v2738_v20, %v2738_v20  ;;  %vm2768_vm5 = vweird.f32 %v5183_v18  ;;  %vm2750_vm8 = vmor %vm2748_vm6, %vm2749_vm4 }
 0x3e7   :  { %v2745_v5 = vsub.f32 1.0, %v2744_v15  ;;  %vm2769_vm9 = vmor %vm2767_vm7, %vm2768_vm5 }
 0x3e8   :  { %v2764_v48 = vsub.f32 1.0, %v2763_v60  ;;  %2815 = vmatmul.bf16.vlgmr.msra.gmra.mxu0 %v2806_v21  ;;  %2828 = vmatmul.bf16.vlgmr.msra.gmra.mxu1 %v2806_v21 }
 0x3e9   :  { %v5185_v36 = vpop.eup %5184  ;;  %v2746_v28 = vmul.f32 %v5181_v58, %v2745_v5  ;;  %2841 = vmatmul.bf16.vlgmr.msra.gmra.mxu2 %v2806_v21  ;;  %2854 = vmatmul.bf16.vlgmr.msra.gmra.mxu3 %v2806_v21 }
 0x3ea   :  { %v2765_v61 = vmul.f32 %v5183_v18, %v2764_v48  ;;  %v2783_v14 = vmul.f32 %v5185_v36, %v6438_v62  ;;  %3055 = vmatpush.bf16.msra.mxu0 %v5630_v47  ;;  %3068 = vmatpush.bf16.msra.mxu1 %v5632_v53  ;;  %v5187_v46 = vpop.eup %5186  ;;  %vm2788_vm12 = vweird.f32 %v5185_v36 }
 0x3eb   :  { %v2747_v50 = vadd.f32 %v5181_v58, %v2746_v28  ;;  %3081 = vmatpush.bf16.msra.mxu2 %v5663_v27  ;;  %3094 = vmatpush.bf16.msra.mxu3 %v5642_v2  ;;  %vm2789_vm14 = vmor %vm2787_vm13, %vm2788_vm12  ;;  %v7142_v28 = vld [vmem:[#allocation40_spill] sm:$0xff] }
 0x3ec   :  { %v2766_v40 = vadd.f32 %v5183_v18, %v2765_v61  ;;  %v2784_v39 = vsub.f32 1.0, %v2783_v14  ;;  %v7144_v61 = vld [vmem:[#allocation42_spill] sm:$0xff]  ;;  %v7146_v14 = vld [vmem:[#allocation45_spill] sm:$0xff] }
 0x3ed   :  { %v2751_v43 = vsel %vm2750_vm8, %v5181_v58, %v2747_v50  ;;  %v7147_v50 = vld [vmem:[#allocation47_spill] sm:$0xff] }
 0x3ee   :  { %v2756_v6 = vsel %vm2753_vm10, %v2755_v42, %v2751_v43  ;;  %v2770_v51 = vsel %vm2769_vm9, %v5183_v18, %v2766_v40  ;;  %3056 = vmatpush.bf16.msra.mxu0 %v5644_v8  ;;  %3069 = vmatpush.bf16.msra.mxu1 %v5646_v9  ;;  %v2785_v54 = vmul.f32 %v5185_v36, %v2784_v39  ;;  %v2793_v18 = vand.u32 2147483648, %v6438_v62  ;;  %v7148_v42 = vld [vmem:[#allocation48_spill] sm:$0xff]  ;;  %v7149_v40 = vld [vmem:[#allocation49_spill] sm:$0xff]  ;;  %v7150_v39 = vld [vmem:[#allocation50_spill] sm:$0xff] }
 0x3ef   :  { %v2775_v16 = vsel %vm2772_vm11, %v2774_v38, %v2770_v51  ;;  %v2798_v37 = vmul.f32 %v5187_v46, %v2756_v6  ;;  %3082 = vmatpush.bf16.msra.mxu2 %v5679_v0  ;;  %3095 = vmatpush.bf16.msra.mxu3 %v5660_v25  ;;  %v7151_v38 = vld [vmem:[#allocation51_spill] sm:$0xff]  ;;  %v7152_v43 = vld [vmem:[#allocation53_spill] sm:$0xff]  ;;  %v7153_v46 = vld [vmem:[#allocation54_spill] sm:$0xff] }
 0x3f0   :  { %v2797_v20 = vmul.f32 %v2775_v16, %v6355_v24  ;;  %v2786_v58 = vadd.f32 %v5185_v36, %v2785_v54  ;;  %v2791_v24 = vand.u32 2147483647, %v6438_v62  ;;  %v2794_v21 = vor.u32 1.1754944e-38, %v2793_v18  ;;  %v7154_v6 = vld [vmem:[#allocation56_spill] sm:$0xff]  ;;  %v7155_v51 = vld [vmem:[#allocation57_spill] sm:$0xff]  ;;  %v7156_v16 = vld [vmem:[#allocation58_spill] sm:$0xff] }
 0x3f1   :  { %v7158_v54 = vld [vmem:[#allocation60_spill] sm:$0xff]  ;;  %v7161_v18 = vld [vmem:[#allocation66_spill] sm:$0xff] }
 0x3f2   :  { %v6453_v15 = vadd.f32 %v2798_v37, %v2797_v20  ;;  %3057 = vmatpush.bf16.msra.mxu0 %v5666_v31  ;;  %3070 = vmatpush.bf16.msra.mxu1 %v5669_v35  ;;  %v2790_v60 = vsel %vm2789_vm14, %v5185_v36, %v2786_v58  ;;  %vm2792_vm15 = vcmp.eq.f32.partialorder %v2791_v24, 8.507059e+37  ;;  %v7140_v36 = vld [vmem:[#allocation36_spill] sm:$0xff]  ;;  %v7157_v37 = vld [vmem:[#allocation59_spill] sm:$0xff]  ;;  %v7160_v58 = vld [vmem:[#allocation65_spill] sm:$0xff] }
 0x3f3   :  { %3083 = vmatpush.bf16.msra.mxu2 %v5694_v22  ;;  %3096 = vmatpush.bf16.msra.mxu3 %v5681_v3  ;;  %v2795_v48 = vsel %vm2792_vm15, %v2794_v21, %v2790_v60  ;;  %v7159_v20 = vld [vmem:[#allocation63_spill] sm:$0xff]  ;;  %v7163_v60 = vld [vmem:[#allocation68_spill] sm:$0xff]  ;;  %v7164_v21 = vld [vmem:[#allocation69_spill] sm:$0xff] }
 0x3f4   :  { %5188 = vtanh.f32 %v6453_v15  ;;  %v7162_v24 = vld [vmem:[#allocation67_spill] sm:$0xff] }
 0x3f6   :  { %3058 = vmatpush.bf16.msra.mxu0 %v5687_v11  ;;  %3071 = vmatpush.bf16.msra.mxu1 %v5689_v12 }
 0x3f7   :  { %3084 = vmatpush.bf16.msra.mxu2 %v5711_v52  ;;  %3097 = vmatpush.bf16.msra.mxu3 %v5704_v45 }
 0x3fa   :  { %v5189_v5 = vpop.eup %5188  ;;  %3059 = vmatpush.bf16.msra.mxu0 %v5715_v63  ;;  %3072 = vmatpush.bf16.msra.mxu1 %v5718_v10 }
 0x3fb   :  { %v2801_v57 = vmul.f32 %v5189_v5, %v2795_v48  ;;  %3085 = vmatpush.bf16.msra.mxu2 %v5720_v13  ;;  %3098 = vmatpush.bf16.msra.mxu3 %v5724_v26  ;;  %v7165_v5 = vld [vmem:[#allocation70_spill] sm:$0xff]  ;;  %v7166_v48 = vld [vmem:[#allocation72_spill] sm:$0xff] }
 0x3fd   :  { %v2867_v62 = vpack.c.bf16 %v2801_v57, %v2801_v57  ;;  %v7167_v57 = vld [vmem:[#allocation74_spill] sm:$0xff] }
 0x3fe   :  { %3060 = vmatpush.bf16.msra.mxu0 %v5734_v56  ;;  %3073 = vmatpush.bf16.msra.mxu1 %v5736_v7 }
 0x3ff   :  { %2876 = vmatmul.bf16.vlgmr.msrb.gmra.mxu0 %v2867_v62  ;;  %2889 = vmatmul.bf16.vlgmr.msrb.gmra.mxu1 %v2867_v62 }
 0x400   :  { %2902 = vmatmul.bf16.vlgmr.msrb.gmra.mxu2 %v2867_v62  ;;  %2915 = vmatmul.bf16.vlgmr.msrb.gmra.mxu3 %v2867_v62  ;;  %v7168_v62 = vld [vmem:[#allocation75_spill] sm:$0xff] }
 0x401   :  { %3086 = vmatpush.bf16.msra.mxu2 %v5738_v44  ;;  %3099 = vmatpush.bf16.msra.mxu3 %v5741_v49 }
 0x402   :  { %3061 = vmatpush.bf16.msra.mxu0 %v5746_v33  ;;  %3074 = vmatpush.bf16.msra.mxu1 %v5749_v17 }
 0x405   :  { %3087 = vmatpush.bf16.msra.mxu2 %v5751_v30  ;;  %3100 = vmatpush.bf16.msra.mxu3 %v5755_v23 }
 0x406   :  { %3062 = vmatpush.bf16.msra.mxu0 %v5765_v59  ;;  %3075 = vmatpush.bf16.msra.mxu1 %v5769_v1 }
 0x409   :  { %3088 = vmatpush.bf16.msra.mxu2 %v5771_v4  ;;  %3101 = vmatpush.bf16.msra.mxu3 %v7140_v36 }
 0x40a   :  { %3116 = vmatpush.bf16.msrb.mxu0 %v5779_v34  ;;  %3129 = vmatpush.bf16.msrb.mxu1 %v7101_v19  ;;  %v7183_v19 = vld [vmem:[#allocation119_spill] sm:$0xff] }
 0x40d   :  { %3142 = vmatpush.bf16.msrb.mxu2 %v7141_v41  ;;  %3155 = vmatpush.bf16.msrb.mxu3 %v7142_v28 }
 0x40e   :  { %3117 = vmatpush.bf16.msrb.mxu0 %v7143_v32  ;;  %3130 = vmatpush.bf16.msrb.mxu1 %v7144_v61 }
 0x411   :  { %3143 = vmatpush.bf16.msrb.mxu2 %v7145_v55  ;;  %3156 = vmatpush.bf16.msrb.mxu3 %v7146_v14  ;;  %v7182_v14 = vld [vmem:[#allocation118_spill] sm:$0xff] }
 0x412   :  { %3118 = vmatpush.bf16.msrb.mxu0 %v7147_v50  ;;  %3131 = vmatpush.bf16.msrb.mxu1 %v7148_v42  ;;  %v7181_v50 = vld [vmem:[#allocation108_spill] sm:$0xff] }
 0x415   :  { %3144 = vmatpush.bf16.msrb.mxu2 %v7149_v40  ;;  %3157 = vmatpush.bf16.msrb.mxu3 %v7150_v39 }
 0x416   :  { %3119 = vmatpush.bf16.msrb.mxu0 %v7151_v38  ;;  %3132 = vmatpush.bf16.msrb.mxu1 %v7152_v43 }
 0x419   :  { %3145 = vmatpush.bf16.msrb.mxu2 %v7153_v46  ;;  %3158 = vmatpush.bf16.msrb.mxu3 %v7154_v6  ;;  %v7173_v6 = vld [vmem:[#allocation64_spill] sm:$0xff] }
 0x41a   :  { %3120 = vmatpush.bf16.msrb.mxu0 %v7155_v51  ;;  %3133 = vmatpush.bf16.msrb.mxu1 %v7156_v16  ;;  %v7172_v16 = vld [vmem:[#allocation22_spill] sm:$0xff] }
 0x41d   :  { %3146 = vmatpush.bf16.msrb.mxu2 %v7157_v37  ;;  %3159 = vmatpush.bf16.msrb.mxu3 %v7158_v54  ;;  %v7169_v54 = vld [vmem:[#allocation76_spill] sm:$0xff]  ;;  %v7171_v37 = vld [vmem:[#allocation21_spill] sm:$0xff] }
 0x41e   :  { %3121 = vmatpush.bf16.msrb.mxu0 %v7159_v20  ;;  %3134 = vmatpush.bf16.msrb.mxu1 %v7160_v58  ;;  %v7170_v20 = vld [vmem:[#allocation78_spill] sm:$0xff] }
 0x421   :  { %3147 = vmatpush.bf16.msrb.mxu2 %v7161_v18  ;;  %3160 = vmatpush.bf16.msrb.mxu3 %v7162_v24 }
 0x422   :  { %3122 = vmatpush.bf16.msrb.mxu0 %v7163_v60  ;;  %3135 = vmatpush.bf16.msrb.mxu1 %v7164_v21 }
 0x425   :  { %3148 = vmatpush.bf16.msrb.mxu2 %v7165_v5  ;;  %3161 = vmatpush.bf16.msrb.mxu3 %v7166_v48 }
 0x426   :  { %3123 = vmatpush.bf16.msrb.mxu0 %v7167_v57  ;;  %3136 = vmatpush.bf16.msrb.mxu1 %v7168_v62 }
 0x429   :  { %3149 = vmatpush.bf16.msrb.mxu2 %v7169_v54  ;;  %3162 = vmatpush.bf16.msrb.mxu3 %v7170_v20 }
 0x465   :  { %v2816_v58 = vpop.f32.mrf.mxu0  ;;  %v2829_v18 = vpop.f32.mrf.mxu1 }
 0x466   :  { %v2859_v24 = vadd.f32 %v2816_v58, %v7171_v37  ;;  %v2860_v60 = vadd.f32 %v2829_v18, %v7172_v16  ;;  %v7174_v18 = vld [vmem:[#allocation82_spill] sm:$0xff] }
 0x468   :  { %v4754_v51 = vmul.f32 -1.442695, %v2859_v24  ;;  %v4755_v21 = vmul.f32 -1.442695, %v2860_v60  ;;  %v7176_v60 = vld [vmem:[#allocation86_spill] sm:$0xff] }
 0x46a   :  { %5190 = vpow2.f32 %v4754_v51  ;;  %v7175_v51 = vld [vmem:[#allocation93_spill] sm:$0xff] }
 0x46b   :  { %5192 = vpow2.f32 %v4755_v21  ;;  %v1149_v24 = vadd.f32 %v7175_v51, %v7174_v18  ;;  %v7177_v21 = vld [vmem:[#allocation96_spill] sm:$0xff]  ;;  %v1323_v51 = vadd.f32 %v7182_v14, %v7181_v50 }
 0x46c   :  { %v2842_v5 = vpop.f32.mrf.mxu2  ;;  %v2855_v48 = vpop.f32.mrf.mxu3  ;;  %v1207_v40 = vadd.f32 %v7177_v21, %v7176_v60 }
 0x46d   :  { %v2862_v57 = vadd.f32 %v2855_v48, %v7173_v6  ;;  %v2818_v46 = vpop.f32.mrf.mxu0  ;;  %v2831_v62 = vpop.f32.mrf.mxu1  ;;  %v7178_v6 = vld [vmem:[#allocation55_spill] sm:$0xff]  ;;  %v1352_v14 = vadd.f32 %v7183_v19, %v1323_v51 }
 0x46e   :  { %v2861_v46 = vadd.f32 %v2842_v5, %v7178_v6 }
 0x46f   :  { %v4756_v43 = vmul.f32 -1.442695, %v2862_v57 }
 0x470   :  { %v5191_v54 = vpop.eup %5190 }
 0x471   :  { %v5193_v38 = vpop.eup %5192  ;;  %v2927_v20 = vadd.f32 1.0, %v5191_v54  ;;  %5194 = vpow2.f32 %v4756_v43 }
 0x472   :  { %v2946_v39 = vadd.f32 1.0, %v5193_v38  ;;  %v7179_v38 = vld [vmem:[#allocation94_spill] sm:$0xff] }
 0x473   :  { %5196 = vrcp.f32 %v2927_v20  ;;  %v1178_v43 = vadd.f32 %v7179_v38, %v1149_v24  ;;  %v2937_v55 = vand.u32 2147483647, %v2927_v20  ;;  %v2939_v6 = vand.u32 2147483648, %v2927_v20 }
 0x474   :  { %5198 = vrcp.f32 %v2946_v39  ;;  %v2844_v37 = vpop.f32.mrf.mxu2  ;;  %v2857_v16 = vpop.f32.mrf.mxu3  ;;  %v2958_v32 = vand.u32 2147483648, %v2946_v39  ;;  %v2956_v41 = vand.u32 2147483647, %v2946_v39  ;;  %vm2952_vm2 = vweird.f32 %v2946_v39 }
 0x475   :  { %v7180_v37 = vld [vmem:[#allocation97_spill] sm:$0xff]  ;;  %vm2933_vm3 = vweird.f32 %v2927_v20  ;;  %vm2938_vm6 = vcmp.eq.f32.partialorder %v2937_v55, 8.507059e+37 }
 0x476   :  { %v1236_v16 = vadd.f32 %v7180_v37, %v1207_v40  ;;  %vm2957_vm7 = vcmp.eq.f32.partialorder %v2956_v41, 8.507059e+37 }
 0x477   :  { %v5195_v58 = vpop.eup %5194 }
 0x478   :  { %v6523_v48 = vadd.f32 1.0, %v5195_v58 }
 0x479   :  { %v5197_v57 = vpop.eup %5196 }
 0x47a   :  { %v5199_v62 = vpop.eup %5198  ;;  %v2929_v54 = vmul.f32 %v5197_v57, %v2927_v20  ;;  %5200 = vrcp.f32 %v6523_v48  ;;  %vm2934_vm0 = vweird.f32 %v5197_v57  ;;  %vm2972_vm9 = vweird.f32 %v6523_v48 }
 0x47b   :  { %v2948_v42 = vmul.f32 %v5199_v62, %v2946_v39  ;;  %5202 = vtanh.f32 %v2861_v46  ;;  %vm2953_vm1 = vweird.f32 %v5199_v62  ;;  %vm2935_vm4 = vmor %vm2933_vm3, %vm2934_vm0  ;;  %v2940_v46 = vor.u32 1.1754944e-38, %v2939_v6 }
 0x47c   :  { %v2930_v18 = vsub.f32 1.0, %v2929_v54  ;;  %v2877_v21 = vpop.f32.mrf.mxu0  ;;  %v2890_v5 = vpop.f32.mrf.mxu1  ;;  %vm2954_vm5 = vmor %vm2952_vm2, %vm2953_vm1 }
 0x47d   :  { %v2949_v58 = vsub.f32 1.0, %v2948_v42  ;;  %v2920_v60 = vadd.f32 %v2877_v21, %v1178_v43  ;;  %v2921_v61 = vadd.f32 %v2890_v5, %v1236_v16 }
 0x47e   :  { %v2931_v28 = vmul.f32 %v5197_v57, %v2930_v18  ;;  %v2959_v18 = vor.u32 1.1754944e-38, %v2958_v32 }
 0x47f   :  { %v2950_v24 = vmul.f32 %v5199_v62, %v2949_v58  ;;  %v4757_v40 = vmul.f32 -1.442695, %v2920_v60  ;;  %v4758_v38 = vmul.f32 -1.442695, %v2921_v61 }
 0x480   :  { %v5201_v37 = vpop.eup %5200  ;;  %v2932_v54 = vadd.f32 %v5197_v57, %v2931_v28 }
 0x481   :  { %v2951_v42 = vadd.f32 %v5199_v62, %v2950_v24  ;;  %v2968_v43 = vmul.f32 %v5201_v37, %v6523_v48  ;;  %5204 = vpow2.f32 %v4757_v40  ;;  %v5203_v16 = vpop.eup %5202  ;;  %vm2973_vm8 = vweird.f32 %v5201_v37 }
 0x482   :  { %v2936_v21 = vsel %vm2935_vm4, %v5197_v57, %v2932_v54  ;;  %5206 = vpow2.f32 %v4758_v38  ;;  %v7185_v54 = vld [vmem:[#allocation115_spill] sm:$0xff]  ;;  %vm2974_vm10 = vmor %vm2972_vm9, %vm2973_vm8 }
 0x483   :  { %v2941_v60 = vsel %vm2938_vm6, %v2940_v46, %v2936_v21  ;;  %v2955_v61 = vsel %vm2954_vm5, %v5199_v62, %v2951_v42  ;;  %v2969_v5 = vsub.f32 1.0, %v2968_v43  ;;  %v2903_v19 = vpop.f32.mrf.mxu2  ;;  %v2916_v39 = vpop.f32.mrf.mxu3  ;;  %v2978_v62 = vand.u32 2147483648, %v6523_v48 }
 0x484   :  { %v2960_v28 = vsel %vm2957_vm7, %v2959_v18, %v2955_v61  ;;  %v2983_v20 = vmul.f32 %v5203_v16, %v2941_v60  ;;  %v2923_v51 = vadd.f32 %v2916_v39, %v1352_v14  ;;  %v2879_v58 = vpop.f32.mrf.mxu0  ;;  %v2892_v6 = vpop.f32.mrf.mxu1  ;;  %v7184_v14 = vld [vmem:[#allocation106_spill] sm:$0xff]  ;;  %v7186_v18 = vld [vmem:[#allocation116_spill] sm:$0xff] }
 0x485   :  { %v2982_v24 = vmul.f32 %v2960_v28, %v6432_v29  ;;  %v2970_v40 = vmul.f32 %v5201_v37, %v2969_v5  ;;  %v1265_v46 = vadd.f32 %v7185_v54, %v7184_v14  ;;  %v2976_v29 = vand.u32 2147483647, %v6523_v48  ;;  %v7216_v14 = vld [vmem:[#allocation75_spill] sm:$0xff] }
 0x486   :  { %v4759_v50 = vmul.f32 -1.442695, %v2923_v51 }
 0x487   :  { %v5205_v34 = vpop.eup %5204  ;;  %v6533_v32 = vadd.f32 %v2983_v20, %v2982_v24  ;;  %v2971_v41 = vadd.f32 %v5201_v37, %v2970_v40  ;;  %v1294_v21 = vadd.f32 %v7186_v18, %v1265_v46  ;;  %vm2977_vm11 = vcmp.eq.f32.partialorder %v2976_v29, 8.507059e+37 }
 0x488   :  { %v5207_v55 = vpop.eup %5206  ;;  %v2990_v57 = vadd.f32 1.0, %v5205_v34  ;;  %5208 = vpow2.f32 %v4759_v50  ;;  %v2979_v50 = vor.u32 1.1754944e-38, %v2978_v62 }
 0x489   :  { %5210 = vtanh.f32 %v6533_v32  ;;  %v3009_v38 = vadd.f32 1.0, %v5207_v55  ;;  %v2975_v34 = vsel %vm2974_vm10, %v5201_v37, %v2971_v41  ;;  %v2922_v28 = vadd.f32 %v2903_v19, %v1294_v21 }
 0x48a   :  { %5212 = vrcp.f32 %v2990_v57  ;;  %v2980_v5 = vsel %vm2977_vm11, %v2979_v50, %v2975_v34  ;;  %v3002_v40 = vand.u32 2147483648, %v2990_v57  ;;  %v3000_v62 = vand.u32 2147483647, %v2990_v57 }
 0x48b   :  { %5214 = vrcp.f32 %v3009_v38  ;;  %v2905_v42 = vpop.f32.mrf.mxu2  ;;  %v2918_v43 = vpop.f32.mrf.mxu3  ;;  %v3021_v55 = vand.u32 2147483648, %v3009_v38  ;;  %v3019_v19 = vand.u32 2147483647, %v3009_v38  ;;  %vm2996_vm14 = vweird.f32 %v2990_v57 }
 0x48c   :  { %vm3015_vm15 = vweird.f32 %v3009_v38  ;;  %v3003_v42 = vor.u32 1.1754944e-38, %v3002_v40  ;;  %vm3001_vm2 = vcmp.eq.f32.partialorder %v3000_v62, 8.507059e+37  ;;  %v7189_v62 = vld [vmem:[#allocation39_spill] sm:$0xff] }
 0x48d   :  { %v3022_v50 = vor.u32 1.1754944e-38, %v3021_v55  ;;  %vm3020_vm3 = vcmp.eq.f32.partialorder %v3019_v19, 8.507059e+37  ;;  %v7187_v55 = vld [vmem:[#allocation37_spill] sm:$0xff] }
 0x48e   :  { %v5209_v16 = vpop.eup %5208  ;;  %v7191_v19 = vld [vmem:[#allocation41_spill] sm:$0xff] }
 0x48f   :  { %v5211_v60 = vpop.eup %5210  ;;  %v6542_v61 = vadd.f32 1.0, %v5209_v16 }
 0x490   :  { %v5213_v39 = vpop.eup %5212  ;;  %v2986_v20 = vmul.f32 %v5211_v60, %v2980_v5 }
 0x491   :  { %v5215_v51 = vpop.eup %5214  ;;  %v2992_v48 = vmul.f32 %v5213_v39, %v2990_v57  ;;  %5216 = vrcp.f32 %v6542_v61  ;;  %vm2997_vm12 = vweird.f32 %v5213_v39  ;;  %vm3035_vm5 = vweird.f32 %v6542_v61 }
 0x492   :  { %v3011_v58 = vmul.f32 %v5215_v51, %v3009_v38  ;;  %v3054_v24 = vpack.c.bf16 %v2986_v20, %v2986_v20  ;;  %5218 = vtanh.f32 %v2922_v28  ;;  %vm3016_vm13 = vweird.f32 %v5215_v51  ;;  %vm2998_vm0 = vmor %vm2996_vm14, %vm2997_vm12 }
 0x493   :  { %v2993_v6 = vsub.f32 1.0, %v2992_v48  ;;  %vm3017_vm1 = vmor %vm3015_vm15, %vm3016_vm13 }
 0x494   :  { %v3012_v37 = vsub.f32 1.0, %v3011_v58  ;;  %3063 = vmatmul.bf16.vlgmr.msra.gmra.mxu0 %v3054_v24  ;;  %3076 = vmatmul.bf16.vlgmr.msra.gmra.mxu1 %v3054_v24 }
 0x495   :  { %v2994_v41 = vmul.f32 %v5213_v39, %v2993_v6  ;;  %3089 = vmatmul.bf16.vlgmr.msra.gmra.mxu2 %v3054_v24  ;;  %3102 = vmatmul.bf16.vlgmr.msra.gmra.mxu3 %v3054_v24 }
 0x496   :  { %v3013_v54 = vmul.f32 %v5215_v51, %v3012_v37  ;;  %3303 = vmatpush.bf16.msra.mxu0 %v5630_v47  ;;  %3316 = vmatpush.bf16.msra.mxu1 %v5632_v53 }
 0x497   :  { %v5217_v46 = vpop.eup %5216  ;;  %v2995_v29 = vadd.f32 %v5213_v39, %v2994_v41  ;;  %3329 = vmatpush.bf16.msra.mxu2 %v5663_v27  ;;  %3342 = vmatpush.bf16.msra.mxu3 %v5642_v2  ;;  %v7188_v41 = vld [vmem:[#allocation38_spill] sm:$0xff] }
 0x498   :  { %v3014_v43 = vadd.f32 %v5215_v51, %v3013_v54  ;;  %v3031_v34 = vmul.f32 %v5217_v46, %v6542_v61  ;;  %v5219_v57 = vpop.eup %5218  ;;  %vm3036_vm4 = vweird.f32 %v5217_v46  ;;  %v7190_v54 = vld [vmem:[#allocation40_spill] sm:$0xff] }
 0x499   :  { %v2999_v16 = vsel %vm2998_vm0, %v5213_v39, %v2995_v29  ;;  %vm3037_vm6 = vmor %vm3035_vm5, %vm3036_vm4  ;;  %v7193_v29 = vld [vmem:[#allocation44_spill] sm:$0xff] }
 0x49a   :  { %v3004_v18 = vsel %vm3001_vm2, %v3003_v42, %v2999_v16  ;;  %v3018_v21 = vsel %vm3017_vm1, %v5215_v51, %v3014_v43  ;;  %v3032_v38 = vsub.f32 1.0, %v3031_v34  ;;  %3304 = vmatpush.bf16.msra.mxu0 %v5644_v8  ;;  %3317 = vmatpush.bf16.msra.mxu1 %v5646_v9  ;;  %v3041_v51 = vand.u32 2147483648, %v6542_v61  ;;  %v7194_v42 = vld [vmem:[#allocation45_spill] sm:$0xff]  ;;  %v7195_v43 = vld [vmem:[#allocation47_spill] sm:$0xff]  ;;  %v7196_v34 = vld [vmem:[#allocation48_spill] sm:$0xff] }
 0x49b   :  { %v3023_v60 = vsel %vm3020_vm3, %v3022_v50, %v3018_v21  ;;  %v3046_v5 = vmul.f32 %v5219_v57, %v3004_v18  ;;  %3330 = vmatpush.bf16.msra.mxu2 %v5679_v0  ;;  %3343 = vmatpush.bf16.msra.mxu3 %v5660_v25  ;;  %v7197_v50 = vld [vmem:[#allocation49_spill] sm:$0xff]  ;;  %v7198_v16 = vld [vmem:[#allocation50_spill] sm:$0xff]  ;;  %v7199_v57 = vld [vmem:[#allocation51_spill] sm:$0xff] }
 0x49c   :  { %v3045_v28 = vmul.f32 %v3023_v60, %v6453_v15  ;;  %v3033_v20 = vmul.f32 %v5217_v46, %v3032_v38  ;;  %v3039_v15 = vand.u32 2147483647, %v6542_v61  ;;  %v3042_v6 = vor.u32 1.1754944e-38, %v3041_v51  ;;  %v7200_v18 = vld [vmem:[#allocation53_spill] sm:$0xff]  ;;  %v7201_v21 = vld [vmem:[#allocation54_spill] sm:$0xff]  ;;  %v7202_v38 = vld [vmem:[#allocation56_spill] sm:$0xff] }
 0x49d   :  { %v7203_v60 = vld [vmem:[#allocation57_spill] sm:$0xff] }
 0x49e   :  { %v6557_v39 = vadd.f32 %v3046_v5, %v3045_v28  ;;  %v3034_v48 = vadd.f32 %v5217_v46, %v3033_v20  ;;  %3305 = vmatpush.bf16.msra.mxu0 %v5666_v31  ;;  %3318 = vmatpush.bf16.msra.mxu1 %v5669_v35  ;;  %vm3040_vm7 = vcmp.eq.f32.partialorder %v3039_v15, 8.507059e+37  ;;  %v7204_v5 = vld [vmem:[#allocation58_spill] sm:$0xff]  ;;  %v7205_v28 = vld [vmem:[#allocation59_spill] sm:$0xff]  ;;  %v7206_v20 = vld [vmem:[#allocation60_spill] sm:$0xff] }
 0x49f   :  { %3331 = vmatpush.bf16.msra.mxu2 %v5694_v22  ;;  %3344 = vmatpush.bf16.msra.mxu3 %v5681_v3  ;;  %v7208_v51 = vld [vmem:[#allocation65_spill] sm:$0xff]  ;;  %v7209_v15 = vld [vmem:[#allocation66_spill] sm:$0xff] }
 0x4a0   :  { %5220 = vtanh.f32 %v6557_v39  ;;  %v3038_v58 = vsel %vm3037_vm6, %v5217_v46, %v3034_v48  ;;  %v7192_v46 = vld [vmem:[#allocation42_spill] sm:$0xff]  ;;  %v7207_v48 = vld [vmem:[#allocation63_spill] sm:$0xff] }
 0x4a1   :  { %v3043_v37 = vsel %vm3040_vm7, %v3042_v6, %v3038_v58  ;;  %v7210_v58 = vld [vmem:[#allocation67_spill] sm:$0xff]  ;;  %v7211_v6 = vld [vmem:[#allocation68_spill] sm:$0xff] }
 0x4a2   :  { %3306 = vmatpush.bf16.msra.mxu0 %v5687_v11  ;;  %3319 = vmatpush.bf16.msra.mxu1 %v5689_v12 }
 0x4a3   :  { %3332 = vmatpush.bf16.msra.mxu2 %v5711_v52  ;;  %3345 = vmatpush.bf16.msra.mxu3 %v5704_v45 }
 0x4a6   :  { %v5221_v24 = vpop.eup %5220  ;;  %3307 = vmatpush.bf16.msra.mxu0 %v5715_v63  ;;  %3320 = vmatpush.bf16.msra.mxu1 %v5718_v10 }
 0x4a7   :  { %v3049_v40 = vmul.f32 %v5221_v24, %v3043_v37  ;;  %3333 = vmatpush.bf16.msra.mxu2 %v5720_v13  ;;  %3346 = vmatpush.bf16.msra.mxu3 %v5724_v26  ;;  %v7212_v24 = vld [vmem:[#allocation69_spill] sm:$0xff]  ;;  %v7213_v37 = vld [vmem:[#allocation70_spill] sm:$0xff] }
 0x4a9   :  { %v3115_v61 = vpack.c.bf16 %v3049_v40, %v3049_v40  ;;  %v7214_v40 = vld [vmem:[#allocation72_spill] sm:$0xff] }
 0x4aa   :  { %3308 = vmatpush.bf16.msra.mxu0 %v5734_v56  ;;  %3321 = vmatpush.bf16.msra.mxu1 %v5736_v7 }
 0x4ab   :  { %3124 = vmatmul.bf16.vlgmr.msrb.gmra.mxu0 %v3115_v61  ;;  %3137 = vmatmul.bf16.vlgmr.msrb.gmra.mxu1 %v3115_v61 }
 0x4ac   :  { %3150 = vmatmul.bf16.vlgmr.msrb.gmra.mxu2 %v3115_v61  ;;  %3163 = vmatmul.bf16.vlgmr.msrb.gmra.mxu3 %v3115_v61  ;;  %v7215_v61 = vld [vmem:[#allocation74_spill] sm:$0xff] }
 0x4ad   :  { %3334 = vmatpush.bf16.msra.mxu2 %v5738_v44  ;;  %3347 = vmatpush.bf16.msra.mxu3 %v5741_v49 }
 0x4ae   :  { %3309 = vmatpush.bf16.msra.mxu0 %v5746_v33  ;;  %3322 = vmatpush.bf16.msra.mxu1 %v5749_v17 }
 0x4b1   :  { %3335 = vmatpush.bf16.msra.mxu2 %v5751_v30  ;;  %3348 = vmatpush.bf16.msra.mxu3 %v5755_v23 }
 0x4b2   :  { %3310 = vmatpush.bf16.msra.mxu0 %v5765_v59  ;;  %3323 = vmatpush.bf16.msra.mxu1 %v5769_v1 }
 0x4b5   :  { %3336 = vmatpush.bf16.msra.mxu2 %v5771_v4  ;;  %3349 = vmatpush.bf16.msra.mxu3 %v7140_v36 }
 0x4b6   :  { %3364 = vmatpush.bf16.msrb.mxu0 %v7187_v55  ;;  %3377 = vmatpush.bf16.msrb.mxu1 %v7188_v41 }
 0x4b9   :  { %3390 = vmatpush.bf16.msrb.mxu2 %v7189_v62  ;;  %3403 = vmatpush.bf16.msrb.mxu3 %v7190_v54 }
 0x4ba   :  { %3365 = vmatpush.bf16.msrb.mxu0 %v7191_v19  ;;  %3378 = vmatpush.bf16.msrb.mxu1 %v7192_v46 }
 0x4bd   :  { %3391 = vmatpush.bf16.msrb.mxu2 %v7193_v29  ;;  %3404 = vmatpush.bf16.msrb.mxu3 %v7194_v42 }
 0x4be   :  { %3366 = vmatpush.bf16.msrb.mxu0 %v7195_v43  ;;  %3379 = vmatpush.bf16.msrb.mxu1 %v7196_v34 }
 0x4c1   :  { %3392 = vmatpush.bf16.msrb.mxu2 %v7197_v50  ;;  %3405 = vmatpush.bf16.msrb.mxu3 %v7198_v16 }
 0x4c2   :  { %3367 = vmatpush.bf16.msrb.mxu0 %v7199_v57  ;;  %3380 = vmatpush.bf16.msrb.mxu1 %v7200_v18 }
 0x4c5   :  { %3393 = vmatpush.bf16.msrb.mxu2 %v7201_v21  ;;  %3406 = vmatpush.bf16.msrb.mxu3 %v7202_v38 }
 0x4c6   :  { %3368 = vmatpush.bf16.msrb.mxu0 %v7203_v60  ;;  %3381 = vmatpush.bf16.msrb.mxu1 %v7204_v5  ;;  %v7220_v5 = vld [vmem:[#allocation24_spill] sm:$0xff]  ;;  %v7221_v60 = vld [vmem:[#allocation31_spill] sm:$0xff] }
 0x4c9   :  { %3394 = vmatpush.bf16.msrb.mxu2 %v7205_v28  ;;  %3407 = vmatpush.bf16.msrb.mxu3 %v7206_v20  ;;  %v7217_v20 = vld [vmem:[#allocation76_spill] sm:$0xff]  ;;  %v7219_v28 = vld [vmem:[#allocation23_spill] sm:$0xff] }
 0x4ca   :  { %3369 = vmatpush.bf16.msrb.mxu0 %v7207_v48  ;;  %3382 = vmatpush.bf16.msrb.mxu1 %v7208_v51  ;;  %v7218_v48 = vld [vmem:[#allocation78_spill] sm:$0xff] }
 0x4cd   :  { %3395 = vmatpush.bf16.msrb.mxu2 %v7209_v15  ;;  %3408 = vmatpush.bf16.msrb.mxu3 %v7210_v58 }
 0x4ce   :  { %3370 = vmatpush.bf16.msrb.mxu0 %v7211_v6  ;;  %3383 = vmatpush.bf16.msrb.mxu1 %v7212_v24  ;;  %v7222_v24 = vld [vmem:[#allocation71_spill] sm:$0xff] }
 0x4cf   :  { %v1096_v38 = vadd.f32 %v7222_v24, %v7221_v60 }
 0x4d1   :  { %3396 = vmatpush.bf16.msrb.mxu2 %v7213_v37  ;;  %3409 = vmatpush.bf16.msrb.mxu3 %v7214_v40  ;;  %v7223_v40 = vld [vmem:[#allocation73_spill] sm:$0xff] }
 0x4d2   :  { %3371 = vmatpush.bf16.msrb.mxu0 %v7215_v61  ;;  %3384 = vmatpush.bf16.msrb.mxu1 %v7216_v14  ;;  %v1125_v61 = vadd.f32 %v7223_v40, %v1096_v38  ;;  %v7226_v38 = vld [vmem:[#allocation62_spill] sm:$0xff] }
 0x4d5   :  { %3397 = vmatpush.bf16.msrb.mxu2 %v7217_v20  ;;  %3410 = vmatpush.bf16.msrb.mxu3 %v7218_v48 }
 0x511   :  { %v3064_v51 = vpop.f32.mrf.mxu0  ;;  %v3077_v15 = vpop.f32.mrf.mxu1 }
 0x512   :  { %v3107_v58 = vadd.f32 %v3064_v51, %v7219_v28  ;;  %v3108_v6 = vadd.f32 %v3077_v15, %v7220_v5  ;;  %v7224_v5 = vld [vmem:[#allocation28_spill] sm:$0xff]  ;;  %v7225_v51 = vld [vmem:[#allocation61_spill] sm:$0xff] }
 0x513   :  { %v1038_v15 = vadd.f32 %v7225_v51, %v7224_v5 }
 0x514   :  { %v4760_v37 = vmul.f32 -1.442695, %v3107_v58  ;;  %v4761_v21 = vmul.f32 -1.442695, %v3108_v6 }
 0x516   :  { %5222 = vpow2.f32 %v4760_v37 }
 0x517   :  { %5224 = vpow2.f32 %v4761_v21  ;;  %v1067_v21 = vadd.f32 %v7226_v38, %v1038_v15 }
 0x518   :  { %v3090_v14 = vpop.f32.mrf.mxu2  ;;  %v3103_v18 = vpop.f32.mrf.mxu3 }
 0x519   :  { %v3110_v20 = vadd.f32 %v3103_v18, %v1125_v61  ;;  %v3066_v57 = vpop.f32.mrf.mxu0  ;;  %v3079_v48 = vpop.f32.mrf.mxu1  ;;  %v3109_v40 = vadd.f32 %v3090_v14, %v1067_v21 }
 0x51b   :  { %v4762_v16 = vmul.f32 -1.442695, %v3110_v20 }
 0x51c   :  { %v5223_v50 = vpop.eup %5222 }
 0x51d   :  { %v5225_v34 = vpop.eup %5224  ;;  %v3175_v28 = vadd.f32 1.0, %v5223_v50  ;;  %5226 = vpow2.f32 %v4762_v16 }
 0x51e   :  { %v3194_v24 = vadd.f32 1.0, %v5225_v34  ;;  %v7227_v34 = vld [vmem:[#allocation92_spill] sm:$0xff] }
 0x51f   :  { %5228 = vrcp.f32 %v3175_v28  ;;  %v3185_v38 = vand.u32 2147483647, %v3175_v28  ;;  %v3187_v14 = vand.u32 2147483648, %v3175_v28  ;;  %vm3181_vm11 = vweird.f32 %v3175_v28 }
 0x520   :  { %5230 = vrcp.f32 %v3194_v24  ;;  %v3092_v58 = vpop.f32.mrf.mxu2  ;;  %v3105_v6 = vpop.f32.mrf.mxu3  ;;  %v3206_v15 = vand.u32 2147483648, %v3194_v24  ;;  %v3204_v29 = vand.u32 2147483647, %v3194_v24  ;;  %vm3200_vm10 = vweird.f32 %v3194_v24 }
 0x521   :  { %v7228_v58 = vld [vmem:[#allocation95_spill] sm:$0xff]  ;;  %vm3186_vm14 = vcmp.eq.f32.partialorder %v3185_v38, 8.507059e+37 }
 0x522   :  { %vm3205_vm15 = vcmp.eq.f32.partialorder %v3204_v29, 8.507059e+37 }
 0x523   :  { %v5227_v37 = vpop.eup %5226 }
 0x524   :  { %v6627_v18 = vadd.f32 1.0, %v5227_v37 }
 0x525   :  { %v5229_v57 = vpop.eup %5228 }
 0x526   :  { %v5231_v20 = vpop.eup %5230  ;;  %v3177_v48 = vmul.f32 %v5229_v57, %v3175_v28  ;;  %5232 = vrcp.f32 %v6627_v18  ;;  %vm3182_vm8 = vweird.f32 %v5229_v57  ;;  %vm3220_vm1 = vweird.f32 %v6627_v18 }
 0x527   :  { %v3196_v50 = vmul.f32 %v5231_v20, %v3194_v24  ;;  %5234 = vtanh.f32 %v3109_v40  ;;  %vm3201_vm9 = vweird.f32 %v5231_v20  ;;  %vm3183_vm12 = vmor %vm3181_vm11, %vm3182_vm8  ;;  %v3188_v40 = vor.u32 1.1754944e-38, %v3187_v14  ;;  %v7229_v14 = vld [vmem:[#allocation117_spill] sm:$0xff] }
 0x528   :  { %v3125_v16 = vpop.f32.mrf.mxu0  ;;  %v3138_v61 = vpop.f32.mrf.mxu1  ;;  %v3178_v51 = vsub.f32 1.0, %v3177_v48  ;;  %vm3202_vm13 = vmor %vm3200_vm10, %vm3201_vm9 }
 0x529   :  { %v3168_v5 = vadd.f32 %v3125_v16, %v7227_v34  ;;  %v3169_v6 = vadd.f32 %v3138_v61, %v7228_v58  ;;  %v3197_v60 = vsub.f32 1.0, %v3196_v50  ;;  %v3207_v61 = vor.u32 1.1754944e-38, %v3206_v15 }
 0x52a   :  { %v3179_v21 = vmul.f32 %v5229_v57, %v3178_v51 }
 0x52b   :  { %v4763_v37 = vmul.f32 -1.442695, %v3168_v5  ;;  %v4764_v43 = vmul.f32 -1.442695, %v3169_v6  ;;  %v3198_v42 = vmul.f32 %v5231_v20, %v3197_v60 }
 0x52c   :  { %v5233_v46 = vpop.eup %5232  ;;  %v3180_v19 = vadd.f32 %v5229_v57, %v3179_v21 }
 0x52d   :  { %5236 = vpow2.f32 %v4763_v37  ;;  %v3199_v48 = vadd.f32 %v5231_v20, %v3198_v42  ;;  %v3216_v50 = vmul.f32 %v5233_v46, %v6627_v18  ;;  %v5235_v16 = vpop.eup %5234  ;;  %vm3221_vm0 = vweird.f32 %v5233_v46 }
 0x52e   :  { %5238 = vpow2.f32 %v4764_v43  ;;  %v3184_v51 = vsel %vm3183_vm12, %v5229_v57, %v3180_v19  ;;  %vm3222_vm2 = vmor %vm3220_vm1, %vm3221_vm0 }
 0x52f   :  { %v3151_v5 = vpop.f32.mrf.mxu2  ;;  %v3164_v60 = vpop.f32.mrf.mxu3  ;;  %v3189_v34 = vsel %vm3186_vm14, %v3188_v40, %v3184_v51  ;;  %v3203_v58 = vsel %vm3202_vm13, %v5231_v20, %v3199_v48  ;;  %v3217_v24 = vsub.f32 1.0, %v3216_v50  ;;  %v3226_v20 = vand.u32 2147483648, %v6627_v18 }
 0x530   :  { %v3127_v6 = vpop.f32.mrf.mxu0  ;;  %v3140_v28 = vpop.f32.mrf.mxu1  ;;  %v3208_v21 = vsel %vm3205_vm15, %v3207_v61, %v3203_v58  ;;  %v3231_v37 = vmul.f32 %v5235_v16, %v3189_v34  ;;  %v3171_v42 = vadd.f32 %v3164_v60, %v7229_v14  ;;  %v3224_v40 = vand.u32 2147483647, %v6627_v18  ;;  %v7230_v60 = vld [vmem:[#allocation114_spill] sm:$0xff] }
 0x531   :  { %v3230_v54 = vmul.f32 %v3208_v21, %v6533_v32  ;;  %v3218_v43 = vmul.f32 %v5233_v46, %v3217_v24  ;;  %v3227_v50 = vor.u32 1.1754944e-38, %v3226_v20  ;;  %v3170_v34 = vadd.f32 %v3151_v5, %v7230_v60  ;;  %v7254_v60 = vld [vmem:[#allocation68_spill] sm:$0xff] }
 0x532   :  { %v4765_v41 = vmul.f32 -1.442695, %v3171_v42  ;;  %vm3225_vm3 = vcmp.eq.f32.partialorder %v3224_v40, 8.507059e+37 }
 0x533   :  { %v5237_v62 = vpop.eup %5236  ;;  %v6635_v19 = vadd.f32 %v3231_v37, %v3230_v54  ;;  %v3219_v29 = vadd.f32 %v5233_v46, %v3218_v43 }
 0x534   :  { %v5239_v15 = vpop.eup %5238  ;;  %v3238_v57 = vadd.f32 1.0, %v5237_v62  ;;  %5240 = vpow2.f32 %v4765_v41 }
 0x535   :  { %v3257_v38 = vadd.f32 1.0, %v5239_v15  ;;  %5242 = vtanh.f32 %v6635_v19  ;;  %v3223_v54 = vsel %vm3222_vm2, %v5233_v46, %v3219_v29 }
 0x536   :  { %5244 = vrcp.f32 %v3238_v57  ;;  %v3228_v61 = vsel %vm3225_vm3, %v3227_v50, %v3223_v54  ;;  %v3250_v46 = vand.u32 2147483648, %v3238_v57  ;;  %v3248_v43 = vand.u32 2147483647, %v3238_v57 }
 0x537   :  { %v3153_v32 = vpop.f32.mrf.mxu2  ;;  %v3166_v48 = vpop.f32.mrf.mxu3  ;;  %5246 = vrcp.f32 %v3257_v38  ;;  %v3269_v14 = vand.u32 2147483648, %v3257_v38  ;;  %v3267_v5 = vand.u32 2147483647, %v3257_v38  ;;  %vm3244_vm6 = vweird.f32 %v3238_v57 }
 0x538   :  { %vm3263_vm7 = vweird.f32 %v3257_v38  ;;  %v3251_v40 = vor.u32 1.1754944e-38, %v3250_v46  ;;  %vm3249_vm10 = vcmp.eq.f32.partialorder %v3248_v43, 8.507059e+37  ;;  %v7263_v43 = vld [vmem:[#allocation26_spill] sm:$0xff] }
 0x539   :  { %v3270_v54 = vor.u32 1.1754944e-38, %v3269_v14  ;;  %vm3268_vm11 = vcmp.eq.f32.partialorder %v3267_v5, 8.507059e+37  ;;  %v7262_v14 = vld [vmem:[#allocation25_spill] sm:$0xff] }
 0x53a   :  { %v5241_v62 = vpop.eup %5240 }
 0x53b   :  { %v5243_v16 = vpop.eup %5242  ;;  %v6641_v41 = vadd.f32 1.0, %v5241_v62 }
 0x53c   :  { %v5245_v51 = vpop.eup %5244  ;;  %v3234_v58 = vmul.f32 %v5243_v16, %v3228_v61 }
 0x53d   :  { %v5247_v24 = vpop.eup %5246  ;;  %v3240_v6 = vmul.f32 %v5245_v51, %v3238_v57  ;;  %5248 = vrcp.f32 %v6641_v41  ;;  %vm3245_vm4 = vweird.f32 %v5245_v51  ;;  %vm3283_vm13 = vweird.f32 %v6641_v41 }
 0x53e   :  { %v3259_v18 = vmul.f32 %v5247_v24, %v3257_v38  ;;  %v3302_v21 = vpack.c.bf16 %v3234_v58, %v3234_v58  ;;  %5250 = vtanh.f32 %v3170_v34  ;;  %vm3264_vm5 = vweird.f32 %v5247_v24  ;;  %vm3246_vm8 = vmor %vm3244_vm6, %vm3245_vm4  ;;  %v7255_v34 = vld [vmem:[#allocation69_spill] sm:$0xff]  ;;  %v7256_v58 = vld [vmem:[#allocation70_spill] sm:$0xff] }
 0x53f   :  { %v3241_v28 = vsub.f32 1.0, %v3240_v6  ;;  %vm3265_vm9 = vmor %vm3263_vm7, %vm3264_vm5  ;;  %v7258_v6 = vld [vmem:[#allocation74_spill] sm:$0xff] }
 0x540   :  { %v3260_v37 = vsub.f32 1.0, %v3259_v18  ;;  %3311 = vmatmul.bf16.vlgmr.msra.gmra.mxu0 %v3302_v21  ;;  %3324 = vmatmul.bf16.vlgmr.msra.gmra.mxu1 %v3302_v21  ;;  %v7259_v18 = vld [vmem:[#allocation75_spill] sm:$0xff] }
 0x541   :  { %v3242_v42 = vmul.f32 %v5245_v51, %v3241_v28  ;;  %3337 = vmatmul.bf16.vlgmr.msra.gmra.mxu2 %v3302_v21  ;;  %3350 = vmatmul.bf16.vlgmr.msra.gmra.mxu3 %v3302_v21  ;;  %v7260_v28 = vld [vmem:[#allocation76_spill] sm:$0xff]  ;;  %v7261_v21 = vld [vmem:[#allocation78_spill] sm:$0xff] }
 0x542   :  { %v3261_v15 = vmul.f32 %v5247_v24, %v3260_v37  ;;  %3551 = vmatpush.bf16.msra.mxu0 %v5630_v47  ;;  %3564 = vmatpush.bf16.msra.mxu1 %v5632_v53 }
 0x543   :  { %v5249_v29 = vpop.eup %5248  ;;  %v3243_v20 = vadd.f32 %v5245_v51, %v3242_v42  ;;  %3577 = vmatpush.bf16.msra.mxu2 %v5663_v27  ;;  %3590 = vmatpush.bf16.msra.mxu3 %v5642_v2 }
 0x544   :  { %v3262_v32 = vadd.f32 %v5247_v24, %v3261_v15  ;;  %v3279_v48 = vmul.f32 %v5249_v29, %v6641_v41  ;;  %v5251_v57 = vpop.eup %5250  ;;  %vm3284_vm12 = vweird.f32 %v5249_v29 }
 0x545   :  { %v3247_v50 = vsel %vm3246_vm8, %v5245_v51, %v3243_v20  ;;  %vm3285_vm14 = vmor %vm3283_vm13, %vm3284_vm12 }
 0x546   :  { %v3252_v47 = vsel %vm3249_vm10, %v3251_v40, %v3247_v50  ;;  %v3266_v62 = vsel %vm3265_vm9, %v5247_v24, %v3262_v32  ;;  %v3280_v53 = vsub.f32 1.0, %v3279_v48  ;;  %3552 = vmatpush.bf16.msra.mxu0 %v5644_v8  ;;  %3565 = vmatpush.bf16.msra.mxu1 %v5646_v9  ;;  %v3289_v8 = vand.u32 2147483648, %v6641_v41  ;;  %v7257_v24 = vld [vmem:[#allocation72_spill] sm:$0xff]  ;;  %v7264_v32 = vld [vmem:[#allocation81_spill] sm:$0xff] }
 0x547   :  { %v3271_v38 = vsel %vm3268_vm11, %v3270_v54, %v3266_v62  ;;  %v3294_v16 = vmul.f32 %v5251_v57, %v3252_v47  ;;  %3578 = vmatpush.bf16.msra.mxu2 %v5679_v0  ;;  %3591 = vmatpush.bf16.msra.mxu3 %v5660_v25  ;;  %v3287_v9 = vand.u32 2147483647, %v6641_v41  ;;  %v7253_v41 = vld [vmem:[#allocation67_spill] sm:$0xff] }
 0x548   :  { %v3293_v27 = vmul.f32 %v3271_v38, %v6557_v39  ;;  %v3281_v61 = vmul.f32 %v5249_v29, %v3280_v53  ;;  %v7251_v39 = vld [vmem:[#allocation65_spill] sm:$0xff] }
 0x549   :  { %vm3288_vm15 = vcmp.eq.f32.partialorder %v3287_v9, 8.507059e+37  ;;  %v7267_v9 = vld [vmem:[#allocation86_spill] sm:$0xff] }
 0x54a   :  { %v6657_v2 = vadd.f32 %v3294_v16, %v3293_v27  ;;  %v3282_v51 = vadd.f32 %v5249_v29, %v3281_v61  ;;  %3553 = vmatpush.bf16.msra.mxu0 %v5666_v31  ;;  %3566 = vmatpush.bf16.msra.mxu1 %v5669_v35  ;;  %v3290_v31 = vor.u32 1.1754944e-38, %v3289_v8  ;;  %v7265_v61 = vld [vmem:[#allocation82_spill] sm:$0xff] }
 0x54b   :  { %3579 = vmatpush.bf16.msra.mxu2 %v5694_v22  ;;  %3592 = vmatpush.bf16.msra.mxu3 %v5681_v3 }
 0x54c   :  { %5252 = vtanh.f32 %v6657_v2  ;;  %v3286_v25 = vsel %vm3285_vm14, %v5249_v29, %v3282_v51  ;;  %v7266_v51 = vld [vmem:[#allocation87_spill] sm:$0xff] }
 0x54d   :  { %v3291_v0 = vsel %vm3288_vm15, %v3290_v31, %v3286_v25  ;;  %v1144_v8 = vadd.f32 %v7266_v51, %v7265_v61  ;;  %v7268_v25 = vld [vmem:[#allocation90_spill] sm:$0xff] }
 0x54e   :  { %3554 = vmatpush.bf16.msra.mxu0 %v5687_v11  ;;  %3567 = vmatpush.bf16.msra.mxu1 %v5689_v12  ;;  %v7231_v11 = vld [vmem:[#allocation38_spill] sm:$0xff]  ;;  %v7232_v12 = vld [vmem:[#allocation39_spill] sm:$0xff]  ;;  %v1202_v31 = vadd.f32 %v7268_v25, %v7267_v9  ;;  %v7276_v25 = vld [vmem:[#allocation109_spill] sm:$0xff] }
 0x54f   :  { %3580 = vmatpush.bf16.msra.mxu2 %v5711_v52  ;;  %3593 = vmatpush.bf16.msra.mxu3 %v5704_v45  ;;  %v7233_v45 = vld [vmem:[#allocation40_spill] sm:$0xff]  ;;  %v7234_v52 = vld [vmem:[#allocation41_spill] sm:$0xff]  ;;  %v7275_v9 = vld [vmem:[#allocation106_spill] sm:$0xff] }
 0x552   :  { %v5253_v35 = vpop.eup %5252  ;;  %3555 = vmatpush.bf16.msra.mxu0 %v5715_v63  ;;  %3568 = vmatpush.bf16.msra.mxu1 %v5718_v10  ;;  %v7236_v63 = vld [vmem:[#allocation44_spill] sm:$0xff]  ;;  %v7237_v10 = vld [vmem:[#allocation45_spill] sm:$0xff] }
 0x553   :  { %v3297_v22 = vmul.f32 %v5253_v35, %v3291_v0  ;;  %3581 = vmatpush.bf16.msra.mxu2 %v5720_v13  ;;  %3594 = vmatpush.bf16.msra.mxu3 %v5724_v26  ;;  %v7238_v13 = vld [vmem:[#allocation47_spill] sm:$0xff]  ;;  %v7239_v26 = vld [vmem:[#allocation48_spill] sm:$0xff]  ;;  %v7269_v0 = vld [vmem:[#allocation77_spill] sm:$0xff] }
 0x555   :  { %v3363_v3 = vpack.c.bf16 %v3297_v22, %v3297_v22 }
 0x556   :  { %3556 = vmatpush.bf16.msra.mxu0 %v5734_v56  ;;  %3569 = vmatpush.bf16.msra.mxu1 %v5736_v7  ;;  %v7240_v56 = vld [vmem:[#allocation49_spill] sm:$0xff]  ;;  %v7241_v7 = vld [vmem:[#allocation50_spill] sm:$0xff] }
 0x557   :  { %3372 = vmatmul.bf16.vlgmr.msrb.gmra.mxu0 %v3363_v3  ;;  %3385 = vmatmul.bf16.vlgmr.msrb.gmra.mxu1 %v3363_v3 }
 0x558   :  { %3398 = vmatmul.bf16.vlgmr.msrb.gmra.mxu2 %v3363_v3  ;;  %3411 = vmatmul.bf16.vlgmr.msrb.gmra.mxu3 %v3363_v3 }
 0x559   :  { %3582 = vmatpush.bf16.msra.mxu2 %v5738_v44  ;;  %3595 = vmatpush.bf16.msra.mxu3 %v5741_v49  ;;  %v7242_v44 = vld [vmem:[#allocation51_spill] sm:$0xff]  ;;  %v7243_v49 = vld [vmem:[#allocation53_spill] sm:$0xff] }
 0x55a   :  { %3557 = vmatpush.bf16.msra.mxu0 %v5746_v33  ;;  %3570 = vmatpush.bf16.msra.mxu1 %v5749_v17  ;;  %v7244_v33 = vld [vmem:[#allocation54_spill] sm:$0xff]  ;;  %v7245_v17 = vld [vmem:[#allocation56_spill] sm:$0xff] }
 0x55d   :  { %3583 = vmatpush.bf16.msra.mxu2 %v5751_v30  ;;  %3596 = vmatpush.bf16.msra.mxu3 %v5755_v23  ;;  %v7235_v30 = vld [vmem:[#allocation42_spill] sm:$0xff]  ;;  %v7246_v23 = vld [vmem:[#allocation57_spill] sm:$0xff] }
 0x55e   :  { %3558 = vmatpush.bf16.msra.mxu0 %v5765_v59  ;;  %3571 = vmatpush.bf16.msra.mxu1 %v5769_v1  ;;  %v7247_v59 = vld [vmem:[#allocation58_spill] sm:$0xff]  ;;  %v7248_v1 = vld [vmem:[#allocation59_spill] sm:$0xff] }
 0x561   :  { %3584 = vmatpush.bf16.msra.mxu2 %v5771_v4  ;;  %3597 = vmatpush.bf16.msra.mxu3 %v7140_v36  ;;  %v7249_v4 = vld [vmem:[#allocation60_spill] sm:$0xff]  ;;  %v7250_v36 = vld [vmem:[#allocation63_spill] sm:$0xff] }
 0x562   :  { %3612 = vmatpush.bf16.msrb.mxu0 %v7187_v55  ;;  %3625 = vmatpush.bf16.msrb.mxu1 %v7231_v11  ;;  %v7252_v55 = vld [vmem:[#allocation66_spill] sm:$0xff] }
 0x565   :  { %3638 = vmatpush.bf16.msrb.mxu2 %v7232_v12  ;;  %3651 = vmatpush.bf16.msrb.mxu3 %v7233_v45  ;;  %v7270_v45 = vld [vmem:[#allocation88_spill] sm:$0xff] }
 0x566   :  { %3613 = vmatpush.bf16.msrb.mxu0 %v7234_v52  ;;  %3626 = vmatpush.bf16.msrb.mxu1 %v7235_v30  ;;  %v1173_v52 = vadd.f32 %v7270_v45, %v1144_v8  ;;  %v7271_v30 = vld [vmem:[#allocation91_spill] sm:$0xff]  ;;  %v7277_v45 = vld [vmem:[#allocation110_spill] sm:$0xff] }
 0x569   :  { %3639 = vmatpush.bf16.msrb.mxu2 %v7236_v63  ;;  %3652 = vmatpush.bf16.msrb.mxu3 %v7237_v10  ;;  %v1231_v63 = vadd.f32 %v7271_v30, %v1202_v31  ;;  %v1260_v31 = vadd.f32 %v7276_v25, %v7275_v9  ;;  %v7280_v9 = vld [vmem:[#allocation31_spill] sm:$0xff] }
 0x56a   :  { %3614 = vmatpush.bf16.msrb.mxu0 %v7238_v13  ;;  %3627 = vmatpush.bf16.msrb.mxu1 %v7239_v26  ;;  %v7272_v13 = vld [vmem:[#allocation108_spill] sm:$0xff]  ;;  %v7281_v25 = vld [vmem:[#allocation83_spill] sm:$0xff] }
 0x56b   :  { %v7273_v26 = vld [vmem:[#allocation112_spill] sm:$0xff] }
 0x56d   :  { %3640 = vmatpush.bf16.msrb.mxu2 %v7240_v56  ;;  %3653 = vmatpush.bf16.msrb.mxu3 %v7241_v7  ;;  %v1318_v56 = vadd.f32 %v7273_v26, %v7272_v13 }
 0x56e   :  { %3615 = vmatpush.bf16.msrb.mxu0 %v7242_v44  ;;  %3628 = vmatpush.bf16.msrb.mxu1 %v7243_v49 }
 0x571   :  { %3641 = vmatpush.bf16.msrb.mxu2 %v7244_v33  ;;  %3654 = vmatpush.bf16.msrb.mxu3 %v7245_v17 }
 0x572   :  { %3616 = vmatpush.bf16.msrb.mxu0 %v7246_v23  ;;  %3629 = vmatpush.bf16.msrb.mxu1 %v7247_v59 }
 0x575   :  { %3642 = vmatpush.bf16.msrb.mxu2 %v7248_v1  ;;  %3655 = vmatpush.bf16.msrb.mxu3 %v7249_v4 }
 0x576   :  { %3617 = vmatpush.bf16.msrb.mxu0 %v7250_v36  ;;  %3630 = vmatpush.bf16.msrb.mxu1 %v7251_v39 }
 0x579   :  { %3643 = vmatpush.bf16.msrb.mxu2 %v7252_v55  ;;  %3656 = vmatpush.bf16.msrb.mxu3 %v7253_v41 }
 0x57a   :  { %3618 = vmatpush.bf16.msrb.mxu0 %v7254_v60  ;;  %3631 = vmatpush.bf16.msrb.mxu1 %v7255_v34 }
 0x57d   :  { %3644 = vmatpush.bf16.msrb.mxu2 %v7256_v58  ;;  %3657 = vmatpush.bf16.msrb.mxu3 %v7257_v24 }
 0x57e   :  { %3619 = vmatpush.bf16.msrb.mxu0 %v7258_v6  ;;  %3632 = vmatpush.bf16.msrb.mxu1 %v7259_v18 }
 0x581   :  { %3645 = vmatpush.bf16.msrb.mxu2 %v7260_v28  ;;  %3658 = vmatpush.bf16.msrb.mxu3 %v7261_v21 }
 0x5bd   :  { %v3312_v37 = vpop.f32.mrf.mxu0  ;;  %v3325_v46 = vpop.f32.mrf.mxu1 }
 0x5be   :  { %v3355_v42 = vadd.f32 %v3312_v37, %v7262_v14  ;;  %v3356_v15 = vadd.f32 %v3325_v46, %v7263_v43  ;;  %v7274_v37 = vld [vmem:[#allocation113_spill] sm:$0xff] }
 0x5bf   :  { %v1347_v46 = vadd.f32 %v7274_v37, %v1318_v56 }
 0x5c0   :  { %v4766_v5 = vmul.f32 -1.442695, %v3355_v42  ;;  %v4767_v29 = vmul.f32 -1.442695, %v3356_v15 }
 0x5c2   :  { %5254 = vpow2.f32 %v4766_v5 }
 0x5c3   :  { %5256 = vpow2.f32 %v4767_v29 }
 0x5c4   :  { %v3338_v20 = vpop.f32.mrf.mxu2  ;;  %v3351_v40 = vpop.f32.mrf.mxu3 }
 0x5c5   :  { %v3358_v48 = vadd.f32 %v3351_v40, %v7264_v32  ;;  %v3314_v54 = vpop.f32.mrf.mxu0  ;;  %v3327_v50 = vpop.f32.mrf.mxu1  ;;  %v3357_v22 = vadd.f32 %v3338_v20, %v7269_v0 }
 0x5c7   :  { %v4768_v57 = vmul.f32 -1.442695, %v3358_v48 }
 0x5c8   :  { %v5255_v47 = vpop.eup %5254 }
 0x5c9   :  { %v5257_v62 = vpop.eup %5256  ;;  %v3423_v53 = vadd.f32 1.0, %v5255_v47  ;;  %5258 = vpow2.f32 %v4768_v57 }
 0x5ca   :  { %v3442_v38 = vadd.f32 1.0, %v5257_v62 }
 0x5cb   :  { %5260 = vrcp.f32 %v3423_v53  ;;  %v3433_v4 = vand.u32 2147483647, %v3423_v53  ;;  %v3435_v36 = vand.u32 2147483648, %v3423_v53  ;;  %vm3429_vm3 = vweird.f32 %v3423_v53 }
 0x5cc   :  { %5262 = vrcp.f32 %v3442_v38  ;;  %v3340_v16 = vpop.f32.mrf.mxu2  ;;  %v3353_v27 = vpop.f32.mrf.mxu3  ;;  %v3454_v1 = vand.u32 2147483648, %v3442_v38  ;;  %v3452_v34 = vand.u32 2147483647, %v3442_v38  ;;  %vm3448_vm2 = vweird.f32 %v3442_v38 }
 0x5cd   :  { %v3436_v6 = vor.u32 1.1754944e-38, %v3435_v36  ;;  %vm3434_vm6 = vcmp.eq.f32.partialorder %v3433_v4, 8.507059e+37 }
 0x5ce   :  { %v3455_v14 = vor.u32 1.1754944e-38, %v3454_v1  ;;  %vm3453_vm7 = vcmp.eq.f32.partialorder %v3452_v34, 8.507059e+37 }
 0x5cf   :  { %v5259_v35 = vpop.eup %5258 }
 0x5d0   :  { %v6727_v3 = vadd.f32 1.0, %v5259_v35 }
 0x5d1   :  { %v5261_v11 = vpop.eup %5260 }
 0x5d2   :  { %v5263_v12 = vpop.eup %5262  ;;  %v3425_v10 = vmul.f32 %v5261_v11, %v3423_v53  ;;  %5264 = vrcp.f32 %v6727_v3  ;;  %vm3430_vm0 = vweird.f32 %v5261_v11  ;;  %v3474_v8 = vand.u32 2147483648, %v6727_v3 }
 0x5d3   :  { %v3444_v7 = vmul.f32 %v5263_v12, %v3442_v38  ;;  %5266 = vtanh.f32 %v3357_v22  ;;  %vm3449_vm1 = vweird.f32 %v5263_v12  ;;  %vm3431_vm4 = vmor %vm3429_vm3, %vm3430_vm0  ;;  %vm3468_vm9 = vweird.f32 %v6727_v3 }
 0x5d4   :  { %v3373_v44 = vpop.f32.mrf.mxu0  ;;  %v3386_v49 = vpop.f32.mrf.mxu1  ;;  %v3426_v33 = vsub.f32 1.0, %v3425_v10  ;;  %vm3450_vm5 = vmor %vm3448_vm2, %vm3449_vm1 }
 0x5d5   :  { %v3416_v17 = vadd.f32 %v3373_v44, %v1173_v52  ;;  %v3417_v23 = vadd.f32 %v3386_v49, %v1231_v63  ;;  %v3445_v59 = vsub.f32 1.0, %v3444_v7  ;;  %v1289_v52 = vadd.f32 %v7277_v45, %v1260_v31  ;;  %v5049_v45 = vld [vmem:[#allocation8 + $0x78] sm:$0xff] }
 0x5d6   :  { %v3427_v39 = vmul.f32 %v5261_v11, %v3426_v33  ;;  %v1101_v31 = vadd.f32 %v7281_v25, %v7280_v9  ;;  %v5043_v25 = vld [vmem:[#allocation8 + $0x48] sm:$0xff] }
 0x5d7   :  { %v4769_v55 = vmul.f32 -1.442695, %v3416_v17  ;;  %v4770_v41 = vmul.f32 -1.442695, %v3417_v23  ;;  %v3446_v60 = vmul.f32 %v5263_v12, %v3445_v59 }
 0x5d8   :  { %v5265_v58 = vpop.eup %5264  ;;  %v3428_v24 = vadd.f32 %v5261_v11, %v3427_v39 }
 0x5d9   :  { %5268 = vpow2.f32 %v4769_v55  ;;  %v3447_v18 = vadd.f32 %v5263_v12, %v3446_v60  ;;  %v3464_v28 = vmul.f32 %v5265_v58, %v6727_v3  ;;  %v5267_v21 = vpop.eup %5266  ;;  %vm3469_vm8 = vweird.f32 %v5265_v58 }
 0x5da   :  { %5270 = vpow2.f32 %v4770_v41  ;;  %v3432_v42 = vsel %vm3431_vm4, %v5261_v11, %v3428_v24  ;;  %vm3470_vm10 = vmor %vm3468_vm9, %vm3469_vm8  ;;  %v3475_v11 = vor.u32 1.1754944e-38, %v3474_v8 }
 0x5db   :  { %v3399_v43 = vpop.f32.mrf.mxu2  ;;  %v3412_v15 = vpop.f32.mrf.mxu3  ;;  %v3437_v5 = vsel %vm3434_vm6, %v3436_v6, %v3432_v42  ;;  %v3451_v29 = vsel %vm3450_vm5, %v5263_v12, %v3447_v18  ;;  %v3465_v20 = vsub.f32 1.0, %v3464_v28 }
 0x5dc   :  { %v3375_v40 = vpop.f32.mrf.mxu0  ;;  %v3388_v32 = vpop.f32.mrf.mxu1  ;;  %v3456_v48 = vsel %vm3453_vm7, %v3455_v14, %v3451_v29  ;;  %v3479_v54 = vmul.f32 %v5267_v21, %v3437_v5  ;;  %v3419_v50 = vadd.f32 %v3412_v15, %v1347_v46  ;;  %v3418_v26 = vadd.f32 %v3399_v43, %v1289_v52 }
 0x5dd   :  { %v3478_v57 = vmul.f32 %v3456_v48, %v6635_v19  ;;  %v3466_v47 = vmul.f32 %v5265_v58, %v3465_v20  ;;  %v3472_v19 = vand.u32 2147483647, %v6727_v3 }
 0x5de   :  { %v4771_v53 = vmul.f32 -1.442695, %v3419_v50 }
 0x5df   :  { %v5269_v62 = vpop.eup %5268  ;;  %v6737_v16 = vadd.f32 %v3479_v54, %v3478_v57  ;;  %v3467_v51 = vadd.f32 %v5265_v58, %v3466_v47  ;;  %vm3473_vm11 = vcmp.eq.f32.partialorder %v3472_v19, 8.507059e+37  ;;  %v5040_v47 = vld [vmem:[#allocation8 + $0x30] sm:$0xff]  ;;  %v5038_v19 = vld [vmem:[#allocation8 + $0x20] sm:$0xff] }
 0x5e0   :  { %v5271_v38 = vpop.eup %5270  ;;  %v3486_v27 = vadd.f32 1.0, %v5269_v62  ;;  %5272 = vpow2.f32 %v4771_v53  ;;  %v5039_v62 = vld [vmem:[#allocation8 + $0x28] sm:$0xff] }
 0x5e1   :  { %v3505_v61 = vadd.f32 1.0, %v5271_v38  ;;  %5274 = vtanh.f32 %v6737_v16  ;;  %v3471_v22 = vsel %vm3470_vm10, %v5265_v58, %v3467_v51  ;;  %v7279_v51 = vld [vmem:[#allocation29_spill] sm:$0xff] }
 0x5e2   :  { %5276 = vrcp.f32 %v3486_v27  ;;  %v3476_v10 = vsel %vm3473_vm11, %v3475_v11, %v3471_v22  ;;  %v3498_v23 = vand.u32 2147483648, %v3486_v27  ;;  %v3496_v4 = vand.u32 2147483647, %v3486_v27  ;;  %v7282_v22 = vld [vmem:[#allocation84_spill] sm:$0xff] }
 0x5e3   :  { %v3401_v35 = vpop.f32.mrf.mxu2  ;;  %v3414_v0 = vpop.f32.mrf.mxu3  ;;  %5278 = vrcp.f32 %v3505_v61  ;;  %v3517_v59 = vand.u32 2147483648, %v3505_v61  ;;  %v3515_v39 = vand.u32 2147483647, %v3505_v61  ;;  %vm3492_vm14 = vweird.f32 %v3486_v27 }
 0x5e4   :  { %vm3511_vm15 = vweird.f32 %v3505_v61  ;;  %v3499_v60 = vor.u32 1.1754944e-38, %v3498_v23  ;;  %vm3497_vm2 = vcmp.eq.f32.partialorder %v3496_v4, 8.507059e+37  ;;  %v1130_v11 = vadd.f32 %v7282_v22, %v1101_v31  ;;  %v5047_v4 = vld [vmem:[#allocation8 + $0x68] sm:$0xff] }
 0x5e5   :  { %v3518_v24 = vor.u32 1.1754944e-38, %v3517_v59  ;;  %vm3516_vm3 = vcmp.eq.f32.partialorder %v3515_v39, 8.507059e+37 }
 0x5e6   :  { %v5273_v12 = vpop.eup %5272 }
 0x5e7   :  { %v5275_v30 = vpop.eup %5274  ;;  %v3525_v63 = vadd.f32 1.0, %v5273_v12  ;;  %v5037_v12 = vld [vmem:[#allocation8 + $0x18] sm:$0xff] }
 0x5e8   :  { %v5277_v13 = vpop.eup %5276  ;;  %v3482_v56 = vmul.f32 %v5275_v30, %v3476_v10 }
 0x5e9   :  { %v5279_v7 = vpop.eup %5278  ;;  %v3488_v44 = vmul.f32 %v5277_v13, %v3486_v27  ;;  %5280 = vrcp.f32 %v3525_v63  ;;  %vm3493_vm12 = vweird.f32 %v5277_v13  ;;  %v3537_v29 = vand.u32 2147483648, %v3525_v63  ;;  %v7278_v27 = vld [vmem:[#allocation27_spill] sm:$0xff] }
 0x5ea   :  { %v3507_v3 = vmul.f32 %v5279_v7, %v3505_v61  ;;  %v3550_v33 = vpack.c.bf16 %v3482_v56, %v3482_v56  ;;  %5282 = vtanh.f32 %v3418_v26  ;;  %vm3512_vm13 = vweird.f32 %v5279_v7  ;;  %vm3494_vm0 = vmor %vm3492_vm14, %vm3493_vm12  ;;  %v5036_v56 = vld [vmem:[#allocation8 + $0x10] sm:$0xff] }
 0x5eb   :  { %v3489_v49 = vsub.f32 1.0, %v3488_v44  ;;  %vm3513_vm1 = vmor %vm3511_vm15, %vm3512_vm13  ;;  %vm3531_vm5 = vweird.f32 %v3525_v63  ;;  %v3535_v20 = vand.u32 2147483647, %v3525_v63  ;;  %v3538_v32 = vor.u32 1.1754944e-38, %v3537_v29 }
 0x5ec   :  { %v3508_v17 = vsub.f32 1.0, %v3507_v3  ;;  %3559 = vmatmul.bf16.vlgmr.msra.gmra.mxu0 %v3550_v33  ;;  %3572 = vmatmul.bf16.vlgmr.msra.gmra.mxu1 %v3550_v33 }
 0x5ed   :  { %v3490_v1 = vmul.f32 %v5277_v13, %v3489_v49  ;;  %3585 = vmatmul.bf16.vlgmr.msra.gmra.mxu2 %v3550_v33  ;;  %3598 = vmatmul.bf16.vlgmr.msra.gmra.mxu3 %v3550_v33  ;;  %vm3536_vm7 = vcmp.eq.f32.partialorder %v3535_v20, 8.507059e+37  ;;  %v7283_v33 = vld [vmem:[#allocation28_spill] sm:$0xff]  ;;  %v7287_v20 = vld [vmem:[#allocation89_spill] sm:$0xff] }
 0x5ee   :  { %v3509_v36 = vmul.f32 %v5279_v7, %v3508_v17  ;;  %3941 = vmatpush.bf16.msra.mxu1 %v5049_v45  ;;  %v7284_v17 = vld [vmem:[#allocation79_spill] sm:$0xff] }
 0x5ef   :  { %v5281_v55 = vpop.eup %5280  ;;  %v3491_v41 = vadd.f32 %v5277_v13, %v3490_v1  ;;  %v1043_v23 = vadd.f32 %v7284_v17, %v7283_v33  ;;  %v5035_v1 = vld [vmem:[#allocation8 + $0x8] sm:$0xff] }
 0x5f0   :  { %v3510_v34 = vadd.f32 %v5279_v7, %v3509_v36  ;;  %v3527_v58 = vmul.f32 %v5281_v55, %v3525_v63  ;;  %v5283_v18 = vpop.eup %5282  ;;  %vm3532_vm4 = vweird.f32 %v5281_v55 }
 0x5f1   :  { %v3495_v6 = vsel %vm3494_vm0, %v5277_v13, %v3491_v41  ;;  %vm3533_vm6 = vmor %vm3531_vm5, %vm3532_vm4 }
 0x5f2   :  { %v3500_v28 = vsel %vm3497_vm2, %v3499_v60, %v3495_v6  ;;  %v3514_v21 = vsel %vm3513_vm1, %v5279_v7, %v3510_v34  ;;  %v3528_v37 = vsub.f32 1.0, %v3527_v58  ;;  %v5048_v7 = vld [vmem:[#allocation8 + $0x70] sm:$0xff]  ;;  %v5034_v34 = vld [vmem:[#allocation8] sm:$0xff] }
 0x5f3   :  { %v3519_v46 = vsel %vm3516_vm3, %v3518_v24, %v3514_v21  ;;  %v3542_v14 = vmul.f32 %v5283_v18, %v3500_v28  ;;  %3942 = vmatpush.bf16.msra.mxu1 %v5048_v7  ;;  %v5046_v58 = vld [vmem:[#allocation8 + $0x60] sm:$0xff] }
 0x5f4   :  { %v3541_v42 = vmul.f32 %v3519_v46, %v6657_v2  ;;  %v3529_v43 = vmul.f32 %v5281_v55, %v3528_v37  ;;  %v5041_v2 = vld [vmem:[#allocation8 + $0x38] sm:$0xff] }
 0x5f5   :  { %3928 = vmatpush.bf16.msra.mxu0 %v5041_v2 }
 0x5f6   :  { %v6747_v15 = vadd.f32 %v3542_v14, %v3541_v42  ;;  %v3530_v5 = vadd.f32 %v5281_v55, %v3529_v43  ;;  %v5045_v42 = vld [vmem:[#allocation8 + $0x58] sm:$0xff] }
 0x5f7   :  { %3943 = vmatpush.bf16.msra.mxu1 %v5047_v4 }
 0x5f8   :  { %5284 = vtanh.f32 %v6747_v15  ;;  %v3534_v40 = vsel %vm3533_vm6, %v5281_v55, %v3530_v5  ;;  %v7285_v55 = vld [vmem:[#allocation80_spill] sm:$0xff]  ;;  %v7286_v5 = vld [vmem:[#allocation85_spill] sm:$0xff] }
 0x5f9   :  { %v3539_v54 = vsel %vm3536_vm7, %v3538_v32, %v3534_v40  ;;  %3929 = vmatpush.bf16.msra.mxu0 %v5040_v47  ;;  %v1072_v41 = vadd.f32 %v7285_v55, %v1043_v23 }
 0x5fb   :  { %3944 = vmatpush.bf16.msra.mxu1 %v5046_v58 }
 0x5fd   :  { %3930 = vmatpush.bf16.msra.mxu0 %v5039_v62 }
 0x5fe   :  { %v5285_v48 = vpop.eup %5284 }
 0x5ff   :  { %v3545_v50 = vmul.f32 %v5285_v48, %v3539_v54  ;;  %3945 = vmatpush.bf16.msra.mxu1 %v5045_v42 }
 0x601   :  { %v3611_v57 = vpack.c.bf16 %v3545_v50, %v3545_v50  ;;  %3931 = vmatpush.bf16.msra.mxu0 %v5038_v19 }
 0x603   :  { %3620 = vmatmul.bf16.vlgmr.msrb.gmra.mxu0 %v3611_v57  ;;  %3633 = vmatmul.bf16.vlgmr.msrb.gmra.mxu1 %v3611_v57 }
 0x604   :  { %3646 = vmatmul.bf16.vlgmr.msrb.gmra.mxu2 %v3611_v57  ;;  %3659 = vmatmul.bf16.vlgmr.msrb.gmra.mxu3 %v3611_v57 }
 0x605   :  { %3932 = vmatpush.bf16.msra.mxu0 %v5037_v12 }
 0x609   :  { %3933 = vmatpush.bf16.msra.mxu0 %v5036_v56 }
 0x60d   :  { %3934 = vmatpush.bf16.msra.mxu0 %v5035_v1 }
 0x611   :  { %3935 = vmatpush.bf16.msra.mxu0 %v5034_v34 }
 0x669   :  { %v3560_v53 = vpop.f32.mrf.mxu0  ;;  %v3573_v38 = vpop.f32.mrf.mxu1 }
 0x66a   :  { %v3603_v61 = vadd.f32 %v3560_v53, %v7278_v27  ;;  %v3604_v8 = vadd.f32 %v3573_v38, %v7279_v51  ;;  %v5044_v38 = vld [vmem:[#allocation8 + $0x50] sm:$0xff] }
 0x66b   :  { %3946 = vmatpush.bf16.msra.mxu1 %v5044_v38 }
 0x66c   :  { %v4772_v35 = vmul.f32 -1.442695, %v3603_v61  ;;  %v4773_v0 = vmul.f32 -1.442695, %v3604_v8 }
 0x66e   :  { %5286 = vpow2.f32 %v4772_v35 }
 0x66f   :  { %5288 = vpow2.f32 %v4773_v0  ;;  %3947 = vmatpush.bf16.msra.mxu1 %v5043_v25 }
 0x670   :  { %v3586_v52 = vpop.f32.mrf.mxu2  ;;  %v3599_v30 = vpop.f32.mrf.mxu3 }
 0x671   :  { %v3606_v63 = vadd.f32 %v3599_v30, %v1130_v11  ;;  %v3562_v10 = vpop.f32.mrf.mxu0  ;;  %v3575_v13 = vpop.f32.mrf.mxu1  ;;  %v3605_v24 = vadd.f32 %v3586_v52, %v1072_v41 }
 0x672   :  { %v7288_v13 = vld [vmem:[#allocation111_spill] sm:$0xff] }
 0x673   :  { %v4774_v26 = vmul.f32 -1.442695, %v3606_v63 }
 0x674   :  { %v5287_v44 = vpop.eup %5286 }
 0x675   :  { %v5289_v3 = vpop.eup %5288  ;;  %v6755_v49 = vadd.f32 1.0, %v5287_v44  ;;  %5290 = vpow2.f32 %v4774_v26  ;;  %v5042_v44 = vld [vmem:[#allocation8 + $0x40] sm:$0xff] }
 0x676   :  { %v6759_v59 = vadd.f32 1.0, %v5289_v3  ;;  %3948 = vmatpush.bf16.msra.mxu1 %v5042_v44 }
 0x677   :  { %5292 = vrcp.f32 %v6755_v49  ;;  %v3681_v54 = vand.u32 2147483647, %v6755_v49  ;;  %v3683_v50 = vand.u32 2147483648, %v6755_v49  ;;  %vm3677_vm11 = vweird.f32 %v6755_v49 }
 0x678   :  { %5294 = vrcp.f32 %v6759_v59  ;;  %v3588_v36 = vpop.f32.mrf.mxu2  ;;  %v3601_v39 = vpop.f32.mrf.mxu3  ;;  %v3702_v48 = vand.u32 2147483648, %v6759_v59  ;;  %v3700_v53 = vand.u32 2147483647, %v6759_v59  ;;  %vm3696_vm10 = vweird.f32 %v6759_v59 }
 0x679   :  { %v3684_v51 = vor.u32 1.1754944e-38, %v3683_v50  ;;  %vm3682_vm14 = vcmp.eq.f32.partialorder %v3681_v54, 8.507059e+37 }
 0x67a   :  { %v3703_v19 = vor.u32 1.1754944e-38, %v3702_v48  ;;  %vm3701_vm15 = vcmp.eq.f32.partialorder %v3700_v53, 8.507059e+37 }
 0x67b   :  { %v5291_v60 = vpop.eup %5290 }
 0x67c   :  { %v6764_v6 = vadd.f32 1.0, %v5291_v60 }
 0x67d   :  { %v5293_v18 = vpop.eup %5292 }
 0x67e   :  { %v5295_v28 = vpop.eup %5294  ;;  %v3673_v21 = vmul.f32 %v5293_v18, %v6755_v49  ;;  %5296 = vrcp.f32 %v6764_v6  ;;  %vm3678_vm8 = vweird.f32 %v5293_v18  ;;  %v3722_v4 = vand.u32 2147483648, %v6764_v6 }
 0x67f   :  { %v3692_v37 = vmul.f32 %v5295_v28, %v6759_v59  ;;  %5298 = vtanh.f32 %v3605_v24  ;;  %vm3697_vm9 = vweird.f32 %v5295_v28  ;;  %vm3679_vm12 = vmor %vm3677_vm11, %vm3678_vm8  ;;  %vm3716_vm1 = vweird.f32 %v6764_v6 }
 0x680   :  { %v3621_v46 = vpop.f32.mrf.mxu0  ;;  %v3634_v14 = vpop.f32.mrf.mxu1  ;;  %v3674_v43 = vsub.f32 1.0, %v3673_v21  ;;  %vm3698_vm13 = vmor %vm3696_vm10, %vm3697_vm9  ;;  %v3723_v41 = vor.u32 1.1754944e-38, %v3722_v4 }
 0x681   :  { %v3664_v29 = vadd.f32 %v3621_v46, %v7286_v5  ;;  %v3665_v40 = vadd.f32 %v3634_v14, %v7287_v20  ;;  %v3693_v32 = vsub.f32 1.0, %v3692_v37 }
 0x682   :  { %v3675_v57 = vmul.f32 %v5293_v18, %v3674_v43 }
 0x683   :  { %v4775_v2 = vmul.f32 -1.442695, %v3664_v29  ;;  %v4776_v47 = vmul.f32 -1.442695, %v3665_v40  ;;  %v3694_v62 = vmul.f32 %v5295_v28, %v3693_v32 }
 0x684   :  { %v5297_v27 = vpop.eup %5296  ;;  %v3676_v61 = vadd.f32 %v5293_v18, %v3675_v57 }
 0x685   :  { %5300 = vpow2.f32 %v4775_v2  ;;  %v3695_v8 = vadd.f32 %v5295_v28, %v3694_v62  ;;  %v3712_v9 = vmul.f32 %v5297_v27, %v6764_v6  ;;  %v5299_v31 = vpop.eup %5298  ;;  %vm3717_vm0 = vweird.f32 %v5297_v27 }
 0x686   :  { %5302 = vpow2.f32 %v4776_v47  ;;  %v3680_v35 = vsel %vm3679_vm12, %v5293_v18, %v3676_v61  ;;  %vm3718_vm2 = vmor %vm3716_vm1, %vm3717_vm0 }
 0x687   :  { %v3647_v0 = vpop.f32.mrf.mxu2  ;;  %v3660_v22 = vpop.f32.mrf.mxu3  ;;  %v3685_v11 = vsel %vm3682_vm14, %v3684_v51, %v3680_v35  ;;  %v3699_v12 = vsel %vm3698_vm13, %v5295_v28, %v3695_v8  ;;  %v3713_v45 = vsub.f32 1.0, %v3712_v9  ;;  %v7289_v28 = vld [vmem:[#allocation107_spill] sm:$0xff] }
 0x688   :  { %v3623_v52 = vpop.f32.mrf.mxu0  ;;  %v3636_v30 = vpop.f32.mrf.mxu1  ;;  %v3704_v63 = vsel %vm3701_vm15, %v3703_v19, %v3699_v12  ;;  %v3727_v10 = vmul.f32 %v5299_v31, %v3685_v11  ;;  %v3667_v26 = vadd.f32 %v3660_v22, %v7288_v13  ;;  %v3666_v21 = vadd.f32 %v3647_v0, %v7289_v28 }
 0x689   :  { %v3726_v56 = vmul.f32 %v3704_v63, %v6737_v16  ;;  %v3714_v7 = vmul.f32 %v5297_v27, %v3713_v45  ;;  %v3720_v16 = vand.u32 2147483647, %v6764_v6 }
 0x68a   :  { %v4777_v49 = vmul.f32 -1.442695, %v3667_v26 }
 0x68b   :  { %v5301_v3 = vpop.eup %5300  ;;  %v3728_v17 = vadd.f32 %v3727_v10, %v3726_v56  ;;  %v3715_v1 = vadd.f32 %v5297_v27, %v3714_v7  ;;  %vm3721_vm3 = vcmp.eq.f32.partialorder %v3720_v16, 8.507059e+37 }
 0x68c   :  { %v5303_v33 = vpop.eup %5302  ;;  %v3734_v23 = vadd.f32 1.0, %v5301_v3  ;;  %5304 = vpow2.f32 %v4777_v49 }
 0x68d   :  { %v3753_v59 = vadd.f32 1.0, %v5303_v33  ;;  %5306 = vtanh.f32 %v3728_v17  ;;  %v3719_v55 = vsel %vm3718_vm2, %v5297_v27, %v3715_v1 }
 0x68e   :  { %5308 = vrcp.f32 %v3734_v23  ;;  %v3724_v24 = vsel %vm3721_vm3, %v3723_v41, %v3719_v55  ;;  %v3746_v29 = vand.u32 2147483648, %v3734_v23  ;;  %v3744_v32 = vand.u32 2147483647, %v3734_v23 }
 0x68f   :  { %v3649_v36 = vpop.f32.mrf.mxu2  ;;  %v3662_v39 = vpop.f32.mrf.mxu3  ;;  %5310 = vrcp.f32 %v3753_v59  ;;  %v3765_v20 = vand.u32 2147483648, %v3753_v59  ;;  %v3763_v54 = vand.u32 2147483647, %v3753_v59  ;;  %vm3740_vm6 = vweird.f32 %v3734_v23 }
 0x690   :  { %vm3759_vm7 = vweird.f32 %v3753_v59  ;;  %v3747_v2 = vor.u32 1.1754944e-38, %v3746_v29  ;;  %vm3745_vm10 = vcmp.eq.f32.partialorder %v3744_v32, 8.507059e+37 }
 0x691   :  { %v3766_v53 = vor.u32 1.1754944e-38, %v3765_v20  ;;  %vm3764_vm11 = vcmp.eq.f32.partialorder %v3763_v54, 8.507059e+37 }
 0x692   :  { %v5305_v60 = vpop.eup %5304 }
 0x693   :  { %v5307_v34 = vpop.eup %5306  ;;  %v3773_v58 = vadd.f32 1.0, %v5305_v60 }
 0x694   :  { %v5309_v18 = vpop.eup %5308  ;;  %v3730_v37 = vmul.f32 %v5307_v34, %v3724_v24 }
 0x695   :  { %v5311_v46 = vpop.eup %5310  ;;  %v3736_v14 = vmul.f32 %v5309_v18, %v3734_v23  ;;  %5312 = vrcp.f32 %v3773_v58  ;;  %vm3741_vm4 = vweird.f32 %v5309_v18  ;;  %v3785_v22 = vand.u32 2147483648, %v3773_v58 }
 0x696   :  { %v3755_v6 = vmul.f32 %v5311_v46, %v3753_v59  ;;  %v3794_v43 = vpack.c.bf16 %v3730_v37, %v3730_v37  ;;  %5314 = vtanh.f32 %v3666_v21  ;;  %vm3760_vm5 = vweird.f32 %v5311_v46  ;;  %vm3742_vm8 = vmor %vm3740_vm6, %vm3741_vm4 }
 0x697   :  { %v3737_v42 = vsub.f32 1.0, %v3736_v14  ;;  %vm3761_vm9 = vmor %vm3759_vm7, %vm3760_vm5  ;;  %vm3779_vm13 = vweird.f32 %v3773_v58  ;;  %v3783_v11 = vand.u32 2147483647, %v3773_v58  ;;  %v3786_v45 = vor.u32 1.1754944e-38, %v3785_v22 }
 0x698   :  { %v3756_v5 = vsub.f32 1.0, %v3755_v6  ;;  %3936 = vmatmul.bf16.vlgmr.msra.gmra.mxu0 %v3794_v43 }
 0x699   :  { %v3738_v40 = vmul.f32 %v5309_v18, %v3737_v42  ;;  %vm3784_vm15 = vcmp.eq.f32.partialorder %v3783_v11, 8.507059e+37 }
 0x69a   :  { %v3757_v48 = vmul.f32 %v5311_v46, %v3756_v5 }
 0x69b   :  { %v5313_v50 = vpop.eup %5312  ;;  %v3739_v57 = vadd.f32 %v5309_v18, %v3738_v40 }
 0x69c   :  { %v3758_v47 = vadd.f32 %v5311_v46, %v3757_v48  ;;  %v3775_v62 = vmul.f32 %v5313_v50, %v3773_v58  ;;  %v5315_v27 = vpop.eup %5314  ;;  %vm3780_vm12 = vweird.f32 %v5313_v50 }
 0x69d   :  { %v3743_v38 = vsel %vm3742_vm8, %v5309_v18, %v3739_v57  ;;  %vm3781_vm14 = vmor %vm3779_vm13, %vm3780_vm12 }
 0x69e   :  { %v3748_v61 = vsel %vm3745_vm10, %v3747_v2, %v3743_v38  ;;  %v3762_v51 = vsel %vm3761_vm9, %v5311_v46, %v3758_v47  ;;  %v3776_v8 = vsub.f32 1.0, %v3775_v62 }
 0x69f   :  { %v3767_v9 = vsel %vm3764_vm11, %v3766_v53, %v3762_v51  ;;  %v3790_v25 = vmul.f32 %v5315_v27, %v3748_v61 }
 0x6a0   :  { %v3789_v31 = vmul.f32 %v3767_v9, %v6747_v15  ;;  %v3777_v19 = vmul.f32 %v5313_v50, %v3776_v8  ;;  %v5061_v15 = vld [vmem:[%s6798_s6] ss:$0 sm:$0xff] }
 0x6a2   :  { %v3791_v35 = vadd.f32 %v3790_v25, %v3789_v31  ;;  %v3778_v0 = vadd.f32 %v5313_v50, %v3777_v19 }
 0x6a4   :  { %5316 = vtanh.f32 %v3791_v35  ;;  %v3782_v12 = vsel %vm3781_vm14, %v5313_v50, %v3778_v0 }
 0x6a5   :  { %v3787_v30 = vsel %vm3784_vm15, %v3786_v45, %v3782_v12 }
 0x6aa   :  { %v5317_v52 = vpop.eup %5316 }
 0x6ab   :  { %v3793_v63 = vmul.f32 %v5317_v52, %v3787_v30 }
 0x6ad   :  { %v3795_v10 = vpack.c.bf16 %v3793_v63, %v3793_v63 }
 0x6af   :  { %3949 = vmatmul.bf16.vlgmr.msra.gmra.mxu1 %v3795_v10 }
 0x715   :  { %v3937_v13 = vpop.f32.mrf.mxu0 }
 0x716   :  { %v3938_v56 = vadd.f32 %v5061_v15, %v3937_v13 }
 0x71d   :  { %v3939_v26 = vpop.f32.mrf.mxu0 }
 0x72c   :  { %v3950_v7 = vpop.f32.mrf.mxu1 }
 0x72d   :  { %v3951_v44 = vadd.f32 %v3950_v7, %v3938_v56 }
 0x72f   :  { %3954 = vst [vmem:[%s6799_s7] sm:$0xff] %v3951_v44 }
 0x734   :  { %v3952_v3 = vpop.f32.mrf.mxu1 }
 0x735   :  { %3959 = vsyncpa [#allocation4], 1 }
 0x736   :  { %3960 = vsyncpa [#allocation6], 1 }
 0x737   :  { %3961 = vsyncpa [#allocation9], 1 }

</bundles_post_ra>
